<compile_context>
chip_gen: v7x
topology: tpu7x:2x2x1
jax: 0.10.0
libtpu: 0.0.40
codegen_flags: <defaults>
</compile_context>

<pallas_src>
import math
import functools

import numpy as np
import jax
import jax.numpy as jnp
from jax import lax
from jax.experimental import pallas as pl
from jax.experimental.pallas import tpu as pltpu


def _pconv_kernel(aug_ref, w_ref, b_ref, out_ref, umask_ref, patch_ref, *,
                  ksize, wp, td, l_valid, l_pad, ca_pad, slide_winsize):
    """One (batch, depth-tile) grid step.

    aug_ref   : (1, Dp, Ca_pad, Hp*Wp) bf16  fused input (x*mask chans, mask-sum, zero pad)
    w_ref     : (Cout+1, kvol*Ca_pad)  bf16  augmented weight (last row = mask-count ones)
    b_ref     : (Cout, 1)              f32
    out_ref   : (1, 1, Cout, td*l_pad) f32   dot-layout output slab (unmangled in wrapper)
    umask_ref : (1, 1, 1,    td*l_pad) f32
    patch_ref : VMEM (kvol*Ca_pad, td*l_pad) bf16 im2col patch; one 128-aligned lane block
                per output depth row of the tile.
    """
    kD, kH, kW = ksize
    Cout = out_ref.shape[2]
    j = pl.program_id(1)
    d0 = j * td

    # Lane blocks [r*l_pad + l_valid, (r+1)*l_pad) are never written by the tap copies; zero
    # them once so the (later-cropped) padding lanes stay finite and deterministic.  Garbage
    # there would only ever land in cropped output lanes, so this is tidiness, not safety.
    @pl.when((pl.program_id(0) == 0) & (j == 0))
    def _():
        patch_ref[...] = jnp.zeros_like(patch_ref)

    # im2col: for each output depth row r of the tile and each (kh, kw) tap column, copy the
    # kD depth tap planes in one aligned (kD*Ca_pad, L) slab.  All patch offsets are static;
    # only the depth start (a non-tiled major dim of aug_ref) is dynamic.
    ckd = kD * ca_pad                            # rows per (kh, kw) column group
    for r in range(td):
        lane0 = r * l_pad                        # static, 128-aligned
        for kh in range(kH):
            for kw in range(kW):
                tc = kh * kW + kw
                off = kh * wp + kw
                src = aug_ref[0, pl.ds(d0 + r, kD), :, off:off + l_valid]   # (kD, Ca, L)
                patch_ref[tc * ckd:(tc + 1) * ckd, lane0:lane0 + l_valid] = (
                    src.reshape(ckd, l_valid))

    # One MXU contraction for the whole tile: (Cout+1, K_aug) x (K_aug, td*l_pad).
    accs = jnp.dot(w_ref[...], patch_ref[...],
                   preferred_element_type=jnp.float32)        # (Cout+1, td*l_pad) f32
    raw = accs[0:Cout]                           # conv(x*mask, W), no bias
    msum = accs[Cout:Cout + 1]                   # mask-window counts (exact integers)

    # PartialConv renormalization, all f32 (exact divide; the approx reciprocal cost nothing
    # but accuracy here).
    ratio = slide_winsize / (msum + 1e-8)
    uclamp = jnp.clip(msum, 0.0, 1.0)
    ratio = ratio * uclamp
    out = (raw * ratio + b_ref[...]) * uclamp    # (Cout, td*l_pad)

    # One fully lane/sublane-dense store per tile for each output.
    out_ref[0, 0, :, :] = out.astype(out_ref.dtype)
    umask_ref[0, 0, :, :] = uclamp.astype(umask_ref.dtype)


def pconv_forward(x, mask, weight, bias, *, stride=1, padding=0):
    """PConv forward. x, mask: (N,Cin,D,H,W); weight: (Cout,Cin,kD,kH,kW); bias: (Cout,).
    Returns (output, update_mask), both (N,Cout,Do,Ho,Wo)."""
    N, Cin, D, H, W = x.shape
    Cout, _, kD, kH, kW = weight.shape
    s = (stride,) * 3 if isinstance(stride, int) else tuple(stride)
    p = (padding,) * 3 if isinstance(padding, int) else tuple(padding)
    if s != (1, 1, 1):
        # TODO(synk): strided PConv not implemented in the Pallas fast path.
        raise NotImplementedError("pconv_forward Pallas kernel supports stride=1 only")

    Dp, Hp, Wp = D + 2 * p[0], H + 2 * p[1], W + 2 * p[2]
    Do, Ho, Wo = Dp - kD + 1, Hp - kH + 1, Wp - kW + 1

    s_row = Ho * Wp                              # flat (H, W) row width of a depth plane
    L = (Ho - 1) * Wp + Wo                       # valid flat-shift extent per depth row
    l_pad = ((max(L, s_row) + 127) // 128) * 128 # 128-aligned per-row lane block
    Ca_pad = max(8, ((Cin + 1 + 7) // 8) * 8)    # augmented channels padded to sublane group
    kvol = kD * kH * kW
    K_aug = kvol * Ca_pad
    slide_winsize = float(Cin * kvol)

    # Fused augmented input: [x*mask (Cin), per-voxel mask-sum (1), zero pad] as ONE bf16
    # array laid out (N, Dp, Ca_pad, Hp*Wp) so channels sit on the sublane dim.
    msum_c = jnp.sum(mask, axis=1, keepdims=True)             # integer <= Cin, exact in bf16
    zpad = jnp.zeros((N, Ca_pad - Cin - 1, D, H, W), x.dtype)
    aug = jnp.concatenate([x * mask, msum_c, zpad], axis=1)   # (N, Ca_pad, D, H, W)
    aug = jnp.pad(aug, ((0, 0), (0, 0), (p[0], p[0]), (p[1], p[1]), (p[2], p[2])))
    aug = jnp.transpose(aug, (0, 2, 1, 3, 4)).astype(jnp.bfloat16)
    aug = aug.reshape(N, Dp, Ca_pad, Hp * Wp)

    # Augmented weight (Cout+1, kvol*Ca_pad).  Tap order (kh, kw, kd), channel-fastest, to
    # match the kernel's fused kD-plane copies.  Extra input channel = mask-sum; extra output
    # row = all-ones -> the same matmul also produces the mask-window counts.
    w_perm = jnp.transpose(weight, (0, 3, 4, 2, 1)).reshape(Cout, kvol, Cin)
    pad_c = Ca_pad - Cin - 1
    w_top = jnp.concatenate(
        [w_perm, jnp.zeros((Cout, kvol, 1 + pad_c), w_perm.dtype)], axis=-1)
    w_bot = jnp.concatenate(
        [jnp.zeros((1, kvol, Cin), w_perm.dtype),
         jnp.ones((1, kvol, 1), w_perm.dtype),
         jnp.zeros((1, kvol, pad_c), w_perm.dtype)], axis=-1)
    w_aug = jnp.concatenate([w_top, w_bot], axis=0).reshape(
        Cout + 1, K_aug).astype(jnp.bfloat16)

    b2 = bias.reshape(Cout, 1).astype(jnp.float32)

    # Depth tiling: td output rows per grid step (8-sublane friendly, >= 2 tiles per batch
    # element at these shapes so both v7x TensorCores get work).
    td = 8 if (Do % 8 == 0 and Do >= 8) else Do
    n_dt = Do // td

    kernel = functools.partial(
        _pconv_kernel, ksize=(kD, kH, kW), wp=Wp, td=td, l_valid=L, l_pad=l_pad,
        ca_pad=Ca_pad, slide_winsize=slide_winsize)

    flops = int(2 * N * Do * l_pad * (Cout + 1) * K_aug)
    bytes_accessed = int(aug.size * 2 + w_aug.size * 2
                         + N * n_dt * (Cout + 1) * td * l_pad * 4)
    cost = pl.CostEstimate(flops=flops, transcendentals=0, bytes_accessed=bytes_accessed)

    out_p, um_p = pl.pallas_call(
        kernel,
        out_shape=(jax.ShapeDtypeStruct((N, n_dt, Cout, td * l_pad), jnp.float32),
                   jax.ShapeDtypeStruct((N, n_dt, 1, td * l_pad), jnp.float32)),
        grid_spec=pltpu.PrefetchScalarGridSpec(
            num_scalar_prefetch=0,
            grid=(N, n_dt),
            in_specs=[
                # TODO(synk): for production volumes, switch to memory_space=pl.ANY plus
                # manual depth-slab DMA (or pipeline_mode=pl.Buffered(1)) so VMEM scales
                # with td instead of Dp (matters on v7x's 64 MiB VMEM).
                pl.BlockSpec((1, Dp, Ca_pad, Hp * Wp), lambda n, j: (n, 0, 0, 0)),
                pl.BlockSpec((Cout + 1, K_aug), lambda n, j: (0, 0)),
                pl.BlockSpec((Cout, 1), lambda n, j: (0, 0)),
            ],
            out_specs=[
                pl.BlockSpec((1, 1, Cout, td * l_pad), lambda n, j: (n, j, 0, 0)),
                pl.BlockSpec((1, 1, 1, td * l_pad), lambda n, j: (n, j, 0, 0)),
            ],
            scratch_shapes=[pltpu.VMEM((K_aug, td * l_pad), jnp.bfloat16)],
        ),
        compiler_params=pltpu.CompilerParams(
            dimension_semantics=("parallel", "parallel")),
        cost_estimate=cost,
    )(aug, w_aug, b2)

    # Un-mangle the dot-shaped output: (N, n_dt, C, td*l_pad) -> NCDHW, crop the lane padding
    # and the W margin (all cheap layout plumbing on the wrapper side).
    out = out_p.reshape(N, n_dt, Cout, td, l_pad).transpose(0, 2, 1, 3, 4)
    out = out.reshape(N, Cout, Do, l_pad)[..., :s_row]
    out = out.reshape(N, Cout, Do, Ho, Wp)[..., :Wo]
    um = um_p.reshape(N, n_dt, 1, td, l_pad).transpose(0, 2, 1, 3, 4)
    um = um.reshape(N, 1, Do, l_pad)[..., :s_row]
    um = um.reshape(N, 1, Do, Ho, Wp)[..., :Wo]
    um = jnp.broadcast_to(um, (N, Cout, Do, Ho, Wo))
    return out, um


def _reference_pconv(x, mask, weight, bias, stride, padding):
    """Pure-JAX reference of PartialConv3d(multi_channel=True, return_mask=True)."""
    dn = jax.lax.conv_dimension_numbers(x.shape, weight.shape, ('NCDHW', 'OIDHW', 'NCDHW'))
    strides = (stride,) * 3
    pads = [(padding, padding)] * 3
    prec = jax.lax.Precision.HIGHEST
    raw = jax.lax.conv_general_dilated(x * mask, weight, strides, pads,
                                       dimension_numbers=dn, precision=prec)
    bv = bias.reshape(1, -1, 1, 1, 1)
    raw = raw + bv
    um = jax.lax.conv_general_dilated(mask, jnp.ones_like(weight), strides, pads,
                                      dimension_numbers=dn, precision=prec)
    slide = float(weight.shape[1] * weight.shape[2] * weight.shape[3] * weight.shape[4])
    ratio = slide / (um + 1e-8)
    umc = jnp.clip(um, 0.0, 1.0)
    ratio = ratio * umc
    out = ((raw - bv) * ratio + bv) * umc
    return out, umc


if __name__ == "__main__":
    # PConv(in_channels=4, out_channels=8, kernel_size=3, stride=1, padding=1, bias=True)
    N, Cin, Cout = 2, 4, 8
    D = H = W = 16
    k, stride, padding = 3, 1, 1

    key = jax.random.PRNGKey(0)
    k_w, k_x, k_m = jax.random.split(key, 3)

    # MSRA / kaiming_normal_ init (fan_in mode, gain=sqrt(2)), bias = 0.
    fan_in = Cin * k * k * k
    std = math.sqrt(2.0 / fan_in)
    weight = jax.random.normal(k_w, (Cout, Cin, k, k, k), jnp.float32) * std
    bias = jnp.zeros((Cout,), jnp.float32)

    x = jax.random.normal(k_x, (N, Cin, D, H, W), jnp.float32)
    mask_in = (jax.random.uniform(k_m, (N, Cin, D, H, W)) > 0.3).astype(jnp.float32)

    out, update_mask = pconv_forward(x, mask_in, weight, bias, stride=stride, padding=padding)
    out, update_mask = jax.block_until_ready((out, update_mask))

    # (a) Kernel-math check: a reference with the same bf16 input/weight quantization as the
    #     fast path; this isolates the kernel logic from the intentional precision choice.
    xq = x.astype(jnp.bfloat16).astype(jnp.float32)
    wq = weight.astype(jnp.bfloat16).astype(jnp.float32)
    ref_out_q, ref_um_q = _reference_pconv(xq, mask_in, wq, bias, stride, padding)
    np.testing.assert_allclose(np.asarray(out), np.asarray(ref_out_q), rtol=1e-2, atol=1e-2)
    np.testing.assert_allclose(np.asarray(update_mask), np.asarray(ref_um_q),
                               rtol=1e-5, atol=1e-5)

    # (b) End-to-end check against the full-f32 reference; tolerance covers the documented
    #     bf16 input/weight quantization of the fast path.
    ref_out, ref_umask = _reference_pconv(x, mask_in, weight, bias, stride, padding)
    np.testing.assert_allclose(np.asarray(out), np.asarray(ref_out), rtol=5e-2, atol=5e-2)
    np.testing.assert_allclose(np.asarray(update_mask), np.asarray(ref_umask),
                               rtol=1e-5, atol=1e-5)

    print("KERNEL_OK")
</pallas_src>

<mosaic_0001>
module attributes {stable_mosaic.version = 11 : i64} {
  func.func @_pconv_kernel(%arg0: i32, %arg1: i32, %arg2: memref<1x18x8x324xbf16, #tpu.memory_space<vmem>>, %arg3: memref<9x216xbf16, #tpu.memory_space<vmem>>, %arg4: memref<8x1xf32, #tpu.memory_space<vmem>>, %arg5: memref<1x1x8x3072xf32, #tpu.memory_space<vmem>>, %arg6: memref<1x1x1x3072xf32, #tpu.memory_space<vmem>>, %arg7: memref<216x3072xbf16, #tpu.memory_space<vmem>>) attributes {dimension_semantics = [#tpu.dimension_semantics<parallel>, #tpu.dimension_semantics<parallel>], iteration_bounds = array<i64: 2, 2>, scalar_prefetch = 0 : i64, scratch_operands = 1 : i64, tpu.core_type = #tpu.core_type<tc>, window_params = [{transform_indices = @transform_0, window_bounds = array<i64: 1, 18, 8, 324>}, {pipeline_mode = #tpu.pipeline_mode<synchronous>, transform_indices = @transform_1, window_bounds = array<i64: 9, 216>}, {pipeline_mode = #tpu.pipeline_mode<synchronous>, transform_indices = @transform_2, window_bounds = array<i64: 8, 1>}, {transform_indices = @transform_3, window_bounds = array<i64: 1, 1, 8, 3072>}, {transform_indices = @transform_4, window_bounds = array<i64: 1, 1, 1, 3072>}]} {
    %c8_i32 = arith.constant 8 : i32
    %0 = arith.muli %arg1, %c8_i32 : i32
    %c0_i32 = arith.constant 0 : i32
    %1 = arith.cmpi eq, %arg0, %c0_i32 : i32
    %c0_i32_0 = arith.constant 0 : i32
    %2 = arith.cmpi eq, %arg1, %c0_i32_0 : i32
    %3 = arith.andi %1, %2 : i1
    %4 = arith.extui %3 : i1 to i32
    %c0_i32_1 = arith.constant 0 : i32
    %5 = arith.cmpi ne, %4, %c0_i32_1 : i32
    scf.if %5 {
      %cst_421 = arith.constant 0.000000e+00 : bf16
      %465 = vector.broadcast %cst_421 : bf16 to vector<216x3072xbf16>
      %c0_422 = arith.constant 0 : index
      %c0_423 = arith.constant 0 : index
      %466 = vector.load %arg7[%c0_422, %c0_423] : memref<216x3072xbf16, #tpu.memory_space<vmem>>, vector<216x3072xbf16>
      tpu.vector_store %arg7[%c0_422, %c0_423], %465 {strides = array<i32>} : memref<216x3072xbf16, #tpu.memory_space<vmem>>, vector<216x3072xbf16>,
    } else {
    }
    %c0_i32_2 = arith.constant 0 : i32
    %6 = arith.addi %0, %c0_i32_2 : i32
    %c0 = arith.constant 0 : index
    %7 = arith.index_cast %6 : i32 to index
    %c0_3 = arith.constant 0 : index
    %c0_4 = arith.constant 0 : index
    %8 = vector.load %arg2[%c0, %7, %c0_3, %c0_4] : memref<1x18x8x324xbf16, #tpu.memory_space<vmem>>, vector<1x3x8x286xbf16>
    %9 = vector.shape_cast %8 : vector<1x3x8x286xbf16> to vector<3x8x286xbf16>
    %10 = vector.shape_cast %9 : vector<3x8x286xbf16> to vector<24x286xbf16>
    %c0_5 = arith.constant 0 : index
    %c0_6 = arith.constant 0 : index
    %11 = vector.load %arg7[%c0_5, %c0_6] : memref<216x3072xbf16, #tpu.memory_space<vmem>>, vector<24x286xbf16>
    tpu.vector_store %arg7[%c0_5, %c0_6], %10 {strides = array<i32>} : memref<216x3072xbf16, #tpu.memory_space<vmem>>, vector<24x286xbf16>,
    %c0_i32_7 = arith.constant 0 : i32
    %12 = arith.addi %0, %c0_i32_7 : i32
    %c0_8 = arith.constant 0 : index
    %13 = arith.index_cast %12 : i32 to index
    %c0_9 = arith.constant 0 : index
    %c1 = arith.constant 1 : index
    %14 = vector.load %arg2[%c0_8, %13, %c0_9, %c1] : memref<1x18x8x324xbf16, #tpu.memory_space<vmem>>, vector<1x3x8x286xbf16>
    %15 = vector.shape_cast %14 : vector<1x3x8x286xbf16> to vector<3x8x286xbf16>
    %16 = vector.shape_cast %15 : vector<3x8x286xbf16> to vector<24x286xbf16>
    %c24 = arith.constant 24 : index
    %c0_10 = arith.constant 0 : index
    %17 = vector.load %arg7[%c24, %c0_10] : memref<216x3072xbf16, #tpu.memory_space<vmem>>, vector<24x286xbf16>
    tpu.vector_store %arg7[%c24, %c0_10], %16 {strides = array<i32>} : memref<216x3072xbf16, #tpu.memory_space<vmem>>, vector<24x286xbf16>,
    %c0_i32_11 = arith.constant 0 : i32
    %18 = arith.addi %0, %c0_i32_11 : i32
    %c0_12 = arith.constant 0 : index
    %19 = arith.index_cast %18 : i32 to index
    %c0_13 = arith.constant 0 : index
    %c2 = arith.constant 2 : index
    %20 = vector.load %arg2[%c0_12, %19, %c0_13, %c2] : memref<1x18x8x324xbf16, #tpu.memory_space<vmem>>, vector<1x3x8x286xbf16>
    %21 = vector.shape_cast %20 : vector<1x3x8x286xbf16> to vector<3x8x286xbf16>
    %22 = vector.shape_cast %21 : vector<3x8x286xbf16> to vector<24x286xbf16>
    %c48 = arith.constant 48 : index
    %c0_14 = arith.constant 0 : index
    %23 = vector.load %arg7[%c48, %c0_14] : memref<216x3072xbf16, #tpu.memory_space<vmem>>, vector<24x286xbf16>
    tpu.vector_store %arg7[%c48, %c0_14], %22 {strides = array<i32>} : memref<216x3072xbf16, #tpu.memory_space<vmem>>, vector<24x286xbf16>,
    %c0_i32_15 = arith.constant 0 : i32
    %24 = arith.addi %0, %c0_i32_15 : i32
    %c0_16 = arith.constant 0 : index
    %25 = arith.index_cast %24 : i32 to index
    %c0_17 = arith.constant 0 : index
    %c18 = arith.constant 18 : index
    %26 = vector.load %arg2[%c0_16, %25, %c0_17, %c18] : memref<1x18x8x324xbf16, #tpu.memory_space<vmem>>, vector<1x3x8x286xbf16>
    %27 = vector.shape_cast %26 : vector<1x3x8x286xbf16> to vector<3x8x286xbf16>
    %28 = vector.shape_cast %27 : vector<3x8x286xbf16> to vector<24x286xbf16>
    %c72 = arith.constant 72 : index
    %c0_18 = arith.constant 0 : index
    %29 = vector.load %arg7[%c72, %c0_18] : memref<216x3072xbf16, #tpu.memory_space<vmem>>, vector<24x286xbf16>
    tpu.vector_store %arg7[%c72, %c0_18], %28 {strides = array<i32>} : memref<216x3072xbf16, #tpu.memory_space<vmem>>, vector<24x286xbf16>,
    %c0_i32_19 = arith.constant 0 : i32
    %30 = arith.addi %0, %c0_i32_19 : i32
    %c0_20 = arith.constant 0 : index
    %31 = arith.index_cast %30 : i32 to index
    %c0_21 = arith.constant 0 : index
    %c19 = arith.constant 19 : index
    %32 = vector.load %arg2[%c0_20, %31, %c0_21, %c19] : memref<1x18x8x324xbf16, #tpu.memory_space<vmem>>, vector<1x3x8x286xbf16>
    %33 = vector.shape_cast %32 : vector<1x3x8x286xbf16> to vector<3x8x286xbf16>
    %34 = vector.shape_cast %33 : vector<3x8x286xbf16> to vector<24x286xbf16>
    %c96 = arith.constant 96 : index
    %c0_22 = arith.constant 0 : index
    %35 = vector.load %arg7[%c96, %c0_22] : memref<216x3072xbf16, #tpu.memory_space<vmem>>, vector<24x286xbf16>
    tpu.vector_store %arg7[%c96, %c0_22], %34 {strides = array<i32>} : memref<216x3072xbf16, #tpu.memory_space<vmem>>, vector<24x286xbf16>,
    %c0_i32_23 = arith.constant 0 : i32
    %36 = arith.addi %0, %c0_i32_23 : i32
    %c0_24 = arith.constant 0 : index
    %37 = arith.index_cast %36 : i32 to index
    %c0_25 = arith.constant 0 : index
    %c20 = arith.constant 20 : index
    %38 = vector.load %arg2[%c0_24, %37, %c0_25, %c20] : memref<1x18x8x324xbf16, #tpu.memory_space<vmem>>, vector<1x3x8x286xbf16>
    %39 = vector.shape_cast %38 : vector<1x3x8x286xbf16> to vector<3x8x286xbf16>
    %40 = vector.shape_cast %39 : vector<3x8x286xbf16> to vector<24x286xbf16>
    %c120 = arith.constant 120 : index
    %c0_26 = arith.constant 0 : index
    %41 = vector.load %arg7[%c120, %c0_26] : memref<216x3072xbf16, #tpu.memory_space<vmem>>, vector<24x286xbf16>
    tpu.vector_store %arg7[%c120, %c0_26], %40 {strides = array<i32>} : memref<216x3072xbf16, #tpu.memory_space<vmem>>, vector<24x286xbf16>,
    %c0_i32_27 = arith.constant 0 : i32
    %42 = arith.addi %0, %c0_i32_27 : i32
    %c0_28 = arith.constant 0 : index
    %43 = arith.index_cast %42 : i32 to index
    %c0_29 = arith.constant 0 : index
    %c36 = arith.constant 36 : index
    %44 = vector.load %arg2[%c0_28, %43, %c0_29, %c36] : memref<1x18x8x324xbf16, #tpu.memory_space<vmem>>, vector<1x3x8x286xbf16>
    %45 = vector.shape_cast %44 : vector<1x3x8x286xbf16> to vector<3x8x286xbf16>
    %46 = vector.shape_cast %45 : vector<3x8x286xbf16> to vector<24x286xbf16>
    %c144 = arith.constant 144 : index
    %c0_30 = arith.constant 0 : index
    %47 = vector.load %arg7[%c144, %c0_30] : memref<216x3072xbf16, #tpu.memory_space<vmem>>, vector<24x286xbf16>
    tpu.vector_store %arg7[%c144, %c0_30], %46 {strides = array<i32>} : memref<216x3072xbf16, #tpu.memory_space<vmem>>, vector<24x286xbf16>,
    %c0_i32_31 = arith.constant 0 : i32
    %48 = arith.addi %0, %c0_i32_31 : i32
    %c0_32 = arith.constant 0 : index
    %49 = arith.index_cast %48 : i32 to index
    %c0_33 = arith.constant 0 : index
    %c37 = arith.constant 37 : index
    %50 = vector.load %arg2[%c0_32, %49, %c0_33, %c37] : memref<1x18x8x324xbf16, #tpu.memory_space<vmem>>, vector<1x3x8x286xbf16>
    %51 = vector.shape_cast %50 : vector<1x3x8x286xbf16> to vector<3x8x286xbf16>
    %52 = vector.shape_cast %51 : vector<3x8x286xbf16> to vector<24x286xbf16>
    %c168 = arith.constant 168 : index
    %c0_34 = arith.constant 0 : index
    %53 = vector.load %arg7[%c168, %c0_34] : memref<216x3072xbf16, #tpu.memory_space<vmem>>, vector<24x286xbf16>
    tpu.vector_store %arg7[%c168, %c0_34], %52 {strides = array<i32>} : memref<216x3072xbf16, #tpu.memory_space<vmem>>, vector<24x286xbf16>,
    %c0_i32_35 = arith.constant 0 : i32
    %54 = arith.addi %0, %c0_i32_35 : i32
    %c0_36 = arith.constant 0 : index
    %55 = arith.index_cast %54 : i32 to index
    %c0_37 = arith.constant 0 : index
    %c38 = arith.constant 38 : index
    %56 = vector.load %arg2[%c0_36, %55, %c0_37, %c38] : memref<1x18x8x324xbf16, #tpu.memory_space<vmem>>, vector<1x3x8x286xbf16>
    %57 = vector.shape_cast %56 : vector<1x3x8x286xbf16> to vector<3x8x286xbf16>
    %58 = vector.shape_cast %57 : vector<3x8x286xbf16> to vector<24x286xbf16>
    %c192 = arith.constant 192 : index
    %c0_38 = arith.constant 0 : index
    %59 = vector.load %arg7[%c192, %c0_38] : memref<216x3072xbf16, #tpu.memory_space<vmem>>, vector<24x286xbf16>
    tpu.vector_store %arg7[%c192, %c0_38], %58 {strides = array<i32>} : memref<216x3072xbf16, #tpu.memory_space<vmem>>, vector<24x286xbf16>,
    %c1_i32 = arith.constant 1 : i32
    %60 = arith.addi %0, %c1_i32 : i32
    %c0_39 = arith.constant 0 : index
    %61 = arith.index_cast %60 : i32 to index
    %c0_40 = arith.constant 0 : index
    %c0_41 = arith.constant 0 : index
    %62 = vector.load %arg2[%c0_39, %61, %c0_40, %c0_41] : memref<1x18x8x324xbf16, #tpu.memory_space<vmem>>, vector<1x3x8x286xbf16>
    %63 = vector.shape_cast %62 : vector<1x3x8x286xbf16> to vector<3x8x286xbf16>
    %64 = vector.shape_cast %63 : vector<3x8x286xbf16> to vector<24x286xbf16>
    %c0_42 = arith.constant 0 : index
    %c384 = arith.constant 384 : index
    %65 = vector.load %arg7[%c0_42, %c384] : memref<216x3072xbf16, #tpu.memory_space<vmem>>, vector<24x286xbf16>
    tpu.vector_store %arg7[%c0_42, %c384], %64 {strides = array<i32>} : memref<216x3072xbf16, #tpu.memory_space<vmem>>, vector<24x286xbf16>,
    %c1_i32_43 = arith.constant 1 : i32
    %66 = arith.addi %0, %c1_i32_43 : i32
    %c0_44 = arith.constant 0 : index
    %67 = arith.index_cast %66 : i32 to index
    %c0_45 = arith.constant 0 : index
    %c1_46 = arith.constant 1 : index
    %68 = vector.load %arg2[%c0_44, %67, %c0_45, %c1_46] : memref<1x18x8x324xbf16, #tpu.memory_space<vmem>>, vector<1x3x8x286xbf16>
    %69 = vector.shape_cast %68 : vector<1x3x8x286xbf16> to vector<3x8x286xbf16>
    %70 = vector.shape_cast %69 : vector<3x8x286xbf16> to vector<24x286xbf16>
    %c24_47 = arith.constant 24 : index
    %c384_48 = arith.constant 384 : index
    %71 = vector.load %arg7[%c24_47, %c384_48] : memref<216x3072xbf16, #tpu.memory_space<vmem>>, vector<24x286xbf16>
    tpu.vector_store %arg7[%c24_47, %c384_48], %70 {strides = array<i32>} : memref<216x3072xbf16, #tpu.memory_space<vmem>>, vector<24x286xbf16>,
    %c1_i32_49 = arith.constant 1 : i32
    %72 = arith.addi %0, %c1_i32_49 : i32
    %c0_50 = arith.constant 0 : index
    %73 = arith.index_cast %72 : i32 to index
    %c0_51 = arith.constant 0 : index
    %c2_52 = arith.constant 2 : index
    %74 = vector.load %arg2[%c0_50, %73, %c0_51, %c2_52] : memref<1x18x8x324xbf16, #tpu.memory_space<vmem>>, vector<1x3x8x286xbf16>
    %75 = vector.shape_cast %74 : vector<1x3x8x286xbf16> to vector<3x8x286xbf16>
    %76 = vector.shape_cast %75 : vector<3x8x286xbf16> to vector<24x286xbf16>
    %c48_53 = arith.constant 48 : index
    %c384_54 = arith.constant 384 : index
    %77 = vector.load %arg7[%c48_53, %c384_54] : memref<216x3072xbf16, #tpu.memory_space<vmem>>, vector<24x286xbf16>
    tpu.vector_store %arg7[%c48_53, %c384_54], %76 {strides = array<i32>} : memref<216x3072xbf16, #tpu.memory_space<vmem>>, vector<24x286xbf16>,
    %c1_i32_55 = arith.constant 1 : i32
    %78 = arith.addi %0, %c1_i32_55 : i32
    %c0_56 = arith.constant 0 : index
    %79 = arith.index_cast %78 : i32 to index
    %c0_57 = arith.constant 0 : index
    %c18_58 = arith.constant 18 : index
    %80 = vector.load %arg2[%c0_56, %79, %c0_57, %c18_58] : memref<1x18x8x324xbf16, #tpu.memory_space<vmem>>, vector<1x3x8x286xbf16>
    %81 = vector.shape_cast %80 : vector<1x3x8x286xbf16> to vector<3x8x286xbf16>
    %82 = vector.shape_cast %81 : vector<3x8x286xbf16> to vector<24x286xbf16>
    %c72_59 = arith.constant 72 : index
    %c384_60 = arith.constant 384 : index
    %83 = vector.load %arg7[%c72_59, %c384_60] : memref<216x3072xbf16, #tpu.memory_space<vmem>>, vector<24x286xbf16>
    tpu.vector_store %arg7[%c72_59, %c384_60], %82 {strides = array<i32>} : memref<216x3072xbf16, #tpu.memory_space<vmem>>, vector<24x286xbf16>,
    %c1_i32_61 = arith.constant 1 : i32
    %84 = arith.addi %0, %c1_i32_61 : i32
    %c0_62 = arith.constant 0 : index
    %85 = arith.index_cast %84 : i32 to index
    %c0_63 = arith.constant 0 : index
    %c19_64 = arith.constant 19 : index
    %86 = vector.load %arg2[%c0_62, %85, %c0_63, %c19_64] : memref<1x18x8x324xbf16, #tpu.memory_space<vmem>>, vector<1x3x8x286xbf16>
    %87 = vector.shape_cast %86 : vector<1x3x8x286xbf16> to vector<3x8x286xbf16>
    %88 = vector.shape_cast %87 : vector<3x8x286xbf16> to vector<24x286xbf16>
    %c96_65 = arith.constant 96 : index
    %c384_66 = arith.constant 384 : index
    %89 = vector.load %arg7[%c96_65, %c384_66] : memref<216x3072xbf16, #tpu.memory_space<vmem>>, vector<24x286xbf16>
    tpu.vector_store %arg7[%c96_65, %c384_66], %88 {strides = array<i32>} : memref<216x3072xbf16, #tpu.memory_space<vmem>>, vector<24x286xbf16>,
    %c1_i32_67 = arith.constant 1 : i32
    %90 = arith.addi %0, %c1_i32_67 : i32
    %c0_68 = arith.constant 0 : index
    %91 = arith.index_cast %90 : i32 to index
    %c0_69 = arith.constant 0 : index
    %c20_70 = arith.constant 20 : index
    %92 = vector.load %arg2[%c0_68, %91, %c0_69, %c20_70] : memref<1x18x8x324xbf16, #tpu.memory_space<vmem>>, vector<1x3x8x286xbf16>
    %93 = vector.shape_cast %92 : vector<1x3x8x286xbf16> to vector<3x8x286xbf16>
    %94 = vector.shape_cast %93 : vector<3x8x286xbf16> to vector<24x286xbf16>
    %c120_71 = arith.constant 120 : index
    %c384_72 = arith.constant 384 : index
    %95 = vector.load %arg7[%c120_71, %c384_72] : memref<216x3072xbf16, #tpu.memory_space<vmem>>, vector<24x286xbf16>
    tpu.vector_store %arg7[%c120_71, %c384_72], %94 {strides = array<i32>} : memref<216x3072xbf16, #tpu.memory_space<vmem>>, vector<24x286xbf16>,
    %c1_i32_73 = arith.constant 1 : i32
    %96 = arith.addi %0, %c1_i32_73 : i32
    %c0_74 = arith.constant 0 : index
    %97 = arith.index_cast %96 : i32 to index
    %c0_75 = arith.constant 0 : index
    %c36_76 = arith.constant 36 : index
    %98 = vector.load %arg2[%c0_74, %97, %c0_75, %c36_76] : memref<1x18x8x324xbf16, #tpu.memory_space<vmem>>, vector<1x3x8x286xbf16>
    %99 = vector.shape_cast %98 : vector<1x3x8x286xbf16> to vector<3x8x286xbf16>
    %100 = vector.shape_cast %99 : vector<3x8x286xbf16> to vector<24x286xbf16>
    %c144_77 = arith.constant 144 : index
    %c384_78 = arith.constant 384 : index
    %101 = vector.load %arg7[%c144_77, %c384_78] : memref<216x3072xbf16, #tpu.memory_space<vmem>>, vector<24x286xbf16>
    tpu.vector_store %arg7[%c144_77, %c384_78], %100 {strides = array<i32>} : memref<216x3072xbf16, #tpu.memory_space<vmem>>, vector<24x286xbf16>,
    %c1_i32_79 = arith.constant 1 : i32
    %102 = arith.addi %0, %c1_i32_79 : i32
    %c0_80 = arith.constant 0 : index
    %103 = arith.index_cast %102 : i32 to index
    %c0_81 = arith.constant 0 : index
    %c37_82 = arith.constant 37 : index
    %104 = vector.load %arg2[%c0_80, %103, %c0_81, %c37_82] : memref<1x18x8x324xbf16, #tpu.memory_space<vmem>>, vector<1x3x8x286xbf16>
    %105 = vector.shape_cast %104 : vector<1x3x8x286xbf16> to vector<3x8x286xbf16>
    %106 = vector.shape_cast %105 : vector<3x8x286xbf16> to vector<24x286xbf16>
    %c168_83 = arith.constant 168 : index
    %c384_84 = arith.constant 384 : index
    %107 = vector.load %arg7[%c168_83, %c384_84] : memref<216x3072xbf16, #tpu.memory_space<vmem>>, vector<24x286xbf16>
    tpu.vector_store %arg7[%c168_83, %c384_84], %106 {strides = array<i32>} : memref<216x3072xbf16, #tpu.memory_space<vmem>>, vector<24x286xbf16>,
    %c1_i32_85 = arith.constant 1 : i32
    %108 = arith.addi %0, %c1_i32_85 : i32
    %c0_86 = arith.constant 0 : index
    %109 = arith.index_cast %108 : i32 to index
    %c0_87 = arith.constant 0 : index
    %c38_88 = arith.constant 38 : index
    %110 = vector.load %arg2[%c0_86, %109, %c0_87, %c38_88] : memref<1x18x8x324xbf16, #tpu.memory_space<vmem>>, vector<1x3x8x286xbf16>
    %111 = vector.shape_cast %110 : vector<1x3x8x286xbf16> to vector<3x8x286xbf16>
    %112 = vector.shape_cast %111 : vector<3x8x286xbf16> to vector<24x286xbf16>
    %c192_89 = arith.constant 192 : index
    %c384_90 = arith.constant 384 : index
    %113 = vector.load %arg7[%c192_89, %c384_90] : memref<216x3072xbf16, #tpu.memory_space<vmem>>, vector<24x286xbf16>
    tpu.vector_store %arg7[%c192_89, %c384_90], %112 {strides = array<i32>} : memref<216x3072xbf16, #tpu.memory_space<vmem>>, vector<24x286xbf16>,
    %c2_i32 = arith.constant 2 : i32
    %114 = arith.addi %0, %c2_i32 : i32
    %c0_91 = arith.constant 0 : index
    %115 = arith.index_cast %114 : i32 to index
    %c0_92 = arith.constant 0 : index
    %c0_93 = arith.constant 0 : index
    %116 = vector.load %arg2[%c0_91, %115, %c0_92, %c0_93] : memref<1x18x8x324xbf16, #tpu.memory_space<vmem>>, vector<1x3x8x286xbf16>
    %117 = vector.shape_cast %116 : vector<1x3x8x286xbf16> to vector<3x8x286xbf16>
    %118 = vector.shape_cast %117 : vector<3x8x286xbf16> to vector<24x286xbf16>
    %c0_94 = arith.constant 0 : index
    %c768 = arith.constant 768 : index
    %119 = vector.load %arg7[%c0_94, %c768] : memref<216x3072xbf16, #tpu.memory_space<vmem>>, vector<24x286xbf16>
    tpu.vector_store %arg7[%c0_94, %c768], %118 {strides = array<i32>} : memref<216x3072xbf16, #tpu.memory_space<vmem>>, vector<24x286xbf16>,
    %c2_i32_95 = arith.constant 2 : i32
    %120 = arith.addi %0, %c2_i32_95 : i32
    %c0_96 = arith.constant 0 : index
    %121 = arith.index_cast %120 : i32 to index
    %c0_97 = arith.constant 0 : index
    %c1_98 = arith.constant 1 : index
    %122 = vector.load %arg2[%c0_96, %121, %c0_97, %c1_98] : memref<1x18x8x324xbf16, #tpu.memory_space<vmem>>, vector<1x3x8x286xbf16>
    %123 = vector.shape_cast %122 : vector<1x3x8x286xbf16> to vector<3x8x286xbf16>
    %124 = vector.shape_cast %123 : vector<3x8x286xbf16> to vector<24x286xbf16>
    %c24_99 = arith.constant 24 : index
    %c768_100 = arith.constant 768 : index
    %125 = vector.load %arg7[%c24_99, %c768_100] : memref<216x3072xbf16, #tpu.memory_space<vmem>>, vector<24x286xbf16>
    tpu.vector_store %arg7[%c24_99, %c768_100], %124 {strides = array<i32>} : memref<216x3072xbf16, #tpu.memory_space<vmem>>, vector<24x286xbf16>,
    %c2_i32_101 = arith.constant 2 : i32
    %126 = arith.addi %0, %c2_i32_101 : i32
    %c0_102 = arith.constant 0 : index
    %127 = arith.index_cast %126 : i32 to index
    %c0_103 = arith.constant 0 : index
    %c2_104 = arith.constant 2 : index
    %128 = vector.load %arg2[%c0_102, %127, %c0_103, %c2_104] : memref<1x18x8x324xbf16, #tpu.memory_space<vmem>>, vector<1x3x8x286xbf16>
    %129 = vector.shape_cast %128 : vector<1x3x8x286xbf16> to vector<3x8x286xbf16>
    %130 = vector.shape_cast %129 : vector<3x8x286xbf16> to vector<24x286xbf16>
    %c48_105 = arith.constant 48 : index
    %c768_106 = arith.constant 768 : index
    %131 = vector.load %arg7[%c48_105, %c768_106] : memref<216x3072xbf16, #tpu.memory_space<vmem>>, vector<24x286xbf16>
    tpu.vector_store %arg7[%c48_105, %c768_106], %130 {strides = array<i32>} : memref<216x3072xbf16, #tpu.memory_space<vmem>>, vector<24x286xbf16>,
    %c2_i32_107 = arith.constant 2 : i32
    %132 = arith.addi %0, %c2_i32_107 : i32
    %c0_108 = arith.constant 0 : index
    %133 = arith.index_cast %132 : i32 to index
    %c0_109 = arith.constant 0 : index
    %c18_110 = arith.constant 18 : index
    %134 = vector.load %arg2[%c0_108, %133, %c0_109, %c18_110] : memref<1x18x8x324xbf16, #tpu.memory_space<vmem>>, vector<1x3x8x286xbf16>
    %135 = vector.shape_cast %134 : vector<1x3x8x286xbf16> to vector<3x8x286xbf16>
    %136 = vector.shape_cast %135 : vector<3x8x286xbf16> to vector<24x286xbf16>
    %c72_111 = arith.constant 72 : index
    %c768_112 = arith.constant 768 : index
    %137 = vector.load %arg7[%c72_111, %c768_112] : memref<216x3072xbf16, #tpu.memory_space<vmem>>, vector<24x286xbf16>
    tpu.vector_store %arg7[%c72_111, %c768_112], %136 {strides = array<i32>} : memref<216x3072xbf16, #tpu.memory_space<vmem>>, vector<24x286xbf16>,
    %c2_i32_113 = arith.constant 2 : i32
    %138 = arith.addi %0, %c2_i32_113 : i32
    %c0_114 = arith.constant 0 : index
    %139 = arith.index_cast %138 : i32 to index
    %c0_115 = arith.constant 0 : index
    %c19_116 = arith.constant 19 : index
    %140 = vector.load %arg2[%c0_114, %139, %c0_115, %c19_116] : memref<1x18x8x324xbf16, #tpu.memory_space<vmem>>, vector<1x3x8x286xbf16>
    %141 = vector.shape_cast %140 : vector<1x3x8x286xbf16> to vector<3x8x286xbf16>
    %142 = vector.shape_cast %141 : vector<3x8x286xbf16> to vector<24x286xbf16>
    %c96_117 = arith.constant 96 : index
    %c768_118 = arith.constant 768 : index
    %143 = vector.load %arg7[%c96_117, %c768_118] : memref<216x3072xbf16, #tpu.memory_space<vmem>>, vector<24x286xbf16>
    tpu.vector_store %arg7[%c96_117, %c768_118], %142 {strides = array<i32>} : memref<216x3072xbf16, #tpu.memory_space<vmem>>, vector<24x286xbf16>,
    %c2_i32_119 = arith.constant 2 : i32
    %144 = arith.addi %0, %c2_i32_119 : i32
    %c0_120 = arith.constant 0 : index
    %145 = arith.index_cast %144 : i32 to index
    %c0_121 = arith.constant 0 : index
    %c20_122 = arith.constant 20 : index
    %146 = vector.load %arg2[%c0_120, %145, %c0_121, %c20_122] : memref<1x18x8x324xbf16, #tpu.memory_space<vmem>>, vector<1x3x8x286xbf16>
    %147 = vector.shape_cast %146 : vector<1x3x8x286xbf16> to vector<3x8x286xbf16>
    %148 = vector.shape_cast %147 : vector<3x8x286xbf16> to vector<24x286xbf16>
    %c120_123 = arith.constant 120 : index
    %c768_124 = arith.constant 768 : index
    %149 = vector.load %arg7[%c120_123, %c768_124] : memref<216x3072xbf16, #tpu.memory_space<vmem>>, vector<24x286xbf16>
    tpu.vector_store %arg7[%c120_123, %c768_124], %148 {strides = array<i32>} : memref<216x3072xbf16, #tpu.memory_space<vmem>>, vector<24x286xbf16>,
    %c2_i32_125 = arith.constant 2 : i32
    %150 = arith.addi %0, %c2_i32_125 : i32
    %c0_126 = arith.constant 0 : index
    %151 = arith.index_cast %150 : i32 to index
    %c0_127 = arith.constant 0 : index
    %c36_128 = arith.constant 36 : index
    %152 = vector.load %arg2[%c0_126, %151, %c0_127, %c36_128] : memref<1x18x8x324xbf16, #tpu.memory_space<vmem>>, vector<1x3x8x286xbf16>
    %153 = vector.shape_cast %152 : vector<1x3x8x286xbf16> to vector<3x8x286xbf16>
    %154 = vector.shape_cast %153 : vector<3x8x286xbf16> to vector<24x286xbf16>
    %c144_129 = arith.constant 144 : index
    %c768_130 = arith.constant 768 : index
    %155 = vector.load %arg7[%c144_129, %c768_130] : memref<216x3072xbf16, #tpu.memory_space<vmem>>, vector<24x286xbf16>
    tpu.vector_store %arg7[%c144_129, %c768_130], %154 {strides = array<i32>} : memref<216x3072xbf16, #tpu.memory_space<vmem>>, vector<24x286xbf16>,
    %c2_i32_131 = arith.constant 2 : i32
    %156 = arith.addi %0, %c2_i32_131 : i32
    %c0_132 = arith.constant 0 : index
    %157 = arith.index_cast %156 : i32 to index
    %c0_133 = arith.constant 0 : index
    %c37_134 = arith.constant 37 : index
    %158 = vector.load %arg2[%c0_132, %157, %c0_133, %c37_134] : memref<1x18x8x324xbf16, #tpu.memory_space<vmem>>, vector<1x3x8x286xbf16>
    %159 = vector.shape_cast %158 : vector<1x3x8x286xbf16> to vector<3x8x286xbf16>
    %160 = vector.shape_cast %159 : vector<3x8x286xbf16> to vector<24x286xbf16>
    %c168_135 = arith.constant 168 : index
    %c768_136 = arith.constant 768 : index
    %161 = vector.load %arg7[%c168_135, %c768_136] : memref<216x3072xbf16, #tpu.memory_space<vmem>>, vector<24x286xbf16>
    tpu.vector_store %arg7[%c168_135, %c768_136], %160 {strides = array<i32>} : memref<216x3072xbf16, #tpu.memory_space<vmem>>, vector<24x286xbf16>,
    %c2_i32_137 = arith.constant 2 : i32
    %162 = arith.addi %0, %c2_i32_137 : i32
    %c0_138 = arith.constant 0 : index
    %163 = arith.index_cast %162 : i32 to index
    %c0_139 = arith.constant 0 : index
    %c38_140 = arith.constant 38 : index
    %164 = vector.load %arg2[%c0_138, %163, %c0_139, %c38_140] : memref<1x18x8x324xbf16, #tpu.memory_space<vmem>>, vector<1x3x8x286xbf16>
    %165 = vector.shape_cast %164 : vector<1x3x8x286xbf16> to vector<3x8x286xbf16>
    %166 = vector.shape_cast %165 : vector<3x8x286xbf16> to vector<24x286xbf16>
    %c192_141 = arith.constant 192 : index
    %c768_142 = arith.constant 768 : index
    %167 = vector.load %arg7[%c192_141, %c768_142] : memref<216x3072xbf16, #tpu.memory_space<vmem>>, vector<24x286xbf16>
    tpu.vector_store %arg7[%c192_141, %c768_142], %166 {strides = array<i32>} : memref<216x3072xbf16, #tpu.memory_space<vmem>>, vector<24x286xbf16>,
    %c3_i32 = arith.constant 3 : i32
    %168 = arith.addi %0, %c3_i32 : i32
    %c0_143 = arith.constant 0 : index
    %169 = arith.index_cast %168 : i32 to index
    %c0_144 = arith.constant 0 : index
    %c0_145 = arith.constant 0 : index
    %170 = vector.load %arg2[%c0_143, %169, %c0_144, %c0_145] : memref<1x18x8x324xbf16, #tpu.memory_space<vmem>>, vector<1x3x8x286xbf16>
    %171 = vector.shape_cast %170 : vector<1x3x8x286xbf16> to vector<3x8x286xbf16>
    %172 = vector.shape_cast %171 : vector<3x8x286xbf16> to vector<24x286xbf16>
    %c0_146 = arith.constant 0 : index
    %c1152 = arith.constant 1152 : index
    %173 = vector.load %arg7[%c0_146, %c1152] : memref<216x3072xbf16, #tpu.memory_space<vmem>>, vector<24x286xbf16>
    tpu.vector_store %arg7[%c0_146, %c1152], %172 {strides = array<i32>} : memref<216x3072xbf16, #tpu.memory_space<vmem>>, vector<24x286xbf16>,
    %c3_i32_147 = arith.constant 3 : i32
    %174 = arith.addi %0, %c3_i32_147 : i32
    %c0_148 = arith.constant 0 : index
    %175 = arith.index_cast %174 : i32 to index
    %c0_149 = arith.constant 0 : index
    %c1_150 = arith.constant 1 : index
    %176 = vector.load %arg2[%c0_148, %175, %c0_149, %c1_150] : memref<1x18x8x324xbf16, #tpu.memory_space<vmem>>, vector<1x3x8x286xbf16>
    %177 = vector.shape_cast %176 : vector<1x3x8x286xbf16> to vector<3x8x286xbf16>
    %178 = vector.shape_cast %177 : vector<3x8x286xbf16> to vector<24x286xbf16>
    %c24_151 = arith.constant 24 : index
    %c1152_152 = arith.constant 1152 : index
    %179 = vector.load %arg7[%c24_151, %c1152_152] : memref<216x3072xbf16, #tpu.memory_space<vmem>>, vector<24x286xbf16>
    tpu.vector_store %arg7[%c24_151, %c1152_152], %178 {strides = array<i32>} : memref<216x3072xbf16, #tpu.memory_space<vmem>>, vector<24x286xbf16>,
    %c3_i32_153 = arith.constant 3 : i32
    %180 = arith.addi %0, %c3_i32_153 : i32
    %c0_154 = arith.constant 0 : index
    %181 = arith.index_cast %180 : i32 to index
    %c0_155 = arith.constant 0 : index
    %c2_156 = arith.constant 2 : index
    %182 = vector.load %arg2[%c0_154, %181, %c0_155, %c2_156] : memref<1x18x8x324xbf16, #tpu.memory_space<vmem>>, vector<1x3x8x286xbf16>
    %183 = vector.shape_cast %182 : vector<1x3x8x286xbf16> to vector<3x8x286xbf16>
    %184 = vector.shape_cast %183 : vector<3x8x286xbf16> to vector<24x286xbf16>
    %c48_157 = arith.constant 48 : index
    %c1152_158 = arith.constant 1152 : index
    %185 = vector.load %arg7[%c48_157, %c1152_158] : memref<216x3072xbf16, #tpu.memory_space<vmem>>, vector<24x286xbf16>
    tpu.vector_store %arg7[%c48_157, %c1152_158], %184 {strides = array<i32>} : memref<216x3072xbf16, #tpu.memory_space<vmem>>, vector<24x286xbf16>,
    %c3_i32_159 = arith.constant 3 : i32
    %186 = arith.addi %0, %c3_i32_159 : i32
    %c0_160 = arith.constant 0 : index
    %187 = arith.index_cast %186 : i32 to index
    %c0_161 = arith.constant 0 : index
    %c18_162 = arith.constant 18 : index
    %188 = vector.load %arg2[%c0_160, %187, %c0_161, %c18_162] : memref<1x18x8x324xbf16, #tpu.memory_space<vmem>>, vector<1x3x8x286xbf16>
    %189 = vector.shape_cast %188 : vector<1x3x8x286xbf16> to vector<3x8x286xbf16>
    %190 = vector.shape_cast %189 : vector<3x8x286xbf16> to vector<24x286xbf16>
    %c72_163 = arith.constant 72 : index
    %c1152_164 = arith.constant 1152 : index
    %191 = vector.load %arg7[%c72_163, %c1152_164] : memref<216x3072xbf16, #tpu.memory_space<vmem>>, vector<24x286xbf16>
    tpu.vector_store %arg7[%c72_163, %c1152_164], %190 {strides = array<i32>} : memref<216x3072xbf16, #tpu.memory_space<vmem>>, vector<24x286xbf16>,
    %c3_i32_165 = arith.constant 3 : i32
    %192 = arith.addi %0, %c3_i32_165 : i32
    %c0_166 = arith.constant 0 : index
    %193 = arith.index_cast %192 : i32 to index
    %c0_167 = arith.constant 0 : index
    %c19_168 = arith.constant 19 : index
    %194 = vector.load %arg2[%c0_166, %193, %c0_167, %c19_168] : memref<1x18x8x324xbf16, #tpu.memory_space<vmem>>, vector<1x3x8x286xbf16>
    %195 = vector.shape_cast %194 : vector<1x3x8x286xbf16> to vector<3x8x286xbf16>
    %196 = vector.shape_cast %195 : vector<3x8x286xbf16> to vector<24x286xbf16>
    %c96_169 = arith.constant 96 : index
    %c1152_170 = arith.constant 1152 : index
    %197 = vector.load %arg7[%c96_169, %c1152_170] : memref<216x3072xbf16, #tpu.memory_space<vmem>>, vector<24x286xbf16>
    tpu.vector_store %arg7[%c96_169, %c1152_170], %196 {strides = array<i32>} : memref<216x3072xbf16, #tpu.memory_space<vmem>>, vector<24x286xbf16>,
    %c3_i32_171 = arith.constant 3 : i32
    %198 = arith.addi %0, %c3_i32_171 : i32
    %c0_172 = arith.constant 0 : index
    %199 = arith.index_cast %198 : i32 to index
    %c0_173 = arith.constant 0 : index
    %c20_174 = arith.constant 20 : index
    %200 = vector.load %arg2[%c0_172, %199, %c0_173, %c20_174] : memref<1x18x8x324xbf16, #tpu.memory_space<vmem>>, vector<1x3x8x286xbf16>
    %201 = vector.shape_cast %200 : vector<1x3x8x286xbf16> to vector<3x8x286xbf16>
    %202 = vector.shape_cast %201 : vector<3x8x286xbf16> to vector<24x286xbf16>
    %c120_175 = arith.constant 120 : index
    %c1152_176 = arith.constant 1152 : index
    %203 = vector.load %arg7[%c120_175, %c1152_176] : memref<216x3072xbf16, #tpu.memory_space<vmem>>, vector<24x286xbf16>
    tpu.vector_store %arg7[%c120_175, %c1152_176], %202 {strides = array<i32>} : memref<216x3072xbf16, #tpu.memory_space<vmem>>, vector<24x286xbf16>,
    %c3_i32_177 = arith.constant 3 : i32
    %204 = arith.addi %0, %c3_i32_177 : i32
    %c0_178 = arith.constant 0 : index
    %205 = arith.index_cast %204 : i32 to index
    %c0_179 = arith.constant 0 : index
    %c36_180 = arith.constant 36 : index
    %206 = vector.load %arg2[%c0_178, %205, %c0_179, %c36_180] : memref<1x18x8x324xbf16, #tpu.memory_space<vmem>>, vector<1x3x8x286xbf16>
    %207 = vector.shape_cast %206 : vector<1x3x8x286xbf16> to vector<3x8x286xbf16>
    %208 = vector.shape_cast %207 : vector<3x8x286xbf16> to vector<24x286xbf16>
    %c144_181 = arith.constant 144 : index
    %c1152_182 = arith.constant 1152 : index
    %209 = vector.load %arg7[%c144_181, %c1152_182] : memref<216x3072xbf16, #tpu.memory_space<vmem>>, vector<24x286xbf16>
    tpu.vector_store %arg7[%c144_181, %c1152_182], %208 {strides = array<i32>} : memref<216x3072xbf16, #tpu.memory_space<vmem>>, vector<24x286xbf16>,
    %c3_i32_183 = arith.constant 3 : i32
    %210 = arith.addi %0, %c3_i32_183 : i32
    %c0_184 = arith.constant 0 : index
    %211 = arith.index_cast %210 : i32 to index
    %c0_185 = arith.constant 0 : index
    %c37_186 = arith.constant 37 : index
    %212 = vector.load %arg2[%c0_184, %211, %c0_185, %c37_186] : memref<1x18x8x324xbf16, #tpu.memory_space<vmem>>, vector<1x3x8x286xbf16>
    %213 = vector.shape_cast %212 : vector<1x3x8x286xbf16> to vector<3x8x286xbf16>
    %214 = vector.shape_cast %213 : vector<3x8x286xbf16> to vector<24x286xbf16>
    %c168_187 = arith.constant 168 : index
    %c1152_188 = arith.constant 1152 : index
    %215 = vector.load %arg7[%c168_187, %c1152_188] : memref<216x3072xbf16, #tpu.memory_space<vmem>>, vector<24x286xbf16>
    tpu.vector_store %arg7[%c168_187, %c1152_188], %214 {strides = array<i32>} : memref<216x3072xbf16, #tpu.memory_space<vmem>>, vector<24x286xbf16>,
    %c3_i32_189 = arith.constant 3 : i32
    %216 = arith.addi %0, %c3_i32_189 : i32
    %c0_190 = arith.constant 0 : index
    %217 = arith.index_cast %216 : i32 to index
    %c0_191 = arith.constant 0 : index
    %c38_192 = arith.constant 38 : index
    %218 = vector.load %arg2[%c0_190, %217, %c0_191, %c38_192] : memref<1x18x8x324xbf16, #tpu.memory_space<vmem>>, vector<1x3x8x286xbf16>
    %219 = vector.shape_cast %218 : vector<1x3x8x286xbf16> to vector<3x8x286xbf16>
    %220 = vector.shape_cast %219 : vector<3x8x286xbf16> to vector<24x286xbf16>
    %c192_193 = arith.constant 192 : index
    %c1152_194 = arith.constant 1152 : index
    %221 = vector.load %arg7[%c192_193, %c1152_194] : memref<216x3072xbf16, #tpu.memory_space<vmem>>, vector<24x286xbf16>
    tpu.vector_store %arg7[%c192_193, %c1152_194], %220 {strides = array<i32>} : memref<216x3072xbf16, #tpu.memory_space<vmem>>, vector<24x286xbf16>,
    %c4_i32 = arith.constant 4 : i32
    %222 = arith.addi %0, %c4_i32 : i32
    %c0_195 = arith.constant 0 : index
    %223 = arith.index_cast %222 : i32 to index
    %c0_196 = arith.constant 0 : index
    %c0_197 = arith.constant 0 : index
    %224 = vector.load %arg2[%c0_195, %223, %c0_196, %c0_197] : memref<1x18x8x324xbf16, #tpu.memory_space<vmem>>, vector<1x3x8x286xbf16>
    %225 = vector.shape_cast %224 : vector<1x3x8x286xbf16> to vector<3x8x286xbf16>
    %226 = vector.shape_cast %225 : vector<3x8x286xbf16> to vector<24x286xbf16>
    %c0_198 = arith.constant 0 : index
    %c1536 = arith.constant 1536 : index
    %227 = vector.load %arg7[%c0_198, %c1536] : memref<216x3072xbf16, #tpu.memory_space<vmem>>, vector<24x286xbf16>
    tpu.vector_store %arg7[%c0_198, %c1536], %226 {strides = array<i32>} : memref<216x3072xbf16, #tpu.memory_space<vmem>>, vector<24x286xbf16>,
    %c4_i32_199 = arith.constant 4 : i32
    %228 = arith.addi %0, %c4_i32_199 : i32
    %c0_200 = arith.constant 0 : index
    %229 = arith.index_cast %228 : i32 to index
    %c0_201 = arith.constant 0 : index
    %c1_202 = arith.constant 1 : index
    %230 = vector.load %arg2[%c0_200, %229, %c0_201, %c1_202] : memref<1x18x8x324xbf16, #tpu.memory_space<vmem>>, vector<1x3x8x286xbf16>
    %231 = vector.shape_cast %230 : vector<1x3x8x286xbf16> to vector<3x8x286xbf16>
    %232 = vector.shape_cast %231 : vector<3x8x286xbf16> to vector<24x286xbf16>
    %c24_203 = arith.constant 24 : index
    %c1536_204 = arith.constant 1536 : index
    %233 = vector.load %arg7[%c24_203, %c1536_204] : memref<216x3072xbf16, #tpu.memory_space<vmem>>, vector<24x286xbf16>
    tpu.vector_store %arg7[%c24_203, %c1536_204], %232 {strides = array<i32>} : memref<216x3072xbf16, #tpu.memory_space<vmem>>, vector<24x286xbf16>,
    %c4_i32_205 = arith.constant 4 : i32
    %234 = arith.addi %0, %c4_i32_205 : i32
    %c0_206 = arith.constant 0 : index
    %235 = arith.index_cast %234 : i32 to index
    %c0_207 = arith.constant 0 : index
    %c2_208 = arith.constant 2 : index
    %236 = vector.load %arg2[%c0_206, %235, %c0_207, %c2_208] : memref<1x18x8x324xbf16, #tpu.memory_space<vmem>>, vector<1x3x8x286xbf16>
    %237 = vector.shape_cast %236 : vector<1x3x8x286xbf16> to vector<3x8x286xbf16>
    %238 = vector.shape_cast %237 : vector<3x8x286xbf16> to vector<24x286xbf16>
    %c48_209 = arith.constant 48 : index
    %c1536_210 = arith.constant 1536 : index
    %239 = vector.load %arg7[%c48_209, %c1536_210] : memref<216x3072xbf16, #tpu.memory_space<vmem>>, vector<24x286xbf16>
    tpu.vector_store %arg7[%c48_209, %c1536_210], %238 {strides = array<i32>} : memref<216x3072xbf16, #tpu.memory_space<vmem>>, vector<24x286xbf16>,
    %c4_i32_211 = arith.constant 4 : i32
    %240 = arith.addi %0, %c4_i32_211 : i32
    %c0_212 = arith.constant 0 : index
    %241 = arith.index_cast %240 : i32 to index
    %c0_213 = arith.constant 0 : index
    %c18_214 = arith.constant 18 : index
    %242 = vector.load %arg2[%c0_212, %241, %c0_213, %c18_214] : memref<1x18x8x324xbf16, #tpu.memory_space<vmem>>, vector<1x3x8x286xbf16>
    %243 = vector.shape_cast %242 : vector<1x3x8x286xbf16> to vector<3x8x286xbf16>
    %244 = vector.shape_cast %243 : vector<3x8x286xbf16> to vector<24x286xbf16>
    %c72_215 = arith.constant 72 : index
    %c1536_216 = arith.constant 1536 : index
    %245 = vector.load %arg7[%c72_215, %c1536_216] : memref<216x3072xbf16, #tpu.memory_space<vmem>>, vector<24x286xbf16>
    tpu.vector_store %arg7[%c72_215, %c1536_216], %244 {strides = array<i32>} : memref<216x3072xbf16, #tpu.memory_space<vmem>>, vector<24x286xbf16>,
    %c4_i32_217 = arith.constant 4 : i32
    %246 = arith.addi %0, %c4_i32_217 : i32
    %c0_218 = arith.constant 0 : index
    %247 = arith.index_cast %246 : i32 to index
    %c0_219 = arith.constant 0 : index
    %c19_220 = arith.constant 19 : index
    %248 = vector.load %arg2[%c0_218, %247, %c0_219, %c19_220] : memref<1x18x8x324xbf16, #tpu.memory_space<vmem>>, vector<1x3x8x286xbf16>
    %249 = vector.shape_cast %248 : vector<1x3x8x286xbf16> to vector<3x8x286xbf16>
    %250 = vector.shape_cast %249 : vector<3x8x286xbf16> to vector<24x286xbf16>
    %c96_221 = arith.constant 96 : index
    %c1536_222 = arith.constant 1536 : index
    %251 = vector.load %arg7[%c96_221, %c1536_222] : memref<216x3072xbf16, #tpu.memory_space<vmem>>, vector<24x286xbf16>
    tpu.vector_store %arg7[%c96_221, %c1536_222], %250 {strides = array<i32>} : memref<216x3072xbf16, #tpu.memory_space<vmem>>, vector<24x286xbf16>,
    %c4_i32_223 = arith.constant 4 : i32
    %252 = arith.addi %0, %c4_i32_223 : i32
    %c0_224 = arith.constant 0 : index
    %253 = arith.index_cast %252 : i32 to index
    %c0_225 = arith.constant 0 : index
    %c20_226 = arith.constant 20 : index
    %254 = vector.load %arg2[%c0_224, %253, %c0_225, %c20_226] : memref<1x18x8x324xbf16, #tpu.memory_space<vmem>>, vector<1x3x8x286xbf16>
    %255 = vector.shape_cast %254 : vector<1x3x8x286xbf16> to vector<3x8x286xbf16>
    %256 = vector.shape_cast %255 : vector<3x8x286xbf16> to vector<24x286xbf16>
    %c120_227 = arith.constant 120 : index
    %c1536_228 = arith.constant 1536 : index
    %257 = vector.load %arg7[%c120_227, %c1536_228] : memref<216x3072xbf16, #tpu.memory_space<vmem>>, vector<24x286xbf16>
    tpu.vector_store %arg7[%c120_227, %c1536_228], %256 {strides = array<i32>} : memref<216x3072xbf16, #tpu.memory_space<vmem>>, vector<24x286xbf16>,
    %c4_i32_229 = arith.constant 4 : i32
    %258 = arith.addi %0, %c4_i32_229 : i32
    %c0_230 = arith.constant 0 : index
    %259 = arith.index_cast %258 : i32 to index
    %c0_231 = arith.constant 0 : index
    %c36_232 = arith.constant 36 : index
    %260 = vector.load %arg2[%c0_230, %259, %c0_231, %c36_232] : memref<1x18x8x324xbf16, #tpu.memory_space<vmem>>, vector<1x3x8x286xbf16>
    %261 = vector.shape_cast %260 : vector<1x3x8x286xbf16> to vector<3x8x286xbf16>
    %262 = vector.shape_cast %261 : vector<3x8x286xbf16> to vector<24x286xbf16>
    %c144_233 = arith.constant 144 : index
    %c1536_234 = arith.constant 1536 : index
    %263 = vector.load %arg7[%c144_233, %c1536_234] : memref<216x3072xbf16, #tpu.memory_space<vmem>>, vector<24x286xbf16>
    tpu.vector_store %arg7[%c144_233, %c1536_234], %262 {strides = array<i32>} : memref<216x3072xbf16, #tpu.memory_space<vmem>>, vector<24x286xbf16>,
    %c4_i32_235 = arith.constant 4 : i32
    %264 = arith.addi %0, %c4_i32_235 : i32
    %c0_236 = arith.constant 0 : index
    %265 = arith.index_cast %264 : i32 to index
    %c0_237 = arith.constant 0 : index
    %c37_238 = arith.constant 37 : index
    %266 = vector.load %arg2[%c0_236, %265, %c0_237, %c37_238] : memref<1x18x8x324xbf16, #tpu.memory_space<vmem>>, vector<1x3x8x286xbf16>
    %267 = vector.shape_cast %266 : vector<1x3x8x286xbf16> to vector<3x8x286xbf16>
    %268 = vector.shape_cast %267 : vector<3x8x286xbf16> to vector<24x286xbf16>
    %c168_239 = arith.constant 168 : index
    %c1536_240 = arith.constant 1536 : index
    %269 = vector.load %arg7[%c168_239, %c1536_240] : memref<216x3072xbf16, #tpu.memory_space<vmem>>, vector<24x286xbf16>
    tpu.vector_store %arg7[%c168_239, %c1536_240], %268 {strides = array<i32>} : memref<216x3072xbf16, #tpu.memory_space<vmem>>, vector<24x286xbf16>,
    %c4_i32_241 = arith.constant 4 : i32
    %270 = arith.addi %0, %c4_i32_241 : i32
    %c0_242 = arith.constant 0 : index
    %271 = arith.index_cast %270 : i32 to index
    %c0_243 = arith.constant 0 : index
    %c38_244 = arith.constant 38 : index
    %272 = vector.load %arg2[%c0_242, %271, %c0_243, %c38_244] : memref<1x18x8x324xbf16, #tpu.memory_space<vmem>>, vector<1x3x8x286xbf16>
    %273 = vector.shape_cast %272 : vector<1x3x8x286xbf16> to vector<3x8x286xbf16>
    %274 = vector.shape_cast %273 : vector<3x8x286xbf16> to vector<24x286xbf16>
    %c192_245 = arith.constant 192 : index
    %c1536_246 = arith.constant 1536 : index
    %275 = vector.load %arg7[%c192_245, %c1536_246] : memref<216x3072xbf16, #tpu.memory_space<vmem>>, vector<24x286xbf16>
    tpu.vector_store %arg7[%c192_245, %c1536_246], %274 {strides = array<i32>} : memref<216x3072xbf16, #tpu.memory_space<vmem>>, vector<24x286xbf16>,
    %c5_i32 = arith.constant 5 : i32
    %276 = arith.addi %0, %c5_i32 : i32
    %c0_247 = arith.constant 0 : index
    %277 = arith.index_cast %276 : i32 to index
    %c0_248 = arith.constant 0 : index
    %c0_249 = arith.constant 0 : index
    %278 = vector.load %arg2[%c0_247, %277, %c0_248, %c0_249] : memref<1x18x8x324xbf16, #tpu.memory_space<vmem>>, vector<1x3x8x286xbf16>
    %279 = vector.shape_cast %278 : vector<1x3x8x286xbf16> to vector<3x8x286xbf16>
    %280 = vector.shape_cast %279 : vector<3x8x286xbf16> to vector<24x286xbf16>
    %c0_250 = arith.constant 0 : index
    %c1920 = arith.constant 1920 : index
    %281 = vector.load %arg7[%c0_250, %c1920] : memref<216x3072xbf16, #tpu.memory_space<vmem>>, vector<24x286xbf16>
    tpu.vector_store %arg7[%c0_250, %c1920], %280 {strides = array<i32>} : memref<216x3072xbf16, #tpu.memory_space<vmem>>, vector<24x286xbf16>,
    %c5_i32_251 = arith.constant 5 : i32
    %282 = arith.addi %0, %c5_i32_251 : i32
    %c0_252 = arith.constant 0 : index
    %283 = arith.index_cast %282 : i32 to index
    %c0_253 = arith.constant 0 : index
    %c1_254 = arith.constant 1 : index
    %284 = vector.load %arg2[%c0_252, %283, %c0_253, %c1_254] : memref<1x18x8x324xbf16, #tpu.memory_space<vmem>>, vector<1x3x8x286xbf16>
    %285 = vector.shape_cast %284 : vector<1x3x8x286xbf16> to vector<3x8x286xbf16>
    %286 = vector.shape_cast %285 : vector<3x8x286xbf16> to vector<24x286xbf16>
    %c24_255 = arith.constant 24 : index
    %c1920_256 = arith.constant 1920 : index
    %287 = vector.load %arg7[%c24_255, %c1920_256] : memref<216x3072xbf16, #tpu.memory_space<vmem>>, vector<24x286xbf16>
    tpu.vector_store %arg7[%c24_255, %c1920_256], %286 {strides = array<i32>} : memref<216x3072xbf16, #tpu.memory_space<vmem>>, vector<24x286xbf16>,
    %c5_i32_257 = arith.constant 5 : i32
    %288 = arith.addi %0, %c5_i32_257 : i32
    %c0_258 = arith.constant 0 : index
    %289 = arith.index_cast %288 : i32 to index
    %c0_259 = arith.constant 0 : index
    %c2_260 = arith.constant 2 : index
    %290 = vector.load %arg2[%c0_258, %289, %c0_259, %c2_260] : memref<1x18x8x324xbf16, #tpu.memory_space<vmem>>, vector<1x3x8x286xbf16>
    %291 = vector.shape_cast %290 : vector<1x3x8x286xbf16> to vector<3x8x286xbf16>
    %292 = vector.shape_cast %291 : vector<3x8x286xbf16> to vector<24x286xbf16>
    %c48_261 = arith.constant 48 : index
    %c1920_262 = arith.constant 1920 : index
    %293 = vector.load %arg7[%c48_261, %c1920_262] : memref<216x3072xbf16, #tpu.memory_space<vmem>>, vector<24x286xbf16>
    tpu.vector_store %arg7[%c48_261, %c1920_262], %292 {strides = array<i32>} : memref<216x3072xbf16, #tpu.memory_space<vmem>>, vector<24x286xbf16>,
    %c5_i32_263 = arith.constant 5 : i32
    %294 = arith.addi %0, %c5_i32_263 : i32
    %c0_264 = arith.constant 0 : index
    %295 = arith.index_cast %294 : i32 to index
    %c0_265 = arith.constant 0 : index
    %c18_266 = arith.constant 18 : index
    %296 = vector.load %arg2[%c0_264, %295, %c0_265, %c18_266] : memref<1x18x8x324xbf16, #tpu.memory_space<vmem>>, vector<1x3x8x286xbf16>
    %297 = vector.shape_cast %296 : vector<1x3x8x286xbf16> to vector<3x8x286xbf16>
    %298 = vector.shape_cast %297 : vector<3x8x286xbf16> to vector<24x286xbf16>
    %c72_267 = arith.constant 72 : index
    %c1920_268 = arith.constant 1920 : index
    %299 = vector.load %arg7[%c72_267, %c1920_268] : memref<216x3072xbf16, #tpu.memory_space<vmem>>, vector<24x286xbf16>
    tpu.vector_store %arg7[%c72_267, %c1920_268], %298 {strides = array<i32>} : memref<216x3072xbf16, #tpu.memory_space<vmem>>, vector<24x286xbf16>,
    %c5_i32_269 = arith.constant 5 : i32
    %300 = arith.addi %0, %c5_i32_269 : i32
    %c0_270 = arith.constant 0 : index
    %301 = arith.index_cast %300 : i32 to index
    %c0_271 = arith.constant 0 : index
    %c19_272 = arith.constant 19 : index
    %302 = vector.load %arg2[%c0_270, %301, %c0_271, %c19_272] : memref<1x18x8x324xbf16, #tpu.memory_space<vmem>>, vector<1x3x8x286xbf16>
    %303 = vector.shape_cast %302 : vector<1x3x8x286xbf16> to vector<3x8x286xbf16>
    %304 = vector.shape_cast %303 : vector<3x8x286xbf16> to vector<24x286xbf16>
    %c96_273 = arith.constant 96 : index
    %c1920_274 = arith.constant 1920 : index
    %305 = vector.load %arg7[%c96_273, %c1920_274] : memref<216x3072xbf16, #tpu.memory_space<vmem>>, vector<24x286xbf16>
    tpu.vector_store %arg7[%c96_273, %c1920_274], %304 {strides = array<i32>} : memref<216x3072xbf16, #tpu.memory_space<vmem>>, vector<24x286xbf16>,
    %c5_i32_275 = arith.constant 5 : i32
    %306 = arith.addi %0, %c5_i32_275 : i32
    %c0_276 = arith.constant 0 : index
    %307 = arith.index_cast %306 : i32 to index
    %c0_277 = arith.constant 0 : index
    %c20_278 = arith.constant 20 : index
    %308 = vector.load %arg2[%c0_276, %307, %c0_277, %c20_278] : memref<1x18x8x324xbf16, #tpu.memory_space<vmem>>, vector<1x3x8x286xbf16>
    %309 = vector.shape_cast %308 : vector<1x3x8x286xbf16> to vector<3x8x286xbf16>
    %310 = vector.shape_cast %309 : vector<3x8x286xbf16> to vector<24x286xbf16>
    %c120_279 = arith.constant 120 : index
    %c1920_280 = arith.constant 1920 : index
    %311 = vector.load %arg7[%c120_279, %c1920_280] : memref<216x3072xbf16, #tpu.memory_space<vmem>>, vector<24x286xbf16>
    tpu.vector_store %arg7[%c120_279, %c1920_280], %310 {strides = array<i32>} : memref<216x3072xbf16, #tpu.memory_space<vmem>>, vector<24x286xbf16>,
    %c5_i32_281 = arith.constant 5 : i32
    %312 = arith.addi %0, %c5_i32_281 : i32
    %c0_282 = arith.constant 0 : index
    %313 = arith.index_cast %312 : i32 to index
    %c0_283 = arith.constant 0 : index
    %c36_284 = arith.constant 36 : index
    %314 = vector.load %arg2[%c0_282, %313, %c0_283, %c36_284] : memref<1x18x8x324xbf16, #tpu.memory_space<vmem>>, vector<1x3x8x286xbf16>
    %315 = vector.shape_cast %314 : vector<1x3x8x286xbf16> to vector<3x8x286xbf16>
    %316 = vector.shape_cast %315 : vector<3x8x286xbf16> to vector<24x286xbf16>
    %c144_285 = arith.constant 144 : index
    %c1920_286 = arith.constant 1920 : index
    %317 = vector.load %arg7[%c144_285, %c1920_286] : memref<216x3072xbf16, #tpu.memory_space<vmem>>, vector<24x286xbf16>
    tpu.vector_store %arg7[%c144_285, %c1920_286], %316 {strides = array<i32>} : memref<216x3072xbf16, #tpu.memory_space<vmem>>, vector<24x286xbf16>,
    %c5_i32_287 = arith.constant 5 : i32
    %318 = arith.addi %0, %c5_i32_287 : i32
    %c0_288 = arith.constant 0 : index
    %319 = arith.index_cast %318 : i32 to index
    %c0_289 = arith.constant 0 : index
    %c37_290 = arith.constant 37 : index
    %320 = vector.load %arg2[%c0_288, %319, %c0_289, %c37_290] : memref<1x18x8x324xbf16, #tpu.memory_space<vmem>>, vector<1x3x8x286xbf16>
    %321 = vector.shape_cast %320 : vector<1x3x8x286xbf16> to vector<3x8x286xbf16>
    %322 = vector.shape_cast %321 : vector<3x8x286xbf16> to vector<24x286xbf16>
    %c168_291 = arith.constant 168 : index
    %c1920_292 = arith.constant 1920 : index
    %323 = vector.load %arg7[%c168_291, %c1920_292] : memref<216x3072xbf16, #tpu.memory_space<vmem>>, vector<24x286xbf16>
    tpu.vector_store %arg7[%c168_291, %c1920_292], %322 {strides = array<i32>} : memref<216x3072xbf16, #tpu.memory_space<vmem>>, vector<24x286xbf16>,
    %c5_i32_293 = arith.constant 5 : i32
    %324 = arith.addi %0, %c5_i32_293 : i32
    %c0_294 = arith.constant 0 : index
    %325 = arith.index_cast %324 : i32 to index
    %c0_295 = arith.constant 0 : index
    %c38_296 = arith.constant 38 : index
    %326 = vector.load %arg2[%c0_294, %325, %c0_295, %c38_296] : memref<1x18x8x324xbf16, #tpu.memory_space<vmem>>, vector<1x3x8x286xbf16>
    %327 = vector.shape_cast %326 : vector<1x3x8x286xbf16> to vector<3x8x286xbf16>
    %328 = vector.shape_cast %327 : vector<3x8x286xbf16> to vector<24x286xbf16>
    %c192_297 = arith.constant 192 : index
    %c1920_298 = arith.constant 1920 : index
    %329 = vector.load %arg7[%c192_297, %c1920_298] : memref<216x3072xbf16, #tpu.memory_space<vmem>>, vector<24x286xbf16>
    tpu.vector_store %arg7[%c192_297, %c1920_298], %328 {strides = array<i32>} : memref<216x3072xbf16, #tpu.memory_space<vmem>>, vector<24x286xbf16>,
    %c6_i32 = arith.constant 6 : i32
    %330 = arith.addi %0, %c6_i32 : i32
    %c0_299 = arith.constant 0 : index
    %331 = arith.index_cast %330 : i32 to index
    %c0_300 = arith.constant 0 : index
    %c0_301 = arith.constant 0 : index
    %332 = vector.load %arg2[%c0_299, %331, %c0_300, %c0_301] : memref<1x18x8x324xbf16, #tpu.memory_space<vmem>>, vector<1x3x8x286xbf16>
    %333 = vector.shape_cast %332 : vector<1x3x8x286xbf16> to vector<3x8x286xbf16>
    %334 = vector.shape_cast %333 : vector<3x8x286xbf16> to vector<24x286xbf16>
    %c0_302 = arith.constant 0 : index
    %c2304 = arith.constant 2304 : index
    %335 = vector.load %arg7[%c0_302, %c2304] : memref<216x3072xbf16, #tpu.memory_space<vmem>>, vector<24x286xbf16>
    tpu.vector_store %arg7[%c0_302, %c2304], %334 {strides = array<i32>} : memref<216x3072xbf16, #tpu.memory_space<vmem>>, vector<24x286xbf16>,
    %c6_i32_303 = arith.constant 6 : i32
    %336 = arith.addi %0, %c6_i32_303 : i32
    %c0_304 = arith.constant 0 : index
    %337 = arith.index_cast %336 : i32 to index
    %c0_305 = arith.constant 0 : index
    %c1_306 = arith.constant 1 : index
    %338 = vector.load %arg2[%c0_304, %337, %c0_305, %c1_306] : memref<1x18x8x324xbf16, #tpu.memory_space<vmem>>, vector<1x3x8x286xbf16>
    %339 = vector.shape_cast %338 : vector<1x3x8x286xbf16> to vector<3x8x286xbf16>
    %340 = vector.shape_cast %339 : vector<3x8x286xbf16> to vector<24x286xbf16>
    %c24_307 = arith.constant 24 : index
    %c2304_308 = arith.constant 2304 : index
    %341 = vector.load %arg7[%c24_307, %c2304_308] : memref<216x3072xbf16, #tpu.memory_space<vmem>>, vector<24x286xbf16>
    tpu.vector_store %arg7[%c24_307, %c2304_308], %340 {strides = array<i32>} : memref<216x3072xbf16, #tpu.memory_space<vmem>>, vector<24x286xbf16>,
    %c6_i32_309 = arith.constant 6 : i32
    %342 = arith.addi %0, %c6_i32_309 : i32
    %c0_310 = arith.constant 0 : index
    %343 = arith.index_cast %342 : i32 to index
    %c0_311 = arith.constant 0 : index
    %c2_312 = arith.constant 2 : index
    %344 = vector.load %arg2[%c0_310, %343, %c0_311, %c2_312] : memref<1x18x8x324xbf16, #tpu.memory_space<vmem>>, vector<1x3x8x286xbf16>
    %345 = vector.shape_cast %344 : vector<1x3x8x286xbf16> to vector<3x8x286xbf16>
    %346 = vector.shape_cast %345 : vector<3x8x286xbf16> to vector<24x286xbf16>
    %c48_313 = arith.constant 48 : index
    %c2304_314 = arith.constant 2304 : index
    %347 = vector.load %arg7[%c48_313, %c2304_314] : memref<216x3072xbf16, #tpu.memory_space<vmem>>, vector<24x286xbf16>
    tpu.vector_store %arg7[%c48_313, %c2304_314], %346 {strides = array<i32>} : memref<216x3072xbf16, #tpu.memory_space<vmem>>, vector<24x286xbf16>,
    %c6_i32_315 = arith.constant 6 : i32
    %348 = arith.addi %0, %c6_i32_315 : i32
    %c0_316 = arith.constant 0 : index
    %349 = arith.index_cast %348 : i32 to index
    %c0_317 = arith.constant 0 : index
    %c18_318 = arith.constant 18 : index
    %350 = vector.load %arg2[%c0_316, %349, %c0_317, %c18_318] : memref<1x18x8x324xbf16, #tpu.memory_space<vmem>>, vector<1x3x8x286xbf16>
    %351 = vector.shape_cast %350 : vector<1x3x8x286xbf16> to vector<3x8x286xbf16>
    %352 = vector.shape_cast %351 : vector<3x8x286xbf16> to vector<24x286xbf16>
    %c72_319 = arith.constant 72 : index
    %c2304_320 = arith.constant 2304 : index
    %353 = vector.load %arg7[%c72_319, %c2304_320] : memref<216x3072xbf16, #tpu.memory_space<vmem>>, vector<24x286xbf16>
    tpu.vector_store %arg7[%c72_319, %c2304_320], %352 {strides = array<i32>} : memref<216x3072xbf16, #tpu.memory_space<vmem>>, vector<24x286xbf16>,
    %c6_i32_321 = arith.constant 6 : i32
    %354 = arith.addi %0, %c6_i32_321 : i32
    %c0_322 = arith.constant 0 : index
    %355 = arith.index_cast %354 : i32 to index
    %c0_323 = arith.constant 0 : index
    %c19_324 = arith.constant 19 : index
    %356 = vector.load %arg2[%c0_322, %355, %c0_323, %c19_324] : memref<1x18x8x324xbf16, #tpu.memory_space<vmem>>, vector<1x3x8x286xbf16>
    %357 = vector.shape_cast %356 : vector<1x3x8x286xbf16> to vector<3x8x286xbf16>
    %358 = vector.shape_cast %357 : vector<3x8x286xbf16> to vector<24x286xbf16>
    %c96_325 = arith.constant 96 : index
    %c2304_326 = arith.constant 2304 : index
    %359 = vector.load %arg7[%c96_325, %c2304_326] : memref<216x3072xbf16, #tpu.memory_space<vmem>>, vector<24x286xbf16>
    tpu.vector_store %arg7[%c96_325, %c2304_326], %358 {strides = array<i32>} : memref<216x3072xbf16, #tpu.memory_space<vmem>>, vector<24x286xbf16>,
    %c6_i32_327 = arith.constant 6 : i32
    %360 = arith.addi %0, %c6_i32_327 : i32
    %c0_328 = arith.constant 0 : index
    %361 = arith.index_cast %360 : i32 to index
    %c0_329 = arith.constant 0 : index
    %c20_330 = arith.constant 20 : index
    %362 = vector.load %arg2[%c0_328, %361, %c0_329, %c20_330] : memref<1x18x8x324xbf16, #tpu.memory_space<vmem>>, vector<1x3x8x286xbf16>
    %363 = vector.shape_cast %362 : vector<1x3x8x286xbf16> to vector<3x8x286xbf16>
    %364 = vector.shape_cast %363 : vector<3x8x286xbf16> to vector<24x286xbf16>
    %c120_331 = arith.constant 120 : index
    %c2304_332 = arith.constant 2304 : index
    %365 = vector.load %arg7[%c120_331, %c2304_332] : memref<216x3072xbf16, #tpu.memory_space<vmem>>, vector<24x286xbf16>
    tpu.vector_store %arg7[%c120_331, %c2304_332], %364 {strides = array<i32>} : memref<216x3072xbf16, #tpu.memory_space<vmem>>, vector<24x286xbf16>,
    %c6_i32_333 = arith.constant 6 : i32
    %366 = arith.addi %0, %c6_i32_333 : i32
    %c0_334 = arith.constant 0 : index
    %367 = arith.index_cast %366 : i32 to index
    %c0_335 = arith.constant 0 : index
    %c36_336 = arith.constant 36 : index
    %368 = vector.load %arg2[%c0_334, %367, %c0_335, %c36_336] : memref<1x18x8x324xbf16, #tpu.memory_space<vmem>>, vector<1x3x8x286xbf16>
    %369 = vector.shape_cast %368 : vector<1x3x8x286xbf16> to vector<3x8x286xbf16>
    %370 = vector.shape_cast %369 : vector<3x8x286xbf16> to vector<24x286xbf16>
    %c144_337 = arith.constant 144 : index
    %c2304_338 = arith.constant 2304 : index
    %371 = vector.load %arg7[%c144_337, %c2304_338] : memref<216x3072xbf16, #tpu.memory_space<vmem>>, vector<24x286xbf16>
    tpu.vector_store %arg7[%c144_337, %c2304_338], %370 {strides = array<i32>} : memref<216x3072xbf16, #tpu.memory_space<vmem>>, vector<24x286xbf16>,
    %c6_i32_339 = arith.constant 6 : i32
    %372 = arith.addi %0, %c6_i32_339 : i32
    %c0_340 = arith.constant 0 : index
    %373 = arith.index_cast %372 : i32 to index
    %c0_341 = arith.constant 0 : index
    %c37_342 = arith.constant 37 : index
    %374 = vector.load %arg2[%c0_340, %373, %c0_341, %c37_342] : memref<1x18x8x324xbf16, #tpu.memory_space<vmem>>, vector<1x3x8x286xbf16>
    %375 = vector.shape_cast %374 : vector<1x3x8x286xbf16> to vector<3x8x286xbf16>
    %376 = vector.shape_cast %375 : vector<3x8x286xbf16> to vector<24x286xbf16>
    %c168_343 = arith.constant 168 : index
    %c2304_344 = arith.constant 2304 : index
    %377 = vector.load %arg7[%c168_343, %c2304_344] : memref<216x3072xbf16, #tpu.memory_space<vmem>>, vector<24x286xbf16>
    tpu.vector_store %arg7[%c168_343, %c2304_344], %376 {strides = array<i32>} : memref<216x3072xbf16, #tpu.memory_space<vmem>>, vector<24x286xbf16>,
    %c6_i32_345 = arith.constant 6 : i32
    %378 = arith.addi %0, %c6_i32_345 : i32
    %c0_346 = arith.constant 0 : index
    %379 = arith.index_cast %378 : i32 to index
    %c0_347 = arith.constant 0 : index
    %c38_348 = arith.constant 38 : index
    %380 = vector.load %arg2[%c0_346, %379, %c0_347, %c38_348] : memref<1x18x8x324xbf16, #tpu.memory_space<vmem>>, vector<1x3x8x286xbf16>
    %381 = vector.shape_cast %380 : vector<1x3x8x286xbf16> to vector<3x8x286xbf16>
    %382 = vector.shape_cast %381 : vector<3x8x286xbf16> to vector<24x286xbf16>
    %c192_349 = arith.constant 192 : index
    %c2304_350 = arith.constant 2304 : index
    %383 = vector.load %arg7[%c192_349, %c2304_350] : memref<216x3072xbf16, #tpu.memory_space<vmem>>, vector<24x286xbf16>
    tpu.vector_store %arg7[%c192_349, %c2304_350], %382 {strides = array<i32>} : memref<216x3072xbf16, #tpu.memory_space<vmem>>, vector<24x286xbf16>,
    %c7_i32 = arith.constant 7 : i32
    %384 = arith.addi %0, %c7_i32 : i32
    %c0_351 = arith.constant 0 : index
    %385 = arith.index_cast %384 : i32 to index
    %c0_352 = arith.constant 0 : index
    %c0_353 = arith.constant 0 : index
    %386 = vector.load %arg2[%c0_351, %385, %c0_352, %c0_353] : memref<1x18x8x324xbf16, #tpu.memory_space<vmem>>, vector<1x3x8x286xbf16>
    %387 = vector.shape_cast %386 : vector<1x3x8x286xbf16> to vector<3x8x286xbf16>
    %388 = vector.shape_cast %387 : vector<3x8x286xbf16> to vector<24x286xbf16>
    %c0_354 = arith.constant 0 : index
    %c2688 = arith.constant 2688 : index
    %389 = vector.load %arg7[%c0_354, %c2688] : memref<216x3072xbf16, #tpu.memory_space<vmem>>, vector<24x286xbf16>
    tpu.vector_store %arg7[%c0_354, %c2688], %388 {strides = array<i32>} : memref<216x3072xbf16, #tpu.memory_space<vmem>>, vector<24x286xbf16>,
    %c7_i32_355 = arith.constant 7 : i32
    %390 = arith.addi %0, %c7_i32_355 : i32
    %c0_356 = arith.constant 0 : index
    %391 = arith.index_cast %390 : i32 to index
    %c0_357 = arith.constant 0 : index
    %c1_358 = arith.constant 1 : index
    %392 = vector.load %arg2[%c0_356, %391, %c0_357, %c1_358] : memref<1x18x8x324xbf16, #tpu.memory_space<vmem>>, vector<1x3x8x286xbf16>
    %393 = vector.shape_cast %392 : vector<1x3x8x286xbf16> to vector<3x8x286xbf16>
    %394 = vector.shape_cast %393 : vector<3x8x286xbf16> to vector<24x286xbf16>
    %c24_359 = arith.constant 24 : index
    %c2688_360 = arith.constant 2688 : index
    %395 = vector.load %arg7[%c24_359, %c2688_360] : memref<216x3072xbf16, #tpu.memory_space<vmem>>, vector<24x286xbf16>
    tpu.vector_store %arg7[%c24_359, %c2688_360], %394 {strides = array<i32>} : memref<216x3072xbf16, #tpu.memory_space<vmem>>, vector<24x286xbf16>,
    %c7_i32_361 = arith.constant 7 : i32
    %396 = arith.addi %0, %c7_i32_361 : i32
    %c0_362 = arith.constant 0 : index
    %397 = arith.index_cast %396 : i32 to index
    %c0_363 = arith.constant 0 : index
    %c2_364 = arith.constant 2 : index
    %398 = vector.load %arg2[%c0_362, %397, %c0_363, %c2_364] : memref<1x18x8x324xbf16, #tpu.memory_space<vmem>>, vector<1x3x8x286xbf16>
    %399 = vector.shape_cast %398 : vector<1x3x8x286xbf16> to vector<3x8x286xbf16>
    %400 = vector.shape_cast %399 : vector<3x8x286xbf16> to vector<24x286xbf16>
    %c48_365 = arith.constant 48 : index
    %c2688_366 = arith.constant 2688 : index
    %401 = vector.load %arg7[%c48_365, %c2688_366] : memref<216x3072xbf16, #tpu.memory_space<vmem>>, vector<24x286xbf16>
    tpu.vector_store %arg7[%c48_365, %c2688_366], %400 {strides = array<i32>} : memref<216x3072xbf16, #tpu.memory_space<vmem>>, vector<24x286xbf16>,
    %c7_i32_367 = arith.constant 7 : i32
    %402 = arith.addi %0, %c7_i32_367 : i32
    %c0_368 = arith.constant 0 : index
    %403 = arith.index_cast %402 : i32 to index
    %c0_369 = arith.constant 0 : index
    %c18_370 = arith.constant 18 : index
    %404 = vector.load %arg2[%c0_368, %403, %c0_369, %c18_370] : memref<1x18x8x324xbf16, #tpu.memory_space<vmem>>, vector<1x3x8x286xbf16>
    %405 = vector.shape_cast %404 : vector<1x3x8x286xbf16> to vector<3x8x286xbf16>
    %406 = vector.shape_cast %405 : vector<3x8x286xbf16> to vector<24x286xbf16>
    %c72_371 = arith.constant 72 : index
    %c2688_372 = arith.constant 2688 : index
    %407 = vector.load %arg7[%c72_371, %c2688_372] : memref<216x3072xbf16, #tpu.memory_space<vmem>>, vector<24x286xbf16>
    tpu.vector_store %arg7[%c72_371, %c2688_372], %406 {strides = array<i32>} : memref<216x3072xbf16, #tpu.memory_space<vmem>>, vector<24x286xbf16>,
    %c7_i32_373 = arith.constant 7 : i32
    %408 = arith.addi %0, %c7_i32_373 : i32
    %c0_374 = arith.constant 0 : index
    %409 = arith.index_cast %408 : i32 to index
    %c0_375 = arith.constant 0 : index
    %c19_376 = arith.constant 19 : index
    %410 = vector.load %arg2[%c0_374, %409, %c0_375, %c19_376] : memref<1x18x8x324xbf16, #tpu.memory_space<vmem>>, vector<1x3x8x286xbf16>
    %411 = vector.shape_cast %410 : vector<1x3x8x286xbf16> to vector<3x8x286xbf16>
    %412 = vector.shape_cast %411 : vector<3x8x286xbf16> to vector<24x286xbf16>
    %c96_377 = arith.constant 96 : index
    %c2688_378 = arith.constant 2688 : index
    %413 = vector.load %arg7[%c96_377, %c2688_378] : memref<216x3072xbf16, #tpu.memory_space<vmem>>, vector<24x286xbf16>
    tpu.vector_store %arg7[%c96_377, %c2688_378], %412 {strides = array<i32>} : memref<216x3072xbf16, #tpu.memory_space<vmem>>, vector<24x286xbf16>,
    %c7_i32_379 = arith.constant 7 : i32
    %414 = arith.addi %0, %c7_i32_379 : i32
    %c0_380 = arith.constant 0 : index
    %415 = arith.index_cast %414 : i32 to index
    %c0_381 = arith.constant 0 : index
    %c20_382 = arith.constant 20 : index
    %416 = vector.load %arg2[%c0_380, %415, %c0_381, %c20_382] : memref<1x18x8x324xbf16, #tpu.memory_space<vmem>>, vector<1x3x8x286xbf16>
    %417 = vector.shape_cast %416 : vector<1x3x8x286xbf16> to vector<3x8x286xbf16>
    %418 = vector.shape_cast %417 : vector<3x8x286xbf16> to vector<24x286xbf16>
    %c120_383 = arith.constant 120 : index
    %c2688_384 = arith.constant 2688 : index
    %419 = vector.load %arg7[%c120_383, %c2688_384] : memref<216x3072xbf16, #tpu.memory_space<vmem>>, vector<24x286xbf16>
    tpu.vector_store %arg7[%c120_383, %c2688_384], %418 {strides = array<i32>} : memref<216x3072xbf16, #tpu.memory_space<vmem>>, vector<24x286xbf16>,
    %c7_i32_385 = arith.constant 7 : i32
    %420 = arith.addi %0, %c7_i32_385 : i32
    %c0_386 = arith.constant 0 : index
    %421 = arith.index_cast %420 : i32 to index
    %c0_387 = arith.constant 0 : index
    %c36_388 = arith.constant 36 : index
    %422 = vector.load %arg2[%c0_386, %421, %c0_387, %c36_388] : memref<1x18x8x324xbf16, #tpu.memory_space<vmem>>, vector<1x3x8x286xbf16>
    %423 = vector.shape_cast %422 : vector<1x3x8x286xbf16> to vector<3x8x286xbf16>
    %424 = vector.shape_cast %423 : vector<3x8x286xbf16> to vector<24x286xbf16>
    %c144_389 = arith.constant 144 : index
    %c2688_390 = arith.constant 2688 : index
    %425 = vector.load %arg7[%c144_389, %c2688_390] : memref<216x3072xbf16, #tpu.memory_space<vmem>>, vector<24x286xbf16>
    tpu.vector_store %arg7[%c144_389, %c2688_390], %424 {strides = array<i32>} : memref<216x3072xbf16, #tpu.memory_space<vmem>>, vector<24x286xbf16>,
    %c7_i32_391 = arith.constant 7 : i32
    %426 = arith.addi %0, %c7_i32_391 : i32
    %c0_392 = arith.constant 0 : index
    %427 = arith.index_cast %426 : i32 to index
    %c0_393 = arith.constant 0 : index
    %c37_394 = arith.constant 37 : index
    %428 = vector.load %arg2[%c0_392, %427, %c0_393, %c37_394] : memref<1x18x8x324xbf16, #tpu.memory_space<vmem>>, vector<1x3x8x286xbf16>
    %429 = vector.shape_cast %428 : vector<1x3x8x286xbf16> to vector<3x8x286xbf16>
    %430 = vector.shape_cast %429 : vector<3x8x286xbf16> to vector<24x286xbf16>
    %c168_395 = arith.constant 168 : index
    %c2688_396 = arith.constant 2688 : index
    %431 = vector.load %arg7[%c168_395, %c2688_396] : memref<216x3072xbf16, #tpu.memory_space<vmem>>, vector<24x286xbf16>
    tpu.vector_store %arg7[%c168_395, %c2688_396], %430 {strides = array<i32>} : memref<216x3072xbf16, #tpu.memory_space<vmem>>, vector<24x286xbf16>,
    %c7_i32_397 = arith.constant 7 : i32
    %432 = arith.addi %0, %c7_i32_397 : i32
    %c0_398 = arith.constant 0 : index
    %433 = arith.index_cast %432 : i32 to index
    %c0_399 = arith.constant 0 : index
    %c38_400 = arith.constant 38 : index
    %434 = vector.load %arg2[%c0_398, %433, %c0_399, %c38_400] : memref<1x18x8x324xbf16, #tpu.memory_space<vmem>>, vector<1x3x8x286xbf16>
    %435 = vector.shape_cast %434 : vector<1x3x8x286xbf16> to vector<3x8x286xbf16>
    %436 = vector.shape_cast %435 : vector<3x8x286xbf16> to vector<24x286xbf16>
    %c192_401 = arith.constant 192 : index
    %c2688_402 = arith.constant 2688 : index
    %437 = vector.load %arg7[%c192_401, %c2688_402] : memref<216x3072xbf16, #tpu.memory_space<vmem>>, vector<24x286xbf16>
    tpu.vector_store %arg7[%c192_401, %c2688_402], %436 {strides = array<i32>} : memref<216x3072xbf16, #tpu.memory_space<vmem>>, vector<24x286xbf16>,
    %c0_403 = arith.constant 0 : index
    %c0_404 = arith.constant 0 : index
    %438 = vector.load %arg3[%c0_403, %c0_404] : memref<9x216xbf16, #tpu.memory_space<vmem>>, vector<9x216xbf16>
    %c0_405 = arith.constant 0 : index
    %c0_406 = arith.constant 0 : index
    %439 = vector.load %arg7[%c0_405, %c0_406] : memref<216x3072xbf16, #tpu.memory_space<vmem>>, vector<216x3072xbf16>
    %cst = arith.constant dense<0.000000e+00> : vector<9x3072xf32>
    %440 = tpu.matmul %438, %439, %cst {dimension_numbers = #tpu.dot_dimension_numbers<[1], [0], [0], [1], [0, 0, 1, 1], [], []>} : vector<9x216xbf16>, vector<216x3072xbf16>, vector<9x3072xf32> -> vector<9x3072xf32>
    %441 = vector.extract_strided_slice %440 {offsets = [0, 0], sizes = [8, 3072], strides = [1, 1]} : vector<9x3072xf32> to vector<8x3072xf32>
    %442 = vector.extract_strided_slice %440 {offsets = [8, 0], sizes = [1, 3072], strides = [1, 1]} : vector<9x3072xf32> to vector<1x3072xf32>
    %cst_407 = arith.constant 9.99999993E-9 : f32
    %443 = vector.broadcast %cst_407 : f32 to vector<1x3072xf32>
    %444 = arith.addf %442, %443 : vector<1x3072xf32>
    %cst_408 = arith.constant 1.080000e+02 : f32
    %445 = vector.broadcast %cst_408 : f32 to vector<1x3072xf32>
    %446 = arith.divf %445, %444 : vector<1x3072xf32>
    %cst_409 = arith.constant 0.000000e+00 : f32
    %cst_410 = arith.constant 1.000000e+00 : f32
    %447 = vector.broadcast %cst_409 : f32 to vector<1x3072xf32>
    %448 = arith.maximumf %447, %442 : vector<1x3072xf32>
    %449 = vector.broadcast %cst_410 : f32 to vector<1x3072xf32>
    %450 = arith.minimumf %449, %448 : vector<1x3072xf32>
    %451 = arith.mulf %446, %450 : vector<1x3072xf32>
    %452 = vector.broadcast %451 : vector<1x3072xf32> to vector<8x3072xf32>
    %453 = arith.mulf %441, %452 : vector<8x3072xf32>
    %c0_411 = arith.constant 0 : index
    %c0_412 = arith.constant 0 : index
    %454 = vector.load %arg4[%c0_411, %c0_412] : memref<8x1xf32, #tpu.memory_space<vmem>>, vector<8x1xf32>
    %455 = vector.broadcast %454 : vector<8x1xf32> to vector<8x3072xf32>
    %456 = arith.addf %453, %455 : vector<8x3072xf32>
    %457 = vector.broadcast %450 : vector<1x3072xf32> to vector<8x3072xf32>
    %458 = arith.mulf %456, %457 : vector<8x3072xf32>
    %c0_413 = arith.constant 0 : index
    %c0_414 = arith.constant 0 : index
    %c0_415 = arith.constant 0 : index
    %c0_416 = arith.constant 0 : index
    %459 = vector.load %arg5[%c0_413, %c0_414, %c0_415, %c0_416] : memref<1x1x8x3072xf32, #tpu.memory_space<vmem>>, vector<1x1x8x3072xf32>
    %460 = vector.shape_cast %459 : vector<1x1x8x3072xf32> to vector<8x3072xf32>
    %461 = vector.shape_cast %458 : vector<8x3072xf32> to vector<1x1x8x3072xf32>
    tpu.vector_store %arg5[%c0_413, %c0_414, %c0_415, %c0_416], %461 {strides = array<i32>} : memref<1x1x8x3072xf32, #tpu.memory_space<vmem>>, vector<1x1x8x3072xf32>,
    %c0_417 = arith.constant 0 : index
    %c0_418 = arith.constant 0 : index
    %c0_419 = arith.constant 0 : index
    %c0_420 = arith.constant 0 : index
    %462 = vector.load %arg6[%c0_417, %c0_418, %c0_419, %c0_420] : memref<1x1x1x3072xf32, #tpu.memory_space<vmem>>, vector<1x1x1x3072xf32>
    %463 = vector.shape_cast %462 : vector<1x1x1x3072xf32> to vector<1x3072xf32>
    %464 = vector.shape_cast %450 : vector<1x3072xf32> to vector<1x1x1x3072xf32>
    tpu.vector_store %arg6[%c0_417, %c0_418, %c0_419, %c0_420], %464 {strides = array<i32>} : memref<1x1x1x3072xf32, #tpu.memory_space<vmem>>, vector<1x1x1x3072xf32>,
    return
  }
  func.func @transform_0(%arg0: i32, %arg1: i32) -> (i32, i32, i32, i32) {
    %c0_i32 = arith.constant 0 : i32
    %c0_i32_0 = arith.constant 0 : i32
    %c0_i32_1 = arith.constant 0 : i32
    %c0_i32_2 = arith.constant 0 : i32
    return %arg0, %c0_i32, %c0_i32_0, %c0_i32_1 : i32, i32, i32, i32
  }
  func.func @transform_1(%arg0: i32, %arg1: i32) -> (i32, i32) {
    %c0_i32 = arith.constant 0 : i32
    %c0_i32_0 = arith.constant 0 : i32
    %c0_i32_1 = arith.constant 0 : i32
    return %c0_i32, %c0_i32_0 : i32, i32
  }
  func.func @transform_2(%arg0: i32, %arg1: i32) -> (i32, i32) {
    %c0_i32 = arith.constant 0 : i32
    %c0_i32_0 = arith.constant 0 : i32
    %c0_i32_1 = arith.constant 0 : i32
    return %c0_i32, %c0_i32_0 : i32, i32
  }
  func.func @transform_3(%arg0: i32, %arg1: i32) -> (i32, i32, i32, i32) {
    %c0_i32 = arith.constant 0 : i32
    %c0_i32_0 = arith.constant 0 : i32
    %c0_i32_1 = arith.constant 0 : i32
    return %arg0, %arg1, %c0_i32, %c0_i32_0 : i32, i32, i32, i32
  }
  func.func @transform_4(%arg0: i32, %arg1: i32) -> (i32, i32, i32, i32) {
    %c0_i32 = arith.constant 0 : i32
    %c0_i32_0 = arith.constant 0 : i32
    %c0_i32_1 = arith.constant 0 : i32
    return %arg0, %arg1, %c0_i32, %c0_i32_0 : i32, i32, i32, i32
  }
}

</mosaic_0001>

<bundles_post_ra>
// kernel: tpu_custom_call.1
= control target key start
LH: loop header
LB: loop body
LE: loop exit
PB: predicated region body
PF: predicated region fallthrough
CT: control target
= control target key end

     0   :  { %s10945_s0 = inlined_call_operand.hbm [shape: bf16[2,18,8,324], index: 0, kind: input, shape index: {}]   ;;  %s10946_s1 = inlined_call_operand.hbm [shape: bf16[9,216], index: 1, kind: input, shape index: {}]   ;;  %s10947_s2 = inlined_call_operand.vmem [shape: f32[8,1], index: 2, kind: input, shape index: {}]   ;;  %s10948_s3 = inlined_call_operand.hbm [shape: f32[2,2,8,3072], index: 3, kind: output, shape index: {0}]   ;;  %s10949_s4 = inlined_call_operand.hbm [shape: f32[2,2,1,3072], index: 4, kind: output, shape index: {1}]  }
   0x1   :  { %10961 = sst [smem:[#allocation20_spill]] %s10946_s1 }
   0x2   :  { %10962 = sst [smem:[#allocation21_spill]] %s10948_s3 }
   0x3   :  { %10 = vsyncpa [#allocation4], 0 }
   0x4   :  { %12 = vsyncpa [#allocation4 + $0x1], 0 }
   0x5   :  { %13 = vsyncpa [#allocation7], 0 }
   0x6   :  { %14 = vsyncpa [#allocation5], 0 }
   0x7   :  { %16 = vsyncpa [#allocation5 + $0x1], 0 }
   0x8   :  { %17 = vsyncpa [#allocation10], 0 }
   0x9   :  { %19 = vsyncpa [#allocation10 + $0x1], 0  ;;  %s8411_s15 = smov 0   ;;  %s8413_s16 = smov 0  }
   0xa   :  { %s8415_s17 = smov 0   ;;  %s8417_s18 = smov 0  }
   0xb   :  { %s8419_s19 = smov 0   ;;  %s8421_s20 = smov 0  }
   0xc   :  { %s8423_s21 = smov 0   ;;  %s8425_s22 = smov 0  }
   0xd   :  { %s8427_s23 = smov 0   ;;  %s8429_s24 = smov 0  }
   0xe   :  { %s8431_s25 = smov 0  }
   0xf LB: > { %10963 = sst [smem:[#allocation15_spill]] %s8325_s15  ;;  %s7159_s26 = sadd.s32 4294967295, %s8365_s25   ;;  %s8365_s25 = sphi %s8431_s25, %s25_s25   ;;  %s8361_s24 = sphi %s8429_s24, %s10996_s24   ;;  %s8357_s23 = sphi %s8427_s23, %s10987_s23   ;;  %s8353_s22 = sphi %s8425_s22, %s10995_s22   ;;  %s8349_s21 = sphi %s8423_s21, %s10986_s21   ;;  %s8345_s20 = sphi %s8421_s20, %s10994_s20   ;;  %s8341_s19 = sphi %s8419_s19, %s10993_s19   ;;  %s8337_s18 = sphi %s8417_s18, %s10992_s18   ;;  %s8333_s17 = sphi %s8415_s17, %s10991_s17   ;;  %s8329_s16 = sphi %s8413_s16, %s10990_s16   ;;  %s8325_s15 = sphi %s8411_s15, %s10989_s15  }
  0x10   : > { %10964 = sst [smem:[#allocation16_spill]] %s8357_s23  ;;  %s7160_s27 = sadd.s32 4294967294, %s8365_s25  }
  0x11   : > { %p57_p0 = scmp.ne.s32.totalorder %s8341_s19, %s8337_s18  ;;  %p8467_p1 = scmp.eq.s32.totalorder %s7159_s26, 0 }
  0x12   : > { %p124_p2 = scmp.ne.s32.totalorder %s8333_s17, %s8329_s16  ;;  %p125_p4 = scmp.eq.s32.totalorder %s7159_s26, 3 }
  0x13   : > { %s10965_s28 = scalar_select %p8467_p1, 1, 0 }
  0x14   : > { %p8476_p3 = por %p8467_p1, %p57_p0  ;;  %p130_p5 = scmp.ne.s32.totalorder %s8329_s16, %s8325_s15 }
  0x15   : > { %p131_p6 = scmp.eq.s32.totalorder %s7160_s27, 3  ;;  %p8482_p7 = por %p125_p4, %p124_p2 }
  0x16   : > { %s10966_s30 = scalar_select %p8476_p3, 1, 0 }
  0x17   : > { %s10967_s5 = scalar_select %p8482_p7, 1, 0 }
  0x18   : > { %p7161_p8 = scmp.ge.s32.totalorder %s8365_s25, 1  ;;  %p8487_p9 = por %p131_p6, %p130_p5 }
  0x19   : > { %p166_p10 = scmp.lt.s32.totalorder %s8365_s25, 5  ;;  %s8367_s8 = smov [#allocation6]  }
  0x1a   : > { %s10968_s6 = scalar_select %p8487_p9, 1, 0 }
  0x1b   : > { %p8492_p11 = pnand %p7161_p8, %p166_p10  ;;  %s178_s9 = sshll.u32 %s8367_s8, 4  ;;  %s179_s9 = int_to_ptr.vmem [resolvable:$true] %s178_s9 }
  0x1c   : > { %10969 = sst [smem:[#allocation17_spill]] %s10968_s6  ;;  %s10972_s1 = sld [smem:[#allocation20_spill]] }
  0x1d   : > { %s10970_s7 = scalar_select %p8492_p11, 1, 0 }
  0x1e   : > { %p7948_p12 = pneg %p8492_p11 }
  0x20   : > { %p8500_p13 = pnand %p7948_p12, %p8467_p1 }
  0x22   : > { %s8149_s13 = scalar_lea.hbm %s10972_s1, 256  ;;  %p8151_p2 = pneg %p8500_p13 }
  0x23   : > { %p8150_p0 = scmp.ne.s32.totalorder %s10972_s1, %s8149_s13  ;;  %p8156_p6 = scmp.lt.u32.totalorder %s8149_s13, %s10972_s1 }
  0x25   : > { %p8152_p4 = pnand %p8151_p2, %p8150_p0 }
  0x27   : > { %p8153_p5 = pneg %p8152_p4 }
  0x29   : > { %p8158_p8 = pnand %p8156_p6, %p8153_p5 }
  0x2b   : > { %8161 = shalt.err (!%p8158_p8)
}
  0x2c   : > { %s8162_s8 = scalar_lea.vmem %s179_s9, 256  ;;  %p8170_p7 = scmp.lt.s32.totalorder %s179_s9, %s179_s9 }
  0x2d   : > { %p8163_p10 = scmp.ne.s32.totalorder %s179_s9, %s8162_s8  ;;  %p8171_p1 = scmp.lt.s32.totalorder %s8162_s8, %s8162_s8 }
  0x2f   : > { %p8165_p12 = pnand %p8163_p10, %p8151_p2  ;;  %p8172_p3 = por %p8171_p1, %p8170_p7 }
  0x31   : > { %p8166_p9 = pneg %p8165_p12 }
  0x33   : > { %p8173_p11 = pnand %p8172_p3, %p8166_p9 }
  0x35   : > { %8176 = shalt.err (!%p8173_p11)
}
  0x36   : > { %s8368_s11 = smov 128   ;;  %s8369_s12 = smov 8  }
  0x37   : > { %7951 = dma.hbm_to_vmem [thread:$0]  (!%p8500_p13), %s10972_s1, 256, %s179_s9, [#allocation7], %s8368_s11, %s8368_s11, %s8369_s12  }
  0x38   : > { %s34_s18 = sadd.s32 1, %s8357_s23  ;;  %s37_s26 = sadd.s32 1, %s8361_s24 }
  0x39   : > { %p35_p1 = scmp.ge.s32.totalorder %s34_s18, 2  ;;  %s44_s27 = sadd.s32 1, %s8345_s20 }
  0x3a   : > { %p51_p3 = scmp.ne.s32.totalorder %s8345_s20, %s8341_s19  ;;  %p52_p7 = scmp.eq.s32.totalorder %s8365_s25, 0 }
  0x3b   : > { %s10998_s18 = smov (%p35_p1, %s34_s18), 0  ;;  %s11000_s26 = smov (!%p35_p1, %s37_s26), %s8361_s24 }
  0x3c   : > { %10973 = sst [smem:[#allocation18_spill]] %s10998_s18  ;;  %s110_s10 = ssub.s32 %s8357_s23, %s10998_s18 }
  0x3d   : > { %p39_p9 = scmp.ge.s32.totalorder %s11000_s26, 2  ;;  %p7964_p11 = scmp.lt.s32.totalorder %s8365_s25, 4 }
  0x3e   : > { %p8532_p13 = por %p52_p7, %p51_p3  ;;  %s195_s8 = sand.u32 1, %s8345_s20  }
  0x3f   : > { %s11002_s26 = smov (%p39_p9, %s11000_s26), 0  ;;  %s7929_s11 = smul.u32 216, %s195_s8 }
  0x40   : > { %10975 = sst [smem:[#allocation19_spill]] %s11002_s26  ;;  %s41_s12 = ssub.s32 %s8361_s24, %s11002_s26 }
  0x41   : > { %s7930_s13 = smul.u32 3456, %s8361_s24  ;;  %p42_p0 = scmp.eq.s32.totalorder %s41_s12, 0 }
  0x42   : > { %s111_s14 = sor.u32 %s110_s10, %s41_s12  ;;  %s10976_s1 = sadd.s32 1, %s8333_s17 }
  0x43   : > { %p112_p2 = scmp.eq.s32.totalorder %s111_s14, 0  ;;  %s8553_s15 = scalar_lea.hbm %s10945_s0, %s7930_s13 }
  0x44   : > { %s8543_s29 = scalar_select %p42_p0, %s8345_s20, %s44_s27  }
  0x45   : > { %s8548_s18 = scalar_select %p112_p2, %s8333_s17, %s10976_s1  }
  0x46   : > { %s199_s3 = scalar_lea.vmem [#allocation3], %s7929_s11  ;;  %p8561_p4 = pnand %p7964_p11, %p8532_p13 }
  0x47   : > { %s206_s26 = sshll.u32 %s199_s3, 4  ;;  %s8565_s1 = scalar_lea.sflag [#allocation4], %s195_s8  ;;  %s8555_s26 = int_to_ptr.vmem [resolvable:$true] %s206_s26 }
  0x48   : > { %s8177_s23 = scalar_lea.hbm %s8553_s15, 3456  ;;  %p8179_p6 = pneg %p8561_p4 }
  0x49   : > { %p8178_p5 = scmp.ne.s32.totalorder %s8553_s15, %s8177_s23  ;;  %s8182_s10 = scalar_lea.hbm %s10945_s0, 6912 }
  0x4a   : > { %p8183_p12 = scmp.lt.u32.totalorder %s8553_s15, %s10945_s0  ;;  %p8184_p1 = scmp.lt.u32.totalorder %s8182_s10, %s8177_s23 }
  0x4b   : > { %p8180_p8 = pnand %p8179_p6, %p8178_p5  ;;  %p8186_p7 = scmp.lt.u32.totalorder %s8177_s23, %s8553_s15 }
  0x4c   : > { %p8185_p3 = por %p8184_p1, %p8183_p12 }
  0x4d   : > { %p8181_p10 = pneg %p8180_p8 }
  0x4e   : > { %p8187_p9 = por %p8186_p7, %p8185_p3 }
  0x50   : > { %p8188_p11 = pnand %p8187_p9, %p8181_p10 }
  0x52   : > { %8191 = shalt.err (!%p8188_p11)
}
  0x53   : > { %s8192_s8 = scalar_lea.vmem %s8555_s26, 3456  ;;  %s8370_s12 = smov [#allocation3]  }
  0x54   : > { %p8193_p13 = scmp.ne.s32.totalorder %s8555_s26, %s8192_s8  ;;  %s8197_s13 = sshll.u32 %s8370_s12, 4  ;;  %s8198_s13 = int_to_ptr.vmem [resolvable:$false] %s8197_s13 }
  0x55   : > { %s8199_s14 = scalar_lea.vmem %s8198_s13, 6912  ;;  %p8200_p5 = scmp.lt.s32.totalorder %s8555_s26, %s8198_s13 }
  0x56   : > { %p8195_p0 = pnand %p8193_p13, %p8179_p6  ;;  %p8201_p8 = scmp.lt.s32.totalorder %s8199_s14, %s8192_s8 }
  0x58   : > { %p8196_p2 = pneg %p8195_p0  ;;  %p8202_p12 = por %p8201_p8, %p8200_p5 }
  0x5a   : > { %p8203_p1 = pnand %p8202_p12, %p8196_p2 }
  0x5c   : > { %8206 = shalt.err (!%p8203_p1)
}
  0x5d   : > { %s8371_s23 = smov 192   ;;  %s8372_s3 = smov 12  }
  0x5e   : > { %7955 = dma.hbm_to_vmem [thread:$0]  (!%p8561_p4), %s8553_s15, 3456, %s8555_s26, %s8565_s1, %s8371_s23, %s8371_s23, %s8372_s3  }
  0x5f   : > { %p10978_p6 = scmp.ne.s32.totalorder %s10970_s7, 0 }
  0x60   : > { %s220_s6 = sand.u32 (!%p10978_p6), 1, %s8341_s19   ;;  %p10979_p10 = scmp.ne.s32.totalorder (!%p10978_p6), %s10966_s30, 0 }
  0x61   : > { %218 = sbr.rel (%p10978_p6) target bundleno = 1399 (0x577), region = 32  ;;  %s221_s9 = scalar_lea.sflag (!%p10978_p6), [#allocation4], %s220_s6 }
  0x62   : > { %s8596_s10 = smul.u32 (!%p10978_p6), 216, %s220_s6 }
  0x64   : > { %s224_s11 = scalar_lea.vmem (!%p10978_p6), [#allocation3], %s8596_s10 }
  0x68   : > { %8308 = dma.done.wait (%p10979_p10), %s221_s9, 3456  }
  0x69   : > { %8310 = vsyncadd (%p10979_p10), %s221_s9, 4294963840  ;;  %p10980_p3 = scmp.ne.s32.totalorder %s10965_s28, 0 }
  0x6b   : > { %8312 = dma.done.wait (%p10980_p3), [#allocation7], 256  }
  0x6c   : > { %8314 = vsyncadd (%p10980_p3), [#allocation7], 4294967040  ;;  %s8608_s15 = sand.u32 1, %s8329_s16   ;;  %p260_p4 = scmp.eq.s32.totalorder %s8353_s22, 0 }
  0x6d   : > { %s7932_s7 = smul.u32 192, %s8608_s15  ;;  %p261_p7 = scmp.eq.s32.totalorder %s8349_s21, 0 }
  0x6e   : > { %s7933_s26 = smul.u32 24, %s8608_s15 }
  0x6f   : > { %p262_p9 = pnand %p261_p7, %p260_p4  ;;  %s8614_s30 = scalar_lea.vmem [#allocation8], %s7932_s7 }
  0x70   : > { %s8616_s27 = scalar_lea.vmem [#allocation9], %s7933_s26  ;;  %v8373_v0 = vmov (!%p262_p9), 0  }
  0x71   : > { %265 = sbr.rel (%p262_p9) target bundleno = 224 (0xe0), region = 44  ;;  %267 = vst [vmem:[#allocation2 + $0x8] sm:$0xff] (!%p262_p9), %v8373_v0  ;;  %268 = vst [vmem:[#allocation2 + $0x10] sm:$0xff] (!%p262_p9), %v8373_v0 }
  0x72   : > { %270 = vst [vmem:[#allocation2 + $0x20] sm:$0xff] (!%p262_p9), %v8373_v0  ;;  %271 = vst [vmem:[#allocation2 + $0x28] sm:$0xff] (!%p262_p9), %v8373_v0 }
  0x73   : > { %272 = vst [vmem:[#allocation2 + $0x30] sm:$0xff] (!%p262_p9), %v8373_v0  ;;  %273 = vst [vmem:[#allocation2 + $0x38] sm:$0xff] (!%p262_p9), %v8373_v0 }
  0x74   : > { %274 = vst [vmem:[#allocation2 + $0x40] sm:$0xff] (!%p262_p9), %v8373_v0  ;;  %275 = vst [vmem:[#allocation2 + $0x48] sm:$0xff] (!%p262_p9), %v8373_v0 }
  0x75   : > { %276 = vst [vmem:[#allocation2 + $0x50] sm:$0xff] (!%p262_p9), %v8373_v0  ;;  %277 = vst [vmem:[#allocation2 + $0x58] sm:$0xff] (!%p262_p9), %v8373_v0 }
  0x76   : > { %279 = vst [vmem:[#allocation2 + $0x68] sm:$0xff] (!%p262_p9), %v8373_v0  ;;  %280 = vst [vmem:[#allocation2 + $0x70] sm:$0xff] (!%p262_p9), %v8373_v0 }
  0x77   : > { %281 = vst [vmem:[#allocation2 + $0x78] sm:$0xff] (!%p262_p9), %v8373_v0  ;;  %282 = vst [vmem:[#allocation2 + $0x80] sm:$0xff] (!%p262_p9), %v8373_v0 }
  0x78   : > { %283 = vst [vmem:[#allocation2 + $0x88] sm:$0xff] %v8373_v0  ;;  %285 = vst [vmem:[#allocation2 + $0x98] sm:$0xff] %v8373_v0 }
  0x79   : > { %286 = vst [vmem:[#allocation2 + $0xa0] sm:$0xff] %v8373_v0  ;;  %287 = vst [vmem:[#allocation2 + $0xa8] sm:$0xff] %v8373_v0 }
  0x7a   : > { %288 = vst [vmem:[#allocation2 + $0xb0] sm:$0xff] %v8373_v0  ;;  %289 = vst [vmem:[#allocation2 + $0xb8] sm:$0xff] %v8373_v0 }
  0x7b   : > { %291 = vst [vmem:[#allocation2 + $0xc8] sm:$0xff] %v8373_v0  ;;  %292 = vst [vmem:[#allocation2 + $0xd0] sm:$0xff] %v8373_v0 }
  0x7c   : > { %293 = vst [vmem:[#allocation2 + $0xd8] sm:$0xff] %v8373_v0  ;;  %294 = vst [vmem:[#allocation2 + $0xe0] sm:$0xff] %v8373_v0 }
  0x7d   : > { %295 = vst [vmem:[#allocation2 + $0xe8] sm:$0xff] %v8373_v0  ;;  %297 = vst [vmem:[#allocation2 + $0xf8] sm:$0xff] %v8373_v0 }
  0x7e   : > { %298 = vst [vmem:[#allocation2 + $0x100] sm:$0xff] %v8373_v0  ;;  %299 = vst [vmem:[#allocation2 + $0x108] sm:$0xff] %v8373_v0 }
  0x7f   : > { %300 = vst [vmem:[#allocation2 + $0x110] sm:$0xff] %v8373_v0  ;;  %301 = vst [vmem:[#allocation2 + $0x118] sm:$0xff] %v8373_v0 }
  0x80   : > { %303 = vst [vmem:[#allocation2 + $0x128] sm:$0xff] %v8373_v0  ;;  %304 = vst [vmem:[#allocation2 + $0x130] sm:$0xff] %v8373_v0 }
  0x81   : > { %306 = vst [vmem:[#allocation2 + $0x140] sm:$0xff] %v8373_v0  ;;  %307 = vst [vmem:[#allocation2 + $0x148] sm:$0xff] %v8373_v0 }
  0x82   : > { %309 = vst [vmem:[#allocation2 + $0x158] sm:$0xff] %v8373_v0  ;;  %310 = vst [vmem:[#allocation2 + $0x160] sm:$0xff] %v8373_v0 }
  0x83   : > { %312 = vst [vmem:[#allocation2 + $0x170] sm:$0xff] %v8373_v0  ;;  %313 = vst [vmem:[#allocation2 + $0x178] sm:$0xff] %v8373_v0 }
  0x84   : > { %315 = vst [vmem:[#allocation2 + $0x188] sm:$0xff] %v8373_v0  ;;  %316 = vst [vmem:[#allocation2 + $0x190] sm:$0xff] %v8373_v0 }
  0x85   : > { %318 = vst [vmem:[#allocation2 + $0x1a0] sm:$0xff] %v8373_v0  ;;  %319 = vst [vmem:[#allocation2 + $0x1a8] sm:$0xff] %v8373_v0 }
  0x86   : > { %321 = vst [vmem:[#allocation2 + $0x1b8] sm:$0xff] %v8373_v0  ;;  %322 = vst [vmem:[#allocation2 + $0x1c0] sm:$0xff] %v8373_v0 }
  0x87   : > { %324 = vst [vmem:[#allocation2 + $0x1d0] sm:$0xff] %v8373_v0  ;;  %325 = vst [vmem:[#allocation2 + $0x1d8] sm:$0xff] %v8373_v0 }
  0x88   : > { %327 = vst [vmem:[#allocation2 + $0x1e8] sm:$0xff] %v8373_v0  ;;  %328 = vst [vmem:[#allocation2 + $0x1f0] sm:$0xff] %v8373_v0 }
  0x89   : > { %330 = vst [vmem:[#allocation2 + $0x200] sm:$0xff] %v8373_v0  ;;  %331 = vst [vmem:[#allocation2 + $0x208] sm:$0xff] %v8373_v0 }
  0x8a   : > { %333 = vst [vmem:[#allocation2 + $0x218] sm:$0xff] %v8373_v0  ;;  %334 = vst [vmem:[#allocation2 + $0x220] sm:$0xff] %v8373_v0 }
  0x8b   : > { %336 = vst [vmem:[#allocation2 + $0x230] sm:$0xff] %v8373_v0  ;;  %337 = vst [vmem:[#allocation2 + $0x238] sm:$0xff] %v8373_v0 }
  0x8c   : > { %339 = vst [vmem:[#allocation2 + $0x248] sm:$0xff] %v8373_v0  ;;  %340 = vst [vmem:[#allocation2 + $0x250] sm:$0xff] %v8373_v0 }
  0x8d   : > { %342 = vst [vmem:[#allocation2 + $0x260] sm:$0xff] %v8373_v0  ;;  %343 = vst [vmem:[#allocation2 + $0x268] sm:$0xff] %v8373_v0 }
  0x8e   : > { %345 = vst [vmem:[#allocation2 + $0x278] sm:$0xff] %v8373_v0  ;;  %346 = vst [vmem:[#allocation2 + $0x280] sm:$0xff] %v8373_v0 }
  0x8f   : > { %348 = vst [vmem:[#allocation2 + $0x290] sm:$0xff] %v8373_v0  ;;  %349 = vst [vmem:[#allocation2 + $0x298] sm:$0xff] %v8373_v0 }
  0x90   : > { %351 = vst [vmem:[#allocation2 + $0x2a8] sm:$0xff] %v8373_v0  ;;  %352 = vst [vmem:[#allocation2 + $0x2b0] sm:$0xff] %v8373_v0 }
  0x91   : > { %354 = vst [vmem:[#allocation2 + $0x2c0] sm:$0xff] %v8373_v0  ;;  %355 = vst [vmem:[#allocation2 + $0x2c8] sm:$0xff] %v8373_v0 }
  0x92   : > { %357 = vst [vmem:[#allocation2 + $0x2d8] sm:$0xff] %v8373_v0  ;;  %358 = vst [vmem:[#allocation2 + $0x2e0] sm:$0xff] %v8373_v0 }
  0x93   : > { %360 = vst [vmem:[#allocation2 + $0x2f0] sm:$0xff] %v8373_v0  ;;  %361 = vst [vmem:[#allocation2 + $0x2f8] sm:$0xff] %v8373_v0 }
  0x94   : > { %363 = vst [vmem:[#allocation2 + $0x308] sm:$0xff] %v8373_v0  ;;  %364 = vst [vmem:[#allocation2 + $0x310] sm:$0xff] %v8373_v0 }
  0x95   : > { %366 = vst [vmem:[#allocation2 + $0x320] sm:$0xff] %v8373_v0  ;;  %367 = vst [vmem:[#allocation2 + $0x328] sm:$0xff] %v8373_v0 }
  0x96   : > { %369 = vst [vmem:[#allocation2 + $0x338] sm:$0xff] %v8373_v0  ;;  %370 = vst [vmem:[#allocation2 + $0x340] sm:$0xff] %v8373_v0 }
  0x97   : > { %372 = vst [vmem:[#allocation2 + $0x350] sm:$0xff] %v8373_v0  ;;  %373 = vst [vmem:[#allocation2 + $0x358] sm:$0xff] %v8373_v0 }
  0x98   : > { %375 = vst [vmem:[#allocation2 + $0x368] sm:$0xff] %v8373_v0  ;;  %376 = vst [vmem:[#allocation2 + $0x370] sm:$0xff] %v8373_v0 }
  0x99   : > { %378 = vst [vmem:[#allocation2 + $0x380] sm:$0xff] %v8373_v0  ;;  %379 = vst [vmem:[#allocation2 + $0x388] sm:$0xff] %v8373_v0 }
  0x9a   : > { %381 = vst [vmem:[#allocation2 + $0x398] sm:$0xff] %v8373_v0  ;;  %382 = vst [vmem:[#allocation2 + $0x3a0] sm:$0xff] %v8373_v0 }
  0x9b   : > { %384 = vst [vmem:[#allocation2 + $0x3b0] sm:$0xff] %v8373_v0  ;;  %385 = vst [vmem:[#allocation2 + $0x3b8] sm:$0xff] %v8373_v0 }
  0x9c   : > { %387 = vst [vmem:[#allocation2 + $0x3c8] sm:$0xff] %v8373_v0  ;;  %388 = vst [vmem:[#allocation2 + $0x3d0] sm:$0xff] %v8373_v0 }
  0x9d   : > { %390 = vst [vmem:[#allocation2 + $0x3e0] sm:$0xff] %v8373_v0  ;;  %391 = vst [vmem:[#allocation2 + $0x3e8] sm:$0xff] %v8373_v0 }
  0x9e   : > { %393 = vst [vmem:[#allocation2 + $0x3f8] sm:$0xff] %v8373_v0  ;;  %394 = vst [vmem:[#allocation2 + $0x400] sm:$0xff] %v8373_v0 }
  0x9f   : > { %396 = vst [vmem:[#allocation2 + $0x410] sm:$0xff] %v8373_v0  ;;  %397 = vst [vmem:[#allocation2 + $0x418] sm:$0xff] %v8373_v0 }
  0xa0   : > { %399 = vst [vmem:[#allocation2 + $0x428] sm:$0xff] %v8373_v0  ;;  %400 = vst [vmem:[#allocation2 + $0x430] sm:$0xff] %v8373_v0 }
  0xa1   : > { %402 = vst [vmem:[#allocation2 + $0x440] sm:$0xff] %v8373_v0  ;;  %403 = vst [vmem:[#allocation2 + $0x448] sm:$0xff] %v8373_v0 }
  0xa2   : > { %405 = vst [vmem:[#allocation2 + $0x458] sm:$0xff] %v8373_v0  ;;  %406 = vst [vmem:[#allocation2 + $0x460] sm:$0xff] %v8373_v0 }
  0xa3   : > { %408 = vst [vmem:[#allocation2 + $0x470] sm:$0xff] %v8373_v0  ;;  %409 = vst [vmem:[#allocation2 + $0x478] sm:$0xff] %v8373_v0 }
  0xa4   : > { %411 = vst [vmem:[#allocation2 + $0x488] sm:$0xff] %v8373_v0  ;;  %412 = vst [vmem:[#allocation2 + $0x490] sm:$0xff] %v8373_v0 }
  0xa5   : > { %414 = vst [vmem:[#allocation2 + $0x4a0] sm:$0xff] %v8373_v0  ;;  %415 = vst [vmem:[#allocation2 + $0x4a8] sm:$0xff] %v8373_v0 }
  0xa6   : > { %417 = vst [vmem:[#allocation2 + $0x4b8] sm:$0xff] %v8373_v0  ;;  %418 = vst [vmem:[#allocation2 + $0x4c0] sm:$0xff] %v8373_v0 }
  0xa7   : > { %420 = vst [vmem:[#allocation2 + $0x4d0] sm:$0xff] %v8373_v0  ;;  %421 = vst [vmem:[#allocation2 + $0x4d8] sm:$0xff] %v8373_v0 }
  0xa8   : > { %423 = vst [vmem:[#allocation2 + $0x4e8] sm:$0xff] %v8373_v0  ;;  %424 = vst [vmem:[#allocation2 + $0x4f0] sm:$0xff] %v8373_v0 }
  0xa9   : > { %426 = vst [vmem:[#allocation2 + $0x500] sm:$0xff] %v8373_v0  ;;  %427 = vst [vmem:[#allocation2 + $0x508] sm:$0xff] %v8373_v0 }
  0xaa   : > { %429 = vst [vmem:[#allocation2 + $0x518] sm:$0xff] %v8373_v0  ;;  %430 = vst [vmem:[#allocation2 + $0x520] sm:$0xff] %v8373_v0 }
  0xab   : > { %432 = vst [vmem:[#allocation2 + $0x530] sm:$0xff] %v8373_v0  ;;  %433 = vst [vmem:[#allocation2 + $0x538] sm:$0xff] %v8373_v0 }
  0xac   : > { %435 = vst [vmem:[#allocation2 + $0x548] sm:$0xff] %v8373_v0  ;;  %436 = vst [vmem:[#allocation2 + $0x550] sm:$0xff] %v8373_v0 }
  0xad   : > { %438 = vst [vmem:[#allocation2 + $0x560] sm:$0xff] %v8373_v0  ;;  %439 = vst [vmem:[#allocation2 + $0x568] sm:$0xff] %v8373_v0 }
  0xae   : > { %441 = vst [vmem:[#allocation2 + $0x578] sm:$0xff] %v8373_v0  ;;  %442 = vst [vmem:[#allocation2 + $0x580] sm:$0xff] %v8373_v0 }
  0xaf   : > { %444 = vst [vmem:[#allocation2 + $0x590] sm:$0xff] %v8373_v0  ;;  %445 = vst [vmem:[#allocation2 + $0x598] sm:$0xff] %v8373_v0 }
  0xb0   : > { %447 = vst [vmem:[#allocation2 + $0x5a8] sm:$0xff] %v8373_v0  ;;  %448 = vst [vmem:[#allocation2 + $0x5b0] sm:$0xff] %v8373_v0 }
  0xb1   : > { %450 = vst [vmem:[#allocation2 + $0x5c0] sm:$0xff] %v8373_v0  ;;  %451 = vst [vmem:[#allocation2 + $0x5c8] sm:$0xff] %v8373_v0 }
  0xb2   : > { %453 = vst [vmem:[#allocation2 + $0x5d8] sm:$0xff] %v8373_v0  ;;  %454 = vst [vmem:[#allocation2 + $0x5e0] sm:$0xff] %v8373_v0 }
  0xb3   : > { %456 = vst [vmem:[#allocation2 + $0x5f0] sm:$0xff] %v8373_v0  ;;  %457 = vst [vmem:[#allocation2 + $0x5f8] sm:$0xff] %v8373_v0 }
  0xb4   : > { %459 = vst [vmem:[#allocation2 + $0x608] sm:$0xff] %v8373_v0  ;;  %460 = vst [vmem:[#allocation2 + $0x610] sm:$0xff] %v8373_v0 }
  0xb5   : > { %462 = vst [vmem:[#allocation2 + $0x620] sm:$0xff] %v8373_v0  ;;  %463 = vst [vmem:[#allocation2 + $0x628] sm:$0xff] %v8373_v0 }
  0xb6   : > { %465 = vst [vmem:[#allocation2 + $0x638] sm:$0xff] %v8373_v0  ;;  %466 = vst [vmem:[#allocation2 + $0x640] sm:$0xff] %v8373_v0 }
  0xb7   : > { %468 = vst [vmem:[#allocation2 + $0x650] sm:$0xff] %v8373_v0  ;;  %469 = vst [vmem:[#allocation2 + $0x658] sm:$0xff] %v8373_v0 }
  0xb8   : > { %471 = vst [vmem:[#allocation2 + $0x668] sm:$0xff] %v8373_v0  ;;  %472 = vst [vmem:[#allocation2 + $0x670] sm:$0xff] %v8373_v0 }
  0xb9   : > { %474 = vst [vmem:[#allocation2 + $0x680] sm:$0xff] %v8373_v0  ;;  %475 = vst [vmem:[#allocation2 + $0x688] sm:$0xff] %v8373_v0 }
  0xba   : > { %477 = vst [vmem:[#allocation2 + $0x698] sm:$0xff] %v8373_v0  ;;  %478 = vst [vmem:[#allocation2 + $0x6a0] sm:$0xff] %v8373_v0 }
  0xbb   : > { %480 = vst [vmem:[#allocation2 + $0x6b0] sm:$0xff] %v8373_v0  ;;  %481 = vst [vmem:[#allocation2 + $0x6b8] sm:$0xff] %v8373_v0 }
  0xbc   : > { %483 = vst [vmem:[#allocation2 + $0x6c8] sm:$0xff] %v8373_v0  ;;  %484 = vst [vmem:[#allocation2 + $0x6d0] sm:$0xff] %v8373_v0 }
  0xbd   : > { %486 = vst [vmem:[#allocation2 + $0x6e0] sm:$0xff] %v8373_v0  ;;  %487 = vst [vmem:[#allocation2 + $0x6e8] sm:$0xff] %v8373_v0 }
  0xbe   : > { %489 = vst [vmem:[#allocation2 + $0x6f8] sm:$0xff] %v8373_v0  ;;  %490 = vst [vmem:[#allocation2 + $0x700] sm:$0xff] %v8373_v0 }
  0xbf   : > { %492 = vst [vmem:[#allocation2 + $0x710] sm:$0xff] %v8373_v0  ;;  %493 = vst [vmem:[#allocation2 + $0x718] sm:$0xff] %v8373_v0 }
  0xc0   : > { %495 = vst [vmem:[#allocation2 + $0x728] sm:$0xff] %v8373_v0  ;;  %496 = vst [vmem:[#allocation2 + $0x730] sm:$0xff] %v8373_v0 }
  0xc1   : > { %498 = vst [vmem:[#allocation2 + $0x740] sm:$0xff] %v8373_v0  ;;  %499 = vst [vmem:[#allocation2 + $0x748] sm:$0xff] %v8373_v0 }
  0xc2   : > { %501 = vst [vmem:[#allocation2 + $0x758] sm:$0xff] %v8373_v0  ;;  %502 = vst [vmem:[#allocation2 + $0x760] sm:$0xff] %v8373_v0 }
  0xc3   : > { %504 = vst [vmem:[#allocation2 + $0x770] sm:$0xff] %v8373_v0  ;;  %505 = vst [vmem:[#allocation2 + $0x778] sm:$0xff] %v8373_v0 }
  0xc4   : > { %507 = vst [vmem:[#allocation2 + $0x788] sm:$0xff] %v8373_v0  ;;  %508 = vst [vmem:[#allocation2 + $0x790] sm:$0xff] %v8373_v0 }
  0xc5   : > { %510 = vst [vmem:[#allocation2 + $0x7a0] sm:$0xff] %v8373_v0  ;;  %511 = vst [vmem:[#allocation2 + $0x7a8] sm:$0xff] %v8373_v0 }
  0xc6   : > { %513 = vst [vmem:[#allocation2 + $0x7b8] sm:$0xff] %v8373_v0  ;;  %514 = vst [vmem:[#allocation2 + $0x7c0] sm:$0xff] %v8373_v0 }
  0xc7   : > { %516 = vst [vmem:[#allocation2 + $0x7d0] sm:$0xff] %v8373_v0  ;;  %517 = vst [vmem:[#allocation2 + $0x7d8] sm:$0xff] %v8373_v0 }
  0xc8   : > { %519 = vst [vmem:[#allocation2 + $0x7e8] sm:$0xff] %v8373_v0  ;;  %520 = vst [vmem:[#allocation2 + $0x7f0] sm:$0xff] %v8373_v0 }
  0xc9   : > { %522 = vst [vmem:[#allocation2 + $0x800] sm:$0xff] %v8373_v0  ;;  %523 = vst [vmem:[#allocation2 + $0x808] sm:$0xff] %v8373_v0 }
  0xca   : > { %525 = vst [vmem:[#allocation2 + $0x818] sm:$0xff] %v8373_v0  ;;  %526 = vst [vmem:[#allocation2 + $0x820] sm:$0xff] %v8373_v0 }
  0xcb   : > { %528 = vst [vmem:[#allocation2 + $0x830] sm:$0xff] %v8373_v0  ;;  %529 = vst [vmem:[#allocation2 + $0x838] sm:$0xff] %v8373_v0 }
  0xcc   : > { %531 = vst [vmem:[#allocation2 + $0x848] sm:$0xff] %v8373_v0  ;;  %532 = vst [vmem:[#allocation2 + $0x850] sm:$0xff] %v8373_v0 }
  0xcd   : > { %534 = vst [vmem:[#allocation2 + $0x860] sm:$0xff] %v8373_v0  ;;  %535 = vst [vmem:[#allocation2 + $0x868] sm:$0xff] %v8373_v0 }
  0xce   : > { %537 = vst [vmem:[#allocation2 + $0x878] sm:$0xff] %v8373_v0  ;;  %538 = vst [vmem:[#allocation2 + $0x880] sm:$0xff] %v8373_v0 }
  0xcf   : > { %540 = vst [vmem:[#allocation2 + $0x890] sm:$0xff] %v8373_v0  ;;  %541 = vst [vmem:[#allocation2 + $0x898] sm:$0xff] %v8373_v0 }
  0xd0   : > { %543 = vst [vmem:[#allocation2 + $0x8a8] sm:$0xff] %v8373_v0  ;;  %544 = vst [vmem:[#allocation2 + $0x8b0] sm:$0xff] %v8373_v0 }
  0xd1   : > { %546 = vst [vmem:[#allocation2 + $0x8c0] sm:$0xff] %v8373_v0  ;;  %547 = vst [vmem:[#allocation2 + $0x8c8] sm:$0xff] %v8373_v0 }
  0xd2   : > { %549 = vst [vmem:[#allocation2 + $0x8d8] sm:$0xff] %v8373_v0  ;;  %550 = vst [vmem:[#allocation2 + $0x8e0] sm:$0xff] %v8373_v0 }
  0xd3   : > { %552 = vst [vmem:[#allocation2 + $0x8f0] sm:$0xff] %v8373_v0  ;;  %553 = vst [vmem:[#allocation2 + $0x8f8] sm:$0xff] %v8373_v0 }
  0xd4   : > { %555 = vst [vmem:[#allocation2 + $0x908] sm:$0xff] %v8373_v0  ;;  %556 = vst [vmem:[#allocation2 + $0x910] sm:$0xff] %v8373_v0 }
  0xd5   : > { %558 = vst [vmem:[#allocation2 + $0x920] sm:$0xff] %v8373_v0  ;;  %559 = vst [vmem:[#allocation2 + $0x928] sm:$0xff] %v8373_v0 }
  0xd6   : > { %561 = vst [vmem:[#allocation2 + $0x938] sm:$0xff] %v8373_v0  ;;  %562 = vst [vmem:[#allocation2 + $0x940] sm:$0xff] %v8373_v0 }
  0xd7   : > { %564 = vst [vmem:[#allocation2 + $0x950] sm:$0xff] %v8373_v0  ;;  %565 = vst [vmem:[#allocation2 + $0x958] sm:$0xff] %v8373_v0 }
  0xd8   : > { %567 = vst [vmem:[#allocation2 + $0x968] sm:$0xff] %v8373_v0  ;;  %568 = vst [vmem:[#allocation2 + $0x970] sm:$0xff] %v8373_v0 }
  0xd9   : > { %570 = vst [vmem:[#allocation2 + $0x980] sm:$0xff] %v8373_v0  ;;  %571 = vst [vmem:[#allocation2 + $0x988] sm:$0xff] %v8373_v0 }
  0xda   : > { %573 = vst [vmem:[#allocation2 + $0x998] sm:$0xff] %v8373_v0  ;;  %574 = vst [vmem:[#allocation2 + $0x9a0] sm:$0xff] %v8373_v0 }
  0xdb   : > { %576 = vst [vmem:[#allocation2 + $0x9b0] sm:$0xff] %v8373_v0  ;;  %577 = vst [vmem:[#allocation2 + $0x9b8] sm:$0xff] %v8373_v0 }
  0xdc   : > { %579 = vst [vmem:[#allocation2 + $0x9c8] sm:$0xff] %v8373_v0  ;;  %580 = vst [vmem:[#allocation2 + $0x9d0] sm:$0xff] %v8373_v0 }
  0xdd   : > { %582 = vst [vmem:[#allocation2 + $0x9e0] sm:$0xff] %v8373_v0  ;;  %583 = vst [vmem:[#allocation2 + $0x9e8] sm:$0xff] %v8373_v0 }
  0xde   : > { %585 = vst [vmem:[#allocation2 + $0x9f8] sm:$0xff] %v8373_v0  ;;  %586 = vst [vmem:[#allocation2 + $0xa00] sm:$0xff] %v8373_v0 }
  0xdf   : > { %588 = vst [vmem:[#allocation2 + $0xa10] sm:$0xff] %v8373_v0  ;;  %589 = vst [vmem:[#allocation2 + $0xa18] sm:$0xff] %v8373_v0 }
  0xe0 PF: > { %s7928_s28 = smul.u32 96, %s8349_s21  ;;  %s8374_s8 = smov 127   ;;  %vm600_vm0 = vcmask 240640   ;;  %v8975_v43 = vld [vmem:[#allocation6 + $0x4] ss:$8 sps:$4 sm:$0x1f]  }
  0xe1   : > { %s8375_s12 = smov 126   ;;  %s8376_s13 = smov 110   ;;  %vm5754_vm1 = vcmask 719872   ;;  %vm636_vm2 = vcmask 1043456   ;;  %vm638_vm3 = vcmask 1039360   ;;  %vm687_vm4 = vcmask 1031168  }
  0xe2   : > { %s8843_s1 = scalar_lea.vmem %s224_s11, %s7928_s28 [#allocation3]  ;;  %s8377_s14 = smov 109   ;;  %7901 = vmatprep.mubr.msk.bf16.mxu0 %vm5754_vm1, %v8975_v43  ;;  %7903 = vmatprep.mubr.msk.bf16.mxu1 %vm5754_vm1, %v8975_v43  ;;  %vm736_vm5 = vcmask 900096   ;;  %vm785_vm6 = vcmask 891904   ;;  %vm834_vm7 = vcmask 883712   ;;  %vm883_vm8 = vcmask 752640  }
  0xe3   : > { %v8846_v1 = vld [vmem:[%s8843_s1 + $0xc] sm:$0xff]  ;;  %v8849_v2 = vld [vmem:[%s8843_s1] sm:$0xff]  ;;  %v609_v5 = vld [vmem:[%s8843_s1 + $0x14] sm:$0xf]  ;;  %s8378_s23 = smov 108   ;;  %s8379_s3 = smov 92  }
  0xe4   : > { %622 = vrot.lane.b32.xlu1 %v8846_v1, %s8374_s8  ;;  %618 = vrot.lane.b32.xlu0 %v8849_v2, %s8374_s8  ;;  %v7565_v3 = vcombine.high %v8849_v2, %v8846_v1  ;;  %v7564_v4 = vcombine.low %v8849_v2, %v8846_v1  ;;  %v607_v6 = vld [vmem:[%s8843_s1 + $0x8] sm:$0xf]  ;;  %v8862_v7 = vld [vmem:[%s8843_s1 + $0x18] sm:$0xff]  ;;  %s8380_s6 = smov 91   ;;  %s8381_s10 = smov 90   ;;  %vm932_vm9 = vcmask 744448  }
  0xe5   : > { %v611_v8 = vld [vmem:[%s8843_s1 + $0x20] sm:$0xf]  ;;  %v657_v9 = vld [vmem:[%s8843_s1 + $0x8] sm:$0xf]  ;;  %v659_v11 = vld [vmem:[%s8843_s1 + $0x14] sm:$0xf] }
  0xe6   : > { %5831 = vmatprep.subr.bf16.mxu0 %v7565_v3  ;;  %v8872_v10 = vld [vmem:[%s8843_s1 + $0x24] sm:$0xff]  ;;  %v661_v12 = vld [vmem:[%s8843_s1 + $0x20] sm:$0xf]  ;;  %v708_v14 = vld [vmem:[%s8843_s1 + $0x14] sm:$0xf]  ;;  %vm981_vm10 = vcmask 736256  }
  0xe7   : > { %5832 = vmatpush1.bf16.msra.mxu0 %v7564_v4  ;;  %1013 = vst [vmem:[#allocation2 + $0xcc] sm:$0xff] %v8872_v10  ;;  %v706_v13 = vld [vmem:[%s8843_s1 + $0x8] sm:$0xf]  ;;  %v710_v15 = vld [vmem:[%s8843_s1 + $0x20] sm:$0xf]  ;;  %v7172_v31 = vld [vmem:[%s8843_s1 + $0xc] sm:$0xff] }
  0xe8   : > { %624 = vrot.lane.b32.xlu1 %v609_v5, %s8374_s8  ;;  %620 = vrot.lane.b32.xlu0 %v607_v6, %s8374_s8  ;;  %v755_v16 = vld [vmem:[%s8843_s1 + $0x8] sm:$0xf]  ;;  %v757_v17 = vld [vmem:[%s8843_s1 + $0x14] sm:$0xf]  ;;  %1009 = vst [vmem:[#allocation2 + $0xc] sm:$0xff] %v7172_v31  ;;  %s7934_s7 = smul.u32 24, %s8349_s21 }
  0xe9   : > { %v759_v18 = vld [vmem:[%s8843_s1 + $0x20] sm:$0xf]  ;;  %v804_v19 = vld [vmem:[%s8843_s1 + $0x8] sm:$0xf]  ;;  %v806_v20 = vld [vmem:[%s8843_s1 + $0x14] sm:$0xf] }
  0xea   : > { %v808_v21 = vld [vmem:[%s8843_s1 + $0x20] sm:$0xf]  ;;  %v853_v22 = vld [vmem:[%s8843_s1 + $0x8] sm:$0xf]  ;;  %v855_v23 = vld [vmem:[%s8843_s1 + $0x14] sm:$0xf] }
  0xeb   : > { %v857_v24 = vld [vmem:[%s8843_s1 + $0x20] sm:$0xf]  ;;  %v902_v25 = vld [vmem:[%s8843_s1 + $0x8] sm:$0xf]  ;;  %v904_v26 = vld [vmem:[%s8843_s1 + $0x14] sm:$0xf] }
  0xec   : > { %628 = vrot.lane.b32.xlu1 %v611_v8, %s8374_s8  ;;  %626 = vrot.lane.b32.xlu0 %v8862_v7, %s8374_s8  ;;  %v906_v27 = vld [vmem:[%s8843_s1 + $0x20] sm:$0xf]  ;;  %v951_v28 = vld [vmem:[%s8843_s1 + $0x8] sm:$0xf]  ;;  %s7935_s26 = smul.u32 48, %s8353_s22  ;;  %p10981_p13 = scmp.ne.s32.totalorder %s10967_s5, 0 }
  0xed   : > { %v594_v29 = vld [vmem:[%s8843_s1 + $0x8] sm:$0xf]  ;;  %v596_v30 = vld [vmem:[%s8843_s1 + $0x14] sm:$0xf]  ;;  %v8953_v32 = vld [vmem:[%s8843_s1 + $0x18] sm:$0xff] }
  0xee   : > { %601 = vst.msk [vmem:[#allocation2 + $0x8] sm:$0xf] %vm600_vm0, %v594_v29  ;;  %603 = vst.msk [vmem:[#allocation2 + $0x68] sm:$0xf] %vm600_vm0, %v596_v30  ;;  %v7173_v33 = vld [vmem:[%s8843_s1 + $0x14] sm:$0xf]  ;;  %s10814_s28 = sadd.s32 %s7935_s26, %s7934_s7 }
  0xef   : > { %1011 = vst [vmem:[#allocation2 + $0x6c] sm:$0xff] %v8953_v32  ;;  %v7175_v34 = vld [vmem:[%s8843_s1 + $0x20] sm:$0xf]  ;;  %1010 = vst.msk [vmem:[#allocation2 + $0x14] sm:$0xf] %vm600_vm0, %v7173_v33  ;;  %v8994_v47 = vld [vmem:[%s8843_s1 + $0x24] sm:$0xff] }
  0xf0   : > { %670 = vrot.lane.b32.xlu1 %v657_v9, %s8375_s12  ;;  %668 = vrot.lane.b32.xlu0 %v8849_v2, %s8375_s12  ;;  %v953_v35 = vld [vmem:[%s8843_s1 + $0x14] sm:$0xf]  ;;  %1012 = vst.msk [vmem:[#allocation2 + $0x74] sm:$0xf] %vm600_vm0, %v7175_v34  ;;  %v598_v36 = vld [vmem:[%s8843_s1 + $0x20] sm:$0xf] }
  0xf1   : > { %v7177_v37 = vld [vmem:[%s8843_s1 + $0x2c] sm:$0xf]  ;;  %605 = vst.msk [vmem:[#allocation2 + $0xc8] sm:$0xf] %vm600_vm0, %v598_v36  ;;  %v955_v38 = vld [vmem:[%s8843_s1 + $0x20] sm:$0xf] }
  0xf2   : > { %1014 = vst.msk [vmem:[#allocation2 + $0xd4] sm:$0xf] %vm600_vm0, %v7177_v37  ;;  %v7179_v44 = vld [vmem:[%s8843_s1 + $0x14] sm:$0xf]  ;;  %v7181_v45 = vld [vmem:[%s8843_s1 + $0x20] sm:$0xf] }
  0xf3   : > { %v7183_v46 = vld [vmem:[%s8843_s1 + $0x2c] sm:$0xf]  ;;  %v7185_v48 = vld [vmem:[%s8843_s1 + $0x14] sm:$0xf]  ;;  %1411 = vst [vmem:[#allocation2 + $0x78] sm:$0xff] %v8994_v47 }
  0xf4   : > { %674 = vrot.lane.b32.xlu1 %v659_v11, %s8375_s12  ;;  %672 = vrot.lane.b32.xlu0 %v8846_v1, %s8375_s12  ;;  %v7187_v49 = vld [vmem:[%s8843_s1 + $0x20] sm:$0xf]  ;;  %v7189_v50 = vld [vmem:[%s8843_s1 + $0x2c] sm:$0xf] }
  0xf5   : > { %v3802_v39 = vld [vmem:[#allocation2 + $0x8] sm:$0xff]  ;;  %v7191_v53 = vld [vmem:[%s8843_s1 + $0x14] sm:$0xf]  ;;  %v7193_v62 = vld [vmem:[%s8843_s1 + $0x20] sm:$0xf] }
  0xf6   : > { %v3814_v40 = vld [vmem:[#allocation2 + $0x68] sm:$0xff] }
  0xf7   : > { %v7567_v41 = vcombine.high %v3802_v39, %v3814_v40  ;;  %v7566_v42 = vcombine.low %v3802_v39, %v3814_v40  ;;  %v7195_v11 = vld [vmem:[%s8843_s1 + $0x2c] sm:$0xf] }
  0xf8   : > { %678 = vrot.lane.b32.xlu1 %v661_v12, %s8375_s12  ;;  %676 = vrot.lane.b32.xlu0 %v8862_v7, %s8375_s12  ;;  %v7201_v37 = vld [vmem:[%s8843_s1 + $0x2c] sm:$0xf] }
  0xf9   : > { %5874 = vmatprep.subr.bf16.mxu1 %v7567_v41 }
  0xfa   : > { %5875 = vmatpush1.bf16.msra.mxu1 %v7566_v42 }
  0xfc   : > { %719 = vrot.lane.b32.xlu1 %v706_v13, %s8376_s13  ;;  %717 = vrot.lane.b32.xlu0 %v8849_v2, %s8376_s13 }
 0x100   : > { %723 = vrot.lane.b32.xlu1 %v708_v14, %s8376_s13  ;;  %721 = vrot.lane.b32.xlu0 %v8846_v1, %s8376_s13 }
 0x104   : > { %727 = vrot.lane.b32.xlu1 %v710_v15, %s8376_s13  ;;  %725 = vrot.lane.b32.xlu0 %v8862_v7, %s8376_s13 }
 0x108   : > { %768 = vrot.lane.b32.xlu1 %v755_v16, %s8377_s14  ;;  %766 = vrot.lane.b32.xlu0 %v8849_v2, %s8377_s14 }
 0x10c   : > { %772 = vrot.lane.b32.xlu1 %v757_v17, %s8377_s14  ;;  %770 = vrot.lane.b32.xlu0 %v8846_v1, %s8377_s14 }
 0x110   : > { %776 = vrot.lane.b32.xlu1 %v759_v18, %s8377_s14  ;;  %774 = vrot.lane.b32.xlu0 %v8862_v7, %s8377_s14 }
 0x114   : > { %817 = vrot.lane.b32.xlu1 %v804_v19, %s8378_s23  ;;  %815 = vrot.lane.b32.xlu0 %v8849_v2, %s8378_s23 }
 0x118   : > { %821 = vrot.lane.b32.xlu1 %v806_v20, %s8378_s23  ;;  %819 = vrot.lane.b32.xlu0 %v8846_v1, %s8378_s23  ;;  %v7197_v20 = vld [vmem:[%s8843_s1 + $0x14] sm:$0xf] }
 0x11c   : > { %825 = vrot.lane.b32.xlu1 %v808_v21, %s8378_s23  ;;  %823 = vrot.lane.b32.xlu0 %v8862_v7, %s8378_s23 }
 0x120   : > { %866 = vrot.lane.b32.xlu1 %v853_v22, %s8379_s3  ;;  %864 = vrot.lane.b32.xlu0 %v8849_v2, %s8379_s3 }
 0x124   : > { %870 = vrot.lane.b32.xlu1 %v855_v23, %s8379_s3  ;;  %868 = vrot.lane.b32.xlu0 %v8846_v1, %s8379_s3 }
 0x128   : > { %874 = vrot.lane.b32.xlu1 %v857_v24, %s8379_s3  ;;  %872 = vrot.lane.b32.xlu0 %v8862_v7, %s8379_s3 }
 0x12c   : > { %915 = vrot.lane.b32.xlu1 %v902_v25, %s8380_s6  ;;  %913 = vrot.lane.b32.xlu0 %v8849_v2, %s8380_s6 }
 0x130   : > { %919 = vrot.lane.b32.xlu1 %v904_v26, %s8380_s6  ;;  %917 = vrot.lane.b32.xlu0 %v8846_v1, %s8380_s6 }
 0x134   : > { %923 = vrot.lane.b32.xlu1 %v906_v27, %s8380_s6  ;;  %921 = vrot.lane.b32.xlu0 %v8862_v7, %s8380_s6  ;;  %v7199_v27 = vld [vmem:[%s8843_s1 + $0x20] sm:$0xf] }
 0x138   : > { %964 = vrot.lane.b32.xlu1 %v951_v28, %s8381_s10  ;;  %962 = vrot.lane.b32.xlu0 %v8849_v2, %s8381_s10 }
 0x13c   : > { %968 = vrot.lane.b32.xlu1 %v953_v35, %s8381_s10  ;;  %966 = vrot.lane.b32.xlu0 %v8846_v1, %s8381_s10 }
 0x140   : > { %972 = vrot.lane.b32.xlu1 %v955_v38, %s8381_s10  ;;  %970 = vrot.lane.b32.xlu0 %v8862_v7, %s8381_s10 }
 0x144   : > { %1029 = vrot.lane.b32.xlu1 %v7179_v44, %s8374_s8  ;;  %1027 = vrot.lane.b32.xlu0 %v8846_v1, %s8374_s8 }
 0x148   : > { %1033 = vrot.lane.b32.xlu1 %v7181_v45, %s8374_s8  ;;  %1031 = vrot.lane.b32.xlu0 %v8862_v7, %s8374_s8  ;;  %v7203_v45 = vld [vmem:[%s8843_s1 + $0x14] sm:$0xf] }
 0x14c   : > { %1037 = vrot.lane.b32.xlu1 %v7183_v46, %s8374_s8  ;;  %1035 = vrot.lane.b32.xlu0 %v8872_v10, %s8374_s8 }
 0x150   : > { %1077 = vrot.lane.b32.xlu1 %v7185_v48, %s8375_s12  ;;  %1075 = vrot.lane.b32.xlu0 %v8846_v1, %s8375_s12 }
 0x154   : > { %1081 = vrot.lane.b32.xlu1 %v7187_v49, %s8375_s12  ;;  %1079 = vrot.lane.b32.xlu0 %v8862_v7, %s8375_s12 }
 0x156   : > { %v623_v51 = vpop.permute.xlu1 %622  ;;  %v619_v52 = vpop.permute.xlu0 %618 }
 0x157   : > { %v632_v56 = vrot.slane %v623_v51, 4  ;;  %v630_v57 = vrot.slane %v619_v52, 4 }
 0x158   : > { %1085 = vrot.lane.b32.xlu1 %v7189_v50, %s8375_s12  ;;  %1083 = vrot.lane.b32.xlu0 %v8872_v10, %s8375_s12 }
 0x15a   : > { %v625_v54 = vpop.permute.xlu1 %624  ;;  %v621_v55 = vpop.permute.xlu0 %620 }
 0x15b   : > { %v633_v58 = vrot.slane %v625_v54, 4  ;;  %653 = vst.msk [vmem:[#allocation2 + $0x188] sm:$0xf] %vm600_vm0, %v625_v54  ;;  %v631_v59 = vrot.slane %v621_v55, 4  ;;  %651 = vst.msk [vmem:[#allocation2 + $0x128] sm:$0xf] %vm600_vm0, %v621_v55 }
 0x15c   : > { %1125 = vrot.lane.b32.xlu1 %v7191_v53, %s8376_s13  ;;  %1123 = vrot.lane.b32.xlu0 %v8846_v1, %s8376_s13  ;;  %v7205_v55 = vld [vmem:[%s8843_s1 + $0x20] sm:$0xf] }
 0x15d   : > { %v640_v60 = vsel %vm636_vm2, %v632_v56, %v633_v58  ;;  %v637_v61 = vsel %vm636_vm2, %v630_v57, %v631_v59 }
 0x15e   : > { %v641_v63 = vsel %vm638_vm3, %v623_v51, %v640_v60  ;;  %v639_v0 = vsel %vm638_vm3, %v619_v52, %v637_v61  ;;  %v629_v2 = vpop.permute.xlu1 %628  ;;  %v627_v3 = vpop.permute.xlu0 %626 }
 0x15f   : > { %v635_v4 = vrot.slane %v629_v2, 4  ;;  %655 = vst.msk [vmem:[#allocation2 + $0x1e8] sm:$0xf] %vm600_vm0, %v629_v2  ;;  %v634_v5 = vrot.slane %v627_v3, 4  ;;  %v7589_v6 = vcombine.high %v8862_v7, %v639_v0  ;;  %v7588_v8 = vcombine.low %v8862_v7, %v639_v0 }
 0x160   : > { %1129 = vrot.lane.b32.xlu1 %v7193_v62, %s8376_s13  ;;  %1127 = vrot.lane.b32.xlu0 %v8862_v7, %s8376_s13  ;;  %v7207_v62 = vld [vmem:[%s8843_s1 + $0x2c] sm:$0xf] }
 0x161   : > { %v642_v9 = vsel %vm636_vm2, %v634_v5, %v635_v4  ;;  %5833 = vmatprep.subr.bf16.mxu0 %v7589_v6 }
 0x162   : > { %v643_v12 = vsel %vm638_vm3, %v627_v3, %v642_v9  ;;  %v671_v13 = vpop.permute.xlu1 %670  ;;  %v669_v14 = vpop.permute.xlu0 %668  ;;  %5834 = vmatpush1.bf16.msra.mxu0 %v7588_v8  ;;  %v7209_v9 = vld [vmem:[%s8843_s1 + $0x14] sm:$0xf] }
 0x163   : > { %v681_v15 = vrot.slane %v671_v13, 4  ;;  %700 = vst.msk [vmem:[#allocation2 + $0x248] sm:$0xf] %vm600_vm0, %v671_v13  ;;  %v680_v16 = vrot.slane %v669_v14, 4  ;;  %v7613_v17 = vcombine.high %v641_v63, %v643_v12  ;;  %v7612_v18 = vcombine.low %v641_v63, %v643_v12 }
 0x164   : > { %1133 = vrot.lane.b32.xlu1 %v7195_v11, %s8376_s13  ;;  %1131 = vrot.lane.b32.xlu0 %v8872_v10, %s8376_s13 }
 0x165   : > { %v686_v19 = vsel %vm636_vm2, %v680_v16, %v681_v15  ;;  %5835 = vmatprep.subr.bf16.mxu0 %v7613_v17  ;;  %v7211_v17 = vld [vmem:[%s8843_s1 + $0x20] sm:$0xf] }
 0x166   : > { %v688_v21 = vsel %vm687_vm4, %v669_v14, %v686_v19  ;;  %v675_v22 = vpop.permute.xlu1 %674  ;;  %v673_v23 = vpop.permute.xlu0 %672  ;;  %5836 = vmatpush1.bf16.msra.mxu0 %v7612_v18 }
 0x167   : > { %v683_v24 = vrot.slane %v675_v22, 4  ;;  %702 = vst.msk [vmem:[#allocation2 + $0x2a8] sm:$0xf] %vm600_vm0, %v675_v22  ;;  %v682_v25 = vrot.slane %v673_v23, 4 }
 0x168   : > { %1173 = vrot.lane.b32.xlu1 %v7197_v20, %s8377_s14  ;;  %1171 = vrot.lane.b32.xlu0 %v8846_v1, %s8377_s14 }
 0x169   : > { %v689_v26 = vsel %vm636_vm2, %v682_v25, %v683_v24 }
 0x16a   : > { %v690_v28 = vsel %vm687_vm4, %v673_v23, %v689_v26  ;;  %v679_v29 = vpop.permute.xlu1 %678  ;;  %v677_v30 = vpop.permute.xlu0 %676  ;;  %v7213_v26 = vld [vmem:[%s8843_s1 + $0x2c] sm:$0xf] }
 0x16b   : > { %v685_v31 = vrot.slane %v679_v29, 4  ;;  %704 = vst.msk [vmem:[#allocation2 + $0x308] sm:$0xf] %vm600_vm0, %v679_v29  ;;  %v684_v33 = vrot.slane %v677_v30, 4  ;;  %v7637_v34 = vcombine.high %v688_v21, %v690_v28  ;;  %v7636_v35 = vcombine.low %v688_v21, %v690_v28 }
 0x16c   : > { %1177 = vrot.lane.b32.xlu1 %v7199_v27, %s8377_s14  ;;  %1175 = vrot.lane.b32.xlu0 %v8862_v7, %s8377_s14 }
 0x16d   : > { %v691_v36 = vsel %vm636_vm2, %v684_v33, %v685_v31  ;;  %5837 = vmatprep.subr.bf16.mxu0 %v7637_v34  ;;  %v7215_v34 = vld [vmem:[%s8843_s1 + $0x14] sm:$0xf] }
 0x16e   : > { %v692_v38 = vsel %vm687_vm4, %v677_v30, %v691_v36  ;;  %v720_v39 = vpop.permute.xlu1 %719  ;;  %v718_v40 = vpop.permute.xlu0 %717  ;;  %5838 = vmatpush1.bf16.msra.mxu0 %v7636_v35 }
 0x16f   : > { %v730_v41 = vrot.slane %v720_v39, 4  ;;  %749 = vst.msk [vmem:[#allocation2 + $0x368] sm:$0xf] %vm600_vm0, %v720_v39  ;;  %v729_v42 = vrot.slane %v718_v40, 4 }
 0x170   : > { %1181 = vrot.lane.b32.xlu1 %v7201_v37, %s8377_s14  ;;  %1179 = vrot.lane.b32.xlu0 %v8872_v10, %s8377_s14 }
 0x171   : > { %v735_v44 = vsel %vm636_vm2, %v729_v42, %v730_v41 }
 0x172   : > { %v737_v46 = vsel %vm736_vm5, %v718_v40, %v735_v44  ;;  %v724_v48 = vpop.permute.xlu1 %723  ;;  %v722_v49 = vpop.permute.xlu0 %721  ;;  %v7217_v44 = vld [vmem:[%s8843_s1 + $0x20] sm:$0xf] }
 0x173   : > { %v732_v50 = vrot.slane %v724_v48, 4  ;;  %751 = vst.msk [vmem:[#allocation2 + $0x3c8] sm:$0xf] %vm600_vm0, %v724_v48  ;;  %v731_v51 = vrot.slane %v722_v49, 4  ;;  %v7661_v52 = vcombine.high %v692_v38, %v737_v46  ;;  %v7660_v53 = vcombine.low %v692_v38, %v737_v46 }
 0x174   : > { %1221 = vrot.lane.b32.xlu1 %v7203_v45, %s8378_s23  ;;  %1219 = vrot.lane.b32.xlu0 %v8846_v1, %s8378_s23 }
 0x175   : > { %v738_v54 = vsel %vm636_vm2, %v731_v51, %v732_v50  ;;  %5839 = vmatprep.subr.bf16.mxu0 %v7661_v52  ;;  %v7219_v52 = vld [vmem:[%s8843_s1 + $0x2c] sm:$0xf] }
 0x176   : > { %v739_v56 = vsel %vm736_vm5, %v722_v49, %v738_v54  ;;  %v728_v57 = vpop.permute.xlu1 %727  ;;  %v726_v58 = vpop.permute.xlu0 %725  ;;  %5840 = vmatpush1.bf16.msra.mxu0 %v7660_v53 }
 0x177   : > { %v734_v59 = vrot.slane %v728_v57, 4  ;;  %753 = vst.msk [vmem:[#allocation2 + $0x428] sm:$0xf] %vm600_vm0, %v728_v57  ;;  %v733_v60 = vrot.slane %v726_v58, 4 }
 0x178   : > { %1225 = vrot.lane.b32.xlu1 %v7205_v55, %s8378_s23  ;;  %1223 = vrot.lane.b32.xlu0 %v8862_v7, %s8378_s23 }
 0x179   : > { %v740_v61 = vsel %vm636_vm2, %v733_v60, %v734_v59 }
 0x17a   : > { %v741_v63 = vsel %vm736_vm5, %v726_v58, %v740_v61  ;;  %v769_v0 = vpop.permute.xlu1 %768  ;;  %v767_v2 = vpop.permute.xlu0 %766  ;;  %v7221_v61 = vld [vmem:[%s8843_s1 + $0x14] sm:$0xf] }
 0x17b   : > { %v779_v3 = vrot.slane %v769_v0, 4  ;;  %798 = vst.msk [vmem:[#allocation2 + $0x488] sm:$0xf] %vm600_vm0, %v769_v0  ;;  %v778_v4 = vrot.slane %v767_v2, 4  ;;  %v7685_v5 = vcombine.high %v739_v56, %v741_v63  ;;  %v7684_v6 = vcombine.low %v739_v56, %v741_v63 }
 0x17c   : > { %1229 = vrot.lane.b32.xlu1 %v7207_v62, %s8378_s23  ;;  %1227 = vrot.lane.b32.xlu0 %v8872_v10, %s8378_s23 }
 0x17d   : > { %v784_v8 = vsel %vm636_vm2, %v778_v4, %v779_v3  ;;  %5841 = vmatprep.subr.bf16.mxu0 %v7685_v5  ;;  %v7223_v5 = vld [vmem:[%s8843_s1 + $0x20] sm:$0xf] }
 0x17e   : > { %v786_v11 = vsel %vm785_vm6, %v767_v2, %v784_v8  ;;  %v773_v12 = vpop.permute.xlu1 %772  ;;  %v771_v13 = vpop.permute.xlu0 %770  ;;  %5842 = vmatpush1.bf16.msra.mxu0 %v7684_v6 }
 0x17f   : > { %v781_v14 = vrot.slane %v773_v12, 4  ;;  %800 = vst.msk [vmem:[#allocation2 + $0x4e8] sm:$0xf] %vm600_vm0, %v773_v12  ;;  %v780_v15 = vrot.slane %v771_v13, 4 }
 0x180   : > { %1269 = vrot.lane.b32.xlu1 %v7209_v9, %s8379_s3  ;;  %1267 = vrot.lane.b32.xlu0 %v8846_v1, %s8379_s3 }
 0x181   : > { %v787_v16 = vsel %vm636_vm2, %v780_v15, %v781_v14  ;;  %v7304_v15 = vld [vmem:[%s8843_s1 + $0x30] sm:$0xff] }
 0x182   : > { %v788_v18 = vsel %vm785_vm6, %v771_v13, %v787_v16  ;;  %v777_v19 = vpop.permute.xlu1 %776  ;;  %v775_v20 = vpop.permute.xlu0 %774  ;;  %1413 = vst [vmem:[#allocation2 + $0xd8] sm:$0xff] %v7304_v15  ;;  %1811 = vst [vmem:[#allocation2 + $0x84] sm:$0xff] %v7304_v15  ;;  %v7225_v16 = vld [vmem:[%s8843_s1 + $0x2c] sm:$0xf] }
 0x183   : > { %v783_v21 = vrot.slane %v777_v19, 4  ;;  %802 = vst.msk [vmem:[#allocation2 + $0x548] sm:$0xf] %vm600_vm0, %v777_v19  ;;  %v782_v22 = vrot.slane %v775_v20, 4  ;;  %v7709_v23 = vcombine.high %v786_v11, %v788_v18  ;;  %v7708_v24 = vcombine.low %v786_v11, %v788_v18 }
 0x184   : > { %1273 = vrot.lane.b32.xlu1 %v7211_v17, %s8379_s3  ;;  %1271 = vrot.lane.b32.xlu0 %v8862_v7, %s8379_s3 }
 0x185   : > { %v789_v25 = vsel %vm636_vm2, %v782_v22, %v783_v21  ;;  %5843 = vmatprep.subr.bf16.mxu0 %v7709_v23  ;;  %v7235_v23 = vld [vmem:[%s8843_s1 + $0x20] sm:$0xf] }
 0x186   : > { %v790_v27 = vsel %vm785_vm6, %v775_v20, %v789_v25  ;;  %v818_v28 = vpop.permute.xlu1 %817  ;;  %v816_v29 = vpop.permute.xlu0 %815  ;;  %5844 = vmatpush1.bf16.msra.mxu0 %v7708_v24 }
 0x187   : > { %v828_v30 = vrot.slane %v818_v28, 4  ;;  %847 = vst.msk [vmem:[#allocation2 + $0x5a8] sm:$0xf] %vm600_vm0, %v818_v28  ;;  %v827_v31 = vrot.slane %v816_v29, 4 }
 0x188   : > { %1277 = vrot.lane.b32.xlu1 %v7213_v26, %s8379_s3  ;;  %1275 = vrot.lane.b32.xlu0 %v8872_v10, %s8379_s3 }
 0x189   : > { %v833_v33 = vsel %vm636_vm2, %v827_v31, %v828_v30 }
 0x18a   : > { %v835_v35 = vsel %vm834_vm7, %v816_v29, %v833_v33  ;;  %v822_v36 = vpop.permute.xlu1 %821  ;;  %v820_v37 = vpop.permute.xlu0 %819  ;;  %v7237_v33 = vld [vmem:[%s8843_s1 + $0x2c] sm:$0xf] }
 0x18b   : > { %v830_v38 = vrot.slane %v822_v36, 4  ;;  %849 = vst.msk [vmem:[#allocation2 + $0x608] sm:$0xf] %vm600_vm0, %v822_v36  ;;  %v829_v39 = vrot.slane %v820_v37, 4  ;;  %v7733_v40 = vcombine.high %v790_v27, %v835_v35  ;;  %v7732_v41 = vcombine.low %v790_v27, %v835_v35 }
 0x18c   : > { %1317 = vrot.lane.b32.xlu1 %v7215_v34, %s8380_s6  ;;  %1315 = vrot.lane.b32.xlu0 %v8846_v1, %s8380_s6 }
 0x18d   : > { %v836_v42 = vsel %vm636_vm2, %v829_v39, %v830_v38  ;;  %5845 = vmatprep.subr.bf16.mxu0 %v7733_v40  ;;  %v7239_v40 = vld [vmem:[%s8843_s1 + $0x38] sm:$0xf] }
 0x18e   : > { %v837_v45 = vsel %vm834_vm7, %v820_v37, %v836_v42  ;;  %v826_v46 = vpop.permute.xlu1 %825  ;;  %v824_v48 = vpop.permute.xlu0 %823  ;;  %5846 = vmatpush1.bf16.msra.mxu0 %v7732_v41  ;;  %v9156_v41 = vld [vmem:[%s8843_s1 + $0x30] sm:$0xff] }
 0x18f   : > { %v832_v49 = vrot.slane %v826_v46, 4  ;;  %851 = vst.msk [vmem:[#allocation2 + $0x668] sm:$0xf] %vm600_vm0, %v826_v46  ;;  %v831_v50 = vrot.slane %v824_v48, 4 }
 0x190   : > { %1321 = vrot.lane.b32.xlu1 %v7217_v44, %s8380_s6  ;;  %1319 = vrot.lane.b32.xlu0 %v8862_v7, %s8380_s6 }
 0x191   : > { %v838_v51 = vsel %vm636_vm2, %v831_v50, %v832_v49 }
 0x192   : > { %v839_v53 = vsel %vm834_vm7, %v824_v48, %v838_v51  ;;  %v867_v54 = vpop.permute.xlu1 %866  ;;  %v865_v55 = vpop.permute.xlu0 %864 }
 0x193   : > { %v877_v56 = vrot.slane %v867_v54, 4  ;;  %896 = vst.msk [vmem:[#allocation2 + $0x6c8] sm:$0xf] %vm600_vm0, %v867_v54  ;;  %v876_v57 = vrot.slane %v865_v55, 4  ;;  %v7757_v58 = vcombine.high %v837_v45, %v839_v53  ;;  %v7756_v59 = vcombine.low %v837_v45, %v839_v53 }
 0x194   : > { %1325 = vrot.lane.b32.xlu1 %v7219_v52, %s8380_s6  ;;  %1323 = vrot.lane.b32.xlu0 %v8872_v10, %s8380_s6  ;;  %v7241_v52 = vld [vmem:[%s8843_s1 + $0x20] sm:$0xf] }
 0x195   : > { %v882_v60 = vsel %vm636_vm2, %v876_v57, %v877_v56  ;;  %5847 = vmatprep.subr.bf16.mxu0 %v7757_v58 }
 0x196   : > { %v884_v62 = vsel %vm883_vm8, %v865_v55, %v882_v60  ;;  %v871_v63 = vpop.permute.xlu1 %870  ;;  %v869_v0 = vpop.permute.xlu0 %868  ;;  %5848 = vmatpush1.bf16.msra.mxu0 %v7756_v59  ;;  %v7243_v59 = vld [vmem:[%s8843_s1 + $0x2c] sm:$0xf] }
 0x197   : > { %v879_v2 = vrot.slane %v871_v63, 4  ;;  %898 = vst.msk [vmem:[#allocation2 + $0x728] sm:$0xf] %vm600_vm0, %v871_v63  ;;  %v878_v3 = vrot.slane %v869_v0, 4 }
 0x198   : > { %1365 = vrot.lane.b32.xlu1 %v7221_v61, %s8381_s10  ;;  %1363 = vrot.lane.b32.xlu0 %v8846_v1, %s8381_s10 }
 0x199   : > { %v885_v4 = vsel %vm636_vm2, %v878_v3, %v879_v2 }
 0x19a   : > { %v886_v6 = vsel %vm883_vm8, %v869_v0, %v885_v4  ;;  %v875_v8 = vpop.permute.xlu1 %874  ;;  %v873_v9 = vpop.permute.xlu0 %872  ;;  %v3803_v4 = vld [vmem:[#allocation2 + $0x10] sm:$0xff] }
 0x19b   : > { %v881_v11 = vrot.slane %v875_v8, 4  ;;  %900 = vst.msk [vmem:[#allocation2 + $0x788] sm:$0xf] %vm600_vm0, %v875_v8  ;;  %v880_v12 = vrot.slane %v873_v9, 4  ;;  %v7781_v13 = vcombine.high %v884_v62, %v886_v6  ;;  %v7780_v14 = vcombine.low %v884_v62, %v886_v6  ;;  %v7245_v8 = vld [vmem:[%s8843_s1 + $0x38] sm:$0xf] }
 0x19c   : > { %1369 = vrot.lane.b32.xlu1 %v7223_v5, %s8381_s10  ;;  %1367 = vrot.lane.b32.xlu0 %v8862_v7, %s8381_s10  ;;  %v3815_v5 = vld [vmem:[#allocation2 + $0x70] sm:$0xff] }
 0x19d   : > { %v887_v1 = vsel %vm636_vm2, %v880_v12, %v881_v11  ;;  %5849 = vmatprep.subr.bf16.mxu0 %v7781_v13  ;;  %v3799_v13 = vld [vmem:[#allocation6] sm:$0xff]  ;;  %v7569_v15 = vcombine.high %v3803_v4, %v3815_v5 }
 0x19e   : > { %v888_v17 = vsel %vm883_vm8, %v873_v9, %v887_v1  ;;  %v916_v18 = vpop.permute.xlu1 %915  ;;  %v914_v19 = vpop.permute.xlu0 %913  ;;  %5850 = vmatpush1.bf16.msra.mxu0 %v7780_v14  ;;  %v3800_v14 = vld [vmem:[#allocation6 + $0x8] sm:$0x11] }
 0x19f   : > { %v926_v20 = vrot.slane %v916_v18, 4  ;;  %945 = vst.msk [vmem:[#allocation2 + $0x7e8] sm:$0xf] %vm600_vm0, %v916_v18  ;;  %v925_v21 = vrot.slane %v914_v19, 4 }
 0x1a0   : > { %1373 = vrot.lane.b32.xlu1 %v7225_v16, %s8381_s10  ;;  %1371 = vrot.lane.b32.xlu0 %v8872_v10, %s8381_s10 }
 0x1a1   : > { %v931_v22 = vsel %vm636_vm2, %v925_v21, %v926_v20  ;;  %v7247_v20 = vld [vmem:[%s8843_s1 + $0x20] sm:$0xf] }
 0x1a2   : > { %v933_v24 = vsel %vm932_vm9, %v914_v19, %v931_v22  ;;  %v920_v25 = vpop.permute.xlu1 %919  ;;  %v918_v26 = vpop.permute.xlu0 %917  ;;  %v9188_v22 = vcombine.low %v3799_v13, %v3800_v14 }
 0x1a3   : > { %v928_v27 = vrot.slane %v920_v25, 4  ;;  %947 = vst.msk [vmem:[#allocation2 + $0x848] sm:$0xf] %vm600_vm0, %v920_v25  ;;  %v927_v28 = vrot.slane %v918_v26, 4  ;;  %v7805_v29 = vcombine.high %v888_v17, %v933_v24  ;;  %v7804_v30 = vcombine.low %v888_v17, %v933_v24 }
 0x1a4   : > { %1429 = vrot.lane.b32.xlu1 %v7235_v23, %s8374_s8  ;;  %1427 = vrot.lane.b32.xlu0 %v8862_v7, %s8374_s8 }
 0x1a5   : > { %v934_v31 = vsel %vm636_vm2, %v927_v28, %v928_v27  ;;  %5851 = vmatprep.subr.bf16.mxu0 %v7805_v29 }
 0x1a6   : > { %v935_v34 = vsel %vm932_vm9, %v918_v26, %v934_v31  ;;  %v924_v35 = vpop.permute.xlu1 %923  ;;  %v922_v36 = vpop.permute.xlu0 %921  ;;  %5852 = vmatpush1.bf16.msra.mxu0 %v7804_v30  ;;  %v7568_v26 = vcombine.low %v3803_v4, %v3815_v5  ;;  %v7249_v30 = vld [vmem:[%s8843_s1 + $0x2c] sm:$0xf] }
 0x1a7   : > { %v930_v37 = vrot.slane %v924_v35, 4  ;;  %949 = vst.msk [vmem:[#allocation2 + $0x8a8] sm:$0xf] %vm600_vm0, %v924_v35  ;;  %v929_v38 = vrot.slane %v922_v36, 4 }
 0x1a8   : > { %1433 = vrot.lane.b32.xlu1 %v7237_v33, %s8374_s8  ;;  %1431 = vrot.lane.b32.xlu0 %v8872_v10, %s8374_s8 }
 0x1a9   : > { %v936_v39 = vsel %vm636_vm2, %v929_v38, %v930_v37  ;;  %v7251_v38 = vld [vmem:[%s8843_s1 + $0x38] sm:$0xf] }
 0x1aa   : > { %v937_v42 = vsel %vm932_vm9, %v922_v36, %v936_v39  ;;  %v965_v44 = vpop.permute.xlu1 %964  ;;  %v963_v45 = vpop.permute.xlu0 %962  ;;  %v3826_v36 = vld [vmem:[#allocation2 + $0xc8] sm:$0xff]  ;;  %v3827_v39 = vld [vmem:[#allocation2 + $0xd0] sm:$0xff] }
 0x1ab   : > { %v975_v46 = vrot.slane %v965_v44, 4  ;;  %994 = vst.msk [vmem:[#allocation2 + $0x908] sm:$0xf] %vm600_vm0, %v965_v44  ;;  %v974_v48 = vrot.slane %v963_v45, 4  ;;  %v7829_v49 = vcombine.high %v935_v34, %v937_v42  ;;  %v7828_v50 = vcombine.low %v935_v34, %v937_v42 }
 0x1ac   : > { %1437 = vrot.lane.b32.xlu1 %v7239_v40, %s8374_s8  ;;  %1435 = vrot.lane.b32.xlu0 %v9156_v41, %s8374_s8  ;;  %v7320_v40 = vld [vmem:[%s8843_s1 + $0x24] sm:$0xff] }
 0x1ad   : > { %v980_v51 = vsel %vm636_vm2, %v974_v48, %v975_v46  ;;  %5853 = vmatprep.subr.bf16.mxu0 %v7829_v49  ;;  %1809 = vst [vmem:[#allocation2 + $0x24] sm:$0xff] %v7320_v40 }
 0x1ae   : > { %v982_v53 = vsel %vm981_vm10, %v963_v45, %v980_v51  ;;  %v969_v54 = vpop.permute.xlu1 %968  ;;  %v967_v55 = vpop.permute.xlu0 %966  ;;  %5854 = vmatpush1.bf16.msra.mxu0 %v7828_v50 }
 0x1af   : > { %v977_v56 = vrot.slane %v969_v54, 4  ;;  %996 = vst.msk [vmem:[#allocation2 + $0x968] sm:$0xf] %vm600_vm0, %v969_v54  ;;  %v976_v57 = vrot.slane %v967_v55, 4  ;;  %v7253_v54 = vld [vmem:[%s8843_s1 + $0x20] sm:$0xf] }
 0x1b0   : > { %1477 = vrot.lane.b32.xlu1 %v7241_v52, %s8375_s12  ;;  %1475 = vrot.lane.b32.xlu0 %v8862_v7, %s8375_s12 }
 0x1b1   : > { %v983_v58 = vsel %vm636_vm2, %v976_v57, %v977_v56 }
 0x1b2   : > { %v984_v60 = vsel %vm981_vm10, %v967_v55, %v983_v58  ;;  %v973_v61 = vpop.permute.xlu1 %972  ;;  %v971_v62 = vpop.permute.xlu0 %970 }
 0x1b3   : > { %v979_v63 = vrot.slane %v973_v61, 4  ;;  %998 = vst.msk [vmem:[#allocation2 + $0x9c8] sm:$0xf] %vm600_vm0, %v973_v61  ;;  %v978_v0 = vrot.slane %v971_v62, 4  ;;  %v7853_v2 = vcombine.high %v982_v53, %v984_v60  ;;  %v7852_v3 = vcombine.low %v982_v53, %v984_v60  ;;  %v7255_v61 = vld [vmem:[%s8843_s1 + $0x2c] sm:$0xf] }
 0x1b4   : > { %1481 = vrot.lane.b32.xlu1 %v7243_v59, %s8375_s12  ;;  %1479 = vrot.lane.b32.xlu0 %v8872_v10, %s8375_s12 }
 0x1b5   : > { %v985_v6 = vsel %vm636_vm2, %v978_v0, %v979_v63  ;;  %5855 = vmatprep.subr.bf16.mxu0 %v7853_v2 }
 0x1b6   : > { %v986_v9 = vsel %vm981_vm10, %v971_v62, %v985_v6  ;;  %v1030_v11 = vpop.permute.xlu1 %1029  ;;  %v1028_v12 = vpop.permute.xlu0 %1027  ;;  %5856 = vmatpush1.bf16.msra.mxu0 %v7852_v3 }
 0x1b7   : > { %v1040_v1 = vrot.slane %v1030_v11, 4  ;;  %1058 = vst.msk [vmem:[#allocation2 + $0x134] sm:$0xf] %vm600_vm0, %v1030_v11  ;;  %v1039_v16 = vrot.slane %v1028_v12, 4  ;;  %v7877_v17 = vcombine.high %v986_v9, %v986_v9  ;;  %v7876_v18 = vcombine.low %v986_v9, %v986_v9 }
 0x1b8   : > { %1485 = vrot.lane.b32.xlu1 %v7245_v8, %s8375_s12  ;;  %1483 = vrot.lane.b32.xlu0 %v9156_v41, %s8375_s12 }
 0x1b9   : > { %v1045_v19 = vsel %vm636_vm2, %v1039_v16, %v1040_v1  ;;  %7900 = vmatprep.subr.msk.bf16.mxu0 %vm636_vm2, %v7877_v17  ;;  %v5760_v21 = vsel %vm636_vm2, %v7876_v18, 0 }
 0x1ba   : > { %v1046_v23 = vsel %vm638_vm3, %v1028_v12, %v1045_v19  ;;  %v1034_v24 = vpop.permute.xlu1 %1033  ;;  %v1032_v25 = vpop.permute.xlu0 %1031  ;;  %5858 = vmatpush1.bf16.msra.mxu0 %v5760_v21  ;;  %v7259_v21 = vld [vmem:[%s8843_s1 + $0x20] sm:$0xf] }
 0x1bb   : > { %1057 = vst [vmem:[#allocation2 + $0x12c] sm:$0xff] %v1046_v23  ;;  %v1042_v27 = vrot.slane %v1034_v24, 4  ;;  %1060 = vst.msk [vmem:[#allocation2 + $0x194] sm:$0xf] %vm600_vm0, %v1034_v24  ;;  %v1041_v28 = vrot.slane %v1032_v25, 4  ;;  %5917 = vmatprep.subr.bf16.mxu0 %v7569_v15 }
 0x1bc   : > { %1525 = vrot.lane.b32.xlu1 %v7247_v20, %s8376_s13  ;;  %1523 = vrot.lane.b32.xlu0 %v8862_v7, %s8376_s13  ;;  %v7257_v15 = vld [vmem:[%s8843_s1 + $0x38] sm:$0xf] }
 0x1bd   : > { %v1047_v29 = vsel %vm636_vm2, %v1041_v28, %v1042_v27  ;;  %5864 = vmatmul.mubr.bf16.vlgmr.msra.gmra.mrb[0].mxu0 %v9188_v22 }
 0x1be   : > { %v1048_v31 = vsel %vm638_vm3, %v1032_v25, %v1047_v29  ;;  %v1038_v33 = vpop.permute.xlu1 %1037  ;;  %v1036_v34 = vpop.permute.xlu0 %1035  ;;  %5918 = vmatpush1.bf16.msra.mxu0 %v7568_v26  ;;  %7905 = vmatprep.mubr.msk.bf16.mxu0 %vm5754_vm1, %v8975_v43 }
 0x1bf   : > { %1059 = vst [vmem:[#allocation2 + $0x18c] sm:$0xff] %v1048_v31  ;;  %v1044_v35 = vrot.slane %v1038_v33, 4  ;;  %1062 = vst.msk [vmem:[#allocation2 + $0x1f4] sm:$0xf] %vm600_vm0, %v1038_v33  ;;  %v1043_v7 = vrot.slane %v1036_v34, 4 }
 0x1c0   : > { %1529 = vrot.lane.b32.xlu1 %v7249_v30, %s8376_s13  ;;  %1527 = vrot.lane.b32.xlu0 %v8872_v10, %s8376_s13 }
 0x1c1   : > { %v1049_v37 = vsel %vm636_vm2, %v1043_v7, %v1044_v35 }
 0x1c2   : > { %v1050_v42 = vsel %vm638_vm3, %v1036_v34, %v1049_v37  ;;  %v1078_v44 = vpop.permute.xlu1 %1077  ;;  %v1076_v43 = vpop.permute.xlu0 %1075  ;;  %v3838_v45 = vld [vmem:[#allocation2 + $0x128] sm:$0xff]  ;;  %v3839_v46 = vld [vmem:[#allocation2 + $0x130] sm:$0xff] }
 0x1c3   : > { %1061 = vst [vmem:[#allocation2 + $0x1ec] sm:$0xff] %v1050_v42  ;;  %v1088_v48 = vrot.slane %v1078_v44, 4  ;;  %1106 = vst.msk [vmem:[#allocation2 + $0x254] sm:$0xf] %vm600_vm0, %v1078_v44  ;;  %v1087_v49 = vrot.slane %v1076_v43, 4  ;;  %v7591_v10 = vcombine.high %v3826_v36, %v3838_v45  ;;  %v7590_v50 = vcombine.low %v3826_v36, %v3838_v45 }
 0x1c4   : > { %1533 = vrot.lane.b32.xlu1 %v7251_v38, %s8376_s13  ;;  %1531 = vrot.lane.b32.xlu0 %v9156_v41, %s8376_s13  ;;  %v7592_v51 = vcombine.low %v3827_v39, %v3839_v46  ;;  %v7593_v52 = vcombine.high %v3827_v39, %v3839_v46  ;;  %v7261_v37 = vld [vmem:[%s8843_s1 + $0x2c] sm:$0xf] }
 0x1c5   : > { %v1093_v53 = vsel %vm636_vm2, %v1087_v49, %v1088_v48  ;;  %5876 = vmatprep.subr.bf16.mxu1 %v7591_v10 }
 0x1c6   : > { %v1094_v55 = vsel %vm687_vm4, %v1076_v43, %v1093_v53  ;;  %v1082_v56 = vpop.permute.xlu1 %1081  ;;  %v1080_v57 = vpop.permute.xlu0 %1079  ;;  %5877 = vmatpush1.bf16.msra.mxu1 %v7590_v50  ;;  %5919 = vmatprep.subr.bf16.mxu0 %v7593_v52  ;;  %v3850_v62 = vld [vmem:[#allocation2 + $0x188] sm:$0xff]  ;;  %v3851_v4 = vld [vmem:[#allocation2 + $0x190] sm:$0xff]  ;;  %v7263_v43 = vld [vmem:[%s8843_s1 + $0x38] sm:$0xf] }
 0x1c7   : > { %1105 = vst [vmem:[#allocation2 + $0x24c] sm:$0xff] %v1094_v55  ;;  %v1090_v58 = vrot.slane %v1082_v56, 4  ;;  %1108 = vst.msk [vmem:[#allocation2 + $0x2b4] sm:$0xf] %vm600_vm0, %v1082_v56  ;;  %v1089_v59 = vrot.slane %v1080_v57, 4  ;;  %5920 = vmatpush1.bf16.msra.mxu0 %v7592_v51 }
 0x1c8   : > { %1573 = vrot.lane.b32.xlu1 %v7253_v54, %s8377_s14  ;;  %1571 = vrot.lane.b32.xlu0 %v8953_v32, %s8377_s14 }
 0x1c9   : > { %v1095_v60 = vsel %vm636_vm2, %v1089_v59, %v1090_v58  ;;  %v7265_v58 = vld [vmem:[%s8843_s1 + $0x20] sm:$0xf] }
 0x1ca   : > { %v1096_v63 = vsel %vm687_vm4, %v1080_v57, %v1095_v60  ;;  %v1086_v0 = vpop.permute.xlu1 %1085  ;;  %v1084_v2 = vpop.permute.xlu0 %1083  ;;  %v3862_v3 = vld [vmem:[#allocation2 + $0x1e8] sm:$0xff]  ;;  %v3863_v5 = vld [vmem:[#allocation2 + $0x1f0] sm:$0xff] }
 0x1cb   : > { %1107 = vst [vmem:[#allocation2 + $0x2ac] sm:$0xff] %v1096_v63  ;;  %v1092_v6 = vrot.slane %v1086_v0, 4  ;;  %1110 = vst.msk [vmem:[#allocation2 + $0x314] sm:$0xf] %vm600_vm0, %v1086_v0  ;;  %v1091_v8 = vrot.slane %v1084_v2, 4  ;;  %v7615_v9 = vcombine.high %v3850_v62, %v3862_v3  ;;  %v7616_v11 = vcombine.low %v3851_v4, %v3863_v5  ;;  %v9260_v0 = vld [vmem:[#allocation2 + $0x6c] sm:$0xff] }
 0x1cc   : > { %1577 = vrot.lane.b32.xlu1 %v7255_v61, %s8377_s14  ;;  %1575 = vrot.lane.b32.xlu0 %v8994_v47, %s8377_s14  ;;  %v7617_v12 = vcombine.high %v3851_v4, %v3863_v5  ;;  %v7614_v13 = vcombine.low %v3850_v62, %v3862_v3  ;;  %v7267_v3 = vld [vmem:[%s8843_s1 + $0x2c] sm:$0xf] }
 0x1cd   : > { %v1097_v14 = vsel %vm636_vm2, %v1091_v8, %v1092_v6  ;;  %5878 = vmatprep.subr.bf16.mxu1 %v7615_v9 }
 0x1ce   : > { %v1098_v1 = vsel %vm687_vm4, %v1084_v2, %v1097_v14  ;;  %5921 = vmatprep.subr.bf16.mxu0 %v7617_v12  ;;  %v1126_v16 = vpop.permute.xlu1 %1125  ;;  %v1124_v17 = vpop.permute.xlu0 %1123  ;;  %5879 = vmatpush1.bf16.msra.mxu1 %v7614_v13  ;;  %v3874_v23 = vld [vmem:[#allocation2 + $0x248] sm:$0xff]  ;;  %v3875_v28 = vld [vmem:[#allocation2 + $0x250] sm:$0xff] }
 0x1cf   : > { %1109 = vst [vmem:[#allocation2 + $0x30c] sm:$0xff] %v1098_v1  ;;  %v1136_v18 = vrot.slane %v1126_v16, 4  ;;  %1154 = vst.msk [vmem:[#allocation2 + $0x374] sm:$0xf] %vm600_vm0, %v1126_v16  ;;  %v1135_v19 = vrot.slane %v1124_v17, 4  ;;  %5922 = vmatpush1.bf16.msra.mxu0 %v7616_v11  ;;  %v9269_v16 = vld [vmem:[#allocation2 + $0x78] sm:$0xff] }
 0x1d0   : > { %1581 = vrot.lane.b32.xlu1 %v7257_v15, %s8377_s14  ;;  %1579 = vrot.lane.b32.xlu0 %v9156_v41, %s8377_s14 }
 0x1d1   : > { %v1141_v20 = vsel %vm636_vm2, %v1135_v19, %v1136_v18 }
 0x1d2   : > { %v1142_v24 = vsel %vm736_vm5, %v1124_v17, %v1141_v20  ;;  %v1130_v25 = vpop.permute.xlu1 %1129  ;;  %v1128_v26 = vpop.permute.xlu0 %1127  ;;  %v3886_v27 = vld [vmem:[#allocation2 + $0x2a8] sm:$0xff]  ;;  %v3887_v29 = vld [vmem:[#allocation2 + $0x2b0] sm:$0xff]  ;;  %v7269_v20 = vld [vmem:[%s8843_s1 + $0x38] sm:$0xf] }
 0x1d3   : > { %1153 = vst [vmem:[#allocation2 + $0x36c] sm:$0xff] %v1142_v24  ;;  %v1138_v30 = vrot.slane %v1130_v25, 4  ;;  %1156 = vst.msk [vmem:[#allocation2 + $0x3d4] sm:$0xf] %vm600_vm0, %v1130_v25  ;;  %v1137_v31 = vrot.slane %v1128_v26, 4  ;;  %v7639_v33 = vcombine.high %v3874_v23, %v3886_v27  ;;  %v7640_v34 = vcombine.low %v3875_v28, %v3887_v29 }
 0x1d4   : > { %1621 = vrot.lane.b32.xlu1 %v7259_v21, %s8378_s23  ;;  %1619 = vrot.lane.b32.xlu0 %v8953_v32, %s8378_s23  ;;  %v7641_v35 = vcombine.high %v3875_v28, %v3887_v29  ;;  %v7638_v7 = vcombine.low %v3874_v23, %v3886_v27  ;;  %v7271_v28 = vld [vmem:[%s8843_s1 + $0x20] sm:$0xf] }
 0x1d5   : > { %v1143_v36 = vsel %vm636_vm2, %v1137_v31, %v1138_v30  ;;  %5880 = vmatprep.subr.bf16.mxu1 %v7639_v33 }
 0x1d6   : > { %v1144_v38 = vsel %vm736_vm5, %v1128_v26, %v1143_v36  ;;  %5923 = vmatprep.subr.bf16.mxu0 %v7641_v35  ;;  %v1134_v39 = vpop.permute.xlu1 %1133  ;;  %v1132_v40 = vpop.permute.xlu0 %1131  ;;  %5881 = vmatpush1.bf16.msra.mxu1 %v7638_v7  ;;  %v3898_v45 = vld [vmem:[#allocation2 + $0x308] sm:$0xff]  ;;  %v3899_v50 = vld [vmem:[#allocation2 + $0x310] sm:$0xff] }
 0x1d7   : > { %1155 = vst [vmem:[#allocation2 + $0x3cc] sm:$0xff] %v1144_v38  ;;  %v1140_v42 = vrot.slane %v1134_v39, 4  ;;  %1158 = vst.msk [vmem:[#allocation2 + $0x434] sm:$0xf] %vm600_vm0, %v1134_v39  ;;  %v1139_v44 = vrot.slane %v1132_v40, 4  ;;  %5924 = vmatpush1.bf16.msra.mxu0 %v7640_v34 }
 0x1d8   : > { %1625 = vrot.lane.b32.xlu1 %v7261_v37, %s8378_s23  ;;  %1623 = vrot.lane.b32.xlu0 %v8994_v47, %s8378_s23 }
 0x1d9   : > { %v1145_v32 = vsel %vm636_vm2, %v1139_v44, %v1140_v42 }
 0x1da   : > { %v1146_v46 = vsel %vm736_vm5, %v1132_v40, %v1145_v32  ;;  %v1174_v48 = vpop.permute.xlu1 %1173  ;;  %v1172_v49 = vpop.permute.xlu0 %1171  ;;  %v3910_v10 = vld [vmem:[#allocation2 + $0x368] sm:$0xff]  ;;  %v3911_v51 = vld [vmem:[#allocation2 + $0x370] sm:$0xff] }
 0x1db   : > { %1157 = vst [vmem:[#allocation2 + $0x42c] sm:$0xff] %v1146_v46  ;;  %v1184_v52 = vrot.slane %v1174_v48, 4  ;;  %1202 = vst.msk [vmem:[#allocation2 + $0x494] sm:$0xf] %vm600_vm0, %v1174_v48  ;;  %v1183_v53 = vrot.slane %v1172_v49, 4  ;;  %v7663_v54 = vcombine.high %v3898_v45, %v3910_v10  ;;  %v7664_v55 = vcombine.low %v3899_v50, %v3911_v51 }
 0x1dc   : > { %1629 = vrot.lane.b32.xlu1 %v7263_v43, %s8378_s23  ;;  %1627 = vrot.lane.b32.xlu0 %v9156_v41, %s8378_s23  ;;  %v7665_v47 = vcombine.high %v3899_v50, %v3911_v51  ;;  %v7662_v56 = vcombine.low %v3898_v45, %v3910_v10  ;;  %v7273_v32 = vld [vmem:[%s8843_s1 + $0x2c] sm:$0xf]  ;;  %v7275_v50 = vld [vmem:[%s8843_s1 + $0x38] sm:$0xf] }
 0x1dd   : > { %v1189_v57 = vsel %vm636_vm2, %v1183_v53, %v1184_v52  ;;  %5882 = vmatprep.subr.bf16.mxu1 %v7663_v54 }
 0x1de   : > { %v1190_v59 = vsel %vm785_vm6, %v1172_v49, %v1189_v57  ;;  %5925 = vmatprep.subr.bf16.mxu0 %v7665_v47  ;;  %v1178_v60 = vpop.permute.xlu1 %1177  ;;  %v1176_v61 = vpop.permute.xlu0 %1175  ;;  %5883 = vmatpush1.bf16.msra.mxu1 %v7662_v56  ;;  %v3922_v4 = vld [vmem:[#allocation2 + $0x3c8] sm:$0xff]  ;;  %v3923_v11 = vld [vmem:[#allocation2 + $0x3d0] sm:$0xff] }
 0x1df   : > { %1201 = vst [vmem:[#allocation2 + $0x48c] sm:$0xff] %v1190_v59  ;;  %v1186_v62 = vrot.slane %v1178_v60, 4  ;;  %1204 = vst.msk [vmem:[#allocation2 + $0x4f4] sm:$0xf] %vm600_vm0, %v1178_v60  ;;  %v1185_v63 = vrot.slane %v1176_v61, 4  ;;  %5926 = vmatpush1.bf16.msra.mxu0 %v7664_v55 }
 0x1e0   : > { %1669 = vrot.lane.b32.xlu1 %v7265_v58, %s8379_s3  ;;  %1667 = vrot.lane.b32.xlu0 %v9260_v0, %s8379_s3 }
 0x1e1   : > { %v1191_v2 = vsel %vm636_vm2, %v1185_v63, %v1186_v62 }
 0x1e2   : > { %v1192_v5 = vsel %vm785_vm6, %v1176_v61, %v1191_v2  ;;  %v1182_v6 = vpop.permute.xlu1 %1181  ;;  %v1180_v8 = vpop.permute.xlu0 %1179  ;;  %v3934_v9 = vld [vmem:[#allocation2 + $0x428] sm:$0xff]  ;;  %v3935_v12 = vld [vmem:[#allocation2 + $0x430] sm:$0xff]  ;;  %v7277_v2 = vld [vmem:[%s8843_s1 + $0x20] sm:$0xf] }
 0x1e3   : > { %1203 = vst [vmem:[#allocation2 + $0x4ec] sm:$0xff] %v1192_v5  ;;  %v1188_v13 = vrot.slane %v1182_v6, 4  ;;  %1206 = vst.msk [vmem:[#allocation2 + $0x554] sm:$0xf] %vm600_vm0, %v1182_v6  ;;  %v1187_v14 = vrot.slane %v1180_v8, 4  ;;  %v7687_v15 = vcombine.high %v3922_v4, %v3934_v9  ;;  %v7688_v1 = vcombine.low %v3923_v11, %v3935_v12 }
 0x1e4   : > { %1673 = vrot.lane.b32.xlu1 %v7267_v3, %s8379_s3  ;;  %1671 = vrot.lane.b32.xlu0 %v9269_v16, %s8379_s3  ;;  %v7689_v17 = vcombine.high %v3923_v11, %v3935_v12  ;;  %v7686_v18 = vcombine.low %v3922_v4, %v3934_v9  ;;  %v7279_v9 = vld [vmem:[%s8843_s1 + $0x2c] sm:$0xf]  ;;  %v7229_v11 = vld [vmem:[%s8843_s1 + $0x20] sm:$0xf] }
 0x1e5   : > { %v1193_v19 = vsel %vm636_vm2, %v1187_v14, %v1188_v13  ;;  %5884 = vmatprep.subr.bf16.mxu1 %v7687_v15  ;;  %v7231_v12 = vld [vmem:[%s8843_s1 + $0x2c] sm:$0xf]  ;;  %1410 = vst.msk [vmem:[#allocation2 + $0x20] sm:$0xf] %vm600_vm0, %v7229_v11 }
 0x1e6   : > { %v1194_v21 = vsel %vm785_vm6, %v1180_v8, %v1193_v19  ;;  %5927 = vmatprep.subr.bf16.mxu0 %v7689_v17  ;;  %v1222_v23 = vpop.permute.xlu1 %1221  ;;  %v1220_v24 = vpop.permute.xlu0 %1219  ;;  %5885 = vmatpush1.bf16.msra.mxu1 %v7686_v18  ;;  %v3946_v29 = vld [vmem:[#allocation2 + $0x488] sm:$0xff]  ;;  %v3947_v35 = vld [vmem:[#allocation2 + $0x490] sm:$0xff]  ;;  %1412 = vst.msk [vmem:[#allocation2 + $0x80] sm:$0xf] %vm600_vm0, %v7231_v12 }
 0x1e7   : > { %1205 = vst [vmem:[#allocation2 + $0x54c] sm:$0xff] %v1194_v21  ;;  %v1232_v25 = vrot.slane %v1222_v23, 4  ;;  %1250 = vst.msk [vmem:[#allocation2 + $0x5b4] sm:$0xf] %vm600_vm0, %v1222_v23  ;;  %v1231_v26 = vrot.slane %v1220_v24, 4  ;;  %5928 = vmatpush1.bf16.msra.mxu0 %v7688_v1 }
 0x1e8   : > { %1677 = vrot.lane.b32.xlu1 %v7269_v20, %s8379_s3  ;;  %1675 = vrot.lane.b32.xlu0 %v9156_v41, %s8379_s3  ;;  %v7285_v1 = vld [vmem:[%s8843_s1 + $0x2c] sm:$0xf]  ;;  %v7287_v23 = vld [vmem:[%s8843_s1 + $0x38] sm:$0xf] }
 0x1e9   : > { %v1237_v27 = vsel %vm636_vm2, %v1231_v26, %v1232_v25  ;;  %1810 = vst.msk [vmem:[#allocation2 + $0x2c] sm:$0xf] %vm600_vm0, %v7285_v1  ;;  %1812 = vst.msk [vmem:[#allocation2 + $0x8c] sm:$0xf] %vm600_vm0, %v7287_v23 }
 0x1ea   : > { %v1238_v30 = vsel %vm834_vm7, %v1220_v24, %v1237_v27  ;;  %v1226_v31 = vpop.permute.xlu1 %1225  ;;  %v1224_v33 = vpop.permute.xlu0 %1223  ;;  %v3958_v34 = vld [vmem:[#allocation2 + $0x4e8] sm:$0xff]  ;;  %v3959_v7 = vld [vmem:[#allocation2 + $0x4f0] sm:$0xff] }
 0x1eb   : > { %1249 = vst [vmem:[#allocation2 + $0x5ac] sm:$0xff] %v1238_v30  ;;  %v1234_v36 = vrot.slane %v1226_v31, 4  ;;  %1252 = vst.msk [vmem:[#allocation2 + $0x614] sm:$0xf] %vm600_vm0, %v1226_v31  ;;  %v1233_v37 = vrot.slane %v1224_v33, 4  ;;  %v7711_v38 = vcombine.high %v3946_v29, %v3958_v34  ;;  %v7712_v39 = vcombine.low %v3947_v35, %v3959_v7  ;;  %v7408_v30 = vld [vmem:[%s8843_s1 + $0x3c] sm:$0xff] }
 0x1ec   : > { %1717 = vrot.lane.b32.xlu1 %v7271_v28, %s8380_s6  ;;  %1715 = vrot.lane.b32.xlu0 %v9260_v0, %s8380_s6  ;;  %v7713_v40 = vcombine.high %v3947_v35, %v3959_v7  ;;  %v7710_v42 = vcombine.low %v3946_v29, %v3958_v34  ;;  %v7233_v31 = vld [vmem:[%s8843_s1 + $0x38] sm:$0xf]  ;;  %1813 = vst [vmem:[#allocation2 + $0xe4] sm:$0xff] %v7408_v30  ;;  %v7289_v35 = vld [vmem:[%s8843_s1 + $0x44] sm:$0xf]  ;;  %2609 = vst [vmem:[#allocation2 + $0x3c] sm:$0xff] %v7408_v30 }
 0x1ed   : > { %v1239_v44 = vsel %vm636_vm2, %v1233_v37, %v1234_v36  ;;  %5886 = vmatprep.subr.bf16.mxu1 %v7711_v38  ;;  %v7281_v34 = vld [vmem:[%s8843_s1 + $0x38] sm:$0xf]  ;;  %1414 = vst.msk [vmem:[#allocation2 + $0xe0] sm:$0xf] %vm600_vm0, %v7233_v31  ;;  %1814 = vst.msk [vmem:[#allocation2 + $0xec] sm:$0xf] %vm600_vm0, %v7289_v35 }
 0x1ee   : > { %v1240_v43 = vsel %vm834_vm7, %v1224_v33, %v1239_v44  ;;  %5929 = vmatprep.subr.bf16.mxu0 %v7713_v40  ;;  %v1230_v45 = vpop.permute.xlu1 %1229  ;;  %v1228_v46 = vpop.permute.xlu0 %1227  ;;  %5887 = vmatpush1.bf16.msra.mxu1 %v7710_v42  ;;  %v3970_v51 = vld [vmem:[#allocation2 + $0x548] sm:$0xff]  ;;  %v3971_v47 = vld [vmem:[#allocation2 + $0x550] sm:$0xff] }
 0x1ef   : > { %1251 = vst [vmem:[#allocation2 + $0x60c] sm:$0xff] %v1240_v43  ;;  %v1236_v48 = vrot.slane %v1230_v45, 4  ;;  %1254 = vst.msk [vmem:[#allocation2 + $0x674] sm:$0xf] %vm600_vm0, %v1230_v45  ;;  %v1235_v49 = vrot.slane %v1228_v46, 4  ;;  %5930 = vmatpush1.bf16.msra.mxu0 %v7712_v39 }
 0x1f0   : > { %1721 = vrot.lane.b32.xlu1 %v7273_v32, %s8380_s6  ;;  %1719 = vrot.lane.b32.xlu0 %v9269_v16, %s8380_s6  ;;  %v7291_v42 = vld [vmem:[%s8843_s1 + $0x2c] sm:$0xf] }
 0x1f1   : > { %v1241_v10 = vsel %vm636_vm2, %v1235_v49, %v1236_v48 }
 0x1f2   : > { %v1242_v52 = vsel %vm834_vm7, %v1228_v46, %v1241_v10  ;;  %v1270_v53 = vpop.permute.xlu1 %1269  ;;  %v1268_v54 = vpop.permute.xlu0 %1267  ;;  %v3982_v55 = vld [vmem:[#allocation2 + $0x5a8] sm:$0xff]  ;;  %v3983_v56 = vld [vmem:[#allocation2 + $0x5b0] sm:$0xff] }
 0x1f3   : > { %1253 = vst [vmem:[#allocation2 + $0x66c] sm:$0xff] %v1242_v52  ;;  %v1280_v57 = vrot.slane %v1270_v53, 4  ;;  %1298 = vst.msk [vmem:[#allocation2 + $0x6d4] sm:$0xf] %vm600_vm0, %v1270_v53  ;;  %v1279_v58 = vrot.slane %v1268_v54, 4  ;;  %v7735_v59 = vcombine.high %v3970_v51, %v3982_v55  ;;  %v7736_v60 = vcombine.low %v3971_v47, %v3983_v56 }
 0x1f4   : > { %1725 = vrot.lane.b32.xlu1 %v7275_v50, %s8380_s6  ;;  %1723 = vrot.lane.b32.xlu0 %v9156_v41, %s8380_s6  ;;  %v7737_v61 = vcombine.high %v3971_v47, %v3983_v56  ;;  %v7734_v62 = vcombine.low %v3970_v51, %v3982_v55  ;;  %v7293_v47 = vld [vmem:[%s8843_s1 + $0x38] sm:$0xf] }
 0x1f5   : > { %v1285_v63 = vsel %vm636_vm2, %v1279_v58, %v1280_v57  ;;  %5888 = vmatprep.subr.bf16.mxu1 %v7735_v59 }
 0x1f6   : > { %v1286_v3 = vsel %vm883_vm8, %v1268_v54, %v1285_v63  ;;  %5931 = vmatprep.subr.bf16.mxu0 %v7737_v61  ;;  %v1274_v4 = vpop.permute.xlu1 %1273  ;;  %v1272_v5 = vpop.permute.xlu0 %1271  ;;  %5889 = vmatpush1.bf16.msra.mxu1 %v7734_v62  ;;  %v3994_v14 = vld [vmem:[#allocation2 + $0x608] sm:$0xff]  ;;  %v3995_v15 = vld [vmem:[#allocation2 + $0x610] sm:$0xff]  ;;  %v7295_v62 = vld [vmem:[%s8843_s1 + $0x44] sm:$0xf] }
 0x1f7   : > { %1297 = vst [vmem:[#allocation2 + $0x6cc] sm:$0xff] %v1286_v3  ;;  %v1282_v6 = vrot.slane %v1274_v4, 4  ;;  %1300 = vst.msk [vmem:[#allocation2 + $0x734] sm:$0xf] %vm600_vm0, %v1274_v4  ;;  %v1281_v8 = vrot.slane %v1272_v5, 4  ;;  %5932 = vmatpush1.bf16.msra.mxu0 %v7736_v60  ;;  %v9352_v63 = vld [vmem:[%s8843_s1 + $0x3c] sm:$0xff] }
 0x1f8   : > { %1765 = vrot.lane.b32.xlu1 %v7277_v2, %s8381_s10  ;;  %1763 = vrot.lane.b32.xlu0 %v9260_v0, %s8381_s10 }
 0x1f9   : > { %v1287_v13 = vsel %vm636_vm2, %v1281_v8, %v1282_v6 }
 0x1fa   : > { %v1288_v17 = vsel %vm883_vm8, %v1272_v5, %v1287_v13  ;;  %v1278_v18 = vpop.permute.xlu1 %1277  ;;  %v1276_v19 = vpop.permute.xlu0 %1275  ;;  %v4006_v20 = vld [vmem:[#allocation2 + $0x668] sm:$0xff]  ;;  %v4007_v21 = vld [vmem:[#allocation2 + $0x670] sm:$0xff] }
 0x1fb   : > { %1299 = vst [vmem:[#allocation2 + $0x72c] sm:$0xff] %v1288_v17  ;;  %v1284_v24 = vrot.slane %v1278_v18, 4  ;;  %1302 = vst.msk [vmem:[#allocation2 + $0x794] sm:$0xf] %vm600_vm0, %v1278_v18  ;;  %v1283_v25 = vrot.slane %v1276_v19, 4  ;;  %v7759_v26 = vcombine.high %v3994_v14, %v4006_v20  ;;  %v7760_v27 = vcombine.low %v3995_v15, %v4007_v21 }
 0x1fc   : > { %1769 = vrot.lane.b32.xlu1 %v7279_v9, %s8381_s10  ;;  %1767 = vrot.lane.b32.xlu0 %v9269_v16, %s8381_s10  ;;  %v7761_v28 = vcombine.high %v3995_v15, %v4007_v21  ;;  %v7758_v29 = vcombine.low %v3994_v14, %v4006_v20  ;;  %v7297_v18 = vld [vmem:[%s8843_s1 + $0x2c] sm:$0xf] }
 0x1fd   : > { %v1289_v33 = vsel %vm636_vm2, %v1283_v25, %v1284_v24  ;;  %5890 = vmatprep.subr.bf16.mxu1 %v7759_v26  ;;  %v7299_v26 = vld [vmem:[%s8843_s1 + $0x38] sm:$0xf] }
 0x1fe   : > { %v1290_v7 = vsel %vm883_vm8, %v1276_v19, %v1289_v33  ;;  %5933 = vmatprep.subr.bf16.mxu0 %v7761_v28  ;;  %v1318_v36 = vpop.permute.xlu1 %1317  ;;  %v1316_v37 = vpop.permute.xlu0 %1315  ;;  %5891 = vmatpush1.bf16.msra.mxu1 %v7758_v29  ;;  %v4018_v44 = vld [vmem:[#allocation2 + $0x6c8] sm:$0xff]  ;;  %v4019_v48 = vld [vmem:[#allocation2 + $0x6d0] sm:$0xff] }
 0x1ff   : > { %1301 = vst [vmem:[#allocation2 + $0x78c] sm:$0xff] %v1290_v7  ;;  %v1328_v38 = vrot.slane %v1318_v36, 4  ;;  %1346 = vst.msk [vmem:[#allocation2 + $0x7f4] sm:$0xf] %vm600_vm0, %v1318_v36  ;;  %v1327_v39 = vrot.slane %v1316_v37, 4  ;;  %5934 = vmatpush1.bf16.msra.mxu0 %v7760_v27 }
 0x200   : > { %1773 = vrot.lane.b32.xlu1 %v7281_v34, %s8381_s10  ;;  %1771 = vrot.lane.b32.xlu0 %v9156_v41, %s8381_s10 }
 0x201   : > { %v1333_v40 = vsel %vm636_vm2, %v1327_v39, %v1328_v38 }
 0x202   : > { %v1334_v32 = vsel %vm932_vm9, %v1316_v37, %v1333_v40  ;;  %v1322_v43 = vpop.permute.xlu1 %1321  ;;  %v1320_v45 = vpop.permute.xlu0 %1319  ;;  %v4030_v46 = vld [vmem:[#allocation2 + $0x728] sm:$0xff]  ;;  %v4031_v49 = vld [vmem:[#allocation2 + $0x730] sm:$0xff] }
 0x203   : > { %1345 = vst [vmem:[#allocation2 + $0x7ec] sm:$0xff] %v1334_v32  ;;  %v1330_v10 = vrot.slane %v1322_v43, 4  ;;  %1348 = vst.msk [vmem:[#allocation2 + $0x854] sm:$0xf] %vm600_vm0, %v1322_v43  ;;  %v1329_v50 = vrot.slane %v1320_v45, 4  ;;  %v7783_v51 = vcombine.high %v4018_v44, %v4030_v46  ;;  %v7784_v52 = vcombine.low %v4019_v48, %v4031_v49 }
 0x204   : > { %1829 = vrot.lane.b32.xlu1 %v7291_v42, %s8374_s8  ;;  %1827 = vrot.lane.b32.xlu0 %v9269_v16, %s8374_s8  ;;  %v7785_v53 = vcombine.high %v4019_v48, %v4031_v49  ;;  %v7782_v54 = vcombine.low %v4018_v44, %v4030_v46  ;;  %v7301_v42 = vld [vmem:[%s8843_s1 + $0x44] sm:$0xf]  ;;  %v7303_v48 = vld [vmem:[%s8843_s1 + $0x2c] sm:$0xf] }
 0x205   : > { %v1335_v55 = vsel %vm636_vm2, %v1329_v50, %v1330_v10  ;;  %5892 = vmatprep.subr.bf16.mxu1 %v7783_v51 }
 0x206   : > { %v1336_v56 = vsel %vm932_vm9, %v1320_v45, %v1335_v55  ;;  %5935 = vmatprep.subr.bf16.mxu0 %v7785_v53  ;;  %v1326_v57 = vpop.permute.xlu1 %1325  ;;  %v1324_v58 = vpop.permute.xlu0 %1323  ;;  %5893 = vmatpush1.bf16.msra.mxu1 %v7782_v54  ;;  %v4042_v2 = vld [vmem:[#allocation2 + $0x788] sm:$0xff]  ;;  %v4043_v8 = vld [vmem:[#allocation2 + $0x790] sm:$0xff] }
 0x207   : > { %1347 = vst [vmem:[#allocation2 + $0x84c] sm:$0xff] %v1336_v56  ;;  %v1332_v59 = vrot.slane %v1326_v57, 4  ;;  %1350 = vst.msk [vmem:[#allocation2 + $0x8b4] sm:$0xf] %vm600_vm0, %v1326_v57  ;;  %v1331_v60 = vrot.slane %v1324_v58, 4  ;;  %5936 = vmatpush1.bf16.msra.mxu0 %v7784_v52 }
 0x208   : > { %1833 = vrot.lane.b32.xlu1 %v7293_v47, %s8374_s8  ;;  %1831 = vrot.lane.b32.xlu0 %v9156_v41, %s8374_s8 }
 0x209   : > { %v1337_v61 = vsel %vm636_vm2, %v1331_v60, %v1332_v59 }
 0x20a   : > { %v1338_v3 = vsel %vm932_vm9, %v1324_v58, %v1337_v61  ;;  %v1366_v4 = vpop.permute.xlu1 %1365  ;;  %v1364_v5 = vpop.permute.xlu0 %1363  ;;  %v4054_v6 = vld [vmem:[#allocation2 + $0x7e8] sm:$0xff]  ;;  %v4055_v9 = vld [vmem:[#allocation2 + $0x7f0] sm:$0xff]  ;;  %v7305_v61 = vld [vmem:[%s8843_s1 + $0x38] sm:$0xf] }
 0x20b   : > { %1349 = vst [vmem:[#allocation2 + $0x8ac] sm:$0xff] %v1338_v3  ;;  %v1376_v11 = vrot.slane %v1366_v4, 4  ;;  %1394 = vst.msk [vmem:[#allocation2 + $0x914] sm:$0xf] %vm600_vm0, %v1366_v4  ;;  %v1375_v12 = vrot.slane %v1364_v5, 4  ;;  %v7807_v13 = vcombine.high %v4042_v2, %v4054_v6  ;;  %v7808_v14 = vcombine.low %v4043_v8, %v4055_v9 }
 0x20c   : > { %1837 = vrot.lane.b32.xlu1 %v7295_v62, %s8374_s8  ;;  %1835 = vrot.lane.b32.xlu0 %v9352_v63, %s8374_s8  ;;  %v7809_v15 = vcombine.high %v4043_v8, %v4055_v9  ;;  %v7806_v1 = vcombine.low %v4042_v2, %v4054_v6  ;;  %v3805_v62 = vld [vmem:[#allocation2 + $0x20] sm:$0xff] }
 0x20d   : > { %v1381_v17 = vsel %vm636_vm2, %v1375_v12, %v1376_v11  ;;  %5894 = vmatprep.subr.bf16.mxu1 %v7807_v13  ;;  %v3817_v8 = vld [vmem:[#allocation2 + $0x80] sm:$0xff] }
 0x20e   : > { %v1382_v19 = vsel %vm981_vm10, %v1364_v5, %v1381_v17  ;;  %5937 = vmatprep.subr.bf16.mxu0 %v7809_v15  ;;  %v1370_v20 = vpop.permute.xlu1 %1369  ;;  %v1368_v21 = vpop.permute.xlu0 %1367  ;;  %5895 = vmatpush1.bf16.msra.mxu1 %v7806_v1  ;;  %v4066_v27 = vld [vmem:[#allocation2 + $0x848] sm:$0xff]  ;;  %v4067_v33 = vld [vmem:[#allocation2 + $0x850] sm:$0xff] }
 0x20f   : > { %1393 = vst [vmem:[#allocation2 + $0x90c] sm:$0xff] %v1382_v19  ;;  %v1378_v23 = vrot.slane %v1370_v20, 4  ;;  %1396 = vst.msk [vmem:[#allocation2 + $0x974] sm:$0xf] %vm600_vm0, %v1370_v20  ;;  %v1377_v24 = vrot.slane %v1368_v21, 4  ;;  %5938 = vmatpush1.bf16.msra.mxu0 %v7808_v14  ;;  %v9396_v14 = vld [vmem:[#allocation2 + $0xd8] sm:$0xff]  ;;  %v7571_v19 = vcombine.high %v9260_v0, %v9269_v16  ;;  %v7573_v20 = vcombine.high %v3805_v62, %v3817_v8 }
 0x210   : > { %1877 = vrot.lane.b32.xlu1 %v7297_v18, %s8375_s12  ;;  %1875 = vrot.lane.b32.xlu0 %v9269_v16, %s8375_s12  ;;  %v7307_v18 = vld [vmem:[%s8843_s1 + $0x44] sm:$0xf] }
 0x211   : > { %v1383_v25 = vsel %vm636_vm2, %v1377_v24, %v1378_v23 }
 0x212   : > { %v1384_v28 = vsel %vm981_vm10, %v1368_v21, %v1383_v25  ;;  %v1374_v29 = vpop.permute.xlu1 %1373  ;;  %v1372_v30 = vpop.permute.xlu0 %1371  ;;  %v4078_v31 = vld [vmem:[#allocation2 + $0x8a8] sm:$0xff]  ;;  %v4079_v34 = vld [vmem:[#allocation2 + $0x8b0] sm:$0xff] }
 0x213   : > { %1395 = vst [vmem:[#allocation2 + $0x96c] sm:$0xff] %v1384_v28  ;;  %v1380_v35 = vrot.slane %v1374_v29, 4  ;;  %1398 = vst.msk [vmem:[#allocation2 + $0x9d4] sm:$0xf] %vm600_vm0, %v1374_v29  ;;  %v1379_v7 = vrot.slane %v1372_v30, 4  ;;  %v7831_v36 = vcombine.high %v4066_v27, %v4078_v31  ;;  %v7832_v37 = vcombine.low %v4067_v33, %v4079_v34 }
 0x214   : > { %1881 = vrot.lane.b32.xlu1 %v7299_v26, %s8375_s12  ;;  %1879 = vrot.lane.b32.xlu0 %v9156_v41, %s8375_s12  ;;  %v7833_v38 = vcombine.high %v4067_v33, %v4079_v34  ;;  %v7830_v39 = vcombine.low %v4066_v27, %v4078_v31  ;;  %v7570_v29 = vcombine.low %v9260_v0, %v9269_v16  ;;  %v7309_v33 = vld [vmem:[%s8843_s1 + $0x2c] sm:$0xf] }
 0x215   : > { %v1385_v40 = vsel %vm636_vm2, %v1379_v7, %v1380_v35  ;;  %5896 = vmatprep.subr.bf16.mxu1 %v7831_v36 }
 0x216   : > { %v1386_v44 = vsel %vm981_vm10, %v1372_v30, %v1385_v40  ;;  %5939 = vmatprep.subr.bf16.mxu0 %v7833_v38  ;;  %v1430_v32 = vpop.permute.xlu1 %1429  ;;  %v1428_v43 = vpop.permute.xlu0 %1427  ;;  %5897 = vmatpush1.bf16.msra.mxu1 %v7830_v39  ;;  %v4090_v49 = vld [vmem:[#allocation2 + $0x908] sm:$0xff]  ;;  %v4091_v53 = vld [vmem:[#allocation2 + $0x910] sm:$0xff]  ;;  %v7572_v30 = vcombine.low %v3805_v62, %v3817_v8  ;;  %v7311_v40 = vld [vmem:[%s8843_s1 + $0x38] sm:$0xf] }
 0x217   : > { %1397 = vst [vmem:[#allocation2 + $0x9cc] sm:$0xff] %v1386_v44  ;;  %v1440_v45 = vrot.slane %v1430_v32, 4  ;;  %1458 = vst.msk [vmem:[#allocation2 + $0x140] sm:$0xf] %vm600_vm0, %v1430_v32  ;;  %v1439_v46 = vrot.slane %v1428_v43, 4  ;;  %5940 = vmatpush1.bf16.msra.mxu0 %v7832_v37 }
 0x218   : > { %1885 = vrot.lane.b32.xlu1 %v7301_v42, %s8375_s12  ;;  %1883 = vrot.lane.b32.xlu0 %v9352_v63, %s8375_s12  ;;  %v9430_v42 = vld [vmem:[#allocation6 + $0x4] ss:$8 sps:$4 sm:$0x1f]  }
 0x219   : > { %v1445_v41 = vsel %vm636_vm2, %v1439_v46, %v1440_v45 }
 0x21a   : > { %v9383_v10 = vsel %vm638_vm3, %v1428_v43, %v1445_v41  ;;  %v1434_v50 = vpop.permute.xlu1 %1433  ;;  %v1432_v51 = vpop.permute.xlu0 %1431  ;;  %v4102_v52 = vld [vmem:[#allocation2 + $0x968] sm:$0xff]  ;;  %v4103_v54 = vld [vmem:[#allocation2 + $0x970] sm:$0xff] }
 0x21b   : > { %v1442_v55 = vrot.slane %v1434_v50, 4  ;;  %1460 = vst.msk [vmem:[#allocation2 + $0x1a0] sm:$0xf] %vm600_vm0, %v1434_v50  ;;  %v1441_v47 = vrot.slane %v1432_v51, 4  ;;  %v7855_v56 = vcombine.high %v4090_v49, %v4102_v52  ;;  %v7856_v57 = vcombine.low %v4091_v53, %v4103_v54  ;;  %v9446_v50 = vld [vmem:[%s8843_s1 + $0x30] sm:$0xff] }
 0x21c   : > { %1925 = vrot.lane.b32.xlu1 %v7303_v48, %s8376_s13  ;;  %1923 = vrot.lane.b32.xlu0 %v9269_v16, %s8376_s13  ;;  %v7857_v58 = vcombine.high %v4091_v53, %v4103_v54  ;;  %v7854_v59 = vcombine.low %v4090_v49, %v4102_v52  ;;  %v7595_v0 = vcombine.high %v9396_v14, %v9383_v10 }
 0x21d   : > { %v1447_v60 = vsel %vm636_vm2, %v1441_v47, %v1442_v55  ;;  %5898 = vmatprep.subr.bf16.mxu1 %v7855_v56  ;;  %v7594_v39 = vcombine.low %v9396_v14, %v9383_v10  ;;  %v7313_v10 = vld [vmem:[%s8843_s1 + $0x44] sm:$0xf]  ;;  %2209 = vst [vmem:[#allocation2 + $0x30] sm:$0xff] %v9446_v50 }
 0x21e   : > { %v9392_v2 = vsel %vm638_vm3, %v1432_v51, %v1447_v60  ;;  %5941 = vmatprep.subr.bf16.mxu0 %v7857_v58  ;;  %v1438_v3 = vpop.permute.xlu1 %1437  ;;  %v1436_v4 = vpop.permute.xlu0 %1435  ;;  %5899 = vmatpush1.bf16.msra.mxu1 %v7854_v59  ;;  %v4114_v5 = vld [vmem:[#allocation2 + $0x9c8] sm:$0xff]  ;;  %v4115_v6 = vld [vmem:[#allocation2 + $0x9d0] sm:$0xff] }
 0x21f   : > { %v1444_v9 = vrot.slane %v1438_v3, 4  ;;  %1462 = vst.msk [vmem:[#allocation2 + $0x200] sm:$0xf] %vm600_vm0, %v1438_v3  ;;  %v1443_v11 = vrot.slane %v1436_v4, 4  ;;  %5942 = vmatpush1.bf16.msra.mxu0 %v7856_v57  ;;  %v7879_v12 = vcombine.high %v4114_v5, %v4114_v5  ;;  %v7881_v13 = vcombine.high %v4115_v6, %v4115_v6  ;;  %v7315_v57 = vld [vmem:[%s8843_s1 + $0x2c] sm:$0xf] }
 0x220   : > { %1929 = vrot.lane.b32.xlu1 %v7305_v61, %s8376_s13  ;;  %1927 = vrot.lane.b32.xlu0 %v9396_v14, %s8376_s13  ;;  %v7878_v15 = vcombine.low %v4114_v5, %v4114_v5  ;;  %v7880_v1 = vcombine.low %v4115_v6, %v4115_v6  ;;  %v7317_v6 = vld [vmem:[%s8843_s1 + $0x38] sm:$0xf] }
 0x221   : > { %v1449_v17 = vsel %vm636_vm2, %v1443_v11, %v1444_v9  ;;  %7902 = vmatprep.subr.msk.bf16.mxu1 %vm636_vm2, %v7879_v12  ;;  %7904 = vmatprep.subr.msk.bf16.mxu0 %vm636_vm2, %v7881_v13 }
 0x222   : > { %v1450_v21 = vsel %vm638_vm3, %v1436_v4, %v1449_v17  ;;  %v1478_v23 = vpop.permute.xlu1 %1477  ;;  %v1476_v24 = vpop.permute.xlu0 %1475  ;;  %v5766_v25 = vsel %vm636_vm2, %v7878_v15, 0  ;;  %v5772_v26 = vsel %vm636_vm2, %v7880_v1, 0 }
 0x223   : > { %v1488_v27 = vrot.slane %v1478_v23, 4  ;;  %1506 = vst.msk [vmem:[#allocation2 + $0x260] sm:$0xf] %vm600_vm0, %v1478_v23  ;;  %v1487_v28 = vrot.slane %v1476_v24, 4  ;;  %5901 = vmatpush1.bf16.msra.mxu1 %v5766_v25  ;;  %5944 = vmatpush1.bf16.msra.mxu0 %v5772_v26  ;;  %v7619_v45 = vcombine.high %v9392_v2, %v1450_v21  ;;  %v7618_v49 = vcombine.low %v9392_v2, %v1450_v21  ;;  %v7321_v25 = vld [vmem:[%s8843_s1 + $0x2c] sm:$0xf] }
 0x224   : > { %1933 = vrot.lane.b32.xlu1 %v7307_v18, %s8376_s13  ;;  %1931 = vrot.lane.b32.xlu0 %v9352_v63, %s8376_s13 }
 0x225   : > { %v1493_v31 = vsel %vm636_vm2, %v1487_v28, %v1488_v27  ;;  %5960 = vmatprep.subr.bf16.mxu1 %v7571_v19  ;;  %6003 = vmatprep.subr.bf16.mxu0 %v7573_v20 }
 0x226   : > { %v1494_v34 = vsel %vm687_vm4, %v1476_v24, %v1493_v31  ;;  %v1482_v35 = vpop.permute.xlu1 %1481  ;;  %v1480_v7 = vpop.permute.xlu0 %1479  ;;  %5907 = vmatmul.mubr.bf16.vlgmr.msra.gmra.mrb[0].mxu1 %v9188_v22  ;;  %5950 = vmatmul.mubr.bf16.vlgmr.msra.gmra.mrb[4].mxu0 %v9188_v22 }
 0x227   : > { %v1490_v36 = vrot.slane %v1482_v35, 4  ;;  %1508 = vst.msk [vmem:[#allocation2 + $0x2c0] sm:$0xf] %vm600_vm0, %v1482_v35  ;;  %v1489_v37 = vrot.slane %v1480_v7, 4  ;;  %5961 = vmatpush1.bf16.msra.mxu1 %v7570_v29  ;;  %6004 = vmatpush1.bf16.msra.mxu0 %v7572_v30 }
 0x228   : > { %5962 = vmatprep.subr.bf16.mxu1 %v7595_v0  ;;  %1973 = vrot.lane.b32.xlu1 %v7309_v33, %s8377_s14  ;;  %v9481_v33 = vld [vmem:[#allocation2 + $0x24] sm:$0xff] }
 0x229   : > { %v1495_v38 = vsel %vm636_vm2, %v1489_v37, %v1490_v36  ;;  %1971 = vrot.lane.b32.xlu0 %v9269_v16, %s8377_s14  ;;  %7907 = vmatprep.mubr.msk.bf16.mxu1 %vm5754_vm1, %v9430_v42 }
 0x22a   : > { %v1496_v44 = vsel %vm687_vm4, %v1480_v7, %v1495_v38  ;;  %v1486_v32 = vpop.permute.xlu1 %1485  ;;  %v1484_v43 = vpop.permute.xlu0 %1483  ;;  %7909 = vmatprep.mubr.msk.bf16.mxu0 %vm5754_vm1, %v9430_v42 }
 0x22b   : > { %v1492_v46 = vrot.slane %v1486_v32, 4  ;;  %1510 = vst.msk [vmem:[#allocation2 + $0x320] sm:$0xf] %vm600_vm0, %v1486_v32  ;;  %v1491_v41 = vrot.slane %v1484_v43, 4  ;;  %5963 = vmatpush1.bf16.msra.mxu1 %v7594_v39  ;;  %v7643_v54 = vcombine.high %v1494_v34, %v1496_v44  ;;  %v7642_v58 = vcombine.low %v1494_v34, %v1496_v44  ;;  %v7323_v34 = vld [vmem:[%s8843_s1 + $0x38] sm:$0xf] }
 0x22c   : > { %1977 = vrot.lane.b32.xlu1 %v7311_v40, %s8377_s14  ;;  %5964 = vmatprep.subr.bf16.mxu1 %v7619_v45  ;;  %v7325_v44 = vld [vmem:[%s8843_s1 + $0x44] sm:$0xf] }
 0x22d   : > { %v1497_v48 = vsel %vm636_vm2, %v1491_v41, %v1492_v46  ;;  %1975 = vrot.lane.b32.xlu0 %v9396_v14, %s8377_s14 }
 0x22e   : > { %v1498_v51 = vsel %vm687_vm4, %v1484_v43, %v1497_v48  ;;  %v1526_v52 = vpop.permute.xlu1 %1525  ;;  %v1524_v53 = vpop.permute.xlu0 %1523 }
 0x22f   : > { %v1536_v55 = vrot.slane %v1526_v52, 4  ;;  %1554 = vst.msk [vmem:[#allocation2 + $0x380] sm:$0xf] %vm600_vm0, %v1526_v52  ;;  %v1535_v47 = vrot.slane %v1524_v53, 4  ;;  %5965 = vmatpush1.bf16.msra.mxu1 %v7618_v49  ;;  %v7327_v49 = vld [vmem:[%s8843_s1 + $0x2c] sm:$0xf] }
 0x230   : > { %1981 = vrot.lane.b32.xlu1 %v7313_v10, %s8377_s14  ;;  %5966 = vmatprep.subr.bf16.mxu1 %v7643_v54 }
 0x231   : > { %v1541_v56 = vsel %vm636_vm2, %v1535_v47, %v1536_v55  ;;  %1979 = vrot.lane.b32.xlu0 %v9352_v63, %s8377_s14 }
 0x232   : > { %v1542_v59 = vsel %vm736_vm5, %v1524_v53, %v1541_v56  ;;  %v1530_v60 = vpop.permute.xlu1 %1529  ;;  %v1528_v61 = vpop.permute.xlu0 %1527 }
 0x233   : > { %v1538_v62 = vrot.slane %v1530_v60, 4  ;;  %1556 = vst.msk [vmem:[#allocation2 + $0x3e0] sm:$0xf] %vm600_vm0, %v1530_v60  ;;  %v1537_v2 = vrot.slane %v1528_v61, 4  ;;  %5967 = vmatpush1.bf16.msra.mxu1 %v7642_v58  ;;  %v7666_v3 = vcombine.low %v1498_v51, %v1542_v59  ;;  %v7667_v4 = vcombine.high %v1498_v51, %v1542_v59 }
 0x234   : > { %2021 = vrot.lane.b32.xlu1 %v7315_v57, %s8378_s23  ;;  %v7329_v57 = vld [vmem:[%s8843_s1 + $0x38] sm:$0xf] }
 0x235   : > { %v1543_v5 = vsel %vm636_vm2, %v1537_v2, %v1538_v62  ;;  %2019 = vrot.lane.b32.xlu0 %v9269_v16, %s8378_s23  ;;  %5968 = vmatprep.subr.bf16.mxu1 %v7667_v4  ;;  %v7319_v16 = vld [vmem:[%s8843_s1 + $0x44] sm:$0xf] }
 0x236   : > { %v1544_v8 = vsel %vm736_vm5, %v1528_v61, %v1543_v5  ;;  %v1534_v9 = vpop.permute.xlu1 %1533  ;;  %v1532_v11 = vpop.permute.xlu0 %1531 }
 0x237   : > { %v1540_v12 = vrot.slane %v1534_v9, 4  ;;  %1558 = vst.msk [vmem:[#allocation2 + $0x440] sm:$0xf] %vm600_vm0, %v1534_v9  ;;  %v1539_v13 = vrot.slane %v1532_v11, 4  ;;  %5969 = vmatpush1.bf16.msra.mxu1 %v7666_v3  ;;  %v7331_v3 = vld [vmem:[%s8843_s1 + $0x44] sm:$0xf] }
 0x238   : > { %2025 = vrot.lane.b32.xlu1 %v7317_v6, %s8378_s23 }
 0x239   : > { %v1545_v15 = vsel %vm636_vm2, %v1539_v13, %v1540_v12  ;;  %2023 = vrot.lane.b32.xlu0 %v9396_v14, %s8378_s23 }
 0x23a   : > { %v1546_v1 = vsel %vm736_vm5, %v1532_v11, %v1545_v15  ;;  %v1574_v17 = vpop.permute.xlu1 %1573  ;;  %v1572_v18 = vpop.permute.xlu0 %1571  ;;  %v7333_v15 = vld [vmem:[%s8843_s1 + $0x2c] sm:$0xf] }
 0x23b   : > { %v1584_v19 = vrot.slane %v1574_v17, 4  ;;  %1602 = vst.msk [vmem:[#allocation2 + $0x4a0] sm:$0xf] %vm600_vm0, %v1574_v17  ;;  %v1583_v20 = vrot.slane %v1572_v18, 4  ;;  %v7690_v21 = vcombine.low %v1544_v8, %v1546_v1  ;;  %v7691_v23 = vcombine.high %v1544_v8, %v1546_v1 }
 0x23c   : > { %2029 = vrot.lane.b32.xlu1 %v7319_v16, %s8378_s23 }
 0x23d   : > { %v1589_v24 = vsel %vm636_vm2, %v1583_v20, %v1584_v19  ;;  %2027 = vrot.lane.b32.xlu0 %v9352_v63, %s8378_s23  ;;  %5970 = vmatprep.subr.bf16.mxu1 %v7691_v23 }
 0x23e   : > { %v1590_v26 = vsel %vm785_vm6, %v1572_v18, %v1589_v24  ;;  %v1578_v27 = vpop.permute.xlu1 %1577  ;;  %v1576_v28 = vpop.permute.xlu0 %1575  ;;  %5971 = vmatpush1.bf16.msra.mxu1 %v7690_v21  ;;  %v7335_v21 = vld [vmem:[%s8843_s1 + $0x38] sm:$0xf] }
 0x23f   : > { %v1586_v29 = vrot.slane %v1578_v27, 4  ;;  %1604 = vst.msk [vmem:[#allocation2 + $0x500] sm:$0xf] %vm600_vm0, %v1578_v27  ;;  %v1585_v30 = vrot.slane %v1576_v28, 4 }
 0x240   : > { %2069 = vrot.lane.b32.xlu1 %v7321_v25, %s8379_s3 }
 0x241   : > { %v1591_v31 = vsel %vm636_vm2, %v1585_v30, %v1586_v29  ;;  %2067 = vrot.lane.b32.xlu0 %v9481_v33, %s8379_s3  ;;  %v7341_v30 = vld [vmem:[%s8843_s1 + $0x38] sm:$0xf] }
 0x242   : > { %v1592_v35 = vsel %vm785_vm6, %v1576_v28, %v1591_v31  ;;  %v1582_v7 = vpop.permute.xlu1 %1581  ;;  %v1580_v0 = vpop.permute.xlu0 %1579  ;;  %v7343_v31 = vld [vmem:[%s8843_s1 + $0x44] sm:$0xf]  ;;  %2210 = vst.msk [vmem:[#allocation2 + $0x38] sm:$0xf] %vm600_vm0, %v7341_v30 }
 0x243   : > { %v1588_v36 = vrot.slane %v1582_v7, 4  ;;  %1606 = vst.msk [vmem:[#allocation2 + $0x560] sm:$0xf] %vm600_vm0, %v1582_v7  ;;  %v1587_v37 = vrot.slane %v1580_v0, 4  ;;  %v7714_v38 = vcombine.low %v1590_v26, %v1592_v35  ;;  %v7715_v39 = vcombine.high %v1590_v26, %v1592_v35  ;;  %v7337_v35 = vld [vmem:[%s8843_s1 + $0x44] sm:$0xf] }
 0x244   : > { %2073 = vrot.lane.b32.xlu1 %v7323_v34, %s8379_s3  ;;  %v7398_v34 = vld [vmem:[%s8843_s1 + $0x48] sm:$0xff]  ;;  %2212 = vst.msk [vmem:[#allocation2 + $0x98] sm:$0xf] %vm600_vm0, %v7343_v31 }
 0x245   : > { %v1593_v40 = vsel %vm636_vm2, %v1587_v37, %v1588_v36  ;;  %2071 = vrot.lane.b32.xlu0 %v9396_v14, %s8379_s3  ;;  %5972 = vmatprep.subr.bf16.mxu1 %v7715_v39  ;;  %2611 = vst [vmem:[#allocation2 + $0x9c] sm:$0xff] %v7398_v34  ;;  %v7345_v39 = vld [vmem:[%s8843_s1 + $0x50] sm:$0xf] }
 0x246   : > { %v1594_v32 = vsel %vm785_vm6, %v1580_v0, %v1593_v40  ;;  %v1622_v43 = vpop.permute.xlu1 %1621  ;;  %v1620_v45 = vpop.permute.xlu0 %1619  ;;  %5973 = vmatpush1.bf16.msra.mxu1 %v7714_v38  ;;  %v7400_v40 = vld [vmem:[%s8843_s1 + $0x54] sm:$0xff]  ;;  %2214 = vst.msk [vmem:[#allocation2 + $0xf8] sm:$0xf] %vm600_vm0, %v7345_v39 }
 0x247   : > { %v1632_v46 = vrot.slane %v1622_v43, 4  ;;  %1650 = vst.msk [vmem:[#allocation2 + $0x5c0] sm:$0xf] %vm600_vm0, %v1622_v43  ;;  %v1631_v41 = vrot.slane %v1620_v45, 4  ;;  %v7347_v43 = vld [vmem:[%s8843_s1 + $0x38] sm:$0xf] }
 0x248   : > { %2077 = vrot.lane.b32.xlu1 %v7325_v44, %s8379_s3  ;;  %v7401_v44 = vld [vmem:[%s8843_s1 + $0x5c] sm:$0xf]  ;;  %2613 = vst [vmem:[#allocation2 + $0xfc] sm:$0xff] %v7400_v40  ;;  %v7353_v39 = vld [vmem:[%s8843_s1 + $0x38] sm:$0xf] }
 0x249   : > { %v1637_v48 = vsel %vm636_vm2, %v1631_v41, %v1632_v46  ;;  %2075 = vrot.lane.b32.xlu0 %v9352_v63, %s8379_s3  ;;  %2614 = vst.msk [vmem:[#allocation2 + $0x104] sm:$0xf] %vm600_vm0, %v7401_v44 }
 0x24a   : > { %v1638_v10 = vsel %vm834_vm7, %v1620_v45, %v1637_v48  ;;  %v1626_v51 = vpop.permute.xlu1 %1625  ;;  %v1624_v52 = vpop.permute.xlu0 %1623 }
 0x24b   : > { %v1634_v53 = vrot.slane %v1626_v51, 4  ;;  %1652 = vst.msk [vmem:[#allocation2 + $0x620] sm:$0xf] %vm600_vm0, %v1626_v51  ;;  %v1633_v54 = vrot.slane %v1624_v52, 4  ;;  %v7738_v55 = vcombine.low %v1594_v32, %v1638_v10  ;;  %v7739_v47 = vcombine.high %v1594_v32, %v1638_v10 }
 0x24c   : > { %2117 = vrot.lane.b32.xlu1 %v7327_v49, %s8380_s6 }
 0x24d   : > { %v1639_v56 = vsel %vm636_vm2, %v1633_v54, %v1634_v53  ;;  %2115 = vrot.lane.b32.xlu0 %v9481_v33, %s8380_s6  ;;  %5974 = vmatprep.subr.bf16.mxu1 %v7739_v47  ;;  %v7403_v53 = vld [vmem:[%s8843_s1 + $0x44] sm:$0xf] }
 0x24e   : > { %v1640_v58 = vsel %vm834_vm7, %v1624_v52, %v1639_v56  ;;  %v1630_v59 = vpop.permute.xlu1 %1629  ;;  %v1628_v60 = vpop.permute.xlu0 %1627  ;;  %5975 = vmatpush1.bf16.msra.mxu1 %v7738_v55 }
 0x24f   : > { %v1636_v61 = vrot.slane %v1630_v59, 4  ;;  %1654 = vst.msk [vmem:[#allocation2 + $0x680] sm:$0xf] %vm600_vm0, %v1630_v59  ;;  %v1635_v62 = vrot.slane %v1628_v60, 4  ;;  %v7349_v59 = vld [vmem:[%s8843_s1 + $0x44] sm:$0xf] }
 0x250   : > { %2121 = vrot.lane.b32.xlu1 %v7329_v57, %s8380_s6 }
 0x251   : > { %v1641_v2 = vsel %vm636_vm2, %v1635_v62, %v1636_v61  ;;  %2119 = vrot.lane.b32.xlu0 %v9396_v14, %s8380_s6 }
 0x252   : > { %v1642_v4 = vsel %vm834_vm7, %v1628_v60, %v1641_v2  ;;  %v1670_v5 = vpop.permute.xlu1 %1669  ;;  %v1668_v6 = vpop.permute.xlu0 %1667 }
 0x253   : > { %v1680_v8 = vrot.slane %v1670_v5, 4  ;;  %1698 = vst.msk [vmem:[#allocation2 + $0x6e0] sm:$0xf] %vm600_vm0, %v1670_v5  ;;  %v1679_v9 = vrot.slane %v1668_v6, 4  ;;  %v7762_v11 = vcombine.low %v1640_v58, %v1642_v4  ;;  %v7763_v12 = vcombine.high %v1640_v58, %v1642_v4 }
 0x254   : > { %2125 = vrot.lane.b32.xlu1 %v7331_v3, %s8380_s6 }
 0x255   : > { %v1685_v13 = vsel %vm636_vm2, %v1679_v9, %v1680_v8  ;;  %2123 = vrot.lane.b32.xlu0 %v9352_v63, %s8380_s6  ;;  %5976 = vmatprep.subr.bf16.mxu1 %v7763_v12  ;;  %v7351_v8 = vld [vmem:[%s8843_s1 + $0x50] sm:$0xf] }
 0x256   : > { %v1686_v16 = vsel %vm883_vm8, %v1668_v6, %v1685_v13  ;;  %v1674_v1 = vpop.permute.xlu1 %1673  ;;  %v1672_v17 = vpop.permute.xlu0 %1671  ;;  %5977 = vmatpush1.bf16.msra.mxu1 %v7762_v11  ;;  %v9575_v13 = vld [vmem:[%s8843_s1 + $0x48] sm:$0xff] }
 0x257   : > { %v1682_v18 = vrot.slane %v1674_v1, 4  ;;  %1700 = vst.msk [vmem:[#allocation2 + $0x740] sm:$0xf] %vm600_vm0, %v1674_v1  ;;  %v1681_v19 = vrot.slane %v1672_v17, 4 }
 0x258   : > { %2165 = vrot.lane.b32.xlu1 %v7333_v15, %s8381_s10 }
 0x259   : > { %v1687_v20 = vsel %vm636_vm2, %v1681_v19, %v1682_v18  ;;  %2163 = vrot.lane.b32.xlu0 %v9481_v33, %s8381_s10 }
 0x25a   : > { %v1688_v23 = vsel %vm883_vm8, %v1672_v17, %v1687_v20  ;;  %v1678_v24 = vpop.permute.xlu1 %1677  ;;  %v1676_v25 = vpop.permute.xlu0 %1675  ;;  %v7405_v17 = vld [vmem:[%s8843_s1 + $0x50] sm:$0xf] }
 0x25b   : > { %v1684_v26 = vrot.slane %v1678_v24, 4  ;;  %1702 = vst.msk [vmem:[#allocation2 + $0x7a0] sm:$0xf] %vm600_vm0, %v1678_v24  ;;  %v1683_v27 = vrot.slane %v1676_v25, 4  ;;  %v7786_v28 = vcombine.low %v1686_v16, %v1688_v23  ;;  %v7787_v29 = vcombine.high %v1686_v16, %v1688_v23 }
 0x25c   : > { %2169 = vrot.lane.b32.xlu1 %v7335_v21, %s8381_s10 }
 0x25d   : > { %v1689_v33 = vsel %vm636_vm2, %v1683_v27, %v1684_v26  ;;  %2167 = vrot.lane.b32.xlu0 %v9396_v14, %s8381_s10  ;;  %5978 = vmatprep.subr.bf16.mxu1 %v7787_v29  ;;  %v3806_v26 = vld [vmem:[#allocation2 + $0x28] sm:$0xff]  ;;  %v7407_v29 = vld [vmem:[%s8843_s1 + $0x5c] sm:$0xf] }
 0x25e   : > { %v1690_v7 = vsel %vm883_vm8, %v1676_v25, %v1689_v33  ;;  %v1718_v0 = vpop.permute.xlu1 %1717  ;;  %v1716_v36 = vpop.permute.xlu0 %1715  ;;  %5979 = vmatpush1.bf16.msra.mxu1 %v7786_v28  ;;  %v3818_v27 = vld [vmem:[#allocation2 + $0x88] sm:$0xff]  ;;  %v9592_v33 = vld [vmem:[%s8843_s1 + $0x54] sm:$0xff] }
 0x25f   : > { %v1728_v37 = vrot.slane %v1718_v0, 4  ;;  %1746 = vst.msk [vmem:[#allocation2 + $0x800] sm:$0xf] %vm600_vm0, %v1718_v0  ;;  %v1727_v38 = vrot.slane %v1716_v36, 4 }
 0x260   : > { %2173 = vrot.lane.b32.xlu1 %v7337_v35, %s8381_s10  ;;  %v7575_v35 = vcombine.high %v3806_v26, %v3818_v27 }
 0x261   : > { %v1733_v32 = vsel %vm636_vm2, %v1727_v38, %v1728_v37  ;;  %2171 = vrot.lane.b32.xlu0 %v9352_v63, %s8381_s10 }
 0x262   : > { %v1734_v45 = vsel %vm932_vm9, %v1716_v36, %v1733_v32  ;;  %v1722_v46 = vpop.permute.xlu1 %1721  ;;  %v1720_v41 = vpop.permute.xlu0 %1719 }
 0x263   : > { %v1730_v48 = vrot.slane %v1722_v46, 4  ;;  %1748 = vst.msk [vmem:[#allocation2 + $0x860] sm:$0xf] %vm600_vm0, %v1722_v46  ;;  %v1729_v49 = vrot.slane %v1720_v41, 4  ;;  %v7810_v10 = vcombine.low %v1690_v7, %v1734_v45  ;;  %v7811_v51 = vcombine.high %v1690_v7, %v1734_v45 }
 0x264   : > { %2229 = vrot.lane.b32.xlu1 %v7347_v43, %s8374_s8  ;;  %v7574_v45 = vcombine.low %v3806_v26, %v3818_v27 }
 0x265   : > { %v1735_v52 = vsel %vm636_vm2, %v1729_v49, %v1730_v48  ;;  %2227 = vrot.lane.b32.xlu0 %v9396_v14, %s8374_s8  ;;  %5980 = vmatprep.subr.bf16.mxu1 %v7811_v51  ;;  %v7355_v49 = vld [vmem:[%s8843_s1 + $0x44] sm:$0xf] }
 0x266   : > { %v1736_v54 = vsel %vm932_vm9, %v1720_v41, %v1735_v52  ;;  %v1726_v55 = vpop.permute.xlu1 %1725  ;;  %v1724_v47 = vpop.permute.xlu0 %1723  ;;  %5981 = vmatpush1.bf16.msra.mxu1 %v7810_v10 }
 0x267   : > { %v1732_v56 = vrot.slane %v1726_v55, 4  ;;  %1750 = vst.msk [vmem:[#allocation2 + $0x8c0] sm:$0xf] %vm600_vm0, %v1726_v55  ;;  %v1731_v57 = vrot.slane %v1724_v47, 4  ;;  %v3829_v55 = vld [vmem:[#allocation2 + $0xe0] sm:$0xff] }
 0x268   : > { %2629 = vrot.lane.b32.xlu1 %v7403_v53, %s8374_s8 }
 0x269   : > { %v1737_v58 = vsel %vm636_vm2, %v1731_v57, %v1732_v56  ;;  %2627 = vrot.lane.b32.xlu0 %v9352_v63, %s8374_s8  ;;  %v7409_v56 = vld [vmem:[%s8843_s1 + $0x44] sm:$0xf]  ;;  %v3830_v57 = vld [vmem:[#allocation2 + $0xe8] sm:$0xff] }
 0x26a   : > { %v1738_v60 = vsel %vm932_vm9, %v1724_v47, %v1737_v58  ;;  %v1766_v61 = vpop.permute.xlu1 %1765  ;;  %v1764_v62 = vpop.permute.xlu0 %1763 }
 0x26b   : > { %v1776_v2 = vrot.slane %v1766_v61, 4  ;;  %1794 = vst.msk [vmem:[#allocation2 + $0x920] sm:$0xf] %vm600_vm0, %v1766_v61  ;;  %v1775_v3 = vrot.slane %v1764_v62, 4  ;;  %v7834_v4 = vcombine.low %v1736_v54, %v1738_v60  ;;  %v7835_v5 = vcombine.high %v1736_v54, %v1738_v60 }
 0x26c   : > { %2233 = vrot.lane.b32.xlu1 %v7349_v59, %s8374_s8 }
 0x26d   : > { %v1781_v6 = vsel %vm636_vm2, %v1775_v3, %v1776_v2  ;;  %2231 = vrot.lane.b32.xlu0 %v9352_v63, %s8374_s8  ;;  %5982 = vmatprep.subr.bf16.mxu1 %v7835_v5 }
 0x26e   : > { %v1782_v9 = vsel %vm981_vm10, %v1764_v62, %v1781_v6  ;;  %v1770_v11 = vpop.permute.xlu1 %1769  ;;  %v1768_v12 = vpop.permute.xlu0 %1767  ;;  %5983 = vmatpush1.bf16.msra.mxu1 %v7834_v4 }
 0x26f   : > { %v1778_v15 = vrot.slane %v1770_v11, 4  ;;  %1796 = vst.msk [vmem:[#allocation2 + $0x980] sm:$0xf] %vm600_vm0, %v1770_v11  ;;  %v1777_v16 = vrot.slane %v1768_v12, 4 }
 0x270   : > { %2237 = vrot.lane.b32.xlu1 %v7351_v8, %s8374_s8  ;;  %v9623_v8 = vld [vmem:[#allocation2 + $0xe4] sm:$0xff] }
 0x271   : > { %v1783_v1 = vsel %vm636_vm2, %v1777_v16, %v1778_v15  ;;  %2235 = vrot.lane.b32.xlu0 %v9575_v13, %s8374_s8 }
 0x272   : > { %v1784_v18 = vsel %vm981_vm10, %v1768_v12, %v1783_v1  ;;  %v1774_v19 = vpop.permute.xlu1 %1773  ;;  %v1772_v20 = vpop.permute.xlu0 %1771 }
 0x273   : > { %v1780_v21 = vrot.slane %v1774_v19, 4  ;;  %1798 = vst.msk [vmem:[#allocation2 + $0x9e0] sm:$0xf] %vm600_vm0, %v1774_v19  ;;  %v1779_v23 = vrot.slane %v1772_v20, 4  ;;  %v7858_v24 = vcombine.low %v1782_v9, %v1784_v18  ;;  %v7859_v25 = vcombine.high %v1782_v9, %v1784_v18  ;;  %v7411_v9 = vld [vmem:[%s8843_s1 + $0x50] sm:$0xf] }
 0x274   : > { %2633 = vrot.lane.b32.xlu1 %v7405_v17, %s8374_s8  ;;  %v7357_v18 = vld [vmem:[%s8843_s1 + $0x50] sm:$0xf] }
 0x275   : > { %v1785_v28 = vsel %vm636_vm2, %v1779_v23, %v1780_v21  ;;  %2631 = vrot.lane.b32.xlu0 %v9575_v13, %s8374_s8  ;;  %5984 = vmatprep.subr.bf16.mxu1 %v7859_v25 }
 0x276   : > { %v1786_v30 = vsel %vm981_vm10, %v1772_v20, %v1785_v28  ;;  %v1830_v31 = vpop.permute.xlu1 %1829  ;;  %v1828_v34 = vpop.permute.xlu0 %1827  ;;  %5985 = vmatpush1.bf16.msra.mxu1 %v7858_v24 }
 0x277   : > { %v1840_v7 = vrot.slane %v1830_v31, 4  ;;  %1858 = vst.msk [vmem:[#allocation2 + $0x14c] sm:$0xf] %vm600_vm0, %v1830_v31  ;;  %v1839_v0 = vrot.slane %v1828_v34, 4  ;;  %v7883_v36 = vcombine.high %v1786_v30, %v1786_v30  ;;  %v7882_v37 = vcombine.low %v1786_v30, %v1786_v30 }
 0x278   : > { %2637 = vrot.lane.b32.xlu1 %v7407_v29, %s8374_s8 }
 0x279   : > { %v1845_v38 = vsel %vm636_vm2, %v1839_v0, %v1840_v7  ;;  %2635 = vrot.lane.b32.xlu0 %v9592_v33, %s8374_s8  ;;  %7906 = vmatprep.subr.msk.bf16.mxu1 %vm636_vm2, %v7883_v36  ;;  %v5778_v40 = vsel %vm636_vm2, %v7882_v37, 0  ;;  %v7359_v7 = vld [vmem:[%s8843_s1 + $0x38] sm:$0xf] }
 0x27a   : > { %v1846_v44 = vsel %vm638_vm3, %v1828_v34, %v1845_v38  ;;  %v1834_v32 = vpop.permute.xlu1 %1833  ;;  %v1832_v43 = vpop.permute.xlu0 %1831  ;;  %5987 = vmatpush1.bf16.msra.mxu1 %v5778_v40 }
 0x27b   : > { %1857 = vst [vmem:[#allocation2 + $0x144] sm:$0xff] %v1846_v44  ;;  %v1842_v46 = vrot.slane %v1834_v32, 4  ;;  %1860 = vst.msk [vmem:[#allocation2 + $0x1ac] sm:$0xf] %vm600_vm0, %v1834_v32  ;;  %v1841_v41 = vrot.slane %v1832_v43, 4  ;;  %6046 = vmatprep.subr.bf16.mxu1 %v7575_v35 }
 0x27c   : > { %2277 = vrot.lane.b32.xlu1 %v7353_v39, %s8375_s12  ;;  %v7413_v44 = vld [vmem:[%s8843_s1 + $0x5c] sm:$0xf] }
 0x27d   : > { %v1847_v48 = vsel %vm636_vm2, %v1841_v41, %v1842_v46  ;;  %2275 = vrot.lane.b32.xlu0 %v9396_v14, %s8375_s12  ;;  %5993 = vmatmul.mubr.bf16.vlgmr.msra.gmra.mrb[4].mxu1 %v9188_v22 }
 0x27e   : > { %v1848_v10 = vsel %vm638_vm3, %v1832_v43, %v1847_v48  ;;  %v1838_v51 = vpop.permute.xlu1 %1837  ;;  %v1836_v52 = vpop.permute.xlu0 %1835  ;;  %6047 = vmatpush1.bf16.msra.mxu1 %v7574_v45  ;;  %7911 = vmatprep.mubr.msk.bf16.mxu1 %vm5754_vm1, %v9430_v42 }
 0x27f   : > { %1859 = vst [vmem:[#allocation2 + $0x1a4] sm:$0xff] %v1848_v10  ;;  %v1844_v53 = vrot.slane %v1838_v51, 4  ;;  %1862 = vst.msk [vmem:[#allocation2 + $0x20c] sm:$0xf] %vm600_vm0, %v1838_v51  ;;  %v1843_v54 = vrot.slane %v1836_v52, 4 }
 0x280   : > { %2281 = vrot.lane.b32.xlu1 %v7355_v49, %s8375_s12 }
 0x281   : > { %v1849_v47 = vsel %vm636_vm2, %v1843_v54, %v1844_v53  ;;  %2279 = vrot.lane.b32.xlu0 %v9352_v63, %s8375_s12 }
 0x282   : > { %v1850_v58 = vsel %vm638_vm3, %v1836_v52, %v1849_v47  ;;  %v1878_v59 = vpop.permute.xlu1 %1877  ;;  %v1876_v60 = vpop.permute.xlu0 %1875  ;;  %v3841_v42 = vld [vmem:[#allocation2 + $0x140] sm:$0xff]  ;;  %v3842_v61 = vld [vmem:[#allocation2 + $0x148] sm:$0xff] }
 0x283   : > { %1861 = vst [vmem:[#allocation2 + $0x204] sm:$0xff] %v1850_v58  ;;  %v1888_v62 = vrot.slane %v1878_v59, 4  ;;  %1906 = vst.msk [vmem:[#allocation2 + $0x26c] sm:$0xf] %vm600_vm0, %v1878_v59  ;;  %v1887_v2 = vrot.slane %v1876_v60, 4  ;;  %v7596_v3 = vcombine.low %v3829_v55, %v3841_v42  ;;  %v7597_v4 = vcombine.high %v3829_v55, %v3841_v42 }
 0x284   : > { %2677 = vrot.lane.b32.xlu1 %v7409_v56, %s8375_s12  ;;  %v7598_v5 = vcombine.low %v3830_v57, %v3842_v61  ;;  %v7599_v63 = vcombine.high %v3830_v57, %v3842_v61  ;;  %v7415_v47 = vld [vmem:[%s8843_s1 + $0x44] sm:$0xf] }
 0x285   : > { %v1893_v6 = vsel %vm636_vm2, %v1887_v2, %v1888_v62  ;;  %2675 = vrot.lane.b32.xlu0 %v9623_v8, %s8375_s12  ;;  %6005 = vmatprep.subr.bf16.mxu0 %v7597_v4  ;;  %v7361_v61 = vld [vmem:[%s8843_s1 + $0x44] sm:$0xf] }
 0x286   : > { %v1894_v11 = vsel %vm687_vm4, %v1876_v60, %v1893_v6  ;;  %v1882_v12 = vpop.permute.xlu1 %1881  ;;  %v1880_v15 = vpop.permute.xlu0 %1879  ;;  %6006 = vmatpush1.bf16.msra.mxu0 %v7596_v3  ;;  %6048 = vmatprep.subr.bf16.mxu1 %v7599_v63  ;;  %v3853_v23 = vld [vmem:[#allocation2 + $0x1a0] sm:$0xff]  ;;  %v3854_v30 = vld [vmem:[#allocation2 + $0x1a8] sm:$0xff] }
 0x287   : > { %1905 = vst [vmem:[#allocation2 + $0x264] sm:$0xff] %v1894_v11  ;;  %v1890_v16 = vrot.slane %v1882_v12, 4  ;;  %1908 = vst.msk [vmem:[#allocation2 + $0x2cc] sm:$0xf] %vm600_vm0, %v1882_v12  ;;  %v1889_v1 = vrot.slane %v1880_v15, 4  ;;  %6049 = vmatpush1.bf16.msra.mxu1 %v7598_v5 }
 0x288   : > { %2681 = vrot.lane.b32.xlu1 %v7411_v9, %s8375_s12 }
 0x289   : > { %v1895_v17 = vsel %vm636_vm2, %v1889_v1, %v1890_v16  ;;  %2679 = vrot.lane.b32.xlu0 %v9575_v13, %s8375_s12 }
 0x28a   : > { %v1896_v19 = vsel %vm687_vm4, %v1880_v15, %v1895_v17  ;;  %v1886_v20 = vpop.permute.xlu1 %1885  ;;  %v1884_v21 = vpop.permute.xlu0 %1883  ;;  %v3865_v24 = vld [vmem:[#allocation2 + $0x200] sm:$0xff]  ;;  %v3866_v25 = vld [vmem:[#allocation2 + $0x208] sm:$0xff]  ;;  %v7363_v17 = vld [vmem:[%s8843_s1 + $0x50] sm:$0xf] }
 0x28b   : > { %1907 = vst [vmem:[#allocation2 + $0x2c4] sm:$0xff] %v1896_v19  ;;  %v1892_v26 = vrot.slane %v1886_v20, 4  ;;  %1910 = vst.msk [vmem:[#allocation2 + $0x32c] sm:$0xf] %vm600_vm0, %v1886_v20  ;;  %v1891_v27 = vrot.slane %v1884_v21, 4  ;;  %v7620_v28 = vcombine.low %v3853_v23, %v3865_v24  ;;  %v7621_v29 = vcombine.high %v3853_v23, %v3865_v24 }
 0x28c   : > { %2285 = vrot.lane.b32.xlu1 %v7357_v18, %s8375_s12  ;;  %v7622_v31 = vcombine.low %v3854_v30, %v3866_v25  ;;  %v7623_v34 = vcombine.high %v3854_v30, %v3866_v25  ;;  %v7417_v25 = vld [vmem:[%s8843_s1 + $0x50] sm:$0xf] }
 0x28d   : > { %v1897_v35 = vsel %vm636_vm2, %v1891_v27, %v1892_v26  ;;  %2283 = vrot.lane.b32.xlu0 %v9575_v13, %s8375_s12  ;;  %6007 = vmatprep.subr.bf16.mxu0 %v7621_v29 }
 0x28e   : > { %v1898_v0 = vsel %vm687_vm4, %v1884_v21, %v1897_v35  ;;  %6050 = vmatprep.subr.bf16.mxu1 %v7623_v34  ;;  %v1926_v36 = vpop.permute.xlu1 %1925  ;;  %v1924_v37 = vpop.permute.xlu0 %1923  ;;  %6008 = vmatpush1.bf16.msra.mxu0 %v7620_v28  ;;  %v3877_v46 = vld [vmem:[#allocation2 + $0x260] sm:$0xff]  ;;  %v3878_v53 = vld [vmem:[#allocation2 + $0x268] sm:$0xff] }
 0x28f   : > { %1909 = vst [vmem:[#allocation2 + $0x324] sm:$0xff] %v1898_v0  ;;  %v1936_v38 = vrot.slane %v1926_v36, 4  ;;  %1954 = vst.msk [vmem:[#allocation2 + $0x38c] sm:$0xf] %vm600_vm0, %v1926_v36  ;;  %v1935_v39 = vrot.slane %v1924_v37, 4  ;;  %6051 = vmatpush1.bf16.msra.mxu1 %v7622_v31 }
 0x290   : > { %2325 = vrot.lane.b32.xlu1 %v7359_v7, %s8376_s13 }
 0x291   : > { %v1941_v40 = vsel %vm636_vm2, %v1935_v39, %v1936_v38  ;;  %2323 = vrot.lane.b32.xlu0 %v9396_v14, %s8376_s13 }
 0x292   : > { %v1942_v32 = vsel %vm736_vm5, %v1924_v37, %v1941_v40  ;;  %v1930_v43 = vpop.permute.xlu1 %1929  ;;  %v1928_v45 = vpop.permute.xlu0 %1927  ;;  %v3889_v41 = vld [vmem:[#allocation2 + $0x2c0] sm:$0xff]  ;;  %v3890_v48 = vld [vmem:[#allocation2 + $0x2c8] sm:$0xff]  ;;  %v7419_v40 = vld [vmem:[%s8843_s1 + $0x5c] sm:$0xf] }
 0x293   : > { %1953 = vst [vmem:[#allocation2 + $0x384] sm:$0xff] %v1942_v32  ;;  %v1938_v49 = vrot.slane %v1930_v43, 4  ;;  %1956 = vst.msk [vmem:[#allocation2 + $0x3ec] sm:$0xf] %vm600_vm0, %v1930_v43  ;;  %v1937_v10 = vrot.slane %v1928_v45, 4  ;;  %v7644_v51 = vcombine.low %v3877_v46, %v3889_v41  ;;  %v7645_v52 = vcombine.high %v3877_v46, %v3889_v41 }
 0x294   : > { %2685 = vrot.lane.b32.xlu1 %v7413_v44, %s8375_s12  ;;  %v7646_v14 = vcombine.low %v3878_v53, %v3890_v48  ;;  %v7647_v54 = vcombine.high %v3878_v53, %v3890_v48  ;;  %v7365_v48 = vld [vmem:[%s8843_s1 + $0x38] sm:$0xf] }
 0x295   : > { %v1943_v55 = vsel %vm636_vm2, %v1937_v10, %v1938_v49  ;;  %2683 = vrot.lane.b32.xlu0 %v9592_v33, %s8375_s12  ;;  %6009 = vmatprep.subr.bf16.mxu0 %v7645_v52 }
 0x296   : > { %v1944_v56 = vsel %vm736_vm5, %v1928_v45, %v1943_v55  ;;  %6052 = vmatprep.subr.bf16.mxu1 %v7647_v54  ;;  %v1934_v57 = vpop.permute.xlu1 %1933  ;;  %v1932_v58 = vpop.permute.xlu0 %1931  ;;  %6010 = vmatpush1.bf16.msra.mxu0 %v7644_v51  ;;  %v3901_v62 = vld [vmem:[#allocation2 + $0x320] sm:$0xff]  ;;  %v3902_v5 = vld [vmem:[#allocation2 + $0x328] sm:$0xff] }
 0x297   : > { %1955 = vst [vmem:[#allocation2 + $0x3e4] sm:$0xff] %v1944_v56  ;;  %v1940_v59 = vrot.slane %v1934_v57, 4  ;;  %1958 = vst.msk [vmem:[#allocation2 + $0x44c] sm:$0xf] %vm600_vm0, %v1934_v57  ;;  %v1939_v60 = vrot.slane %v1932_v58, 4  ;;  %6053 = vmatpush1.bf16.msra.mxu1 %v7646_v14 }
 0x298   : > { %2725 = vrot.lane.b32.xlu1 %v7415_v47, %s8376_s13 }
 0x299   : > { %v1945_v42 = vsel %vm636_vm2, %v1939_v60, %v1940_v59  ;;  %2723 = vrot.lane.b32.xlu0 %v9623_v8, %s8376_s13 }
 0x29a   : > { %v1946_v2 = vsel %vm736_vm5, %v1932_v58, %v1945_v42  ;;  %v1974_v3 = vpop.permute.xlu1 %1973  ;;  %v3913_v4 = vld [vmem:[#allocation2 + $0x380] sm:$0xff]  ;;  %v3914_v63 = vld [vmem:[#allocation2 + $0x388] sm:$0xff] }
 0x29b   : > { %1957 = vst [vmem:[#allocation2 + $0x444] sm:$0xff] %v1946_v2  ;;  %v1984_v6 = vrot.slane %v1974_v3, 4  ;;  %2002 = vst.msk [vmem:[#allocation2 + $0x4ac] sm:$0xf] %vm600_vm0, %v1974_v3  ;;  %v1972_v9 = vpop.permute.xlu0 %1971  ;;  %v7668_v11 = vcombine.low %v3901_v62, %v3913_v4  ;;  %v7669_v12 = vcombine.high %v3901_v62, %v3913_v4  ;;  %v7670_v15 = vcombine.low %v3902_v5, %v3914_v63  ;;  %v7367_v42 = vld [vmem:[%s8843_s1 + $0x44] sm:$0xf] }
 0x29c   : > { %v1983_v16 = vrot.slane %v1972_v9, 4  ;;  %2329 = vrot.lane.b32.xlu1 %v7361_v61, %s8376_s13  ;;  %v7671_v1 = vcombine.high %v3902_v5, %v3914_v63  ;;  %v7462_v61 = vld [vmem:[%s8843_s1 + $0x60] sm:$0xff] }
 0x29d   : > { %2327 = vrot.lane.b32.xlu0 %v9623_v8, %s8376_s13  ;;  %6011 = vmatprep.subr.bf16.mxu0 %v7669_v12  ;;  %3013 = vst [vmem:[#allocation2 + $0x108] sm:$0xff] %v7462_v61 }
 0x29e   : > { %v1989_v18 = vsel %vm636_vm2, %v1983_v16, %v1984_v6  ;;  %6054 = vmatprep.subr.bf16.mxu1 %v7671_v1  ;;  %v1978_v19 = vpop.permute.xlu1 %1977  ;;  %6012 = vmatpush1.bf16.msra.mxu0 %v7668_v11  ;;  %v3925_v28 = vld [vmem:[#allocation2 + $0x3e0] sm:$0xff]  ;;  %v3926_v36 = vld [vmem:[#allocation2 + $0x3e8] sm:$0xff] }
 0x29f   : > { %v1990_v20 = vsel %vm785_vm6, %v1972_v9, %v1989_v18  ;;  %v1986_v21 = vrot.slane %v1978_v19, 4  ;;  %2004 = vst.msk [vmem:[#allocation2 + $0x50c] sm:$0xf] %vm600_vm0, %v1978_v19  ;;  %v1976_v23 = vpop.permute.xlu0 %1975  ;;  %6055 = vmatpush1.bf16.msra.mxu1 %v7670_v15 }
 0x2a0   : > { %2001 = vst [vmem:[#allocation2 + $0x4a4] sm:$0xff] %v1990_v20  ;;  %v1985_v24 = vrot.slane %v1976_v23, 4  ;;  %2333 = vrot.lane.b32.xlu1 %v7363_v17, %s8376_s13 }
 0x2a1   : > { %2331 = vrot.lane.b32.xlu0 %v9575_v13, %s8376_s13 }
 0x2a2   : > { %v1991_v26 = vsel %vm636_vm2, %v1985_v24, %v1986_v21  ;;  %v1982_v27 = vpop.permute.xlu1 %1981  ;;  %v3937_v29 = vld [vmem:[#allocation2 + $0x440] sm:$0xff]  ;;  %v3938_v30 = vld [vmem:[#allocation2 + $0x448] sm:$0xff] }
 0x2a3   : > { %v1992_v31 = vsel %vm785_vm6, %v1976_v23, %v1991_v26  ;;  %v1988_v34 = vrot.slane %v1982_v27, 4  ;;  %2006 = vst.msk [vmem:[#allocation2 + $0x56c] sm:$0xf] %vm600_vm0, %v1982_v27  ;;  %v1980_v35 = vpop.permute.xlu0 %1979  ;;  %v7692_v7 = vcombine.low %v3925_v28, %v3937_v29  ;;  %v7693_v0 = vcombine.high %v3925_v28, %v3937_v29 }
 0x2a4   : > { %2003 = vst [vmem:[#allocation2 + $0x504] sm:$0xff] %v1992_v31  ;;  %v1987_v37 = vrot.slane %v1980_v35, 4  ;;  %2729 = vrot.lane.b32.xlu1 %v7417_v25, %s8376_s13  ;;  %v7694_v38 = vcombine.low %v3926_v36, %v3938_v30  ;;  %v7695_v39 = vcombine.high %v3926_v36, %v3938_v30  ;;  %v7423_v25 = vld [vmem:[%s8843_s1 + $0x50] sm:$0xf] }
 0x2a5   : > { %2727 = vrot.lane.b32.xlu0 %v9575_v13, %s8376_s13  ;;  %6013 = vmatprep.subr.bf16.mxu0 %v7693_v0 }
 0x2a6   : > { %v1993_v44 = vsel %vm636_vm2, %v1987_v37, %v1988_v34  ;;  %6056 = vmatprep.subr.bf16.mxu1 %v7695_v39  ;;  %v2022_v32 = vpop.permute.xlu1 %2021  ;;  %6014 = vmatpush1.bf16.msra.mxu0 %v7692_v7  ;;  %v7369_v34 = vld [vmem:[%s8843_s1 + $0x50] sm:$0xf] }
 0x2a7   : > { %v1994_v43 = vsel %vm785_vm6, %v1980_v35, %v1993_v44  ;;  %v2032_v45 = vrot.slane %v2022_v32, 4  ;;  %2050 = vst.msk [vmem:[#allocation2 + $0x5cc] sm:$0xf] %vm600_vm0, %v2022_v32  ;;  %v2020_v46 = vpop.permute.xlu0 %2019  ;;  %6057 = vmatpush1.bf16.msra.mxu1 %v7694_v38  ;;  %v3949_v51 = vld [vmem:[#allocation2 + $0x4a0] sm:$0xff]  ;;  %v3950_v55 = vld [vmem:[#allocation2 + $0x4a8] sm:$0xff] }
 0x2a8   : > { %2005 = vst [vmem:[#allocation2 + $0x564] sm:$0xff] %v1994_v43  ;;  %v2031_v41 = vrot.slane %v2020_v46, 4  ;;  %2733 = vrot.lane.b32.xlu1 %v7419_v40, %s8376_s13 }
 0x2a9   : > { %2731 = vrot.lane.b32.xlu0 %v9592_v33, %s8376_s13 }
 0x2aa   : > { %v2037_v49 = vsel %vm636_vm2, %v2031_v41, %v2032_v45  ;;  %v2026_v10 = vpop.permute.xlu1 %2025 }
 0x2ab   : > { %v2038_v52 = vsel %vm834_vm7, %v2020_v46, %v2037_v49  ;;  %v2034_v53 = vrot.slane %v2026_v10, 4  ;;  %2052 = vst.msk [vmem:[#allocation2 + $0x62c] sm:$0xf] %vm600_vm0, %v2026_v10  ;;  %v2024_v14 = vpop.permute.xlu0 %2023  ;;  %v3961_v54 = vld [vmem:[#allocation2 + $0x500] sm:$0xff]  ;;  %v3962_v47 = vld [vmem:[#allocation2 + $0x508] sm:$0xff] }
 0x2ac   : > { %2049 = vst [vmem:[#allocation2 + $0x5c4] sm:$0xff] %v2038_v52  ;;  %v2033_v56 = vrot.slane %v2024_v14, 4  ;;  %2373 = vrot.lane.b32.xlu1 %v7365_v48, %s8377_s14  ;;  %v7716_v57 = vcombine.low %v3949_v51, %v3961_v54  ;;  %v7717_v58 = vcombine.high %v3949_v51, %v3961_v54  ;;  %v7718_v59 = vcombine.low %v3950_v55, %v3962_v47  ;;  %v7371_v48 = vld [vmem:[%s8843_s1 + $0x38] sm:$0xf]  ;;  %v9730_v54 = vld [vmem:[#allocation2 + $0x30] sm:$0xff] }
 0x2ad   : > { %2371 = vrot.lane.b32.xlu0 %v9446_v50, %s8377_s14  ;;  %v7719_v60 = vcombine.high %v3950_v55, %v3962_v47  ;;  %v7421_v50 = vld [vmem:[%s8843_s1 + $0x44] sm:$0xf]  ;;  %v7425_v55 = vld [vmem:[%s8843_s1 + $0x5c] sm:$0xf] }
 0x2ae   : > { %v2039_v62 = vsel %vm636_vm2, %v2033_v56, %v2034_v53  ;;  %6015 = vmatprep.subr.bf16.mxu0 %v7717_v58  ;;  %v2030_v2 = vpop.permute.xlu1 %2029 }
 0x2af   : > { %v2040_v3 = vsel %vm834_vm7, %v2024_v14, %v2039_v62  ;;  %6058 = vmatprep.subr.bf16.mxu1 %v7719_v60  ;;  %v2036_v4 = vrot.slane %v2030_v2, 4  ;;  %2054 = vst.msk [vmem:[#allocation2 + $0x68c] sm:$0xf] %vm600_vm0, %v2030_v2  ;;  %v2028_v5 = vpop.permute.xlu0 %2027  ;;  %6016 = vmatpush1.bf16.msra.mxu0 %v7716_v57  ;;  %v3973_v11 = vld [vmem:[#allocation2 + $0x560] sm:$0xff]  ;;  %v3974_v17 = vld [vmem:[#allocation2 + $0x568] sm:$0xff] }
 0x2b0   : > { %2051 = vst [vmem:[#allocation2 + $0x624] sm:$0xff] %v2040_v3  ;;  %v2035_v63 = vrot.slane %v2028_v5, 4  ;;  %6059 = vmatpush1.bf16.msra.mxu1 %v7718_v59  ;;  %2377 = vrot.lane.b32.xlu1 %v7367_v42, %s8377_s14 }
 0x2b1   : > { %2375 = vrot.lane.b32.xlu0 %v9623_v8, %s8377_s14 }
 0x2b2   : > { %v2041_v6 = vsel %vm636_vm2, %v2035_v63, %v2036_v4  ;;  %v2070_v9 = vpop.permute.xlu1 %2069 }
 0x2b3   : > { %v2042_v12 = vsel %vm834_vm7, %v2028_v5, %v2041_v6  ;;  %v2080_v15 = vrot.slane %v2070_v9, 4  ;;  %2098 = vst.msk [vmem:[#allocation2 + $0x6ec] sm:$0xf] %vm600_vm0, %v2070_v9  ;;  %v2068_v16 = vpop.permute.xlu0 %2067  ;;  %v3985_v1 = vld [vmem:[#allocation2 + $0x5c0] sm:$0xff]  ;;  %v3986_v18 = vld [vmem:[#allocation2 + $0x5c8] sm:$0xff] }
 0x2b4   : > { %2053 = vst [vmem:[#allocation2 + $0x684] sm:$0xff] %v2042_v12  ;;  %v2079_v19 = vrot.slane %v2068_v16, 4  ;;  %2773 = vrot.lane.b32.xlu1 %v7421_v50, %s8377_s14  ;;  %v7740_v20 = vcombine.low %v3973_v11, %v3985_v1  ;;  %v7741_v21 = vcombine.high %v3973_v11, %v3985_v1  ;;  %v7742_v23 = vcombine.low %v3974_v17, %v3986_v18  ;;  %v7427_v50 = vld [vmem:[%s8843_s1 + $0x44] sm:$0xf] }
 0x2b5   : > { %2771 = vrot.lane.b32.xlu0 %v9623_v8, %s8377_s14  ;;  %v7743_v24 = vcombine.high %v3974_v17, %v3986_v18  ;;  %v7373_v1 = vld [vmem:[%s8843_s1 + $0x44] sm:$0xf] }
 0x2b6   : > { %v2085_v26 = vsel %vm636_vm2, %v2079_v19, %v2080_v15  ;;  %6017 = vmatprep.subr.bf16.mxu0 %v7741_v21  ;;  %v2074_v27 = vpop.permute.xlu1 %2073 }
 0x2b7   : > { %v2086_v28 = vsel %vm883_vm8, %v2068_v16, %v2085_v26  ;;  %6060 = vmatprep.subr.bf16.mxu1 %v7743_v24  ;;  %v2082_v29 = vrot.slane %v2074_v27, 4  ;;  %2100 = vst.msk [vmem:[#allocation2 + $0x74c] sm:$0xf] %vm600_vm0, %v2074_v27  ;;  %v2072_v30 = vpop.permute.xlu0 %2071  ;;  %6018 = vmatpush1.bf16.msra.mxu0 %v7740_v20  ;;  %v3997_v0 = vld [vmem:[#allocation2 + $0x620] sm:$0xff]  ;;  %v3998_v40 = vld [vmem:[#allocation2 + $0x628] sm:$0xff] }
 0x2b8   : > { %2097 = vst [vmem:[#allocation2 + $0x6e4] sm:$0xff] %v2086_v28  ;;  %v2081_v31 = vrot.slane %v2072_v30, 4  ;;  %6061 = vmatpush1.bf16.msra.mxu1 %v7742_v23  ;;  %2777 = vrot.lane.b32.xlu1 %v7423_v25, %s8377_s14 }
 0x2b9   : > { %2775 = vrot.lane.b32.xlu0 %v9575_v13, %s8377_s14 }
 0x2ba   : > { %v2087_v35 = vsel %vm636_vm2, %v2081_v31, %v2082_v29  ;;  %v2078_v7 = vpop.permute.xlu1 %2077 }
 0x2bb   : > { %v2088_v36 = vsel %vm883_vm8, %v2072_v30, %v2087_v35  ;;  %v2084_v37 = vrot.slane %v2078_v7, 4  ;;  %2102 = vst.msk [vmem:[#allocation2 + $0x7ac] sm:$0xf] %vm600_vm0, %v2078_v7  ;;  %v2076_v38 = vpop.permute.xlu0 %2075  ;;  %v4009_v39 = vld [vmem:[#allocation2 + $0x680] sm:$0xff]  ;;  %v4010_v44 = vld [vmem:[#allocation2 + $0x688] sm:$0xff] }
 0x2bc   : > { %2099 = vst [vmem:[#allocation2 + $0x744] sm:$0xff] %v2088_v36  ;;  %v2083_v32 = vrot.slane %v2076_v38, 4  ;;  %2381 = vrot.lane.b32.xlu1 %v7369_v34, %s8377_s14  ;;  %v7764_v43 = vcombine.low %v3997_v0, %v4009_v39  ;;  %v7765_v45 = vcombine.high %v3997_v0, %v4009_v39  ;;  %v7766_v46 = vcombine.low %v3998_v40, %v4010_v44  ;;  %v7375_v34 = vld [vmem:[%s8843_s1 + $0x50] sm:$0xf] }
 0x2bd   : > { %2379 = vrot.lane.b32.xlu0 %v9575_v13, %s8377_s14  ;;  %v7767_v41 = vcombine.high %v3998_v40, %v4010_v44  ;;  %v7429_v39 = vld [vmem:[%s8843_s1 + $0x50] sm:$0xf] }
 0x2be   : > { %v2089_v49 = vsel %vm636_vm2, %v2083_v32, %v2084_v37  ;;  %6019 = vmatprep.subr.bf16.mxu0 %v7765_v45  ;;  %v2118_v10 = vpop.permute.xlu1 %2117 }
 0x2bf   : > { %v2090_v51 = vsel %vm883_vm8, %v2076_v38, %v2089_v49  ;;  %6062 = vmatprep.subr.bf16.mxu1 %v7767_v41  ;;  %v2128_v52 = vrot.slane %v2118_v10, 4  ;;  %2146 = vst.msk [vmem:[#allocation2 + $0x80c] sm:$0xf] %vm600_vm0, %v2118_v10  ;;  %v2116_v53 = vpop.permute.xlu0 %2115  ;;  %6020 = vmatpush1.bf16.msra.mxu0 %v7764_v43  ;;  %v4021_v57 = vld [vmem:[#allocation2 + $0x6e0] sm:$0xff]  ;;  %v4022_v61 = vld [vmem:[#allocation2 + $0x6e8] sm:$0xff] }
 0x2c0   : > { %2101 = vst [vmem:[#allocation2 + $0x7a4] sm:$0xff] %v2090_v51  ;;  %v2127_v14 = vrot.slane %v2116_v53, 4  ;;  %6063 = vmatpush1.bf16.msra.mxu1 %v7766_v46  ;;  %2421 = vrot.lane.b32.xlu1 %v7371_v48, %s8378_s23 }
 0x2c1   : > { %2419 = vrot.lane.b32.xlu0 %v9730_v54, %s8378_s23 }
 0x2c2   : > { %v2133_v47 = vsel %vm636_vm2, %v2127_v14, %v2128_v52  ;;  %v2122_v56 = vpop.permute.xlu1 %2121 }
 0x2c3   : > { %v2134_v58 = vsel %vm932_vm9, %v2116_v53, %v2133_v47  ;;  %v2130_v59 = vrot.slane %v2122_v56, 4  ;;  %2148 = vst.msk [vmem:[#allocation2 + $0x86c] sm:$0xf] %vm600_vm0, %v2122_v56  ;;  %v2120_v60 = vpop.permute.xlu0 %2119  ;;  %v4033_v42 = vld [vmem:[#allocation2 + $0x740] sm:$0xff]  ;;  %v4034_v62 = vld [vmem:[#allocation2 + $0x748] sm:$0xff] }
 0x2c4   : > { %2145 = vst [vmem:[#allocation2 + $0x804] sm:$0xff] %v2134_v58  ;;  %v2129_v2 = vrot.slane %v2120_v60, 4  ;;  %2781 = vrot.lane.b32.xlu1 %v7425_v55, %s8377_s14  ;;  %v7788_v3 = vcombine.low %v4021_v57, %v4033_v42  ;;  %v7789_v4 = vcombine.high %v4021_v57, %v4033_v42  ;;  %v7790_v5 = vcombine.low %v4022_v61, %v4034_v62  ;;  %v7431_v55 = vld [vmem:[%s8843_s1 + $0x5c] sm:$0xf] }
 0x2c5   : > { %2779 = vrot.lane.b32.xlu0 %v9592_v33, %s8377_s14  ;;  %v7791_v63 = vcombine.high %v4022_v61, %v4034_v62 }
 0x2c6   : > { %v2135_v6 = vsel %vm636_vm2, %v2129_v2, %v2130_v59  ;;  %6021 = vmatprep.subr.bf16.mxu0 %v7789_v4  ;;  %v2126_v9 = vpop.permute.xlu1 %2125 }
 0x2c7   : > { %v2136_v11 = vsel %vm932_vm9, %v2120_v60, %v2135_v6  ;;  %6064 = vmatprep.subr.bf16.mxu1 %v7791_v63  ;;  %v2132_v12 = vrot.slane %v2126_v9, 4  ;;  %2150 = vst.msk [vmem:[#allocation2 + $0x8cc] sm:$0xf] %vm600_vm0, %v2126_v9  ;;  %v2124_v15 = vpop.permute.xlu0 %2123  ;;  %6022 = vmatpush1.bf16.msra.mxu0 %v7788_v3  ;;  %v4045_v19 = vld [vmem:[#allocation2 + $0x7a0] sm:$0xff]  ;;  %v4046_v25 = vld [vmem:[#allocation2 + $0x7a8] sm:$0xff] }
 0x2c8   : > { %2147 = vst [vmem:[#allocation2 + $0x864] sm:$0xff] %v2136_v11  ;;  %v2131_v16 = vrot.slane %v2124_v15, 4  ;;  %6065 = vmatpush1.bf16.msra.mxu1 %v7790_v5  ;;  %2821 = vrot.lane.b32.xlu1 %v7427_v50, %s8378_s23 }
 0x2c9   : > { %2819 = vrot.lane.b32.xlu0 %v9623_v8, %s8378_s23 }
 0x2ca   : > { %v2137_v17 = vsel %vm636_vm2, %v2131_v16, %v2132_v12  ;;  %v2166_v18 = vpop.permute.xlu1 %2165 }
 0x2cb   : > { %v2138_v20 = vsel %vm932_vm9, %v2124_v15, %v2137_v17  ;;  %v2176_v21 = vrot.slane %v2166_v18, 4  ;;  %2194 = vst.msk [vmem:[#allocation2 + $0x92c] sm:$0xf] %vm600_vm0, %v2166_v18  ;;  %v2164_v23 = vpop.permute.xlu0 %2163  ;;  %v4057_v24 = vld [vmem:[#allocation2 + $0x800] sm:$0xff]  ;;  %v4058_v26 = vld [vmem:[#allocation2 + $0x808] sm:$0xff]  ;;  %v3808_v17 = vld [vmem:[#allocation2 + $0x38] sm:$0xff] }
 0x2cc   : > { %2149 = vst [vmem:[#allocation2 + $0x8c4] sm:$0xff] %v2138_v20  ;;  %v2175_v27 = vrot.slane %v2164_v23, 4  ;;  %2425 = vrot.lane.b32.xlu1 %v7373_v1, %s8378_s23  ;;  %v7812_v28 = vcombine.low %v4045_v19, %v4057_v24  ;;  %v7813_v29 = vcombine.high %v4045_v19, %v4057_v24  ;;  %v7814_v30 = vcombine.low %v4046_v25, %v4058_v26  ;;  %v7379_v15 = vld [vmem:[%s8843_s1 + $0x44] sm:$0xf]  ;;  %v3820_v24 = vld [vmem:[#allocation2 + $0x98] sm:$0xff] }
 0x2cd   : > { %2423 = vrot.lane.b32.xlu0 %v9623_v8, %s8378_s23  ;;  %v7815_v31 = vcombine.high %v4046_v25, %v4058_v26 }
 0x2ce   : > { %v2181_v35 = vsel %vm636_vm2, %v2175_v27, %v2176_v21  ;;  %6023 = vmatprep.subr.bf16.mxu0 %v7813_v29  ;;  %v2170_v7 = vpop.permute.xlu1 %2169 }
 0x2cf   : > { %v2182_v0 = vsel %vm981_vm10, %v2164_v23, %v2181_v35  ;;  %6066 = vmatprep.subr.bf16.mxu1 %v7815_v31  ;;  %v2178_v36 = vrot.slane %v2170_v7, 4  ;;  %2196 = vst.msk [vmem:[#allocation2 + $0x98c] sm:$0xf] %vm600_vm0, %v2170_v7  ;;  %v2168_v37 = vpop.permute.xlu0 %2167  ;;  %6024 = vmatpush1.bf16.msra.mxu0 %v7812_v28  ;;  %v4069_v32 = vld [vmem:[#allocation2 + $0x860] sm:$0xff]  ;;  %v4070_v48 = vld [vmem:[#allocation2 + $0x868] sm:$0xff]  ;;  %v7577_v31 = vcombine.high %v9730_v54, %v9623_v8 }
 0x2d0   : > { %2193 = vst [vmem:[#allocation2 + $0x924] sm:$0xff] %v2182_v0  ;;  %v2177_v38 = vrot.slane %v2168_v37, 4  ;;  %6067 = vmatpush1.bf16.msra.mxu1 %v7814_v30  ;;  %2429 = vrot.lane.b32.xlu1 %v7375_v34, %s8378_s23  ;;  %v7433_v30 = vld [vmem:[%s8843_s1 + $0x44] sm:$0xf]  ;;  %v7579_v0 = vcombine.high %v3808_v17, %v3820_v24 }
 0x2d1   : > { %2427 = vrot.lane.b32.xlu0 %v9575_v13, %s8378_s23 }
 0x2d2   : > { %v2183_v40 = vsel %vm636_vm2, %v2177_v38, %v2178_v36  ;;  %v2174_v44 = vpop.permute.xlu1 %2173 }
 0x2d3   : > { %v2184_v43 = vsel %vm981_vm10, %v2168_v37, %v2183_v40  ;;  %v2180_v45 = vrot.slane %v2174_v44, 4  ;;  %2198 = vst.msk [vmem:[#allocation2 + $0x9ec] sm:$0xf] %vm600_vm0, %v2174_v44  ;;  %v2172_v46 = vpop.permute.xlu0 %2171  ;;  %v4081_v41 = vld [vmem:[#allocation2 + $0x8c0] sm:$0xff]  ;;  %v4082_v49 = vld [vmem:[#allocation2 + $0x8c8] sm:$0xff]  ;;  %v7576_v40 = vcombine.low %v9730_v54, %v9623_v8 }
 0x2d4   : > { %2195 = vst [vmem:[#allocation2 + $0x984] sm:$0xff] %v2184_v43  ;;  %v2179_v10 = vrot.slane %v2172_v46, 4  ;;  %2825 = vrot.lane.b32.xlu1 %v7429_v39, %s8378_s23  ;;  %v7836_v51 = vcombine.low %v4069_v32, %v4081_v41  ;;  %v7837_v52 = vcombine.high %v4069_v32, %v4081_v41  ;;  %v7838_v53 = vcombine.low %v4070_v48, %v4082_v49  ;;  %v3832_v43 = vld [vmem:[#allocation2 + $0xf8] sm:$0xff] }
 0x2d5   : > { %2823 = vrot.lane.b32.xlu0 %v9575_v13, %s8378_s23  ;;  %v7839_v14 = vcombine.high %v4070_v48, %v4082_v49  ;;  %v7377_v13 = vld [vmem:[%s8843_s1 + $0x38] sm:$0xf]  ;;  %v7578_v32 = vcombine.low %v3808_v17, %v3820_v24  ;;  %v9811_v41 = vld [vmem:[#allocation2 + $0x9c] sm:$0xff]  ;;  %v7435_v49 = vld [vmem:[%s8843_s1 + $0x50] sm:$0xf] }
 0x2d6   : > { %v2185_v47 = vsel %vm636_vm2, %v2179_v10, %v2180_v45  ;;  %6025 = vmatprep.subr.bf16.mxu0 %v7837_v52  ;;  %v2230_v56 = vpop.permute.xlu1 %2229  ;;  %v9858_v24 = vld [vmem:[%s8843_s1 + $0x3c] sm:$0xff] }
 0x2d7   : > { %v2186_v57 = vsel %vm981_vm10, %v2172_v46, %v2185_v47  ;;  %6068 = vmatprep.subr.bf16.mxu1 %v7839_v14  ;;  %v2240_v58 = vrot.slane %v2230_v56, 4  ;;  %2258 = vst.msk [vmem:[#allocation2 + $0x158] sm:$0xf] %vm600_vm0, %v2230_v56  ;;  %v2228_v59 = vpop.permute.xlu0 %2227  ;;  %6026 = vmatpush1.bf16.msra.mxu0 %v7836_v51  ;;  %v4093_v62 = vld [vmem:[#allocation2 + $0x920] sm:$0xff]  ;;  %v4094_v63 = vld [vmem:[#allocation2 + $0x928] sm:$0xff] }
 0x2d8   : > { %2197 = vst [vmem:[#allocation2 + $0x9e4] sm:$0xff] %v2186_v57  ;;  %v2239_v60 = vrot.slane %v2228_v59, 4  ;;  %6069 = vmatpush1.bf16.msra.mxu1 %v7838_v53  ;;  %2829 = vrot.lane.b32.xlu1 %v7431_v55, %s8378_s23 }
 0x2d9   : > { %2827 = vrot.lane.b32.xlu0 %v9592_v33, %s8378_s23 }
 0x2da   : > { %v2245_v42 = vsel %vm636_vm2, %v2239_v60, %v2240_v58  ;;  %v2630_v61 = vpop.permute.xlu1 %2629  ;;  %v7381_v58 = vld [vmem:[%s8843_s1 + $0x50] sm:$0xf]  ;;  %v8140_v60 = vld [vmem:[#allocation6 + $0x4] ss:$8 sps:$4 sm:$0x1f]  }
 0x2db   : > { %v9779_v2 = vsel %vm638_vm3, %v2228_v59, %v2245_v42  ;;  %v2640_v3 = vrot.slane %v2630_v61, 4  ;;  %2658 = vst.msk [vmem:[#allocation2 + $0x164] sm:$0xf] %vm600_vm0, %v2630_v61  ;;  %v2628_v4 = vpop.permute.xlu0 %2627  ;;  %v4105_v5 = vld [vmem:[#allocation2 + $0x980] sm:$0xff]  ;;  %v4106_v50 = vld [vmem:[#allocation2 + $0x988] sm:$0xff] }
 0x2dc   : > { %v2639_v6 = vrot.slane %v2628_v4, 4  ;;  %2469 = vrot.lane.b32.xlu1 %v7377_v13, %s8379_s3  ;;  %v7860_v33 = vcombine.low %v4093_v62, %v4105_v5  ;;  %v7861_v9 = vcombine.high %v4093_v62, %v4105_v5  ;;  %v7862_v11 = vcombine.low %v4094_v63, %v4106_v50 }
 0x2dd   : > { %2467 = vrot.lane.b32.xlu0 %v9730_v54, %s8379_s3  ;;  %v7863_v12 = vcombine.high %v4094_v63, %v4106_v50  ;;  %v7601_v48 = vcombine.high %v9811_v41, %v9779_v2  ;;  %v7600_v47 = vcombine.low %v9811_v41, %v9779_v2  ;;  %v7383_v63 = vld [vmem:[%s8843_s1 + $0x38] sm:$0xf] }
 0x2de   : > { %v2645_v16 = vsel %vm636_vm2, %v2639_v6, %v2640_v3  ;;  %6027 = vmatprep.subr.bf16.mxu0 %v7861_v9  ;;  %v2234_v1 = vpop.permute.xlu1 %2233  ;;  %v9836_v3 = vld [vmem:[%s8843_s1 + $0x48] sm:$0xff] }
 0x2df   : > { %v2646_v18 = vsel %vm638_vm3, %v2628_v4, %v2645_v16  ;;  %6070 = vmatprep.subr.bf16.mxu1 %v7863_v12  ;;  %v2242_v19 = vrot.slane %v2234_v1, 4  ;;  %2260 = vst.msk [vmem:[#allocation2 + $0x1b8] sm:$0xf] %vm600_vm0, %v2234_v1  ;;  %v2232_v20 = vpop.permute.xlu0 %2231  ;;  %6028 = vmatpush1.bf16.msra.mxu0 %v7860_v33  ;;  %v4117_v21 = vld [vmem:[#allocation2 + $0x9e0] sm:$0xff]  ;;  %v4118_v23 = vld [vmem:[#allocation2 + $0x9e8] sm:$0xff]  ;;  %3009 = vst [vmem:[#allocation2 + $0x48] sm:$0xff] %v9836_v3 }
 0x2e0   : > { %2657 = vst [vmem:[#allocation2 + $0x15c] sm:$0xff] %v2646_v18  ;;  %v2241_v25 = vrot.slane %v2232_v20, 4  ;;  %6071 = vmatpush1.bf16.msra.mxu1 %v7862_v11  ;;  %2473 = vrot.lane.b32.xlu1 %v7379_v15, %s8379_s3  ;;  %v7885_v26 = vcombine.high %v4117_v21, %v4117_v21  ;;  %v7887_v27 = vcombine.high %v4118_v23, %v4118_v23  ;;  %v7437_v15 = vld [vmem:[%s8843_s1 + $0x5c] sm:$0xf] }
 0x2e1   : > { %v7884_v28 = vcombine.low %v4117_v21, %v4117_v21  ;;  %2471 = vrot.lane.b32.xlu0 %v9623_v8, %s8379_s3  ;;  %v7886_v29 = vcombine.low %v4118_v23, %v4118_v23  ;;  %v7439_v23 = vld [vmem:[%s8843_s1 + $0x44] sm:$0xf] }
 0x2e2   : > { %v2247_v34 = vsel %vm636_vm2, %v2241_v25, %v2242_v19  ;;  %7908 = vmatprep.subr.msk.bf16.mxu0 %vm636_vm2, %v7885_v26  ;;  %7910 = vmatprep.subr.msk.bf16.mxu1 %vm636_vm2, %v7887_v27  ;;  %v2238_v35 = vpop.permute.xlu1 %2237  ;;  %v9851_v19 = vld [vmem:[#allocation2 + $0xfc] sm:$0xff] }
 0x2e3   : > { %v5784_v7 = vsel %vm636_vm2, %v7884_v28, 0  ;;  %v9800_v36 = vsel %vm638_vm3, %v2232_v20, %v2247_v34  ;;  %v2244_v37 = vrot.slane %v2238_v35, 4  ;;  %2262 = vst.msk [vmem:[#allocation2 + $0x218] sm:$0xf] %vm600_vm0, %v2238_v35  ;;  %v2236_v38 = vpop.permute.xlu0 %2235  ;;  %v5790_v39 = vsel %vm636_vm2, %v7886_v29, 0 }
 0x2e4   : > { %6030 = vmatpush1.bf16.msra.mxu0 %v5784_v7  ;;  %v2243_v44 = vrot.slane %v2236_v38, 4  ;;  %6073 = vmatpush1.bf16.msra.mxu1 %v5790_v39 }
 0x2e5   : > { %2869 = vrot.lane.b32.xlu1 %v7433_v30, %s8379_s3  ;;  %2867 = vrot.lane.b32.xlu0 %v9623_v8, %s8379_s3 }
 0x2e6   : > { %6089 = vmatprep.subr.bf16.mxu0 %v7577_v31  ;;  %v2249_v45 = vsel %vm636_vm2, %v2243_v44, %v2244_v37  ;;  %6132 = vmatprep.subr.bf16.mxu1 %v7579_v0  ;;  %v2634_v46 = vpop.permute.xlu1 %2633  ;;  %v7385_v37 = vld [vmem:[%s8843_s1 + $0x44] sm:$0xf] }
 0x2e7   : > { %6036 = vmatmul.mubr.bf16.vlgmr.msra.gmra.mrb[8].mxu0 %v9188_v22  ;;  %v2250_v10 = vsel %vm638_vm3, %v2236_v38, %v2249_v45  ;;  %v2642_v51 = vrot.slane %v2634_v46, 4  ;;  %2660 = vst.msk [vmem:[#allocation2 + $0x1c4] sm:$0xf] %vm600_vm0, %v2634_v46  ;;  %v2632_v8 = vpop.permute.xlu0 %2631  ;;  %6079 = vmatmul.mubr.bf16.vlgmr.msra.gmra.mrb[8].mxu1 %v9188_v22  ;;  %v3844_v52 = vld [vmem:[#allocation2 + $0x158] sm:$0xff]  ;;  %v7387_v46 = vld [vmem:[%s8843_s1 + $0x50] sm:$0xf] }
 0x2e8   : > { %6090 = vmatpush1.bf16.msra.mxu0 %v7576_v40  ;;  %v2641_v53 = vrot.slane %v2632_v8, 4  ;;  %6133 = vmatpush1.bf16.msra.mxu1 %v7578_v32  ;;  %v7602_v14 = vcombine.low %v3832_v43, %v3844_v52  ;;  %v7603_v55 = vcombine.high %v3832_v43, %v3844_v52  ;;  %v7625_v59 = vcombine.high %v9800_v36, %v2250_v10  ;;  %v9873_v32 = vld [vmem:[%s8843_s1 + $0x54] sm:$0xff] }
 0x2e9   : > { %6091 = vmatprep.subr.bf16.mxu0 %v7601_v48  ;;  %2873 = vrot.lane.b32.xlu1 %v7435_v49, %s8379_s3  ;;  %v7624_v2 = vcombine.low %v9800_v36, %v2250_v10  ;;  %3011 = vst [vmem:[#allocation2 + $0xa8] sm:$0xff] %v9873_v32 }
 0x2ea   : > { %2871 = vrot.lane.b32.xlu0 %v9811_v41, %s8379_s3  ;;  %v2647_v56 = vsel %vm636_vm2, %v2641_v53, %v2642_v51  ;;  %6134 = vmatprep.subr.bf16.mxu1 %v7603_v55  ;;  %v2638_v57 = vpop.permute.xlu1 %2637  ;;  %v7441_v53 = vld [vmem:[%s8843_s1 + $0x50] sm:$0xf] }
 0x2eb   : > { %7913 = vmatprep.mubr.msk.bf16.mxu0 %vm5754_vm1, %v8140_v60  ;;  %v2648_v13 = vsel %vm638_vm3, %v2632_v8, %v2647_v56  ;;  %v2644_v42 = vrot.slane %v2638_v57, 4  ;;  %2662 = vst.msk [vmem:[#allocation2 + $0x224] sm:$0xf] %vm600_vm0, %v2638_v57  ;;  %v2636_v61 = vpop.permute.xlu0 %2635  ;;  %7915 = vmatprep.mubr.msk.bf16.mxu1 %vm5754_vm1, %v8140_v60 }
 0x2ec   : > { %6092 = vmatpush1.bf16.msra.mxu0 %v7600_v47  ;;  %2659 = vst [vmem:[#allocation2 + $0x1bc] sm:$0xff] %v2648_v13  ;;  %v2643_v62 = vrot.slane %v2636_v61, 4  ;;  %6135 = vmatpush1.bf16.msra.mxu1 %v7602_v14 }
 0x2ed   : > { %6093 = vmatprep.subr.bf16.mxu0 %v7625_v59  ;;  %2477 = vrot.lane.b32.xlu1 %v7381_v58, %s8379_s3  ;;  %v7443_v59 = vld [vmem:[%s8843_s1 + $0x5c] sm:$0xf] }
 0x2ee   : > { %2475 = vrot.lane.b32.xlu0 %v9811_v41, %s8379_s3  ;;  %v2649_v4 = vsel %vm636_vm2, %v2643_v62, %v2644_v42  ;;  %v2278_v5 = vpop.permute.xlu1 %2277 }
 0x2ef   : > { %v2650_v50 = vsel %vm638_vm3, %v2636_v61, %v2649_v4  ;;  %v2288_v6 = vrot.slane %v2278_v5, 4  ;;  %2306 = vst.msk [vmem:[#allocation2 + $0x278] sm:$0xf] %vm600_vm0, %v2278_v5  ;;  %v2276_v33 = vpop.permute.xlu0 %2275 }
 0x2f0   : > { %6094 = vmatpush1.bf16.msra.mxu0 %v7624_v2  ;;  %2661 = vst [vmem:[#allocation2 + $0x21c] sm:$0xff] %v2650_v50  ;;  %v2287_v9 = vrot.slane %v2276_v33, 4 }
 0x2f1   : > { %2517 = vrot.lane.b32.xlu1 %v7383_v63, %s8380_s6 }
 0x2f2   : > { %2515 = vrot.lane.b32.xlu0 %v9730_v54, %s8380_s6  ;;  %v2293_v11 = vsel %vm636_vm2, %v2287_v9, %v2288_v6  ;;  %v2282_v12 = vpop.permute.xlu1 %2281  ;;  %v7389_v9 = vld [vmem:[%s8843_s1 + $0x38] sm:$0xf] }
 0x2f3   : > { %v2294_v16 = vsel %vm687_vm4, %v2276_v33, %v2293_v11  ;;  %v2290_v1 = vrot.slane %v2282_v12, 4  ;;  %2308 = vst.msk [vmem:[#allocation2 + $0x2d8] sm:$0xf] %vm600_vm0, %v2282_v12  ;;  %v2280_v17 = vpop.permute.xlu0 %2279  ;;  %v3856_v28 = vld [vmem:[#allocation2 + $0x1b8] sm:$0xff] }
 0x2f4   : > { %v2289_v18 = vrot.slane %v2280_v17, 4 }
 0x2f5   : > { %2877 = vrot.lane.b32.xlu1 %v7437_v15, %s8379_s3 }
 0x2f6   : > { %2875 = vrot.lane.b32.xlu0 %v9851_v19, %s8379_s3  ;;  %v2295_v20 = vsel %vm636_vm2, %v2289_v18, %v2290_v1  ;;  %v2678_v21 = vpop.permute.xlu1 %2677  ;;  %v7391_v18 = vld [vmem:[%s8843_s1 + $0x44] sm:$0xf] }
 0x2f7   : > { %v2296_v25 = vsel %vm687_vm4, %v2280_v17, %v2295_v20  ;;  %v2688_v26 = vrot.slane %v2678_v21, 4  ;;  %2706 = vst.msk [vmem:[#allocation2 + $0x284] sm:$0xf] %vm600_vm0, %v2678_v21  ;;  %v2676_v27 = vpop.permute.xlu0 %2675  ;;  %v3868_v29 = vld [vmem:[#allocation2 + $0x218] sm:$0xff] }
 0x2f8   : > { %v2687_v30 = vrot.slane %v2676_v27, 4  ;;  %v7626_v31 = vcombine.low %v3856_v28, %v3868_v29  ;;  %v7627_v34 = vcombine.high %v3856_v28, %v3868_v29  ;;  %v7648_v35 = vcombine.low %v2294_v16, %v2296_v25  ;;  %v7445_v29 = vld [vmem:[%s8843_s1 + $0x44] sm:$0xf] }
 0x2f9   : > { %2917 = vrot.lane.b32.xlu1 %v7439_v23, %s8380_s6  ;;  %v7649_v7 = vcombine.high %v2294_v16, %v2296_v25 }
 0x2fa   : > { %2915 = vrot.lane.b32.xlu0 %v9858_v24, %s8380_s6  ;;  %v2693_v0 = vsel %vm636_vm2, %v2687_v30, %v2688_v26  ;;  %6136 = vmatprep.subr.bf16.mxu1 %v7627_v34  ;;  %v2682_v36 = vpop.permute.xlu1 %2681  ;;  %v7397_v26 = vld [vmem:[%s8843_s1 + $0x44] sm:$0xf] }
 0x2fb   : > { %v2694_v38 = vsel %vm687_vm4, %v2676_v27, %v2693_v0  ;;  %v2690_v39 = vrot.slane %v2682_v36, 4  ;;  %2708 = vst.msk [vmem:[#allocation2 + $0x2e4] sm:$0xf] %vm600_vm0, %v2682_v36  ;;  %v2680_v40 = vpop.permute.xlu0 %2679  ;;  %6137 = vmatpush1.bf16.msra.mxu1 %v7626_v31  ;;  %6095 = vmatprep.subr.bf16.mxu0 %v7649_v7  ;;  %v7399_v27 = vld [vmem:[%s8843_s1 + $0x50] sm:$0xf] }
 0x2fc   : > { %2705 = vst [vmem:[#allocation2 + $0x27c] sm:$0xff] %v2694_v38  ;;  %v2689_v44 = vrot.slane %v2680_v40, 4  ;;  %6096 = vmatpush1.bf16.msra.mxu0 %v7648_v35  ;;  %2610 = vst.msk [vmem:[#allocation2 + $0x44] sm:$0xf] %vm600_vm0, %v7397_v26  ;;  %v7447_v36 = vld [vmem:[%s8843_s1 + $0x50] sm:$0xf] }
 0x2fd   : > { %2521 = vrot.lane.b32.xlu1 %v7385_v37, %s8380_s6  ;;  %2612 = vst.msk [vmem:[#allocation2 + $0xa4] sm:$0xf] %vm600_vm0, %v7399_v27 }
 0x2fe   : > { %2519 = vrot.lane.b32.xlu0 %v9858_v24, %s8380_s6  ;;  %v2695_v43 = vsel %vm636_vm2, %v2689_v44, %v2690_v39  ;;  %v2286_v45 = vpop.permute.xlu1 %2285 }
 0x2ff   : > { %v2696_v48 = vsel %vm687_vm4, %v2680_v40, %v2695_v43  ;;  %v2292_v49 = vrot.slane %v2286_v45, 4  ;;  %2310 = vst.msk [vmem:[#allocation2 + $0x338] sm:$0xf] %vm600_vm0, %v2286_v45  ;;  %v2284_v10 = vpop.permute.xlu0 %2283 }
 0x300   : > { %2707 = vst [vmem:[#allocation2 + $0x2dc] sm:$0xff] %v2696_v48  ;;  %v2291_v51 = vrot.slane %v2284_v10, 4 }
 0x301   : > { %2525 = vrot.lane.b32.xlu1 %v7387_v46, %s8380_s6 }
 0x302   : > { %2523 = vrot.lane.b32.xlu0 %v9811_v41, %s8380_s6  ;;  %v2297_v8 = vsel %vm636_vm2, %v2291_v51, %v2292_v49  ;;  %v2326_v52 = vpop.permute.xlu1 %2325  ;;  %v7393_v51 = vld [vmem:[%s8843_s1 + $0x50] sm:$0xf] }
 0x303   : > { %v2298_v14 = vsel %vm687_vm4, %v2284_v10, %v2297_v8  ;;  %v2336_v55 = vrot.slane %v2326_v52, 4  ;;  %2354 = vst.msk [vmem:[#allocation2 + $0x398] sm:$0xf] %vm600_vm0, %v2326_v52  ;;  %v2324_v47 = vpop.permute.xlu0 %2323  ;;  %v3880_v61 = vld [vmem:[#allocation2 + $0x278] sm:$0xff] }
 0x304   : > { %v2335_v56 = vrot.slane %v2324_v47, 4 }
 0x305   : > { %2921 = vrot.lane.b32.xlu1 %v7441_v53, %s8380_s6 }
 0x306   : > { %2919 = vrot.lane.b32.xlu0 %v9811_v41, %s8380_s6  ;;  %v2341_v57 = vsel %vm636_vm2, %v2335_v56, %v2336_v55  ;;  %v2686_v58 = vpop.permute.xlu1 %2685  ;;  %v7449_v56 = vld [vmem:[%s8843_s1 + $0x5c] sm:$0xf] }
 0x307   : > { %v2342_v60 = vsel %vm736_vm5, %v2324_v47, %v2341_v57  ;;  %v2692_v13 = vrot.slane %v2686_v58, 4  ;;  %2710 = vst.msk [vmem:[#allocation2 + $0x344] sm:$0xf] %vm600_vm0, %v2686_v58  ;;  %v2684_v42 = vpop.permute.xlu0 %2683  ;;  %v3892_v62 = vld [vmem:[#allocation2 + $0x2d8] sm:$0xff] }
 0x308   : > { %v2691_v2 = vrot.slane %v2684_v42, 4  ;;  %v7650_v4 = vcombine.low %v3880_v61, %v3892_v62  ;;  %v7651_v5 = vcombine.high %v3880_v61, %v3892_v62  ;;  %v7672_v63 = vcombine.low %v2298_v14, %v2342_v60  ;;  %v7459_v61 = vld [vmem:[%s8843_s1 + $0x50] sm:$0xf] }
 0x309   : > { %2925 = vrot.lane.b32.xlu1 %v7443_v59, %s8380_s6  ;;  %v7673_v50 = vcombine.high %v2298_v14, %v2342_v60 }
 0x30a   : > { %2923 = vrot.lane.b32.xlu0 %v9851_v19, %s8380_s6  ;;  %v2697_v6 = vsel %vm636_vm2, %v2691_v2, %v2692_v13  ;;  %6138 = vmatprep.subr.bf16.mxu1 %v7651_v5  ;;  %v2726_v33 = vpop.permute.xlu1 %2725 }
 0x30b   : > { %v2698_v11 = vsel %vm687_vm4, %v2684_v42, %v2697_v6  ;;  %v2736_v12 = vrot.slane %v2726_v33, 4  ;;  %2754 = vst.msk [vmem:[#allocation2 + $0x3a4] sm:$0xf] %vm600_vm0, %v2726_v33  ;;  %v2724_v15 = vpop.permute.xlu0 %2723  ;;  %6139 = vmatpush1.bf16.msra.mxu1 %v7650_v4  ;;  %6097 = vmatprep.subr.bf16.mxu0 %v7673_v50  ;;  %v7461_v6 = vld [vmem:[%s8843_s1 + $0x5c] sm:$0xf] }
 0x30c   : > { %2709 = vst [vmem:[#allocation2 + $0x33c] sm:$0xff] %v2698_v11  ;;  %v2735_v16 = vrot.slane %v2724_v15, 4  ;;  %6098 = vmatpush1.bf16.msra.mxu0 %v7672_v63 }
 0x30d   : > { %2565 = vrot.lane.b32.xlu1 %v7389_v9, %s8381_s10 }
 0x30e   : > { %2563 = vrot.lane.b32.xlu0 %v9730_v54, %s8381_s10  ;;  %v2741_v1 = vsel %vm636_vm2, %v2735_v16, %v2736_v12  ;;  %v2330_v17 = vpop.permute.xlu1 %2329 }
 0x30f   : > { %v2742_v20 = vsel %vm736_vm5, %v2724_v15, %v2741_v1  ;;  %v2338_v21 = vrot.slane %v2330_v17, 4  ;;  %2356 = vst.msk [vmem:[#allocation2 + $0x3f8] sm:$0xf] %vm600_vm0, %v2330_v17  ;;  %v2328_v23 = vpop.permute.xlu0 %2327 }
 0x310   : > { %2753 = vst [vmem:[#allocation2 + $0x39c] sm:$0xff] %v2742_v20  ;;  %v2337_v25 = vrot.slane %v2328_v23, 4 }
 0x311   : > { %2569 = vrot.lane.b32.xlu1 %v7391_v18, %s8381_s10 }
 0x312   : > { %2567 = vrot.lane.b32.xlu0 %v9858_v24, %s8381_s10  ;;  %v2343_v54 = vsel %vm636_vm2, %v2337_v25, %v2338_v21  ;;  %v2334_v28 = vpop.permute.xlu1 %2333  ;;  %v7463_v25 = vld [vmem:[%s8843_s1 + $0x68] sm:$0xf] }
 0x313   : > { %v2344_v30 = vsel %vm736_vm5, %v2328_v23, %v2343_v54  ;;  %v2340_v31 = vrot.slane %v2334_v28, 4  ;;  %2358 = vst.msk [vmem:[#allocation2 + $0x458] sm:$0xf] %vm600_vm0, %v2334_v28  ;;  %v2332_v34 = vpop.permute.xlu0 %2331  ;;  %v3904_v40 = vld [vmem:[#allocation2 + $0x338] sm:$0xff] }
 0x314   : > { %v2339_v35 = vrot.slane %v2332_v34, 4 }
 0x315   : > { %2965 = vrot.lane.b32.xlu1 %v7445_v29, %s8381_s10  ;;  %v9962_v29 = vld [vmem:[#allocation2 + $0x108] sm:$0xff] }
 0x316   : > { %2963 = vrot.lane.b32.xlu0 %v9858_v24, %s8381_s10  ;;  %v2345_v7 = vsel %vm636_vm2, %v2339_v35, %v2340_v31  ;;  %v2730_v0 = vpop.permute.xlu1 %2729  ;;  %v7465_v35 = vld [vmem:[%s8843_s1 + $0x50] sm:$0xf] }
 0x317   : > { %v2346_v37 = vsel %vm736_vm5, %v2332_v34, %v2345_v7  ;;  %v2738_v38 = vrot.slane %v2730_v0, 4  ;;  %2756 = vst.msk [vmem:[#allocation2 + $0x404] sm:$0xf] %vm600_vm0, %v2730_v0  ;;  %v2728_v39 = vpop.permute.xlu0 %2727  ;;  %v3916_v44 = vld [vmem:[#allocation2 + $0x398] sm:$0xff] }
 0x318   : > { %v2737_v43 = vrot.slane %v2728_v39, 4  ;;  %v7674_v45 = vcombine.low %v3904_v40, %v3916_v44  ;;  %v7675_v46 = vcombine.high %v3904_v40, %v3916_v44  ;;  %v7696_v48 = vcombine.low %v2344_v30, %v2346_v37  ;;  %v7467_v40 = vld [vmem:[%s8843_s1 + $0x5c] sm:$0xf] }
 0x319   : > { %2969 = vrot.lane.b32.xlu1 %v7447_v36, %s8381_s10  ;;  %v7697_v24 = vcombine.high %v2344_v30, %v2346_v37  ;;  %v7534_v30 = vld [vmem:[%s8843_s1 + $0x60] sm:$0xff] }
 0x31a   : > { %2967 = vrot.lane.b32.xlu0 %v9811_v41, %s8381_s10  ;;  %v2743_v49 = vsel %vm636_vm2, %v2737_v43, %v2738_v38  ;;  %6140 = vmatprep.subr.bf16.mxu1 %v7675_v46  ;;  %v2734_v10 = vpop.permute.xlu1 %2733  ;;  %3411 = vst [vmem:[#allocation2 + $0xb4] sm:$0xff] %v7534_v30 }
 0x31b   : > { %v2744_v8 = vsel %vm736_vm5, %v2728_v39, %v2743_v49  ;;  %v2740_v52 = vrot.slane %v2734_v10, 4  ;;  %2758 = vst.msk [vmem:[#allocation2 + $0x464] sm:$0xf] %vm600_vm0, %v2734_v10  ;;  %v2732_v53 = vpop.permute.xlu0 %2731  ;;  %6141 = vmatpush1.bf16.msra.mxu1 %v7674_v45  ;;  %6099 = vmatprep.subr.bf16.mxu0 %v7697_v24  ;;  %v7469_v49 = vld [vmem:[%s8843_s1 + $0x68] sm:$0xf] }
 0x31c   : > { %2755 = vst [vmem:[#allocation2 + $0x3fc] sm:$0xff] %v2744_v8  ;;  %v2739_v14 = vrot.slane %v2732_v53, 4  ;;  %6100 = vmatpush1.bf16.msra.mxu0 %v7696_v48 }
 0x31d   : > { %2573 = vrot.lane.b32.xlu1 %v7393_v51, %s8381_s10 }
 0x31e   : > { %2571 = vrot.lane.b32.xlu0 %v9811_v41, %s8381_s10  ;;  %v2745_v55 = vsel %vm636_vm2, %v2739_v14, %v2740_v52  ;;  %v2374_v47 = vpop.permute.xlu1 %2373 }
 0x31f   : > { %v2746_v57 = vsel %vm736_vm5, %v2732_v53, %v2745_v55  ;;  %v2384_v58 = vrot.slane %v2374_v47, 4  ;;  %2402 = vst.msk [vmem:[#allocation2 + $0x4b8] sm:$0xf] %vm600_vm0, %v2374_v47  ;;  %v2372_v59 = vpop.permute.xlu0 %2371 }
 0x320   : > { %2757 = vst [vmem:[#allocation2 + $0x45c] sm:$0xff] %v2746_v57  ;;  %v2383_v60 = vrot.slane %v2372_v59, 4 }
 0x321   : > { %2973 = vrot.lane.b32.xlu1 %v7449_v56, %s8381_s10 }
 0x322   : > { %2971 = vrot.lane.b32.xlu0 %v9851_v19, %s8381_s10  ;;  %v2389_v13 = vsel %vm636_vm2, %v2383_v60, %v2384_v58  ;;  %v2378_v42 = vpop.permute.xlu1 %2377  ;;  %v7471_v60 = vld [vmem:[%s8843_s1 + $0x50] sm:$0xf] }
 0x323   : > { %v2390_v62 = vsel %vm785_vm6, %v2372_v59, %v2389_v13  ;;  %v2386_v2 = vrot.slane %v2378_v42, 4  ;;  %2404 = vst.msk [vmem:[#allocation2 + $0x518] sm:$0xf] %vm600_vm0, %v2378_v42  ;;  %v2376_v4 = vpop.permute.xlu0 %2375  ;;  %v3928_v12 = vld [vmem:[#allocation2 + $0x3f8] sm:$0xff] }
 0x324   : > { %v2385_v5 = vrot.slane %v2376_v4, 4 }
 0x325   : > { %3029 = vrot.lane.b32.xlu1 %v7459_v61, %s8374_s8 }
 0x326   : > { %3027 = vrot.lane.b32.xlu0 %v9811_v41, %s8374_s8  ;;  %v2391_v63 = vsel %vm636_vm2, %v2385_v5, %v2386_v2  ;;  %v2774_v50 = vpop.permute.xlu1 %2773  ;;  %v7473_v5 = vld [vmem:[%s8843_s1 + $0x5c] sm:$0xf] }
 0x327   : > { %v2392_v33 = vsel %vm785_vm6, %v2376_v4, %v2391_v63  ;;  %v2784_v9 = vrot.slane %v2774_v50, 4  ;;  %2802 = vst.msk [vmem:[#allocation2 + $0x4c4] sm:$0xf] %vm600_vm0, %v2774_v50  ;;  %v2772_v11 = vpop.permute.xlu0 %2771  ;;  %v3940_v15 = vld [vmem:[#allocation2 + $0x458] sm:$0xff] }
 0x328   : > { %v2783_v16 = vrot.slane %v2772_v11, 4  ;;  %v7698_v1 = vcombine.low %v3928_v12, %v3940_v15  ;;  %v7699_v17 = vcombine.high %v3928_v12, %v3940_v15  ;;  %v7720_v18 = vcombine.low %v2390_v62, %v2392_v33  ;;  %v7475_v12 = vld [vmem:[%s8843_s1 + $0x68] sm:$0xf] }
 0x329   : > { %3033 = vrot.lane.b32.xlu1 %v7461_v6, %s8374_s8  ;;  %v7721_v20 = vcombine.high %v2390_v62, %v2392_v33 }
 0x32a   : > { %3031 = vrot.lane.b32.xlu0 %v9851_v19, %s8374_s8  ;;  %v2789_v21 = vsel %vm636_vm2, %v2783_v16, %v2784_v9  ;;  %6142 = vmatprep.subr.bf16.mxu1 %v7699_v17  ;;  %v2778_v23 = vpop.permute.xlu1 %2777 }
 0x32b   : > { %v2790_v26 = vsel %vm785_vm6, %v2772_v11, %v2789_v21  ;;  %v2786_v27 = vrot.slane %v2778_v23, 4  ;;  %2804 = vst.msk [vmem:[#allocation2 + $0x524] sm:$0xf] %vm600_vm0, %v2778_v23  ;;  %v2776_v54 = vpop.permute.xlu0 %2775  ;;  %6143 = vmatpush1.bf16.msra.mxu1 %v7698_v1  ;;  %6101 = vmatprep.subr.bf16.mxu0 %v7721_v20  ;;  %v7477_v21 = vld [vmem:[%s8843_s1 + $0x50] sm:$0xf] }
 0x32c   : > { %2801 = vst [vmem:[#allocation2 + $0x4bc] sm:$0xff] %v2790_v26  ;;  %v2785_v28 = vrot.slane %v2776_v54, 4  ;;  %6102 = vmatpush1.bf16.msra.mxu0 %v7720_v18 }
 0x32d   : > { %3037 = vrot.lane.b32.xlu1 %v7463_v25, %s8374_s8 }
 0x32e   : > { %3035 = vrot.lane.b32.xlu0 %v9962_v29, %s8374_s8  ;;  %v2791_v31 = vsel %vm636_vm2, %v2785_v28, %v2786_v27  ;;  %v2382_v34 = vpop.permute.xlu1 %2381 }
 0x32f   : > { %v2792_v7 = vsel %vm785_vm6, %v2776_v54, %v2791_v31  ;;  %v2388_v0 = vrot.slane %v2382_v34, 4  ;;  %2406 = vst.msk [vmem:[#allocation2 + $0x578] sm:$0xf] %vm600_vm0, %v2382_v34  ;;  %v2380_v36 = vpop.permute.xlu0 %2379 }
 0x330   : > { %2803 = vst [vmem:[#allocation2 + $0x51c] sm:$0xff] %v2792_v7  ;;  %v2387_v37 = vrot.slane %v2380_v36, 4 }
 0x331   : > { %3077 = vrot.lane.b32.xlu1 %v7465_v35, %s8375_s12 }
 0x332   : > { %3075 = vrot.lane.b32.xlu0 %v9811_v41, %s8375_s12  ;;  %v2393_v38 = vsel %vm636_vm2, %v2387_v37, %v2388_v0  ;;  %v2422_v39 = vpop.permute.xlu1 %2421 }
 0x333   : > { %v2394_v44 = vsel %vm785_vm6, %v2380_v36, %v2393_v38  ;;  %v2432_v43 = vrot.slane %v2422_v39, 4  ;;  %2450 = vst.msk [vmem:[#allocation2 + $0x5d8] sm:$0xf] %vm600_vm0, %v2422_v39  ;;  %v2420_v45 = vpop.permute.xlu0 %2419  ;;  %v3952_v52 = vld [vmem:[#allocation2 + $0x4b8] sm:$0xff] }
 0x334   : > { %v2431_v46 = vrot.slane %v2420_v45, 4  ;;  %v7479_v36 = vld [vmem:[%s8843_s1 + $0x5c] sm:$0xf] }
 0x335   : > { %3081 = vrot.lane.b32.xlu1 %v7467_v40, %s8375_s12 }
 0x336   : > { %3079 = vrot.lane.b32.xlu0 %v9851_v19, %s8375_s12  ;;  %v2437_v48 = vsel %vm636_vm2, %v2431_v46, %v2432_v43  ;;  %v2782_v24 = vpop.permute.xlu1 %2781 }
 0x337   : > { %v2438_v10 = vsel %vm834_vm7, %v2420_v45, %v2437_v48  ;;  %v2788_v51 = vrot.slane %v2782_v24, 4  ;;  %2806 = vst.msk [vmem:[#allocation2 + $0x584] sm:$0xf] %vm600_vm0, %v2782_v24  ;;  %v2780_v8 = vpop.permute.xlu0 %2779  ;;  %v3964_v53 = vld [vmem:[#allocation2 + $0x518] sm:$0xff]  ;;  %v7481_v45 = vld [vmem:[%s8843_s1 + $0x68] sm:$0xf] }
 0x338   : > { %v2787_v14 = vrot.slane %v2780_v8, 4  ;;  %v7722_v55 = vcombine.low %v3952_v52, %v3964_v53  ;;  %v7723_v47 = vcombine.high %v3952_v52, %v3964_v53  ;;  %v7744_v56 = vcombine.low %v2394_v44, %v2438_v10 }
 0x339   : > { %3085 = vrot.lane.b32.xlu1 %v7469_v49, %s8375_s12  ;;  %v7745_v57 = vcombine.high %v2394_v44, %v2438_v10 }
 0x33a   : > { %3083 = vrot.lane.b32.xlu0 %v9962_v29, %s8375_s12  ;;  %v2793_v58 = vsel %vm636_vm2, %v2787_v14, %v2788_v51  ;;  %6144 = vmatprep.subr.bf16.mxu1 %v7723_v47  ;;  %v2822_v59 = vpop.permute.xlu1 %2821 }
 0x33b   : > { %v2794_v13 = vsel %vm785_vm6, %v2780_v8, %v2793_v58  ;;  %v2832_v42 = vrot.slane %v2822_v59, 4  ;;  %2850 = vst.msk [vmem:[#allocation2 + $0x5e4] sm:$0xf] %vm600_vm0, %v2822_v59  ;;  %v2820_v61 = vpop.permute.xlu0 %2819  ;;  %6145 = vmatpush1.bf16.msra.mxu1 %v7722_v55  ;;  %6103 = vmatprep.subr.bf16.mxu0 %v7745_v57  ;;  %v7483_v8 = vld [vmem:[%s8843_s1 + $0x50] sm:$0xf] }
 0x33c   : > { %2805 = vst [vmem:[#allocation2 + $0x57c] sm:$0xff] %v2794_v13  ;;  %v2831_v62 = vrot.slane %v2820_v61, 4  ;;  %6104 = vmatpush1.bf16.msra.mxu0 %v7744_v56  ;;  %v7485_v57 = vld [vmem:[%s8843_s1 + $0x5c] sm:$0xf] }
 0x33d   : > { %3125 = vrot.lane.b32.xlu1 %v7471_v60, %s8376_s13 }
 0x33e   : > { %3123 = vrot.lane.b32.xlu0 %v9811_v41, %s8376_s13  ;;  %v2837_v2 = vsel %vm636_vm2, %v2831_v62, %v2832_v42  ;;  %v2426_v4 = vpop.permute.xlu1 %2425 }
 0x33f   : > { %v2838_v63 = vsel %vm834_vm7, %v2820_v61, %v2837_v2  ;;  %v2434_v50 = vrot.slane %v2426_v4, 4  ;;  %2452 = vst.msk [vmem:[#allocation2 + $0x638] sm:$0xf] %vm600_vm0, %v2426_v4  ;;  %v2424_v6 = vpop.permute.xlu0 %2423 }
 0x340   : > { %2849 = vst [vmem:[#allocation2 + $0x5dc] sm:$0xff] %v2838_v63  ;;  %v2433_v33 = vrot.slane %v2424_v6, 4 }
 0x341   : > { %3129 = vrot.lane.b32.xlu1 %v7473_v5, %s8376_s13 }
 0x342   : > { %3127 = vrot.lane.b32.xlu0 %v9851_v19, %s8376_s13  ;;  %v2439_v9 = vsel %vm636_vm2, %v2433_v33, %v2434_v50  ;;  %v2430_v11 = vpop.permute.xlu1 %2429  ;;  %v7487_v50 = vld [vmem:[%s8843_s1 + $0x68] sm:$0xf] }
 0x343   : > { %v2440_v15 = vsel %vm834_vm7, %v2424_v6, %v2439_v9  ;;  %v2436_v16 = vrot.slane %v2430_v11, 4  ;;  %2454 = vst.msk [vmem:[#allocation2 + $0x698] sm:$0xf] %vm600_vm0, %v2430_v11  ;;  %v2428_v1 = vpop.permute.xlu0 %2427  ;;  %v3976_v27 = vld [vmem:[#allocation2 + $0x578] sm:$0xff] }
 0x344   : > { %v2435_v17 = vrot.slane %v2428_v1, 4 }
 0x345   : > { %3133 = vrot.lane.b32.xlu1 %v7475_v12, %s8376_s13 }
 0x346   : > { %3131 = vrot.lane.b32.xlu0 %v9962_v29, %s8376_s13  ;;  %v2441_v18 = vsel %vm636_vm2, %v2435_v17, %v2436_v16  ;;  %v2826_v20 = vpop.permute.xlu1 %2825  ;;  %v7489_v16 = vld [vmem:[%s8843_s1 + $0x50] sm:$0xf] }
 0x347   : > { %v2442_v23 = vsel %vm834_vm7, %v2428_v1, %v2441_v18  ;;  %v2834_v25 = vrot.slane %v2826_v20, 4  ;;  %2852 = vst.msk [vmem:[#allocation2 + $0x644] sm:$0xf] %vm600_vm0, %v2826_v20  ;;  %v2824_v26 = vpop.permute.xlu0 %2823  ;;  %v3988_v54 = vld [vmem:[#allocation2 + $0x5d8] sm:$0xff] }
 0x348   : > { %v2833_v28 = vrot.slane %v2824_v26, 4  ;;  %v7746_v30 = vcombine.low %v3976_v27, %v3988_v54  ;;  %v7747_v31 = vcombine.high %v3976_v27, %v3988_v54  ;;  %v7768_v34 = vcombine.low %v2440_v15, %v2442_v23 }
 0x349   : > { %3173 = vrot.lane.b32.xlu1 %v7477_v21, %s8377_s14  ;;  %v7769_v35 = vcombine.high %v2440_v15, %v2442_v23 }
 0x34a   : > { %3171 = vrot.lane.b32.xlu0 %v9811_v41, %s8377_s14  ;;  %v2839_v7 = vsel %vm636_vm2, %v2833_v28, %v2834_v25  ;;  %6146 = vmatprep.subr.bf16.mxu1 %v7747_v31  ;;  %v2830_v0 = vpop.permute.xlu1 %2829  ;;  %v7491_v25 = vld [vmem:[%s8843_s1 + $0x5c] sm:$0xf] }
 0x34b   : > { %v2840_v37 = vsel %vm834_vm7, %v2824_v26, %v2839_v7  ;;  %v2836_v38 = vrot.slane %v2830_v0, 4  ;;  %2854 = vst.msk [vmem:[#allocation2 + $0x6a4] sm:$0xf] %vm600_vm0, %v2830_v0  ;;  %v2828_v39 = vpop.permute.xlu0 %2827  ;;  %6147 = vmatpush1.bf16.msra.mxu1 %v7746_v30  ;;  %6105 = vmatprep.subr.bf16.mxu0 %v7769_v35 }
 0x34c   : > { %2851 = vst [vmem:[#allocation2 + $0x63c] sm:$0xff] %v2840_v37  ;;  %v2835_v40 = vrot.slane %v2828_v39, 4  ;;  %6106 = vmatpush1.bf16.msra.mxu0 %v7768_v34  ;;  %v7493_v34 = vld [vmem:[%s8843_s1 + $0x68] sm:$0xf] }
 0x34d   : > { %3177 = vrot.lane.b32.xlu1 %v7479_v36, %s8377_s14 }
 0x34e   : > { %3175 = vrot.lane.b32.xlu0 %v9851_v19, %s8377_s14  ;;  %v2841_v44 = vsel %vm636_vm2, %v2835_v40, %v2836_v38  ;;  %v2470_v43 = vpop.permute.xlu1 %2469 }
 0x34f   : > { %v2842_v46 = vsel %vm834_vm7, %v2828_v39, %v2841_v44  ;;  %v2480_v48 = vrot.slane %v2470_v43, 4  ;;  %2498 = vst.msk [vmem:[#allocation2 + $0x6f8] sm:$0xf] %vm600_vm0, %v2470_v43  ;;  %v2468_v24 = vpop.permute.xlu0 %2467 }
 0x350   : > { %2853 = vst [vmem:[#allocation2 + $0x69c] sm:$0xff] %v2842_v46  ;;  %v2479_v49 = vrot.slane %v2468_v24, 4 }
 0x351   : > { %3181 = vrot.lane.b32.xlu1 %v7481_v45, %s8377_s14 }
 0x352   : > { %3179 = vrot.lane.b32.xlu0 %v9962_v29, %s8377_s14  ;;  %v2485_v10 = vsel %vm636_vm2, %v2479_v49, %v2480_v48  ;;  %v2474_v51 = vpop.permute.xlu1 %2473  ;;  %v7495_v48 = vld [vmem:[%s8843_s1 + $0x50] sm:$0xf] }
 0x353   : > { %v2486_v52 = vsel %vm883_vm8, %v2468_v24, %v2485_v10  ;;  %v2482_v53 = vrot.slane %v2474_v51, 4  ;;  %2500 = vst.msk [vmem:[#allocation2 + $0x758] sm:$0xf] %vm600_vm0, %v2474_v51  ;;  %v2472_v14 = vpop.permute.xlu0 %2471  ;;  %v4000_v13 = vld [vmem:[#allocation2 + $0x638] sm:$0xff] }
 0x354   : > { %v2481_v55 = vrot.slane %v2472_v14, 4 }
 0x355   : > { %3221 = vrot.lane.b32.xlu1 %v7483_v8, %s8378_s23 }
 0x356   : > { %3219 = vrot.lane.b32.xlu0 %v9811_v41, %s8378_s23  ;;  %v2487_v47 = vsel %vm636_vm2, %v2481_v55, %v2482_v53  ;;  %v7497_v53 = vld [vmem:[%s8843_s1 + $0x5c] sm:$0xf] }
 0x357   : > { %v2870_v56 = vpop.permute.xlu1 %2869  ;;  %v2488_v58 = vsel %vm883_vm8, %v2472_v14, %v2487_v47  ;;  %v2868_v60 = vpop.permute.xlu0 %2867  ;;  %v4012_v42 = vld [vmem:[#allocation2 + $0x698] sm:$0xff] }
 0x358   : > { %v2880_v59 = vrot.slane %v2870_v56, 4  ;;  %2898 = vst.msk [vmem:[#allocation2 + $0x704] sm:$0xf] %vm600_vm0, %v2870_v56  ;;  %v2879_v61 = vrot.slane %v2868_v60, 4  ;;  %v7770_v62 = vcombine.low %v4000_v13, %v4012_v42  ;;  %v7771_v2 = vcombine.high %v4000_v13, %v4012_v42 }
 0x359   : > { %v7792_v4 = vcombine.low %v2486_v52, %v2488_v58  ;;  %3225 = vrot.lane.b32.xlu1 %v7485_v57, %s8378_s23  ;;  %v7793_v5 = vcombine.high %v2486_v52, %v2488_v58 }
 0x35a   : > { %3223 = vrot.lane.b32.xlu0 %v9851_v19, %s8378_s23  ;;  %v2885_v63 = vsel %vm636_vm2, %v2879_v61, %v2880_v59  ;;  %6148 = vmatprep.subr.bf16.mxu1 %v7771_v2  ;;  %v7499_v59 = vld [vmem:[%s8843_s1 + $0x68] sm:$0xf] }
 0x35b   : > { %v2886_v6 = vsel %vm883_vm8, %v2868_v60, %v2885_v63  ;;  %v2874_v33 = vpop.permute.xlu1 %2873  ;;  %6149 = vmatpush1.bf16.msra.mxu1 %v7770_v62  ;;  %6107 = vmatprep.subr.bf16.mxu0 %v7793_v5 }
 0x35c   : > { %v2872_v9 = vpop.permute.xlu0 %2871  ;;  %2897 = vst [vmem:[#allocation2 + $0x6fc] sm:$0xff] %v2886_v6  ;;  %v2882_v11 = vrot.slane %v2874_v33, 4  ;;  %2900 = vst.msk [vmem:[#allocation2 + $0x764] sm:$0xf] %vm600_vm0, %v2874_v33  ;;  %6108 = vmatpush1.bf16.msra.mxu0 %v7792_v4 }
 0x35d   : > { %v2881_v12 = vrot.slane %v2872_v9, 4  ;;  %3229 = vrot.lane.b32.xlu1 %v7487_v50, %s8378_s23 }
 0x35e   : > { %3227 = vrot.lane.b32.xlu0 %v9962_v29, %s8378_s23 }
 0x35f   : > { %v2887_v15 = vsel %vm636_vm2, %v2881_v12, %v2882_v11  ;;  %v2478_v17 = vpop.permute.xlu1 %2477 }
 0x360   : > { %v2888_v1 = vsel %vm883_vm8, %v2872_v9, %v2887_v15  ;;  %v2476_v18 = vpop.permute.xlu0 %2475  ;;  %v2484_v20 = vrot.slane %v2478_v17, 4  ;;  %2502 = vst.msk [vmem:[#allocation2 + $0x7b8] sm:$0xf] %vm600_vm0, %v2478_v17  ;;  %v7503_v15 = vld [vmem:[%s8843_s1 + $0x5c] sm:$0xf] }
 0x361   : > { %2899 = vst [vmem:[#allocation2 + $0x75c] sm:$0xff] %v2888_v1  ;;  %v2483_v21 = vrot.slane %v2476_v18, 4  ;;  %3269 = vrot.lane.b32.xlu1 %v7489_v16, %s8379_s3  ;;  %v7453_v17 = vld [vmem:[%s8843_s1 + $0x50] sm:$0xf] }
 0x362   : > { %3267 = vrot.lane.b32.xlu0 %v9811_v41, %s8379_s3  ;;  %v8382_v41 = vmov 0   ;;  %3010 = vst.msk [vmem:[#allocation2 + $0x50] sm:$0xf] %vm600_vm0, %v7453_v17 }
 0x363   : > { %v2489_v23 = vsel %vm636_vm2, %v2483_v21, %v2484_v20  ;;  %v2518_v27 = vpop.permute.xlu1 %2517  ;;  %8071 = vset.pattern.permute.xlu0 %v8382_v41  ;;  %v4024_v36 = vld [vmem:[#allocation2 + $0x6f8] sm:$0xff]  ;;  %v7505_v41 = vld [vmem:[%s8843_s1 + $0x68] sm:$0xf] }
 0x364   : > { %v2490_v26 = vsel %vm883_vm8, %v2476_v18, %v2489_v23  ;;  %v2516_v54 = vpop.permute.xlu0 %2515  ;;  %v2528_v28 = vrot.slane %v2518_v27, 4  ;;  %2546 = vst.msk [vmem:[#allocation2 + $0x818] sm:$0xf] %vm600_vm0, %v2518_v27  ;;  %v7455_v18 = vld [vmem:[%s8843_s1 + $0x5c] sm:$0xf]  ;;  %v7508_v21 = vld [vmem:[%s8843_s1 + $0x54] sm:$0xff] }
 0x365   : > { %v2527_v30 = vrot.slane %v2516_v54, 4  ;;  %3273 = vrot.lane.b32.xlu1 %v7491_v25, %s8379_s3  ;;  %3012 = vst.msk [vmem:[#allocation2 + $0xb0] sm:$0xf] %vm600_vm0, %v7455_v18  ;;  %v7509_v23 = vld [vmem:[%s8843_s1 + $0x5c] sm:$0xf]  ;;  %3409 = vst [vmem:[#allocation2 + $0x54] sm:$0xff] %v7508_v21 }
 0x366   : > { %3271 = vrot.lane.b32.xlu0 %v9851_v19, %s8379_s3  ;;  %v7511_v25 = vld [vmem:[%s8843_s1 + $0x68] sm:$0xf]  ;;  %3410 = vst.msk [vmem:[#allocation2 + $0x5c] sm:$0xf] %vm600_vm0, %v7509_v23  ;;  %v10177_v21 = vld [vmem:[#allocation2 + $0x220] sm:$0xff] }
 0x367   : > { %v2533_v31 = vsel %vm636_vm2, %v2527_v30, %v2528_v28  ;;  %v2878_v7 = vpop.permute.xlu1 %2877  ;;  %3412 = vst.msk [vmem:[#allocation2 + $0xbc] sm:$0xf] %vm600_vm0, %v7511_v25  ;;  %v7457_v30 = vld [vmem:[%s8843_s1 + $0x68] sm:$0xf] }
 0x368   : > { %v2534_v35 = vsel %vm932_vm9, %v2516_v54, %v2533_v31  ;;  %v2876_v0 = vpop.permute.xlu0 %2875  ;;  %v4036_v37 = vld [vmem:[#allocation2 + $0x758] sm:$0xff]  ;;  %v2884_v38 = vrot.slane %v2878_v7, 4  ;;  %2902 = vst.msk [vmem:[#allocation2 + $0x7c4] sm:$0xf] %vm600_vm0, %v2878_v7  ;;  %v7512_v31 = vld [vmem:[%s8843_s1 + $0x6c] sm:$0xff] }
 0x369   : > { %v2883_v39 = vrot.slane %v2876_v0, 4  ;;  %v7794_v40 = vcombine.low %v4024_v36, %v4036_v37  ;;  %v7795_v44 = vcombine.high %v4024_v36, %v4036_v37  ;;  %3277 = vrot.lane.b32.xlu1 %v7493_v34, %s8379_s3  ;;  %v7816_v43 = vcombine.low %v2490_v26, %v2534_v35  ;;  %3014 = vst.msk [vmem:[#allocation2 + $0x110] sm:$0xf] %vm600_vm0, %v7457_v30 }
 0x36a   : > { %3275 = vrot.lane.b32.xlu0 %v9962_v29, %s8379_s3  ;;  %v7817_v45 = vcombine.high %v2490_v26, %v2534_v35  ;;  %3413 = vst [vmem:[#allocation2 + $0x114] sm:$0xff] %v7512_v31  ;;  %v7513_v35 = vld [vmem:[%s8843_s1 + $0x74] sm:$0xf] }
 0x36b   : > { %v2889_v46 = vsel %vm636_vm2, %v2883_v39, %v2884_v38  ;;  %6150 = vmatprep.subr.bf16.mxu1 %v7795_v44  ;;  %v2918_v49 = vpop.permute.xlu1 %2917  ;;  %3414 = vst.msk [vmem:[#allocation2 + $0x11c] sm:$0xf] %vm600_vm0, %v7513_v35 }
 0x36c   : > { %v2890_v24 = vsel %vm883_vm8, %v2876_v0, %v2889_v46  ;;  %v2916_v10 = vpop.permute.xlu0 %2915  ;;  %6151 = vmatpush1.bf16.msra.mxu1 %v7794_v40  ;;  %6109 = vmatprep.subr.bf16.mxu0 %v7817_v45  ;;  %v2928_v51 = vrot.slane %v2918_v49, 4  ;;  %2946 = vst.msk [vmem:[#allocation2 + $0x824] sm:$0xf] %vm600_vm0, %v2918_v49  ;;  %v7515_v40 = vld [vmem:[%s8843_s1 + $0x5c] sm:$0xf] }
 0x36d   : > { %2901 = vst [vmem:[#allocation2 + $0x7bc] sm:$0xff] %v2890_v24  ;;  %v2927_v8 = vrot.slane %v2916_v10, 4  ;;  %6110 = vmatpush1.bf16.msra.mxu0 %v7816_v43  ;;  %3317 = vrot.lane.b32.xlu1 %v7495_v48, %s8380_s6  ;;  %v7517_v49 = vld [vmem:[%s8843_s1 + $0x68] sm:$0xf] }
 0x36e   : > { %3315 = vrot.lane.b32.xlu0 %v9836_v3, %s8380_s6 }
 0x36f   : > { %v2933_v52 = vsel %vm636_vm2, %v2927_v8, %v2928_v51  ;;  %v2522_v55 = vpop.permute.xlu1 %2521 }
 0x370   : > { %v2934_v14 = vsel %vm932_vm9, %v2916_v10, %v2933_v52  ;;  %v2520_v47 = vpop.permute.xlu0 %2519  ;;  %v2530_v56 = vrot.slane %v2522_v55, 4  ;;  %2548 = vst.msk [vmem:[#allocation2 + $0x878] sm:$0xf] %vm600_vm0, %v2522_v55 }
 0x371   : > { %2945 = vst [vmem:[#allocation2 + $0x81c] sm:$0xff] %v2934_v14  ;;  %v2529_v57 = vrot.slane %v2520_v47, 4  ;;  %3321 = vrot.lane.b32.xlu1 %v7497_v53, %s8380_s6 }
 0x372   : > { %3319 = vrot.lane.b32.xlu0 %v9851_v19, %s8380_s6  ;;  %v7501_v19 = vld [vmem:[%s8843_s1 + $0x50] sm:$0xf] }
 0x373   : > { %v2535_v58 = vsel %vm636_vm2, %v2529_v57, %v2530_v56  ;;  %v2526_v13 = vpop.permute.xlu1 %2525 }
 0x374   : > { %v2536_v60 = vsel %vm932_vm9, %v2520_v47, %v2535_v58  ;;  %v2524_v42 = vpop.permute.xlu0 %2523  ;;  %v2532_v61 = vrot.slane %v2526_v13, 4  ;;  %2550 = vst.msk [vmem:[#allocation2 + $0x8d8] sm:$0xf] %vm600_vm0, %v2526_v13  ;;  %v4048_v50 = vld [vmem:[#allocation2 + $0x7b8] sm:$0xff] }
 0x375   : > { %v2531_v62 = vrot.slane %v2524_v42, 4  ;;  %3325 = vrot.lane.b32.xlu1 %v7499_v59, %s8380_s6  ;;  %v7519_v59 = vld [vmem:[%s8843_s1 + $0x74] sm:$0xf] }
 0x376   : > { %3323 = vrot.lane.b32.xlu0 %v9962_v29, %s8380_s6 }
 0x377   : > { %v2537_v2 = vsel %vm636_vm2, %v2531_v62, %v2532_v61  ;;  %v2922_v5 = vpop.permute.xlu1 %2921 }
 0x378   : > { %v2538_v4 = vsel %vm932_vm9, %v2524_v42, %v2537_v2  ;;  %v2920_v63 = vpop.permute.xlu0 %2919  ;;  %v4060_v6 = vld [vmem:[#allocation2 + $0x818] sm:$0xff]  ;;  %v2930_v33 = vrot.slane %v2922_v5, 4  ;;  %2948 = vst.msk [vmem:[#allocation2 + $0x884] sm:$0xf] %vm600_vm0, %v2922_v5  ;;  %v10154_v5 = vpop.f32.mrb[0].mxu0 }
 0x379   : > { %v2929_v9 = vrot.slane %v2920_v63, 4  ;;  %v7818_v11 = vcombine.low %v4048_v50, %v4060_v6  ;;  %v7819_v12 = vcombine.high %v4048_v50, %v4060_v6  ;;  %3365 = vrot.lane.b32.xlu1 %v7501_v19, %s8381_s10  ;;  %v7840_v16 = vcombine.low %v2536_v60, %v2538_v4  ;;  %v10168_v17 = vpop.f32.mrb[1].mxu0 }
 0x37a   : > { %3363 = vrot.lane.b32.xlu0 %v9836_v3, %s8381_s10  ;;  %v7841_v1 = vcombine.high %v2536_v60, %v2538_v4  ;;  %v10145_v60 = vld [vmem:[%s8843_s1 + $0x6c] sm:$0xff]  ;;  %v7521_v4 = vld [vmem:[%s8843_s1 + $0x5c] sm:$0xf]  ;;  %v5869_v23 = vpop.f32.mrb[2].mxu0 }
 0x37b   : > { %v2935_v20 = vsel %vm636_vm2, %v2929_v9, %v2930_v33  ;;  %6152 = vmatprep.subr.bf16.mxu1 %v7819_v12  ;;  %v2926_v27 = vpop.permute.xlu1 %2925  ;;  %v10159_v9 = vld [vmem:[#allocation2 + $0x100] sm:$0xff] }
 0x37c   : > { %v2936_v26 = vsel %vm932_vm9, %v2920_v63, %v2935_v20  ;;  %v2924_v3 = vpop.permute.xlu0 %2923  ;;  %6153 = vmatpush1.bf16.msra.mxu1 %v7818_v11  ;;  %6111 = vmatprep.subr.bf16.mxu0 %v7841_v1  ;;  %v2932_v54 = vrot.slane %v2926_v27, 4  ;;  %2950 = vst.msk [vmem:[#allocation2 + $0x8e4] sm:$0xf] %vm600_vm0, %v2926_v27  ;;  %v10156_v63 = vpop.f32.mrb[0].mxu1  ;;  %v10161_v11 = vld [vmem:[#allocation2 + $0x160] sm:$0xff]  ;;  %v10173_v20 = vld [vmem:[#allocation2 + $0xa8] sm:$0xff] }
 0x37d   : > { %2947 = vst [vmem:[#allocation2 + $0x87c] sm:$0xff] %v2936_v26  ;;  %v2931_v28 = vrot.slane %v2924_v3, 4  ;;  %6112 = vmatpush1.bf16.msra.mxu0 %v7840_v16  ;;  %3369 = vrot.lane.b32.xlu1 %v7503_v15, %s8381_s10  ;;  %v10164_v16 = vld [vmem:[#allocation2 + $0x40] sm:$0xff]  ;;  %v10170_v18 = vpop.f32.mrb[1].mxu1  ;;  %v7523_v27 = vld [vmem:[%s8843_s1 + $0x68] sm:$0xf]  ;;  %v7604_v35 = vcombine.low %v10159_v9, %v10161_v11 }
 0x37e   : > { %3367 = vrot.lane.b32.xlu0 %v9873_v32, %s8381_s10  ;;  %v10166_v1 = vld [vmem:[#allocation2 + $0xa0] sm:$0xff]  ;;  %v10179_v25 = vpop.f32.mrb[2].mxu1 }
 0x37f   : > { %v2937_v34 = vsel %vm636_vm2, %v2931_v28, %v2932_v54  ;;  %v2566_v0 = vpop.permute.xlu1 %2565  ;;  %v5871_v54 = vpop.f32.mrb[3].mxu0 }
 0x380   : > { %v2938_v7 = vsel %vm932_vm9, %v2924_v3, %v2937_v34  ;;  %v2564_v36 = vpop.permute.xlu0 %2563  ;;  %v2576_v37 = vrot.slane %v2566_v0, 4  ;;  %2594 = vst.msk [vmem:[#allocation2 + $0x938] sm:$0xf] %vm600_vm0, %v2566_v0  ;;  %v6347_v3 = vadd.f32 1e-08, %v5869_v23  ;;  %v10183_v28 = vpop.f32.mrb[3].mxu1 }
 0x381   : > { %2949 = vst [vmem:[#allocation2 + $0x8dc] sm:$0xff] %v2938_v7  ;;  %v2575_v38 = vrot.slane %v2564_v36, 4  ;;  %3373 = vrot.lane.b32.xlu1 %v7505_v41, %s8381_s10  ;;  %v7581_v41 = vcombine.high %v10164_v16, %v10166_v1  ;;  %v6349_v7 = vadd.f32 1e-08, %v10179_v25 }
 0x382   : > { %3371 = vrot.lane.b32.xlu0 %v9962_v29, %s8381_s10  ;;  %8084 = vrcp.f32 %v6347_v3  ;;  %v10238_v3 = vld [vmem:[#allocation6 + $0x4] ss:$8 sps:$4 sm:$0x1f]  }
 0x383   : > { %v2581_v39 = vsel %vm636_vm2, %v2575_v38, %v2576_v37  ;;  %v2570_v43 = vpop.permute.xlu1 %2569  ;;  %8086 = vrcp.f32 %v6349_v7  ;;  %v7529_v7 = vld [vmem:[%s8843_s1 + $0x68] sm:$0xf] }
 0x384   : > { %v2582_v44 = vsel %vm981_vm10, %v2564_v36, %v2581_v39  ;;  %v2568_v45 = vpop.permute.xlu0 %2567  ;;  %v2578_v46 = vrot.slane %v2570_v43, 4  ;;  %2596 = vst.msk [vmem:[#allocation2 + $0x998] sm:$0xf] %vm600_vm0, %v2570_v43  ;;  %v4072_v52 = vld [vmem:[#allocation2 + $0x878] sm:$0xff]  ;;  %v10192_v39 = vld [vmem:[#allocation2 + $0x1c0] sm:$0xff]  ;;  %v6419_v43 = vmax.f32 %v5869_v23, 0.0 }
 0x385   : > { %v2577_v48 = vrot.slane %v2568_v45, 4  ;;  %3429 = vrot.lane.b32.xlu1 %v7515_v40, %s8374_s8  ;;  %v7605_v40 = vcombine.high %v10159_v9, %v10161_v11  ;;  %v10279_v11 = vld [vmem:[#allocation2 + $0x460] sm:$0xff] }
 0x386   : > { %3427 = vrot.lane.b32.xlu0 %v9873_v32, %s8374_s8 }
 0x387   : > { %v2583_v24 = vsel %vm636_vm2, %v2577_v48, %v2578_v46  ;;  %v2966_v51 = vpop.permute.xlu1 %2965  ;;  %v7525_v46 = vld [vmem:[%s8843_s1 + $0x74] sm:$0xf] }
 0x388   : > { %v2584_v10 = vsel %vm981_vm10, %v2568_v45, %v2583_v24  ;;  %v2964_v8 = vpop.permute.xlu0 %2963  ;;  %v4084_v53 = vld [vmem:[#allocation2 + $0x8d8] sm:$0xff]  ;;  %v2976_v14 = vrot.slane %v2966_v51, 4  ;;  %2994 = vst.msk [vmem:[#allocation2 + $0x944] sm:$0xf] %vm600_vm0, %v2966_v51  ;;  %v6348_v24 = vadd.f32 1e-08, %v5871_v54 }
 0x389   : > { %v2975_v55 = vrot.slane %v2964_v8, 4  ;;  %v7842_v47 = vcombine.low %v4072_v52, %v4084_v53  ;;  %v7843_v56 = vcombine.high %v4072_v52, %v4084_v53  ;;  %3433 = vrot.lane.b32.xlu1 %v7517_v49, %s8374_s8  ;;  %v7864_v32 = vcombine.low %v2582_v44, %v2584_v10 }
 0x38a   : > { %3431 = vrot.lane.b32.xlu0 %v9962_v29, %s8374_s8  ;;  %v7865_v57 = vcombine.high %v2582_v44, %v2584_v10  ;;  %v7628_v44 = vcombine.low %v10192_v39, %v10177_v21  ;;  %v7580_v53 = vcombine.low %v10164_v16, %v10166_v1  ;;  %8088 = vrcp.f32 %v6348_v24 }
 0x38b   : > { %v2981_v58 = vsel %vm636_vm2, %v2975_v55, %v2976_v14  ;;  %6154 = vmatprep.subr.bf16.mxu1 %v7843_v56  ;;  %v2970_v42 = vpop.permute.xlu1 %2969  ;;  %v6491_v14 = vlaneseq  ;;  %v6420_v55 = vmax.f32 %v5871_v54, 0.0  ;;  %v8383_v1 = vmov 1966171168  }
 0x38c   : > { %v2982_v13 = vsel %vm981_vm10, %v2964_v8, %v2981_v58  ;;  %v2968_v61 = vpop.permute.xlu0 %2967  ;;  %6155 = vmatpush1.bf16.msra.mxu1 %v7842_v47  ;;  %6113 = vmatprep.subr.bf16.mxu0 %v7865_v57  ;;  %v2978_v62 = vrot.slane %v2970_v42, 4  ;;  %2996 = vst.msk [vmem:[#allocation2 + $0x9a4] sm:$0xf] %vm600_vm0, %v2970_v42  ;;  %v7527_v58 = vld [vmem:[%s8843_s1 + $0x5c] sm:$0xf]  ;;  %v6421_v42 = vmax.f32 %v10179_v25, 0.0  ;;  %v6814_v23 = vunpack.c.l.s4 %v8383_v1 }
 0x38d   : > { %2993 = vst [vmem:[#allocation2 + $0x93c] sm:$0xff] %v2982_v13  ;;  %v2977_v2 = vrot.slane %v2968_v61, 4  ;;  %6114 = vmatpush1.bf16.msra.mxu0 %v7864_v32  ;;  %3437 = vrot.lane.b32.xlu1 %v7519_v59, %s8374_s8  ;;  %v10213_v59 = vld [vmem:[#allocation2 + $0x2e0] sm:$0xff]  ;;  %v10215_v13 = vmin.f32 %v6419_v43, 1.0  ;;  %v6492_v54 = vshrl.u32 %v6491_v14, 7 }
 0x38e   : > { %3435 = vrot.lane.b32.xlu0 %v10145_v60, %s8374_s8  ;;  %s7000_s8 = sshll.u32 %s8616_s27, 4  ;;  %s10827_s8 = int_to_ptr.vmem [resolvable:$true] %s7000_s8 }
 0x38f   : > { %v2983_v19 = vsel %vm636_vm2, %v2977_v2, %v2978_v62  ;;  %v2574_v6 = vpop.permute.xlu1 %2573  ;;  %v6350_v2 = vadd.f32 1e-08, %v10183_v28 }
 0x390   : > { %v2984_v50 = vsel %vm981_vm10, %v2968_v61, %v2983_v19  ;;  %v2572_v33 = vpop.permute.xlu0 %2571  ;;  %v2580_v12 = vrot.slane %v2574_v6, 4  ;;  %2598 = vst.msk [vmem:[#allocation2 + $0x9f8] sm:$0xf] %vm600_vm0, %v2574_v6  ;;  %v10218_v61 = vmin.f32 %v6420_v55, 1.0  ;;  %v6422_v19 = vmax.f32 %v10183_v28, 0.0  ;;  %v10245_v28 = vld [vmem:[#allocation2 + $0x340] sm:$0xff] }
 0x391   : > { %2995 = vst [vmem:[#allocation2 + $0x99c] sm:$0xff] %v2984_v50  ;;  %v2579_v15 = vrot.slane %v2572_v33, 4  ;;  %3477 = vrot.lane.b32.xlu1 %v7521_v4, %s8375_s12  ;;  %8090 = vrcp.f32 %v6350_v2  ;;  %v10281_v55 = vsub.s32 0, %v6492_v54 }
 0x392   : > { %3475 = vrot.lane.b32.xlu0 %v10173_v20, %s8375_s12  ;;  %v6809_v16 = vcombine.low %v10215_v13, %v10218_v61 }
 0x393   : > { %v2585_v26 = vsel %vm636_vm2, %v2579_v15, %v2580_v12  ;;  %v2974_v31 = vpop.permute.xlu1 %2973  ;;  %v10229_v12 = vld [vmem:[#allocation2 + $0x280] sm:$0xff] }
 0x394   : > { %v2586_v30 = vsel %vm981_vm10, %v2572_v33, %v2585_v26  ;;  %v2972_v34 = vpop.permute.xlu0 %2971  ;;  %v2980_v0 = vrot.slane %v2974_v31, 4  ;;  %2998 = vst.msk [vmem:[#allocation2 + $0xa04] sm:$0xf] %vm600_vm0, %v2974_v31  ;;  %v4096_v8 = vld [vmem:[#allocation2 + $0x938] sm:$0xff]  ;;  %v7629_v33 = vcombine.high %v10192_v39, %v10177_v21  ;;  %v10231_v15 = vld [vmem:[#allocation2 + $0x3a0] sm:$0xff]  ;;  %v6815_v31 = vunpack.c.0.s8 %v6814_v23 }
 0x395   : > { %v2979_v36 = vrot.slane %v2972_v34, 4  ;;  %v7889_v37 = vcombine.high %v2586_v30, %v2586_v30  ;;  %v7888_v38 = vcombine.low %v2586_v30, %v2586_v30  ;;  %3481 = vrot.lane.b32.xlu1 %v7523_v27, %s8375_s12  ;;  %v7652_v27 = vcombine.low %v10229_v12, %v10213_v59 }
 0x396   : > { %3479 = vrot.lane.b32.xlu0 %v9962_v29, %s8375_s12  ;;  %v10247_v30 = vmin.f32 %v6421_v42, 1.0  ;;  %v7531_v42 = vld [vmem:[%s8843_s1 + $0x74] sm:$0xf] }
 0x397   : > { %v2985_v45 = vsel %vm636_vm2, %v2979_v36, %v2980_v0  ;;  %7912 = vmatprep.subr.msk.bf16.mxu0 %vm636_vm2, %v7889_v37  ;;  %v5796_v48 = vsel %vm636_vm2, %v7888_v38, 0  ;;  %v3030_v10 = vpop.permute.xlu1 %3029  ;;  %v7653_v0 = vcombine.high %v10229_v12, %v10213_v59  ;;  %v7676_v36 = vcombine.low %v10245_v28, %v10231_v15  ;;  %v8085_v38 = vpop.eup %8084 }
 0x398   : > { %v2986_v49 = vsel %vm981_vm10, %v2972_v34, %v2985_v45  ;;  %v3028_v51 = vpop.permute.xlu0 %3027  ;;  %v4108_v52 = vld [vmem:[#allocation2 + $0x998] sm:$0xff]  ;;  %6116 = vmatpush1.bf16.msra.mxu0 %v5796_v48  ;;  %v3040_v47 = vrot.slane %v3030_v10, 4  ;;  %3058 = vst.msk [vmem:[#allocation2 + $0x170] sm:$0xf] %vm600_vm0, %v3030_v10  ;;  %v10249_v34 = vmin.f32 %v6422_v19, 1.0  ;;  %v7677_v37 = vcombine.high %v10245_v28, %v10231_v15  ;;  %v10262_v48 = vld [vmem:[#allocation2 + $0x48] sm:$0xff] }
 0x399   : > { %2997 = vst [vmem:[#allocation2 + $0x9fc] sm:$0xff] %v2986_v49  ;;  %v3039_v56 = vrot.slane %v3028_v51, 4  ;;  %v7866_v32 = vcombine.low %v4096_v8, %v4108_v52  ;;  %v7867_v57 = vcombine.high %v4096_v8, %v4108_v52  ;;  %6175 = vmatprep.subr.bf16.mxu0 %v7581_v41  ;;  %3485 = vrot.lane.b32.xlu1 %v7525_v46, %s8375_s12  ;;  %v10382_v15 = vld [vmem:[#allocation2 + $0xb4] sm:$0xff] }
 0x39a   : > { %3483 = vrot.lane.b32.xlu0 %v10145_v60, %s8375_s12  ;;  %v7583_v24 = vcombine.high %v10262_v48, %v10173_v20  ;;  %v10269_v49 = vsub.s32 %v6815_v31, %v6492_v54  ;;  %v6810_v10 = vcombine.low %v10247_v30, %v10249_v34  ;;  %v7582_v9 = vcombine.low %v10262_v48, %v10173_v20  ;;  %v8146_v48 = vld [vmem:[#allocation2 + $0x108] sm:$0xff] }
 0x39b   : > { %v3045_v62 = vsel %vm636_vm2, %v3039_v56, %v3040_v47  ;;  %6156 = vmatprep.subr.bf16.mxu1 %v7867_v57  ;;  %6122 = vmatmul.mubr.bf16.vlgmr.msra.gmra.mrb[12].mxu0 %v9188_v22  ;;  %v3034_v50 = vpop.permute.xlu1 %3033  ;;  %v10283_v56 = vpop.f32.mrb[4].mxu0 }
 0x39c   : > { %v10225_v4 = vsel %vm638_vm3, %v3028_v51, %v3045_v62  ;;  %v3032_v6 = vpop.permute.xlu0 %3031  ;;  %6157 = vmatpush1.bf16.msra.mxu1 %v7866_v32  ;;  %6176 = vmatpush1.bf16.msra.mxu0 %v7580_v53  ;;  %v3042_v25 = vrot.slane %v3034_v50, 4  ;;  %3060 = vst.msk [vmem:[#allocation2 + $0x1d0] sm:$0xf] %vm600_vm0, %v3034_v50  ;;  %v8087_v51 = vpop.eup %8086  ;;  %v10292_v62 = vrot.slane %v6809_v16, %v10269_v49  ;;  %v10307_v16 = vld [vmem:[#allocation2 + $0x400] sm:$0xff] }
 0x39d   : > { %v3041_v26 = vrot.slane %v3032_v6, 4  ;;  %6177 = vmatprep.subr.bf16.mxu0 %v7605_v40  ;;  %7917 = vmatprep.mubr.msk.bf16.mxu0 %vm5754_vm1, %v10238_v3  ;;  %v6376_v47 = vmul.f32 108.0, %v8087_v51  ;;  %v10285_v32 = vpop.f32.mrb[4].mxu1  ;;  %v10295_v2 = vrot.slane %v6810_v10, %v10269_v49  ;;  %v10297_v19 = vpop.f32.mrb[5].mxu0  ;;  %v7701_v21 = vcombine.high %v10307_v16, %v10279_v11  ;;  %v7533_v10 = vld [vmem:[%s8843_s1 + $0x5c] sm:$0xf] }
 0x39e   : > { %3525 = vrot.lane.b32.xlu1 %v7527_v58, %s8376_s13  ;;  %3523 = vrot.lane.b32.xlu0 %v10173_v20, %s8376_s13  ;;  %v10299_v50 = vpop.f32.mrb[5].mxu1  ;;  %v5955_v39 = vpop.f32.mrb[6].mxu0 }
 0x39f   : > { %v3047_v41 = vsel %vm636_vm2, %v3041_v26, %v3042_v25  ;;  %v3038_v43 = vpop.permute.xlu1 %3037  ;;  %v6469_v26 = vmul.f32 %v10247_v30, %v6376_v47  ;;  %v6351_v51 = vadd.f32 1e-08, %v5955_v39 }
 0x3a0   : > { %v10260_v40 = vsel %vm638_vm3, %v3032_v6, %v3047_v41  ;;  %v3036_v45 = vpop.permute.xlu0 %3035  ;;  %v4120_v46 = vld [vmem:[#allocation2 + $0x9f8] sm:$0xff]  ;;  %6178 = vmatpush1.bf16.msra.mxu0 %v7604_v35  ;;  %v3044_v8 = vrot.slane %v3038_v43, 4  ;;  %3062 = vst.msk [vmem:[#allocation2 + $0x230] sm:$0xf] %vm600_vm0, %v3038_v43  ;;  %v6372_v35 = vmul.f32 108.0, %v8085_v38  ;;  %v8089_v6 = vpop.eup %8088  ;;  %v7606_v41 = vcombine.low %v9962_v29, %v10225_v4 }
 0x3a1   : > { %v3043_v52 = vrot.slane %v3036_v45, 4  ;;  %v7891_v53 = vcombine.high %v4120_v46, %v4120_v46  ;;  %v7890_v14 = vcombine.low %v4120_v46, %v4120_v46  ;;  %6179 = vmatprep.subr.bf16.mxu0 %v7629_v33  ;;  %v6502_v38 = vrot.slane %v6469_v26, %v10281_v55 }
 0x3a2   : > { %3529 = vrot.lane.b32.xlu1 %v7529_v7, %s8376_s13  ;;  %3527 = vrot.lane.b32.xlu0 %v9962_v29, %s8376_s13  ;;  %v6467_v25 = vmul.f32 %v10215_v13, %v6372_v35  ;;  %v6374_v43 = vmul.f32 108.0, %v8089_v6  ;;  %v6841_v29 = vcombine.low %v10292_v62, %v10295_v2  ;;  %8092 = vrcp.f32 %v6351_v51  ;;  %v7535_v6 = vld [vmem:[%s8843_s1 + $0x68] sm:$0xf]  ;;  %v3989_v51 = vld [vmem:[#allocation2 + $0x5e0] sm:$0xff] }
 0x3a3   : > { %v3049_v57 = vsel %vm636_vm2, %v3043_v52, %v3044_v8  ;;  %7914 = vmatprep.subr.msk.bf16.mxu1 %vm636_vm2, %v7891_v53  ;;  %v5802_v58 = vsel %vm636_vm2, %v7890_v14, 0  ;;  %v3078_v1 = vpop.permute.xlu1 %3077  ;;  %v8091_v52 = vpop.eup %8090 }
 0x3a4   : > { %v10302_v33 = vsel %vm638_vm3, %v3036_v45, %v3049_v57  ;;  %v3076_v23 = vpop.permute.xlu0 %3075  ;;  %6159 = vmatpush1.bf16.msra.mxu1 %v5802_v58  ;;  %6180 = vmatpush1.bf16.msra.mxu0 %v7628_v44  ;;  %v3088_v54 = vrot.slane %v3078_v1, 4  ;;  %3106 = vst.msk [vmem:[#allocation2 + $0x290] sm:$0xf] %vm600_vm0, %v3078_v1  ;;  %v10316_v44 = vpop.f32.mrb[6].mxu1  ;;  %v6494_v7 = vrot.slane %v6467_v25, %v10281_v55  ;;  %v6423_v57 = vmax.f32 %v5955_v39, 0.0  ;;  %v10362_v1 = vld [vmem:[#allocation2 + $0x4c0] sm:$0xff] }
 0x3a5   : > { %v3087_v31 = vrot.slane %v3076_v23, 4  ;;  %6218 = vmatprep.subr.bf16.mxu1 %v7583_v24  ;;  %6181 = vmatprep.subr.bf16.mxu0 %v7653_v0  ;;  %v10325_v0 = vpop.f32.mrb[7].mxu0  ;;  %v10327_v45 = vpop.f32.mrb[7].mxu1  ;;  %v7607_v24 = vcombine.high %v8146_v48, %v10225_v4  ;;  %v6353_v8 = vadd.f32 1e-08, %v10316_v44  ;;  %v10344_v4 = vmul.f32 %v6502_v38, %v10156_v63 }
 0x3a6   : > { %3533 = vrot.lane.b32.xlu1 %v7531_v42, %s8376_s13  ;;  %3531 = vrot.lane.b32.xlu0 %v10145_v60, %s8376_s13  ;;  %v10341_v47 = vmul.f32 %v6494_v7, %v10154_v5  ;;  %v6468_v59 = vmul.f32 %v10218_v61, %v6374_v43  ;;  %v6378_v5 = vmul.f32 108.0, %v8091_v52  ;;  %v7631_v63 = vcombine.high %v10260_v40, %v10302_v33  ;;  %s6968_s13 = scalar_lea.sflag [#allocation10], %s8608_s15 }
 0x3a7   : > { %v3093_v46 = vsel %vm636_vm2, %v3087_v31, %v3088_v54  ;;  %6165 = vmatmul.mubr.bf16.vlgmr.msra.gmra.mrb[12].mxu1 %v9188_v22  ;;  %v3082_v14 = vpop.permute.xlu1 %3081  ;;  %v6425_v12 = vmax.f32 %v10316_v44, 0.0  ;;  %8094 = vrcp.f32 %v6353_v8  ;;  %v7700_v39 = vcombine.low %v10307_v16, %v10279_v11  ;;  %v7537_v16 = vld [vmem:[%s8843_s1 + $0x74] sm:$0xf] }
 0x3a8   : > { %v10335_v53 = vsel %vm687_vm4, %v3076_v23, %v3093_v46  ;;  %v3080_v35 = vpop.permute.xlu0 %3079  ;;  %6219 = vmatpush1.bf16.msra.mxu1 %v7582_v9  ;;  %6182 = vmatpush1.bf16.msra.mxu0 %v7652_v27  ;;  %v3090_v58 = vrot.slane %v3082_v14, 4  ;;  %3108 = vst.msk [vmem:[#allocation2 + $0x2f0] sm:$0xf] %vm600_vm0, %v3082_v14  ;;  %v10350_v9 = vld [vmem:[#allocation2 + $0x520] sm:$0xff]  ;;  %v6352_v27 = vadd.f32 1e-08, %v10325_v0  ;;  %v6498_v23 = vrot.slane %v6468_v59, %v10281_v55 }
 0x3a9   : > { %v3089_v42 = vrot.slane %v3080_v35, 4  ;;  %6220 = vmatprep.subr.bf16.mxu1 %v7607_v24  ;;  %6183 = vmatprep.subr.bf16.mxu0 %v7677_v37  ;;  %v6470_v25 = vmul.f32 %v10249_v34, %v6378_v5  ;;  %v7725_v44 = vcombine.high %v10362_v1, %v10350_v9  ;;  %v7630_v43 = vcombine.low %v10260_v40, %v10302_v33  ;;  %v7539_v59 = vld [vmem:[%s8843_s1 + $0x5c] sm:$0xf] }
 0x3aa   : > { %3573 = vrot.lane.b32.xlu1 %v7533_v10, %s8377_s14  ;;  %3571 = vrot.lane.b32.xlu0 %v10173_v20, %s8377_s14  ;;  %8096 = vrcp.f32 %v6352_v27  ;;  %v10387_v28 = vmul.f32 %v6498_v23, %v10168_v17  ;;  %v6424_v11 = vmax.f32 %v10325_v0, 0.0  ;;  %v6354_v40 = vadd.f32 1e-08, %v10327_v45 }
 0x3ab   : > { %v3095_v37 = vsel %vm636_vm2, %v3089_v42, %v3090_v58  ;;  %7919 = vmatprep.mubr.msk.bf16.mxu1 %vm5754_vm1, %v10238_v3  ;;  %v3086_v54 = vpop.permute.xlu1 %3085  ;;  %v10395_v46 = vmin.f32 %v6425_v12, 1.0  ;;  %v6426_v48 = vmax.f32 %v10327_v45, 0.0 }
 0x3ac   : > { %v3096_v26 = vsel %vm687_vm4, %v3080_v35, %v3095_v37  ;;  %v3084_v31 = vpop.permute.xlu0 %3083  ;;  %6221 = vmatpush1.bf16.msra.mxu1 %v7606_v41  ;;  %6184 = vmatpush1.bf16.msra.mxu0 %v7676_v36  ;;  %v3092_v7 = vrot.slane %v3086_v54, 4  ;;  %3110 = vst.msk [vmem:[#allocation2 + $0x350] sm:$0xf] %vm600_vm0, %v3086_v54  ;;  %v10379_v41 = vmin.f32 %v6423_v57, 1.0  ;;  %v6506_v36 = vrot.slane %v6470_v25, %v10281_v55  ;;  %v3977_v57 = vld [vmem:[#allocation2 + $0x580] sm:$0xff]  ;;  %v8093_v27 = vpop.eup %8092 }
 0x3ad   : > { %v3091_v38 = vrot.slane %v3084_v31, 4  ;;  %6222 = vmatprep.subr.bf16.mxu1 %v7631_v63  ;;  %6185 = vmatprep.subr.bf16.mxu0 %v7701_v21  ;;  %v7655_v21 = vcombine.high %v10335_v53, %v3096_v26  ;;  %v10402_v8 = vmin.f32 %v6424_v11, 1.0  ;;  %8098 = vrcp.f32 %v6354_v40  ;;  %v4013_v63 = vld [vmem:[#allocation2 + $0x6a0] sm:$0xff] }
 0x3ae   : > { %3577 = vrot.lane.b32.xlu1 %v7535_v6, %s8377_s14  ;;  %3575 = vrot.lane.b32.xlu0 %v10382_v15, %s8377_s14  ;;  %v10400_v0 = vmul.f32 %v6506_v36, %v10170_v18  ;;  %v10405_v45 = vmin.f32 %v6426_v48, 1.0  ;;  %v7654_v18 = vcombine.low %v10335_v53, %v3096_v26  ;;  %v7724_v35 = vcombine.low %v10362_v1, %v10350_v9  ;;  %v10420_v1 = vld [vmem:[#allocation2 + $0x760] sm:$0xff] }
 0x3af   : > { %v3097_v33 = vsel %vm636_vm2, %v3091_v38, %v3092_v7  ;;  %v3126_v10 = vpop.permute.xlu1 %3125  ;;  %v6811_v58 = vcombine.low %v10379_v41, %v10402_v8  ;;  %v7749_v5 = vcombine.high %v3977_v57, %v3989_v51  ;;  %v7748_v9 = vcombine.low %v3977_v57, %v3989_v51 }
 0x3b0   : > { %v3098_v24 = vsel %vm687_vm4, %v3084_v31, %v3097_v33  ;;  %v3124_v17 = vpop.permute.xlu0 %3123  ;;  %6223 = vmatpush1.bf16.msra.mxu1 %v7630_v43  ;;  %6186 = vmatpush1.bf16.msra.mxu0 %v7700_v39  ;;  %v3136_v52 = vrot.slane %v3126_v10, 4  ;;  %3154 = vst.msk [vmem:[#allocation2 + $0x3b0] sm:$0xf] %vm600_vm0, %v3126_v10  ;;  %v6812_v12 = vcombine.low %v10395_v46, %v10405_v45  ;;  %v4025_v43 = vld [vmem:[#allocation2 + $0x700] sm:$0xff]  ;;  %v6380_v36 = vmul.f32 108.0, %v8093_v27 }
 0x3b1   : > { %v3135_v14 = vrot.slane %v3124_v17, 4  ;;  %6224 = vmatprep.subr.bf16.mxu1 %v7655_v21  ;;  %6187 = vmatprep.subr.bf16.mxu0 %v7725_v44  ;;  %v6833_v23 = vrot.slane %v6811_v58, %v10269_v49  ;;  %v8095_v25 = vpop.eup %8094  ;;  %v4001_v44 = vld [vmem:[#allocation2 + $0x640] sm:$0xff]  ;;  %v7797_v48 = vcombine.high %v4025_v43, %v10420_v1  ;;  %v7543_v27 = vld [vmem:[%s8843_s1 + $0x74] sm:$0xf] }
 0x3b2   : > { %3581 = vrot.lane.b32.xlu1 %v7537_v16, %s8377_s14  ;;  %3579 = vrot.lane.b32.xlu0 %v10145_v60, %s8377_s14  ;;  %v7772_v38 = vcombine.low %v4001_v44, %v4013_v63  ;;  %v6384_v11 = vmul.f32 108.0, %v8095_v25  ;;  %v6840_v40 = vrot.slane %v6812_v12, %v10269_v49  ;;  %v7541_v16 = vld [vmem:[%s8843_s1 + $0x68] sm:$0xf]  ;;  %v7773_v21 = vcombine.high %v4001_v44, %v4013_v63  ;;  %s8207_s14 = scalar_lea.vmem %s10827_s8, 384 }
 0x3b3   : > { %v3141_v42 = vsel %vm636_vm2, %v3135_v14, %v3136_v52  ;;  %v3130_v6 = vpop.permute.xlu1 %3129  ;;  %v6471_v52 = vmul.f32 %v10379_v41, %v6380_v36  ;;  %v6849_v63 = vrot.slane %v6841_v29, %v10269_v49  ;;  %p8208_p11 = scmp.ne.s32.totalorder %s10827_s8, %s8207_s14 }
 0x3b4   : > { %v3142_v37 = vsel %vm736_vm5, %v3124_v17, %v3141_v42  ;;  %v3128_v53 = vpop.permute.xlu0 %3127  ;;  %6225 = vmatpush1.bf16.msra.mxu1 %v7654_v18  ;;  %6188 = vmatpush1.bf16.msra.mxu0 %v7724_v35  ;;  %v3138_v26 = vrot.slane %v3130_v6, 4  ;;  %3156 = vst.msk [vmem:[#allocation2 + $0x410] sm:$0xf] %vm600_vm0, %v3130_v6  ;;  %v8097_v7 = vpop.eup %8096  ;;  %v6473_v14 = vmul.f32 %v10395_v46, %v6384_v11 }
 0x3b5   : > { %v3137_v54 = vrot.slane %v3128_v53, 4  ;;  %6189 = vmatprep.subr.bf16.mxu0 %v7749_v5  ;;  %v7678_v31 = vcombine.low %v3098_v24, %v3142_v37  ;;  %v7679_v39 = vcombine.high %v3098_v24, %v3142_v37  ;;  %v6382_v24 = vmul.f32 108.0, %v8097_v7  ;;  %p8209_p0 = pnand %p8208_p11, %p10981_p13 }
 0x3b6   : > { %3621 = vrot.lane.b32.xlu1 %v7539_v59, %s8378_s23  ;;  %3619 = vrot.lane.b32.xlu0 %v10173_v20, %s8378_s23  ;;  %v6842_v58 = vcombine.low %v6833_v23, %v6840_v40  ;;  %v6510_v59 = vrot.slane %v6471_v52, %v10281_v55  ;;  %v6518_v5 = vrot.slane %v6473_v14, %v10281_v55  ;;  %v7547_v52 = vld [vmem:[%s8843_s1 + $0x68] sm:$0xf] }
 0x3b7   : > { %v3143_v33 = vsel %vm636_vm2, %v3137_v54, %v3138_v26  ;;  %6226 = vmatprep.subr.bf16.mxu1 %v7679_v39  ;;  %v3134_v17 = vpop.permute.xlu1 %3133  ;;  %v6472_v57 = vmul.f32 %v10402_v8, %v6382_v24  ;;  %v8099_v42 = vpop.eup %8098  ;;  %v7796_v26 = vcombine.low %v4025_v43, %v10420_v1  ;;  %v4061_v54 = vld [vmem:[#allocation2 + $0x820] sm:$0xff]  ;;  %v7545_v43 = vld [vmem:[%s8843_s1 + $0x5c] sm:$0xf]  ;;  %p8210_p2 = pneg %p8209_p0 }
 0x3b8   : > { %v3144_v10 = vsel %vm736_vm5, %v3128_v53, %v3143_v33  ;;  %v3132_v51 = vpop.permute.xlu0 %3131  ;;  %6190 = vmatpush1.bf16.msra.mxu0 %v7748_v9  ;;  %6227 = vmatpush1.bf16.msra.mxu1 %v7678_v31  ;;  %v3140_v18 = vrot.slane %v3134_v17, 4  ;;  %3158 = vst.msk [vmem:[#allocation2 + $0x470] sm:$0xf] %vm600_vm0, %v3134_v17  ;;  %v6386_v6 = vmul.f32 108.0, %v8099_v42  ;;  %v6856_v53 = vrot.slane %v6842_v58, %v10269_v49  ;;  %v4049_v1 = vld [vmem:[#allocation2 + $0x7c0] sm:$0xff] }
 0x3b9   : > { %v3139_v35 = vrot.slane %v3132_v51, 4  ;;  %6191 = vmatprep.subr.bf16.mxu0 %v7773_v21  ;;  %v6514_v37 = vrot.slane %v6472_v57, %v10281_v55  ;;  %v10452_v62 = vmul.f32 %v6510_v59, %v10283_v56  ;;  %v10455_v2 = vmul.f32 %v6518_v5, %v10285_v32  ;;  %v4109_v58 = vld [vmem:[#allocation2 + $0x9a0] sm:$0xff] }
 0x3ba   : > { %3625 = vrot.lane.b32.xlu1 %v7541_v16, %s8378_s23  ;;  %3623 = vrot.lane.b32.xlu0 %v10382_v15, %s8378_s23  ;;  %v6474_v32 = vmul.f32 %v10405_v45, %v6386_v6  ;;  %v6857_v7 = vcombine.low %v6849_v63, %v6856_v53  ;;  %v7821_v36 = vcombine.high %v4049_v1, %v4061_v54  ;;  %v4085_v16 = vld [vmem:[#allocation2 + $0x8e0] sm:$0xff] }
 0x3bb   : > { %v3145_v12 = vsel %vm636_vm2, %v3139_v35, %v3140_v18  ;;  %v3174_v23 = vpop.permute.xlu1 %3173  ;;  %v10462_v56 = vmul.f32 %v6514_v37, %v10297_v19  ;;  %v7820_v24 = vcombine.low %v4049_v1, %v4061_v54  ;;  %v7549_v37 = vld [vmem:[%s8843_s1 + $0x74] sm:$0xf]  ;;  %v7551_v1 = vld [vmem:[%s8843_s1 + $0x5c] sm:$0xf] }
 0x3bc   : > { %v3146_v9 = vsel %vm736_vm5, %v3132_v51, %v3145_v12  ;;  %v3172_v25 = vpop.permute.xlu0 %3171  ;;  %6192 = vmatpush1.bf16.msra.mxu0 %v7772_v38  ;;  %v3184_v29 = vrot.slane %v3174_v23, 4  ;;  %3202 = vst.msk [vmem:[#allocation2 + $0x4d0] sm:$0xf] %vm600_vm0, %v3174_v23  ;;  %v6522_v21 = vrot.slane %v6474_v32, %v10281_v55  ;;  %6959 = vst [vmem:[%s8616_s27] sm:$0xff] %v6857_v7  ;;  %v4097_v12 = vld [vmem:[#allocation2 + $0x940] sm:$0xff] }
 0x3bd   : > { %v3183_v31 = vrot.slane %v3172_v25, 4  ;;  %6193 = vmatprep.subr.bf16.mxu0 %v7797_v48  ;;  %v7702_v39 = vcombine.low %v3144_v10, %v3146_v9  ;;  %v7703_v44 = vcombine.high %v3144_v10, %v3146_v9  ;;  %v4073_v10 = vld [vmem:[#allocation2 + $0x880] sm:$0xff]  ;;  %v7869_v6 = vcombine.high %v4097_v12, %v4109_v58 }
 0x3be   : > { %3629 = vrot.lane.b32.xlu1 %v7543_v27, %s8378_s23  ;;  %3627 = vrot.lane.b32.xlu0 %v10145_v60, %s8378_s23  ;;  %v10475_v17 = vmul.f32 %v6522_v21, %v10299_v50  ;;  %v7845_v14 = vcombine.high %v4073_v10, %v4085_v16  ;;  %v7844_v50 = vcombine.low %v4073_v10, %v4085_v16  ;;  %s8384_s23 = smov [#allocation9]  }
 0x3bf   : > { %v3189_v38 = vsel %vm636_vm2, %v3183_v31, %v3184_v29  ;;  %6228 = vmatprep.subr.bf16.mxu1 %v7703_v44  ;;  %v3178_v40 = vpop.permute.xlu1 %3177  ;;  %v3811_v29 = vld [vmem:[#allocation2 + $0x50] sm:$0xff] }
 0x3c0   : > { %v3190_v11 = vsel %vm785_vm6, %v3172_v25, %v3189_v38  ;;  %v3176_v33 = vpop.permute.xlu0 %3175  ;;  %6194 = vmatpush1.bf16.msra.mxu0 %v7796_v26  ;;  %6229 = vmatpush1.bf16.msra.mxu1 %v7702_v39  ;;  %v3186_v19 = vrot.slane %v3178_v40, 4  ;;  %3204 = vst.msk [vmem:[#allocation2 + $0x530] sm:$0xf] %vm600_vm0, %v3178_v40  ;;  %v4121_v25 = vld [vmem:[#allocation2 + $0xa00] sm:$0xff]  ;;  %v3823_v31 = vld [vmem:[#allocation2 + $0xb0] sm:$0xff]  ;;  %v7868_v39 = vcombine.low %v4097_v12, %v4109_v58 }
 0x3c1   : > { %v3185_v48 = vrot.slane %v3176_v33, 4  ;;  %6195 = vmatprep.subr.bf16.mxu0 %v7821_v36  ;;  %v7893_v32 = vcombine.high %v4121_v25, %v4121_v25  ;;  %v7892_v7 = vcombine.low %v4121_v25, %v4121_v25  ;;  %v7555_v58 = vld [vmem:[%s8843_s1 + $0x74] sm:$0xf] }
 0x3c2   : > { %3669 = vrot.lane.b32.xlu1 %v7545_v43, %s8379_s3  ;;  %3667 = vrot.lane.b32.xlu0 %v10173_v20, %s8379_s3 }
 0x3c3   : > { %v3191_v51 = vsel %vm636_vm2, %v3185_v48, %v3186_v19  ;;  %v3182_v35 = vpop.permute.xlu1 %3181  ;;  %v7553_v48 = vld [vmem:[%s8843_s1 + $0x68] sm:$0xf] }
 0x3c4   : > { %v3192_v18 = vsel %vm785_vm6, %v3176_v33, %v3191_v51  ;;  %v3180_v57 = vpop.permute.xlu0 %3179  ;;  %6196 = vmatpush1.bf16.msra.mxu0 %v7820_v24  ;;  %v3188_v42 = vrot.slane %v3182_v35, 4  ;;  %3206 = vst.msk [vmem:[#allocation2 + $0x590] sm:$0xf] %vm600_vm0, %v3182_v35  ;;  %v5808_v24 = vsel %vm636_vm2, %v7892_v7, 0 }
 0x3c5   : > { %v3187_v59 = vrot.slane %v3180_v57, 4  ;;  %6197 = vmatprep.subr.bf16.mxu0 %v7845_v14  ;;  %v7726_v5 = vcombine.low %v3190_v11, %v3192_v18  ;;  %v7727_v63 = vcombine.high %v3190_v11, %v3192_v18  ;;  %v7585_v11 = vcombine.high %v3811_v29, %v3823_v31 }
 0x3c6   : > { %3673 = vrot.lane.b32.xlu1 %v7547_v52, %s8379_s3  ;;  %3671 = vrot.lane.b32.xlu0 %v10382_v15, %s8379_s3  ;;  %v7584_v14 = vcombine.low %v3811_v29, %v3823_v31 }
 0x3c7   : > { %v3193_v27 = vsel %vm636_vm2, %v3187_v59, %v3188_v42  ;;  %6230 = vmatprep.subr.bf16.mxu1 %v7727_v63  ;;  %v3222_v9 = vpop.permute.xlu1 %3221 }
 0x3c8   : > { %v3194_v53 = vsel %vm785_vm6, %v3180_v57, %v3193_v27  ;;  %v3220_v23 = vpop.permute.xlu0 %3219  ;;  %6198 = vmatpush1.bf16.msra.mxu0 %v7844_v50  ;;  %6231 = vmatpush1.bf16.msra.mxu1 %v7726_v5  ;;  %v3232_v26 = vrot.slane %v3222_v9, 4  ;;  %3250 = vst.msk [vmem:[#allocation2 + $0x5f0] sm:$0xf] %vm600_vm0, %v3222_v9 }
 0x3c9   : > { %v3231_v54 = vrot.slane %v3220_v23, 4  ;;  %6199 = vmatprep.subr.bf16.mxu0 %v7869_v6  ;;  %v7557_v6 = vld [vmem:[%s8843_s1 + $0x5c] sm:$0xf] }
 0x3ca   : > { %3677 = vrot.lane.b32.xlu1 %v7549_v37, %s8379_s3  ;;  %3675 = vrot.lane.b32.xlu0 %v10145_v60, %s8379_s3  ;;  %s8211_s3 = sshll.u32 %s8384_s23, 4  ;;  %s8212_s3 = int_to_ptr.vmem [resolvable:$false] %s8211_s3 }
 0x3cb   : > { %v3237_v44 = vsel %vm636_vm2, %v3231_v54, %v3232_v26  ;;  %v3226_v43 = vpop.permute.xlu1 %3225  ;;  %v7559_v54 = vld [vmem:[%s8843_s1 + $0x68] sm:$0xf]  ;;  %p8214_p5 = scmp.lt.s32.totalorder %s10827_s8, %s8212_s3 }
 0x3cc   : > { %v3238_v38 = vsel %vm834_vm7, %v3220_v23, %v3237_v44  ;;  %v3224_v36 = vpop.permute.xlu0 %3223  ;;  %6200 = vmatpush1.bf16.msra.mxu0 %v7868_v39  ;;  %v3234_v40 = vrot.slane %v3226_v43, 4  ;;  %3252 = vst.msk [vmem:[#allocation2 + $0x650] sm:$0xf] %vm600_vm0, %v3226_v43 }
 0x3cd   : > { %v3233_v33 = vrot.slane %v3224_v36, 4  ;;  %7916 = vmatprep.subr.msk.bf16.mxu0 %vm636_vm2, %v7893_v32  ;;  %v7750_v16 = vcombine.low %v3194_v53, %v3238_v38  ;;  %v7751_v21 = vcombine.high %v3194_v53, %v3238_v38  ;;  %v7561_v38 = vld [vmem:[%s8843_s1 + $0x74] sm:$0xf]  ;;  %s7925_s1 = sshll.u32 %s10814_s28, 4 }
 0x3ce   : > { %3717 = vrot.lane.b32.xlu1 %v7551_v1, %s8380_s6  ;;  %3715 = vrot.lane.b32.xlu0 %v10173_v20, %s8380_s6  ;;  %s10825_s12 = scalar_lea.hbm %s10949_s4, %s7925_s1 }
 0x3cf   : > { %v3239_v19 = vsel %vm636_vm2, %v3233_v33, %v3234_v40  ;;  %6232 = vmatprep.subr.bf16.mxu1 %v7751_v21  ;;  %v3230_v51 = vpop.permute.xlu1 %3229 }
 0x3d0   : > { %v3240_v10 = vsel %vm834_vm7, %v3224_v36, %v3239_v19  ;;  %v3228_v52 = vpop.permute.xlu0 %3227  ;;  %6202 = vmatpush1.bf16.msra.mxu0 %v5808_v24  ;;  %6233 = vmatpush1.bf16.msra.mxu1 %v7750_v16  ;;  %v3236_v18 = vrot.slane %v3230_v51, 4  ;;  %3254 = vst.msk [vmem:[#allocation2 + $0x6b0] sm:$0xf] %vm600_vm0, %v3230_v51  ;;  %v6611_v16 = vld [vmem:[%s10947_s2] sm:$0xff] }
 0x3d1   : > { %v3235_v35 = vrot.slane %v3228_v52, 4  ;;  %6261 = vmatprep.subr.bf16.mxu0 %v7585_v11 }
 0x3d2   : > { %3721 = vrot.lane.b32.xlu1 %v7553_v48, %s8380_s6  ;;  %3719 = vrot.lane.b32.xlu0 %v10382_v15, %s8380_s6 }
 0x3d3   : > { %v3241_v57 = vsel %vm636_vm2, %v3235_v35, %v3236_v18  ;;  %6208 = vmatmul.mubr.bf16.vlgmr.msra.gmra.mrb[16].mxu0 %v9188_v22  ;;  %v3270_v59 = vpop.permute.xlu1 %3269 }
 0x3d4   : > { %v3242_v42 = vsel %vm834_vm7, %v3228_v52, %v3241_v57  ;;  %v3268_v5 = vpop.permute.xlu0 %3267  ;;  %6262 = vmatpush1.bf16.msra.mxu0 %v7584_v14  ;;  %7921 = vmatprep.mubr.msk.bf16.mxu0 %vm5754_vm1, %v10238_v3  ;;  %v3280_v63 = vrot.slane %v3270_v59, 4  ;;  %3298 = vst.msk [vmem:[#allocation2 + $0x710] sm:$0xf] %vm600_vm0, %v3270_v59  ;;  %v10548_v59 = vpop.f32.mrb[8].mxu0 }
 0x3d5   : > { %v3279_v50 = vrot.slane %v3268_v5, 4  ;;  %v7774_v12 = vcombine.low %v3240_v10, %v3242_v42  ;;  %v7775_v27 = vcombine.high %v3240_v10, %v3242_v42 }
 0x3d6   : > { %3725 = vrot.lane.b32.xlu1 %v7555_v58, %s8380_s6  ;;  %3723 = vrot.lane.b32.xlu0 %v10145_v60, %s8380_s6  ;;  %s8213_s6 = scalar_lea.vmem %s8212_s3, 768 }
 0x3d7   : > { %v3285_v37 = vsel %vm636_vm2, %v3279_v50, %v3280_v63  ;;  %6234 = vmatprep.subr.bf16.mxu1 %v7775_v27  ;;  %v3274_v9 = vpop.permute.xlu1 %3273  ;;  %p8215_p8 = scmp.lt.s32.totalorder %s8213_s6, %s8207_s14 }
 0x3d8   : > { %v3286_v53 = vsel %vm883_vm8, %v3268_v5, %v3285_v37  ;;  %v3272_v3 = vpop.permute.xlu0 %3271  ;;  %6235 = vmatpush1.bf16.msra.mxu1 %v7774_v12  ;;  %v3282_v23 = vrot.slane %v3274_v9, 4  ;;  %3300 = vst.msk [vmem:[#allocation2 + $0x770] sm:$0xf] %vm600_vm0, %v3274_v9  ;;  %v10550_v5 = vpop.f32.mrb[8].mxu1 }
 0x3d9   : > { %v3281_v25 = vrot.slane %v3272_v3, 4  ;;  %v10554_v9 = vpop.f32.mrb[9].mxu0  ;;  %p8216_p12 = por %p8215_p8, %p8214_p5 }
 0x3da   : > { %3765 = vrot.lane.b32.xlu1 %v7557_v6, %s8381_s10  ;;  %3763 = vrot.lane.b32.xlu0 %v10173_v20, %s8381_s10 }
 0x3db   : > { %v3287_v26 = vsel %vm636_vm2, %v3281_v25, %v3282_v23  ;;  %v3278_v31 = vpop.permute.xlu1 %3277  ;;  %v6041_v23 = vpop.f32.mrb[10].mxu0  ;;  %p8217_p1 = pnand %p8216_p12, %p8210_p2 }
 0x3dc   : > { %v3288_v29 = vsel %vm883_vm8, %v3272_v3, %v3287_v26  ;;  %v3276_v39 = vpop.permute.xlu0 %3275  ;;  %v3284_v44 = vrot.slane %v3278_v31, 4  ;;  %3302 = vst.msk [vmem:[#allocation2 + $0x7d0] sm:$0xf] %vm600_vm0, %v3278_v31  ;;  %v10556_v3 = vpop.f32.mrb[9].mxu1 }
 0x3dd   : > { %v3283_v1 = vrot.slane %v3276_v39, 4  ;;  %v7798_v32 = vcombine.low %v3286_v53, %v3288_v29  ;;  %v7799_v7 = vcombine.high %v3286_v53, %v3288_v29  ;;  %v6084_v25 = vpop.f32.mrb[10].mxu1  ;;  %v6427_v29 = vmax.f32 %v6041_v23, 0.0 }
 0x3de   : > { %3769 = vrot.lane.b32.xlu1 %v7559_v54, %s8381_s10  ;;  %3767 = vrot.lane.b32.xlu0 %v10382_v15, %s8381_s10  ;;  %v6355_v54 = vadd.f32 1e-08, %v6041_v23  ;;  %v6357_v31 = vadd.f32 1e-08, %v6084_v25 }
 0x3df   : > { %v3289_v20 = vsel %vm636_vm2, %v3283_v1, %v3284_v44  ;;  %6236 = vmatprep.subr.bf16.mxu1 %v7799_v7  ;;  %v3318_v36 = vpop.permute.xlu1 %3317 }
 0x3e0   : > { %v3290_v43 = vsel %vm883_vm8, %v3276_v39, %v3289_v20  ;;  %v3316_v11 = vpop.permute.xlu0 %3315  ;;  %6237 = vmatpush1.bf16.msra.mxu1 %v7798_v32  ;;  %v3328_v40 = vrot.slane %v3318_v36, 4  ;;  %3346 = vst.msk [vmem:[#allocation2 + $0x830] sm:$0xf] %vm600_vm0, %v3318_v36  ;;  %v6043_v39 = vpop.f32.mrb[11].mxu0  ;;  %8100 = vrcp.f32 %v6355_v54  ;;  %v6429_v36 = vmax.f32 %v6084_v25, 0.0 }
 0x3e1   : > { %v3327_v33 = vrot.slane %v3316_v11, 4  ;;  %v6356_v7 = vadd.f32 1e-08, %v6043_v39  ;;  %v6428_v20 = vmax.f32 %v6043_v39, 0.0  ;;  %8102 = vrcp.f32 %v6357_v31 }
 0x3e2   : > { %3773 = vrot.lane.b32.xlu1 %v7561_v38, %s8381_s10  ;;  %3771 = vrot.lane.b32.xlu0 %v10145_v60, %s8381_s10 }
 0x3e3   : > { %v3333_v15 = vsel %vm636_vm2, %v3327_v33, %v3328_v40  ;;  %v3322_v19 = vpop.permute.xlu1 %3321  ;;  %v10561_v40 = vmin.f32 %v6427_v29, 1.0  ;;  %v10563_v33 = vmin.f32 %v6428_v20, 1.0  ;;  %8104 = vrcp.f32 %v6356_v7 }
 0x3e4   : > { %v3334_v21 = vsel %vm932_vm9, %v3316_v11, %v3333_v15  ;;  %v3320_v48 = vpop.permute.xlu0 %3319  ;;  %v3330_v24 = vrot.slane %v3322_v19, 4  ;;  %3348 = vst.msk [vmem:[#allocation2 + $0x890] sm:$0xf] %vm600_vm0, %v3322_v19  ;;  %v6086_v11 = vpop.f32.mrb[11].mxu1 }
 0x3e5   : > { %v3329_v10 = vrot.slane %v3320_v48, 4  ;;  %v7822_v51 = vcombine.low %v3290_v43, %v3334_v21  ;;  %v7823_v52 = vcombine.high %v3290_v43, %v3334_v21  ;;  %v6358_v15 = vadd.f32 1e-08, %v6086_v11 }
 0x3e6   : > { %6614 = vperm.xlu0 %8071, %v6611_v16   ;;  %v6430_v21 = vmax.f32 %v6086_v11, 0.0 }
 0x3e7   : > { %v3335_v14 = vsel %vm636_vm2, %v3329_v10, %v3330_v24  ;;  %6238 = vmatprep.subr.bf16.mxu1 %v7823_v52  ;;  %v3326_v18 = vpop.permute.xlu1 %3325  ;;  %v6858_v10 = vcombine.low %v10561_v40, %v10563_v33  ;;  %8106 = vrcp.f32 %v6358_v15 }
 0x3e8   : > { %v3336_v60 = vsel %vm932_vm9, %v3320_v48, %v3335_v14  ;;  %v3324_v35 = vpop.permute.xlu0 %3323  ;;  %6239 = vmatpush1.bf16.msra.mxu1 %v7822_v51  ;;  %v3332_v57 = vrot.slane %v3326_v18, 4  ;;  %3350 = vst.msk [vmem:[#allocation2 + $0x8f0] sm:$0xf] %vm600_vm0, %v3326_v18  ;;  %v3812_v18 = vld [vmem:[#allocation2 + $0x58] sm:$0xff] }
 0x3e9   : > { %v3331_v58 = vrot.slane %v3324_v35, 4 }
 0x3ea   : > { %v8101_v29 = vpop.eup %8100 }
 0x3eb   : > { %v3337_v42 = vsel %vm636_vm2, %v3331_v58, %v3332_v57  ;;  %v3366_v50 = vpop.permute.xlu1 %3365  ;;  %v10570_v57 = vmin.f32 %v6429_v36, 1.0  ;;  %v10572_v58 = vmin.f32 %v6430_v21, 1.0 }
 0x3ec   : > { %v3338_v63 = vsel %vm932_vm9, %v3324_v35, %v3337_v42  ;;  %v3364_v12 = vpop.permute.xlu0 %3363  ;;  %v3376_v27 = vrot.slane %v3366_v50, 4  ;;  %3394 = vst.msk [vmem:[#allocation2 + $0x950] sm:$0xf] %vm600_vm0, %v3366_v50  ;;  %v3824_v35 = vld [vmem:[#allocation2 + $0xb8] sm:$0xff] }
 0x3ed   : > { %v3375_v37 = vrot.slane %v3364_v12, 4  ;;  %v7846_v6 = vcombine.low %v3336_v60, %v3338_v63  ;;  %v7847_v53 = vcombine.high %v3336_v60, %v3338_v63  ;;  %v7586_v20 = vcombine.low %v3812_v18, %v3824_v35 }
 0x3ef   : > { %v3381_v26 = vsel %vm636_vm2, %v3375_v37, %v3376_v27  ;;  %6240 = vmatprep.subr.bf16.mxu1 %v7847_v53  ;;  %v3370_v1 = vpop.permute.xlu1 %3369  ;;  %v7587_v27 = vcombine.high %v3812_v18, %v3824_v35  ;;  %v10577_v37 = vrot.slane %v6858_v10, %v10269_v49 }
 0x3f0   : > { %v3382_v44 = vsel %vm981_vm10, %v3364_v12, %v3381_v26  ;;  %v3368_v32 = vpop.permute.xlu0 %3367  ;;  %6241 = vmatpush1.bf16.msra.mxu1 %v7846_v6  ;;  %v3378_v38 = vrot.slane %v3370_v1, 4  ;;  %3396 = vst.msk [vmem:[#allocation2 + $0x9b0] sm:$0xf] %vm600_vm0, %v3370_v1  ;;  %v6859_v6 = vcombine.low %v10570_v57, %v10572_v58 }
 0x3f1   : > { %v3377_v43 = vrot.slane %v3368_v32, 4 }
 0x3f2   : > { %v10583_v54 = vrot.slane %v6859_v6, %v10269_v49 }
 0x3f3   : > { %v3383_v16 = vsel %vm636_vm2, %v3377_v43, %v3378_v38  ;;  %v3374_v48 = vpop.permute.xlu1 %3373  ;;  %v6388_v38 = vmul.f32 108.0, %v8101_v29 }
 0x3f4   : > { %v3384_v19 = vsel %vm981_vm10, %v3368_v32, %v3383_v16  ;;  %v3372_v24 = vpop.permute.xlu0 %3371  ;;  %v3380_v51 = vrot.slane %v3374_v48, 4  ;;  %3398 = vst.msk [vmem:[#allocation2 + $0xa10] sm:$0xf] %vm600_vm0, %v3374_v48  ;;  %v6890_v43 = vcombine.low %v10577_v37, %v10583_v54 }
 0x3f5   : > { %v3379_v52 = vrot.slane %v3372_v24, 4  ;;  %v7870_v14 = vcombine.low %v3382_v44, %v3384_v19  ;;  %v7871_v60 = vcombine.high %v3382_v44, %v3384_v19  ;;  %v8103_v44 = vpop.eup %8102  ;;  %v6475_v21 = vmul.f32 %v10561_v40, %v6388_v38 }
 0x3f6   : > { %v8105_v36 = vpop.eup %8104  ;;  %v6392_v16 = vmul.f32 108.0, %v8103_v44 }
 0x3f7   : > { %v3385_v42 = vsel %vm636_vm2, %v3379_v52, %v3380_v51  ;;  %6242 = vmatprep.subr.bf16.mxu1 %v7871_v60  ;;  %v3430_v50 = vpop.permute.xlu1 %3429  ;;  %v6390_v19 = vmul.f32 108.0, %v8105_v36  ;;  %v8107_v10 = vpop.eup %8106  ;;  %v8148_v60 = vld [vmem:[#allocation6 + $0x4] ss:$8 sps:$4 sm:$0x1f]   ;;  %v6526_v18 = vrot.slane %v6475_v21, %v10281_v55 }
 0x3f8   : > { %v3386_v63 = vsel %vm981_vm10, %v3372_v24, %v3385_v42  ;;  %v3428_v12 = vpop.permute.xlu0 %3427  ;;  %6243 = vmatpush1.bf16.msra.mxu1 %v7870_v14  ;;  %v3440_v53 = vrot.slane %v3430_v50, 4  ;;  %3458 = vst.msk [vmem:[#allocation2 + $0x17c] sm:$0xf] %vm600_vm0, %v3430_v50  ;;  %v6477_v24 = vmul.f32 %v10570_v57, %v6392_v16 }
 0x3f9   : > { %v3439_v23 = vrot.slane %v3428_v12, 4  ;;  %v7895_v25 = vcombine.high %v3386_v63, %v3386_v63  ;;  %v7894_v26 = vcombine.low %v3386_v63, %v3386_v63  ;;  %v6476_v35 = vmul.f32 %v10563_v33, %v6390_v19 }
 0x3fa   : > { %v6534_v50 = vrot.slane %v6477_v24, %v10281_v55  ;;  %v10603_v6 = vmul.f32 %v6526_v18, %v10548_v59 }
 0x3fb   : > { %v3445_v31 = vsel %vm636_vm2, %v3439_v23, %v3440_v53  ;;  %7918 = vmatprep.subr.msk.bf16.mxu1 %vm636_vm2, %v7895_v25  ;;  %v5814_v39 = vsel %vm636_vm2, %v7894_v26, 0  ;;  %v3434_v32 = vpop.permute.xlu1 %3433  ;;  %v6530_v53 = vrot.slane %v6476_v35, %v10281_v55  ;;  %v3836_v25 = vld [vmem:[#allocation2 + $0x118] sm:$0xff] }
 0x3fc   : > { %v3446_v1 = vsel %vm638_vm3, %v3428_v12, %v3445_v31  ;;  %v3432_v7 = vpop.permute.xlu0 %3431  ;;  %6245 = vmatpush1.bf16.msra.mxu1 %v5814_v39  ;;  %v3442_v11 = vrot.slane %v3434_v32, 4  ;;  %3460 = vst.msk [vmem:[#allocation2 + $0x1dc] sm:$0xf] %vm600_vm0, %v3434_v32  ;;  %v6394_v12 = vmul.f32 108.0, %v8107_v10  ;;  %v10608_v26 = vmul.f32 %v6534_v50, %v10550_v5 }
 0x3fd   : > { %3457 = vst [vmem:[#allocation2 + $0x174] sm:$0xff] %v3446_v1  ;;  %v3441_v15 = vrot.slane %v3432_v7, 4  ;;  %6304 = vmatprep.subr.bf16.mxu1 %v7587_v27  ;;  %v3835_v27 = vld [vmem:[#allocation2 + $0x110] sm:$0xff] }
 0x3fe   : > { %v6478_v29 = vmul.f32 %v10572_v58, %v6394_v12 }
 0x3ff   : > { %v3447_v48 = vsel %vm636_vm2, %v3441_v15, %v3442_v11  ;;  %6251 = vmatmul.mubr.bf16.vlgmr.msra.gmra.mrb[16].mxu1 %v9188_v22  ;;  %v3438_v52 = vpop.permute.xlu1 %3437 }
 0x400   : > { %v3448_v51 = vsel %vm638_vm3, %v3432_v7, %v3447_v48  ;;  %v3436_v14 = vpop.permute.xlu0 %3435  ;;  %6305 = vmatpush1.bf16.msra.mxu1 %v7586_v20  ;;  %7923 = vmatprep.mubr.msk.bf16.mxu1 %vm5754_vm1, %v8148_v60  ;;  %v3444_v42 = vrot.slane %v3438_v52, 4  ;;  %3462 = vst.msk [vmem:[#allocation2 + $0x23c] sm:$0xf] %vm600_vm0, %v3438_v52  ;;  %v10613_v7 = vmul.f32 %v6530_v53, %v10554_v9 }
 0x401   : > { %3459 = vst [vmem:[#allocation2 + $0x1d4] sm:$0xff] %v3448_v51  ;;  %v3443_v63 = vrot.slane %v3436_v14, 4  ;;  %v6538_v15 = vrot.slane %v6478_v29, %v10281_v55 }
 0x403   : > { %v3449_v23 = vsel %vm636_vm2, %v3443_v63, %v3444_v42  ;;  %v3478_v39 = vpop.permute.xlu1 %3477  ;;  %v10620_v9 = vmul.f32 %v6538_v15, %v10556_v3 }
 0x404   : > { %v3450_v31 = vsel %vm638_vm3, %v3436_v14, %v3449_v23  ;;  %v3476_v44 = vpop.permute.xlu0 %3475  ;;  %v3847_v1 = vld [vmem:[#allocation2 + $0x170] sm:$0xff]  ;;  %v3848_v32 = vld [vmem:[#allocation2 + $0x178] sm:$0xff]  ;;  %v3488_v59 = vrot.slane %v3478_v39, 4  ;;  %3506 = vst.msk [vmem:[#allocation2 + $0x29c] sm:$0xf] %vm600_vm0, %v3478_v39 }
 0x405   : > { %3461 = vst [vmem:[#allocation2 + $0x234] sm:$0xff] %v3450_v31  ;;  %v3487_v20 = vrot.slane %v3476_v44, 4  ;;  %v7608_v38 = vcombine.low %v3835_v27, %v3847_v1  ;;  %v7609_v36 = vcombine.high %v3835_v27, %v3847_v1  ;;  %v7610_v5 = vcombine.low %v3836_v25, %v3848_v32 }
 0x406   : > { %v7611_v11 = vcombine.high %v3836_v25, %v3848_v32 }
 0x407   : > { %v3493_v16 = vsel %vm636_vm2, %v3487_v20, %v3488_v59  ;;  %6263 = vmatprep.subr.bf16.mxu0 %v7609_v36  ;;  %v3482_v19 = vpop.permute.xlu1 %3481 }
 0x408   : > { %v3494_v21 = vsel %vm687_vm4, %v3476_v44, %v3493_v16  ;;  %v3480_v48 = vpop.permute.xlu0 %3479  ;;  %6264 = vmatpush1.bf16.msra.mxu0 %v7608_v38  ;;  %6306 = vmatprep.subr.bf16.mxu1 %v7611_v11  ;;  %v3490_v24 = vrot.slane %v3482_v19, 4  ;;  %3508 = vst.msk [vmem:[#allocation2 + $0x2fc] sm:$0xf] %vm600_vm0, %v3482_v19  ;;  %v3859_v18 = vld [vmem:[#allocation2 + $0x1d0] sm:$0xff]  ;;  %v3860_v27 = vld [vmem:[#allocation2 + $0x1d8] sm:$0xff] }
 0x409   : > { %3505 = vst [vmem:[#allocation2 + $0x294] sm:$0xff] %v3494_v21  ;;  %v3489_v10 = vrot.slane %v3480_v48, 4  ;;  %6307 = vmatpush1.bf16.msra.mxu1 %v7610_v5 }
 0x40b   : > { %v3495_v51 = vsel %vm636_vm2, %v3489_v10, %v3490_v24  ;;  %v3486_v14 = vpop.permute.xlu1 %3485 }
 0x40c   : > { %v3496_v52 = vsel %vm687_vm4, %v3480_v48, %v3495_v51  ;;  %v3484_v60 = vpop.permute.xlu0 %3483  ;;  %v3871_v35 = vld [vmem:[#allocation2 + $0x230] sm:$0xff]  ;;  %v3872_v42 = vld [vmem:[#allocation2 + $0x238] sm:$0xff]  ;;  %v3492_v63 = vrot.slane %v3486_v14, 4  ;;  %3510 = vst.msk [vmem:[#allocation2 + $0x35c] sm:$0xf] %vm600_vm0, %v3486_v14 }
 0x40d   : > { %3507 = vst [vmem:[#allocation2 + $0x2f4] sm:$0xff] %v3496_v52  ;;  %v3491_v3 = vrot.slane %v3484_v60, 4  ;;  %v7632_v50 = vcombine.low %v3859_v18, %v3871_v35  ;;  %v7633_v12 = vcombine.high %v3859_v18, %v3871_v35  ;;  %v7634_v53 = vcombine.low %v3860_v27, %v3872_v42 }
 0x40e   : > { %v7635_v23 = vcombine.high %v3860_v27, %v3872_v42 }
 0x40f   : > { %v3497_v25 = vsel %vm636_vm2, %v3491_v3, %v3492_v63  ;;  %6265 = vmatprep.subr.bf16.mxu0 %v7633_v12 }
 0x410   : > { %v3498_v29 = vsel %vm687_vm4, %v3484_v60, %v3497_v25  ;;  %6308 = vmatprep.subr.bf16.mxu1 %v7635_v23  ;;  %v3526_v31 = vpop.permute.xlu1 %3525  ;;  %v3524_v39 = vpop.permute.xlu0 %3523  ;;  %6266 = vmatpush1.bf16.msra.mxu0 %v7632_v50  ;;  %v3883_v36 = vld [vmem:[#allocation2 + $0x290] sm:$0xff]  ;;  %v3884_v48 = vld [vmem:[#allocation2 + $0x298] sm:$0xff] }
 0x411   : > { %3509 = vst [vmem:[#allocation2 + $0x354] sm:$0xff] %v3498_v29  ;;  %v3536_v44 = vrot.slane %v3526_v31, 4  ;;  %3554 = vst.msk [vmem:[#allocation2 + $0x3bc] sm:$0xf] %vm600_vm0, %v3526_v31  ;;  %v3535_v1 = vrot.slane %v3524_v39, 4  ;;  %6309 = vmatpush1.bf16.msra.mxu1 %v7634_v53 }
 0x413   : > { %v3541_v32 = vsel %vm636_vm2, %v3535_v1, %v3536_v44 }
 0x414   : > { %v3542_v59 = vsel %vm736_vm5, %v3524_v39, %v3541_v32  ;;  %v3530_v20 = vpop.permute.xlu1 %3529  ;;  %v3528_v38 = vpop.permute.xlu0 %3527  ;;  %v3895_v5 = vld [vmem:[#allocation2 + $0x2f0] sm:$0xff]  ;;  %v3896_v11 = vld [vmem:[#allocation2 + $0x2f8] sm:$0xff] }
 0x415   : > { %3553 = vst [vmem:[#allocation2 + $0x3b4] sm:$0xff] %v3542_v59  ;;  %v3538_v15 = vrot.slane %v3530_v20, 4  ;;  %3556 = vst.msk [vmem:[#allocation2 + $0x41c] sm:$0xf] %vm600_vm0, %v3530_v20  ;;  %v3537_v16 = vrot.slane %v3528_v38, 4  ;;  %v7656_v21 = vcombine.low %v3883_v36, %v3895_v5  ;;  %v7657_v19 = vcombine.high %v3883_v36, %v3895_v5 }
 0x416   : > { %v7658_v24 = vcombine.low %v3884_v48, %v3896_v11  ;;  %v7659_v10 = vcombine.high %v3884_v48, %v3896_v11 }
 0x417   : > { %v3543_v51 = vsel %vm636_vm2, %v3537_v16, %v3538_v15  ;;  %6267 = vmatprep.subr.bf16.mxu0 %v7657_v19 }
 0x418   : > { %v3544_v52 = vsel %vm736_vm5, %v3528_v38, %v3543_v51  ;;  %6310 = vmatprep.subr.bf16.mxu1 %v7659_v10  ;;  %v3534_v14 = vpop.permute.xlu1 %3533  ;;  %v3532_v60 = vpop.permute.xlu0 %3531  ;;  %6268 = vmatpush1.bf16.msra.mxu0 %v7656_v21  ;;  %v3907_v12 = vld [vmem:[#allocation2 + $0x350] sm:$0xff]  ;;  %v3908_v39 = vld [vmem:[#allocation2 + $0x358] sm:$0xff] }
 0x419   : > { %3555 = vst [vmem:[#allocation2 + $0x414] sm:$0xff] %v3544_v52  ;;  %v3540_v18 = vrot.slane %v3534_v14, 4  ;;  %3558 = vst.msk [vmem:[#allocation2 + $0x47c] sm:$0xf] %vm600_vm0, %v3534_v14  ;;  %v3539_v35 = vrot.slane %v3532_v60, 4  ;;  %6311 = vmatpush1.bf16.msra.mxu1 %v7658_v24 }
 0x41b   : > { %v3545_v42 = vsel %vm636_vm2, %v3539_v35, %v3540_v18 }
 0x41c   : > { %v3546_v63 = vsel %vm736_vm5, %v3532_v60, %v3545_v42  ;;  %v3574_v3 = vpop.permute.xlu1 %3573  ;;  %v3572_v50 = vpop.permute.xlu0 %3571  ;;  %v3919_v27 = vld [vmem:[#allocation2 + $0x3b0] sm:$0xff]  ;;  %v3920_v53 = vld [vmem:[#allocation2 + $0x3b8] sm:$0xff] }
 0x41d   : > { %3557 = vst [vmem:[#allocation2 + $0x474] sm:$0xff] %v3546_v63  ;;  %v3584_v23 = vrot.slane %v3574_v3, 4  ;;  %3602 = vst.msk [vmem:[#allocation2 + $0x4dc] sm:$0xf] %vm600_vm0, %v3574_v3  ;;  %v3583_v25 = vrot.slane %v3572_v50, 4  ;;  %v7680_v29 = vcombine.low %v3907_v12, %v3919_v27  ;;  %v7681_v31 = vcombine.high %v3907_v12, %v3919_v27 }
 0x41e   : > { %v7682_v44 = vcombine.low %v3908_v39, %v3920_v53  ;;  %v7683_v1 = vcombine.high %v3908_v39, %v3920_v53 }
 0x41f   : > { %v3589_v32 = vsel %vm636_vm2, %v3583_v25, %v3584_v23  ;;  %6269 = vmatprep.subr.bf16.mxu0 %v7681_v31 }
 0x420   : > { %v3590_v59 = vsel %vm785_vm6, %v3572_v50, %v3589_v32  ;;  %6312 = vmatprep.subr.bf16.mxu1 %v7683_v1  ;;  %v3578_v20 = vpop.permute.xlu1 %3577  ;;  %v3576_v38 = vpop.permute.xlu0 %3575  ;;  %6270 = vmatpush1.bf16.msra.mxu0 %v7680_v29  ;;  %v3931_v19 = vld [vmem:[#allocation2 + $0x410] sm:$0xff]  ;;  %v3932_v60 = vld [vmem:[#allocation2 + $0x418] sm:$0xff] }
 0x421   : > { %3601 = vst [vmem:[#allocation2 + $0x4d4] sm:$0xff] %v3590_v59  ;;  %v3586_v36 = vrot.slane %v3578_v20, 4  ;;  %3604 = vst.msk [vmem:[#allocation2 + $0x53c] sm:$0xf] %vm600_vm0, %v3578_v20  ;;  %v3585_v5 = vrot.slane %v3576_v38, 4  ;;  %6313 = vmatpush1.bf16.msra.mxu1 %v7682_v44 }
 0x423   : > { %v3591_v11 = vsel %vm636_vm2, %v3585_v5, %v3586_v36 }
 0x424   : > { %v3592_v15 = vsel %vm785_vm6, %v3576_v38, %v3591_v11  ;;  %v3582_v16 = vpop.permute.xlu1 %3581  ;;  %v3580_v21 = vpop.permute.xlu0 %3579  ;;  %v3943_v48 = vld [vmem:[#allocation2 + $0x470] sm:$0xff]  ;;  %v3944_v24 = vld [vmem:[#allocation2 + $0x478] sm:$0xff] }
 0x425   : > { %3603 = vst [vmem:[#allocation2 + $0x534] sm:$0xff] %v3592_v15  ;;  %v3588_v10 = vrot.slane %v3582_v16, 4  ;;  %3606 = vst.msk [vmem:[#allocation2 + $0x59c] sm:$0xf] %vm600_vm0, %v3582_v16  ;;  %v3587_v51 = vrot.slane %v3580_v21, 4  ;;  %v7704_v52 = vcombine.low %v3931_v19, %v3943_v48  ;;  %v7705_v14 = vcombine.high %v3931_v19, %v3943_v48 }
 0x426   : > { %v7706_v18 = vcombine.low %v3932_v60, %v3944_v24  ;;  %v7707_v35 = vcombine.high %v3932_v60, %v3944_v24 }
 0x427   : > { %v3593_v42 = vsel %vm636_vm2, %v3587_v51, %v3588_v10  ;;  %6271 = vmatprep.subr.bf16.mxu0 %v7705_v14 }
 0x428   : > { %v3594_v63 = vsel %vm785_vm6, %v3580_v21, %v3593_v42  ;;  %6314 = vmatprep.subr.bf16.mxu1 %v7707_v35  ;;  %v3622_v3 = vpop.permute.xlu1 %3621  ;;  %v3620_v50 = vpop.permute.xlu0 %3619  ;;  %6272 = vmatpush1.bf16.msra.mxu0 %v7704_v52  ;;  %v3955_v31 = vld [vmem:[#allocation2 + $0x4d0] sm:$0xff]  ;;  %v3956_v38 = vld [vmem:[#allocation2 + $0x4d8] sm:$0xff] }
 0x429   : > { %3605 = vst [vmem:[#allocation2 + $0x594] sm:$0xff] %v3594_v63  ;;  %v3632_v12 = vrot.slane %v3622_v3, 4  ;;  %3650 = vst.msk [vmem:[#allocation2 + $0x5fc] sm:$0xf] %vm600_vm0, %v3622_v3  ;;  %v3631_v27 = vrot.slane %v3620_v50, 4  ;;  %6315 = vmatpush1.bf16.msra.mxu1 %v7706_v18 }
 0x42b   : > { %v3637_v53 = vsel %vm636_vm2, %v3631_v27, %v3632_v12 }
 0x42c   : > { %v3638_v23 = vsel %vm834_vm7, %v3620_v50, %v3637_v53  ;;  %v3626_v25 = vpop.permute.xlu1 %3625  ;;  %v3624_v29 = vpop.permute.xlu0 %3623  ;;  %v3967_v39 = vld [vmem:[#allocation2 + $0x530] sm:$0xff]  ;;  %v3968_v44 = vld [vmem:[#allocation2 + $0x538] sm:$0xff] }
 0x42d   : > { %3649 = vst [vmem:[#allocation2 + $0x5f4] sm:$0xff] %v3638_v23  ;;  %v3634_v1 = vrot.slane %v3626_v25, 4  ;;  %3652 = vst.msk [vmem:[#allocation2 + $0x65c] sm:$0xf] %vm600_vm0, %v3626_v25  ;;  %v3633_v32 = vrot.slane %v3624_v29, 4  ;;  %v7728_v59 = vcombine.low %v3955_v31, %v3967_v39  ;;  %v7729_v20 = vcombine.high %v3955_v31, %v3967_v39 }
 0x42e   : > { %v7730_v36 = vcombine.low %v3956_v38, %v3968_v44  ;;  %v7731_v5 = vcombine.high %v3956_v38, %v3968_v44 }
 0x42f   : > { %v3639_v11 = vsel %vm636_vm2, %v3633_v32, %v3634_v1  ;;  %6273 = vmatprep.subr.bf16.mxu0 %v7729_v20 }
 0x430   : > { %v3640_v15 = vsel %vm834_vm7, %v3624_v29, %v3639_v11  ;;  %6316 = vmatprep.subr.bf16.mxu1 %v7731_v5  ;;  %v3630_v16 = vpop.permute.xlu1 %3629  ;;  %v3628_v21 = vpop.permute.xlu0 %3627  ;;  %6274 = vmatpush1.bf16.msra.mxu0 %v7728_v59  ;;  %v3979_v14 = vld [vmem:[#allocation2 + $0x590] sm:$0xff]  ;;  %v3980_v50 = vld [vmem:[#allocation2 + $0x598] sm:$0xff] }
 0x431   : > { %3651 = vst [vmem:[#allocation2 + $0x654] sm:$0xff] %v3640_v15  ;;  %v3636_v19 = vrot.slane %v3630_v16, 4  ;;  %3654 = vst.msk [vmem:[#allocation2 + $0x6bc] sm:$0xf] %vm600_vm0, %v3630_v16  ;;  %v3635_v48 = vrot.slane %v3628_v21, 4  ;;  %6317 = vmatpush1.bf16.msra.mxu1 %v7730_v36 }
 0x433   : > { %v3641_v24 = vsel %vm636_vm2, %v3635_v48, %v3636_v19 }
 0x434   : > { %v3642_v10 = vsel %vm834_vm7, %v3628_v21, %v3641_v24  ;;  %v3670_v51 = vpop.permute.xlu1 %3669  ;;  %v3668_v52 = vpop.permute.xlu0 %3667  ;;  %v3991_v60 = vld [vmem:[#allocation2 + $0x5f0] sm:$0xff]  ;;  %v3992_v18 = vld [vmem:[#allocation2 + $0x5f8] sm:$0xff] }
 0x435   : > { %3653 = vst [vmem:[#allocation2 + $0x6b4] sm:$0xff] %v3642_v10  ;;  %v3680_v35 = vrot.slane %v3670_v51, 4  ;;  %3698 = vst.msk [vmem:[#allocation2 + $0x71c] sm:$0xf] %vm600_vm0, %v3670_v51  ;;  %v3679_v42 = vrot.slane %v3668_v52, 4  ;;  %v7752_v63 = vcombine.low %v3979_v14, %v3991_v60  ;;  %v7753_v3 = vcombine.high %v3979_v14, %v3991_v60 }
 0x436   : > { %v7754_v12 = vcombine.low %v3980_v50, %v3992_v18  ;;  %v7755_v27 = vcombine.high %v3980_v50, %v3992_v18 }
 0x437   : > { %v3685_v53 = vsel %vm636_vm2, %v3679_v42, %v3680_v35  ;;  %6275 = vmatprep.subr.bf16.mxu0 %v7753_v3 }
 0x438   : > { %v3686_v23 = vsel %vm883_vm8, %v3668_v52, %v3685_v53  ;;  %6318 = vmatprep.subr.bf16.mxu1 %v7755_v27  ;;  %v3674_v25 = vpop.permute.xlu1 %3673  ;;  %v3672_v29 = vpop.permute.xlu0 %3671  ;;  %6276 = vmatpush1.bf16.msra.mxu0 %v7752_v63  ;;  %v4003_v20 = vld [vmem:[#allocation2 + $0x650] sm:$0xff]  ;;  %v4004_v21 = vld [vmem:[#allocation2 + $0x658] sm:$0xff] }
 0x439   : > { %3697 = vst [vmem:[#allocation2 + $0x714] sm:$0xff] %v3686_v23  ;;  %v3682_v31 = vrot.slane %v3674_v25, 4  ;;  %3700 = vst.msk [vmem:[#allocation2 + $0x77c] sm:$0xf] %vm600_vm0, %v3674_v25  ;;  %v3681_v39 = vrot.slane %v3672_v29, 4  ;;  %6319 = vmatpush1.bf16.msra.mxu1 %v7754_v12 }
 0x43b   : > { %v3687_v44 = vsel %vm636_vm2, %v3681_v39, %v3682_v31 }
 0x43c   : > { %v3688_v1 = vsel %vm883_vm8, %v3672_v29, %v3687_v44  ;;  %v3678_v32 = vpop.permute.xlu1 %3677  ;;  %v3676_v59 = vpop.permute.xlu0 %3675  ;;  %v4015_v38 = vld [vmem:[#allocation2 + $0x6b0] sm:$0xff]  ;;  %v4016_v36 = vld [vmem:[#allocation2 + $0x6b8] sm:$0xff] }
 0x43d   : > { %3699 = vst [vmem:[#allocation2 + $0x774] sm:$0xff] %v3688_v1  ;;  %v3684_v5 = vrot.slane %v3678_v32, 4  ;;  %3702 = vst.msk [vmem:[#allocation2 + $0x7dc] sm:$0xf] %vm600_vm0, %v3678_v32  ;;  %v3683_v11 = vrot.slane %v3676_v59, 4  ;;  %v7776_v15 = vcombine.low %v4003_v20, %v4015_v38  ;;  %v7777_v16 = vcombine.high %v4003_v20, %v4015_v38 }
 0x43e   : > { %v7778_v19 = vcombine.low %v4004_v21, %v4016_v36  ;;  %v7779_v48 = vcombine.high %v4004_v21, %v4016_v36 }
 0x43f   : > { %v3689_v24 = vsel %vm636_vm2, %v3683_v11, %v3684_v5  ;;  %6277 = vmatprep.subr.bf16.mxu0 %v7777_v16 }
 0x440   : > { %v3690_v10 = vsel %vm883_vm8, %v3676_v59, %v3689_v24  ;;  %6320 = vmatprep.subr.bf16.mxu1 %v7779_v48  ;;  %v3718_v51 = vpop.permute.xlu1 %3717  ;;  %v3716_v52 = vpop.permute.xlu0 %3715  ;;  %6278 = vmatpush1.bf16.msra.mxu0 %v7776_v15  ;;  %v4027_v3 = vld [vmem:[#allocation2 + $0x710] sm:$0xff]  ;;  %v4028_v29 = vld [vmem:[#allocation2 + $0x718] sm:$0xff] }
 0x441   : > { %3701 = vst [vmem:[#allocation2 + $0x7d4] sm:$0xff] %v3690_v10  ;;  %v3728_v14 = vrot.slane %v3718_v51, 4  ;;  %3746 = vst.msk [vmem:[#allocation2 + $0x83c] sm:$0xf] %vm600_vm0, %v3718_v51  ;;  %v3727_v60 = vrot.slane %v3716_v52, 4  ;;  %6321 = vmatpush1.bf16.msra.mxu1 %v7778_v19 }
 0x443   : > { %v3733_v18 = vsel %vm636_vm2, %v3727_v60, %v3728_v14 }
 0x444   : > { %v3734_v35 = vsel %vm932_vm9, %v3716_v52, %v3733_v18  ;;  %v3722_v42 = vpop.permute.xlu1 %3721  ;;  %v3720_v63 = vpop.permute.xlu0 %3719  ;;  %v4039_v50 = vld [vmem:[#allocation2 + $0x770] sm:$0xff]  ;;  %v4040_v12 = vld [vmem:[#allocation2 + $0x778] sm:$0xff] }
 0x445   : > { %3745 = vst [vmem:[#allocation2 + $0x834] sm:$0xff] %v3734_v35  ;;  %v3730_v27 = vrot.slane %v3722_v42, 4  ;;  %3748 = vst.msk [vmem:[#allocation2 + $0x89c] sm:$0xf] %vm600_vm0, %v3722_v42  ;;  %v3729_v53 = vrot.slane %v3720_v63, 4  ;;  %v7800_v23 = vcombine.low %v4027_v3, %v4039_v50  ;;  %v7801_v25 = vcombine.high %v4027_v3, %v4039_v50 }
 0x446   : > { %v7802_v31 = vcombine.low %v4028_v29, %v4040_v12  ;;  %v7803_v39 = vcombine.high %v4028_v29, %v4040_v12 }
 0x447   : > { %v3735_v44 = vsel %vm636_vm2, %v3729_v53, %v3730_v27  ;;  %6279 = vmatprep.subr.bf16.mxu0 %v7801_v25 }
 0x448   : > { %v3736_v1 = vsel %vm932_vm9, %v3720_v63, %v3735_v44  ;;  %6322 = vmatprep.subr.bf16.mxu1 %v7803_v39  ;;  %v3726_v32 = vpop.permute.xlu1 %3725  ;;  %v3724_v59 = vpop.permute.xlu0 %3723  ;;  %6280 = vmatpush1.bf16.msra.mxu0 %v7800_v23  ;;  %v4051_v16 = vld [vmem:[#allocation2 + $0x7d0] sm:$0xff]  ;;  %v4052_v52 = vld [vmem:[#allocation2 + $0x7d8] sm:$0xff] }
 0x449   : > { %3747 = vst [vmem:[#allocation2 + $0x894] sm:$0xff] %v3736_v1  ;;  %v3732_v20 = vrot.slane %v3726_v32, 4  ;;  %3750 = vst.msk [vmem:[#allocation2 + $0x8fc] sm:$0xf] %vm600_vm0, %v3726_v32  ;;  %v3731_v38 = vrot.slane %v3724_v59, 4  ;;  %6323 = vmatpush1.bf16.msra.mxu1 %v7802_v31 }
 0x44b   : > { %v3737_v36 = vsel %vm636_vm2, %v3731_v38, %v3732_v20 }
 0x44c   : > { %v3738_v5 = vsel %vm932_vm9, %v3724_v59, %v3737_v36  ;;  %v3766_v11 = vpop.permute.xlu1 %3765  ;;  %v3764_v15 = vpop.permute.xlu0 %3763  ;;  %v4063_v21 = vld [vmem:[#allocation2 + $0x830] sm:$0xff]  ;;  %v4064_v19 = vld [vmem:[#allocation2 + $0x838] sm:$0xff] }
 0x44d   : > { %3749 = vst [vmem:[#allocation2 + $0x8f4] sm:$0xff] %v3738_v5  ;;  %v3776_v48 = vrot.slane %v3766_v11, 4  ;;  %3794 = vst.msk [vmem:[#allocation2 + $0x95c] sm:$0xf] %vm600_vm0, %v3766_v11  ;;  %v3775_v24 = vrot.slane %v3764_v15, 4  ;;  %v7824_v10 = vcombine.low %v4051_v16, %v4063_v21  ;;  %v7825_v51 = vcombine.high %v4051_v16, %v4063_v21 }
 0x44e   : > { %v7826_v14 = vcombine.low %v4052_v52, %v4064_v19  ;;  %v7827_v60 = vcombine.high %v4052_v52, %v4064_v19 }
 0x44f   : > { %v3781_v18 = vsel %vm636_vm2, %v3775_v24, %v3776_v48  ;;  %6281 = vmatprep.subr.bf16.mxu0 %v7825_v51 }
 0x450   : > { %v3782_v35 = vsel %vm981_vm10, %v3764_v15, %v3781_v18  ;;  %6324 = vmatprep.subr.bf16.mxu1 %v7827_v60  ;;  %v3770_v42 = vpop.permute.xlu1 %3769  ;;  %v3768_v63 = vpop.permute.xlu0 %3767  ;;  %6282 = vmatpush1.bf16.msra.mxu0 %v7824_v10  ;;  %v4075_v25 = vld [vmem:[#allocation2 + $0x890] sm:$0xff]  ;;  %v4076_v59 = vld [vmem:[#allocation2 + $0x898] sm:$0xff] }
 0x451   : > { %3793 = vst [vmem:[#allocation2 + $0x954] sm:$0xff] %v3782_v35  ;;  %v3778_v3 = vrot.slane %v3770_v42, 4  ;;  %3796 = vst.msk [vmem:[#allocation2 + $0x9bc] sm:$0xf] %vm600_vm0, %v3770_v42  ;;  %v3777_v50 = vrot.slane %v3768_v63, 4  ;;  %6325 = vmatpush1.bf16.msra.mxu1 %v7826_v14  ;;  %v6644_v42 = vrot.slane %v10215_v13, %v10281_v55 }
 0x453   : > { %v3783_v12 = vsel %vm636_vm2, %v3777_v50, %v3778_v3  ;;  %v6648_v3 = vrot.slane %v10218_v61, %v10281_v55  ;;  %v6656_v50 = vrot.slane %v10249_v34, %v10281_v55  ;;  %v6664_v61 = vrot.slane %v10402_v8, %v10281_v55 }
 0x454   : > { %v3784_v27 = vsel %vm981_vm10, %v3768_v63, %v3783_v12  ;;  %v3774_v53 = vpop.permute.xlu1 %3773  ;;  %v3772_v23 = vpop.permute.xlu0 %3771  ;;  %v4087_v29 = vld [vmem:[#allocation2 + $0x8f0] sm:$0xff]  ;;  %v4088_v31 = vld [vmem:[#allocation2 + $0x8f8] sm:$0xff]  ;;  %v6652_v63 = vrot.slane %v10247_v30, %v10281_v55  ;;  %v6660_v12 = vrot.slane %v10379_v41, %v10281_v55  ;;  %v6668_v30 = vrot.slane %v10395_v46, %v10281_v55 }
 0x455   : > { %3795 = vst [vmem:[#allocation2 + $0x9b4] sm:$0xff] %v3784_v27  ;;  %v3780_v39 = vrot.slane %v3774_v53, 4  ;;  %3798 = vst.msk [vmem:[#allocation2 + $0xa1c] sm:$0xf] %vm600_vm0, %v3774_v53  ;;  %v3779_v44 = vrot.slane %v3772_v23, 4  ;;  %v7848_v1 = vcombine.low %v4075_v25, %v4087_v29  ;;  %v7849_v32 = vcombine.high %v4075_v25, %v4087_v29 }
 0x456   : > { %v7850_v20 = vcombine.low %v4076_v59, %v4088_v31  ;;  %v7851_v38 = vcombine.high %v4076_v59, %v4088_v31  ;;  %v6672_v34 = vrot.slane %v10405_v45, %v10281_v55  ;;  %v6676_v53 = vrot.slane %v10561_v40, %v10281_v55 }
 0x457   : > { %v3785_v36 = vsel %vm636_vm2, %v3779_v44, %v3780_v39  ;;  %6283 = vmatprep.subr.bf16.mxu0 %v7849_v32  ;;  %v6680_v25 = vrot.slane %v10563_v33, %v10281_v55  ;;  %v6688_v46 = vrot.slane %v10572_v58, %v10281_v55 }
 0x458   : > { %v3786_v5 = vsel %vm981_vm10, %v3772_v23, %v3785_v36  ;;  %6326 = vmatprep.subr.bf16.mxu1 %v7851_v38  ;;  %6284 = vmatpush1.bf16.msra.mxu0 %v7848_v1  ;;  %v4099_v11 = vld [vmem:[#allocation2 + $0x950] sm:$0xff]  ;;  %v4100_v16 = vld [vmem:[#allocation2 + $0x958] sm:$0xff]  ;;  %v6684_v23 = vrot.slane %v10570_v57, %v10281_v55 }
 0x459   : > { %3797 = vst [vmem:[#allocation2 + $0xa14] sm:$0xff] %v3786_v5  ;;  %6327 = vmatpush1.bf16.msra.mxu1 %v7850_v20 }
 0x45c   : > { %v4111_v15 = vld [vmem:[#allocation2 + $0x9b0] sm:$0xff]  ;;  %v4112_v21 = vld [vmem:[#allocation2 + $0x9b8] sm:$0xff] }
 0x45d   : > { %v7872_v19 = vcombine.low %v4099_v11, %v4111_v15  ;;  %v7873_v48 = vcombine.high %v4099_v11, %v4111_v15  ;;  %v7874_v24 = vcombine.low %v4100_v16, %v4112_v21  ;;  %v7875_v10 = vcombine.high %v4100_v16, %v4112_v21 }
 0x45f   : > { %6285 = vmatprep.subr.bf16.mxu0 %v7873_v48  ;;  %6328 = vmatprep.subr.bf16.mxu1 %v7875_v10 }
 0x460   : > { %6286 = vmatpush1.bf16.msra.mxu0 %v7872_v19  ;;  %6329 = vmatpush1.bf16.msra.mxu1 %v7874_v24  ;;  %v4123_v51 = vld [vmem:[#allocation2 + $0xa10] sm:$0xff]  ;;  %v4124_v52 = vld [vmem:[#allocation2 + $0xa18] sm:$0xff] }
 0x461   : > { %v7897_v14 = vcombine.high %v4123_v51, %v4123_v51  ;;  %v7899_v60 = vcombine.high %v4124_v52, %v4124_v52  ;;  %v7896_v18 = vcombine.low %v4123_v51, %v4123_v51  ;;  %v7898_v35 = vcombine.low %v4124_v52, %v4124_v52 }
 0x463   : > { %7920 = vmatprep.subr.msk.bf16.mxu0 %vm636_vm2, %v7897_v14  ;;  %7922 = vmatprep.subr.msk.bf16.mxu1 %vm636_vm2, %v7899_v60  ;;  %v5820_v27 = vsel %vm636_vm2, %v7896_v18, 0  ;;  %v5826_v13 = vsel %vm636_vm2, %v7898_v35, 0 }
 0x464   : > { %6288 = vmatpush1.bf16.msra.mxu0 %v5820_v27  ;;  %6331 = vmatpush1.bf16.msra.mxu1 %v5826_v13 }
 0x465   : > { %v10702_v41 = vpop.permute.xlu0 %6614 }
 0x466   : > { %v6617_v8 = vadd.f32 %v10702_v41, %v10341_v47  ;;  %v6618_v45 = vadd.f32 %v10702_v41, %v10387_v28  ;;  %v6619_v29 = vadd.f32 %v10702_v41, %v10344_v4  ;;  %v6620_v40 = vadd.f32 %v10702_v41, %v10400_v0 }
 0x467   : > { %v6621_v33 = vadd.f32 %v10702_v41, %v10452_v62  ;;  %v6622_v57 = vadd.f32 %v10702_v41, %v10462_v56  ;;  %v6623_v47 = vadd.f32 %v10702_v41, %v10455_v2  ;;  %v6624_v28 = vadd.f32 %v10702_v41, %v10475_v17  ;;  %6294 = vmatmul.mubr.bf16.vlgmr.msra.gmra.mrb[20].mxu0 %v9188_v22 }
 0x468   : > { %v6737_v4 = vmul.f32 %v6644_v42, %v6617_v8  ;;  %v6738_v58 = vmul.f32 %v6648_v3, %v6618_v45  ;;  %v6739_v0 = vmul.f32 %v6652_v63, %v6619_v29  ;;  %v6740_v31 = vmul.f32 %v6656_v50, %v6620_v40  ;;  %6337 = vmatmul.mubr.bf16.vlgmr.msra.gmra.mrb[20].mxu1 %v9188_v22 }
 0x469   : > { %v6741_v62 = vmul.f32 %v6660_v12, %v6621_v33  ;;  %v6742_v56 = vmul.f32 %v6664_v61, %v6622_v57  ;;  %v6743_v39 = vmul.f32 %v6668_v30, %v6623_v47  ;;  %v6744_v44 = vmul.f32 %v6672_v34, %v6624_v28 }
 0x46a   : > { %6761 = vst [vmem:[%s8614_s30] sm:$0xff] %v6737_v4  ;;  %6762 = vst [vmem:[%s8614_s30 + $0x8] sm:$0xff] %v6738_v58  ;;  %v6625_v2 = vadd.f32 %v10702_v41, %v10603_v6  ;;  %v6627_v17 = vadd.f32 %v10702_v41, %v10608_v26  ;;  %v6626_v22 = vadd.f32 %v10702_v41, %v10613_v7 }
 0x46b   : > { %6763 = vst [vmem:[%s8614_s30 + $0x10] sm:$0xff] %v6739_v0  ;;  %6764 = vst [vmem:[%s8614_s30 + $0x18] sm:$0xff] %v6740_v31  ;;  %v6628_v1 = vadd.f32 %v10702_v41, %v10620_v9  ;;  %v6898_v33 = vrot.slane %v6890_v43, %v10269_v49 }
 0x46c   : > { %6765 = vst [vmem:[%s8614_s30 + $0x20] sm:$0xff] %v6741_v62  ;;  %6766 = vst [vmem:[%s8614_s30 + $0x28] sm:$0xff] %v6742_v56  ;;  %v6745_v32 = vmul.f32 %v6676_v53, %v6625_v2  ;;  %v6747_v59 = vmul.f32 %v6684_v23, %v6627_v17  ;;  %v6746_v20 = vmul.f32 %v6680_v25, %v6626_v22 }
 0x46d   : > { %6767 = vst [vmem:[%s8614_s30 + $0x30] sm:$0xff] %v6743_v39  ;;  %6768 = vst [vmem:[%s8614_s30 + $0x38] sm:$0xff] %v6744_v44  ;;  %v6748_v38 = vmul.f32 %v6688_v46, %v6628_v1 }
 0x46e   : > { %6769 = vst [vmem:[%s8614_s30 + $0x40] sm:$0xff] %v6745_v32  ;;  %6771 = vst [vmem:[%s8614_s30 + $0x50] sm:$0xff] %v6747_v59  ;;  %v6123_v6 = vpop.f32.mrb[12].mxu0 }
 0x46f   : > { %6770 = vst [vmem:[%s8614_s30 + $0x48] sm:$0xff] %v6746_v20  ;;  %6772 = vst [vmem:[%s8614_s30 + $0x58] sm:$0xff] %v6748_v38  ;;  %v6125_v26 = vpop.f32.mrb[13].mxu0 }
 0x470   : > { %v6127_v36 = vpop.f32.mrb[14].mxu0 }
 0x471   : > { %v6359_v5 = vadd.f32 1e-08, %v6127_v36  ;;  %v6431_v7 = vmax.f32 %v6127_v36, 0.0  ;;  %v6129_v11 = vpop.f32.mrb[15].mxu0 }
 0x472   : > { %v6360_v15 = vadd.f32 1e-08, %v6129_v11  ;;  %v6432_v9 = vmax.f32 %v6129_v11, 0.0 }
 0x473   : > { %8108 = vrcp.f32 %v6359_v5  ;;  %v6455_v16 = vmin.f32 %v6431_v7, 1.0 }
 0x474   : > { %8110 = vrcp.f32 %v6360_v15  ;;  %v6456_v21 = vmin.f32 %v6432_v9, 1.0 }
 0x475   : > { %v6692_v25 = vrot.slane %v6455_v16, %v10281_v55 }
 0x476   : > { %v6860_v19 = vcombine.low %v6455_v16, %v6456_v21  ;;  %v6696_v45 = vrot.slane %v6456_v21, %v10281_v55 }
 0x478   : > { %v6882_v61 = vrot.slane %v6860_v19, %v10269_v49 }
 0x47a   : > { %v6166_v48 = vpop.f32.mrb[12].mxu1 }
 0x47b   : > { %v6168_v24 = vpop.f32.mrb[13].mxu1 }
 0x47c   : > { %v6170_v10 = vpop.f32.mrb[14].mxu1 }
 0x47d   : > { %v8109_v51 = vpop.eup %8108  ;;  %v6361_v52 = vadd.f32 1e-08, %v6170_v10  ;;  %v6433_v14 = vmax.f32 %v6170_v10, 0.0  ;;  %v6172_v60 = vpop.f32.mrb[15].mxu1 }
 0x47e   : > { %v8111_v18 = vpop.eup %8110  ;;  %v6396_v35 = vmul.f32 108.0, %v8109_v51  ;;  %v6362_v42 = vadd.f32 1e-08, %v6172_v60  ;;  %v6434_v63 = vmax.f32 %v6172_v60, 0.0 }
 0x47f   : > { %8112 = vrcp.f32 %v6361_v52  ;;  %v6457_v3 = vmin.f32 %v6433_v14, 1.0  ;;  %v6398_v50 = vmul.f32 108.0, %v8111_v18 }
 0x480   : > { %v6479_v12 = vmul.f32 %v6455_v16, %v6396_v35  ;;  %8114 = vrcp.f32 %v6362_v42  ;;  %v6458_v27 = vmin.f32 %v6434_v63, 1.0 }
 0x481   : > { %v6480_v13 = vmul.f32 %v6456_v21, %v6398_v50  ;;  %v6700_v2 = vrot.slane %v6457_v3, %v10281_v55 }
 0x482   : > { %v6542_v30 = vrot.slane %v6479_v12, %v10281_v55  ;;  %v6861_v34 = vcombine.low %v6457_v3, %v6458_v27  ;;  %v6704_v22 = vrot.slane %v6458_v27, %v10281_v55 }
 0x483   : > { %v6546_v53 = vrot.slane %v6480_v13, %v10281_v55 }
 0x484   : > { %v6599_v23 = vmul.f32 %v6542_v30, %v6123_v6  ;;  %v6889_v46 = vrot.slane %v6861_v34, %v10269_v49 }
 0x485   : > { %v6600_v8 = vmul.f32 %v6546_v53, %v6125_v26 }
 0x486   : > { %v6629_v29 = vadd.f32 %v10702_v41, %v6599_v23  ;;  %v6891_v40 = vcombine.low %v6882_v61, %v6889_v46 }
 0x487   : > { %v6630_v57 = vadd.f32 %v10702_v41, %v6600_v8 }
 0x488   : > { %v6749_v47 = vmul.f32 %v6692_v25, %v6629_v29  ;;  %v6905_v28 = vrot.slane %v6891_v40, %v10269_v49 }
 0x489   : > { %v8113_v4 = vpop.eup %8112  ;;  %v6750_v58 = vmul.f32 %v6696_v45, %v6630_v57 }
 0x48a   : > { %v8115_v0 = vpop.eup %8114  ;;  %6773 = vst [vmem:[%s8614_s30 + $0x60] sm:$0xff] %v6749_v47  ;;  %v6400_v31 = vmul.f32 108.0, %v8113_v4  ;;  %v6906_v62 = vcombine.low %v6898_v33, %v6905_v28 }
 0x48b   : > { %6774 = vst [vmem:[%s8614_s30 + $0x68] sm:$0xff] %v6750_v58  ;;  %v6402_v56 = vmul.f32 108.0, %v8115_v0 }
 0x48c   : > { %v6481_v39 = vmul.f32 %v6457_v3, %v6400_v31  ;;  %6960 = vst [vmem:[%s8616_s27 + $0x8] sm:$0xff] %v6906_v62 }
 0x48d   : > { %v6482_v44 = vmul.f32 %v6458_v27, %v6402_v56 }
 0x48e   : > { %v6550_v37 = vrot.slane %v6481_v39, %v10281_v55 }
 0x48f   : > { %v6554_v54 = vrot.slane %v6482_v44, %v10281_v55 }
 0x490   : > { %v6601_v43 = vmul.f32 %v6550_v37, %v6166_v48 }
 0x491   : > { %v6602_v17 = vmul.f32 %v6554_v54, %v6168_v24 }
 0x492   : > { %v6631_v1 = vadd.f32 %v10702_v41, %v6601_v43 }
 0x493   : > { %v6632_v32 = vadd.f32 %v10702_v41, %v6602_v17 }
 0x494   : > { %v6751_v59 = vmul.f32 %v6700_v2, %v6631_v1 }
 0x495   : > { %v6752_v20 = vmul.f32 %v6704_v22, %v6632_v32 }
 0x496   : > { %6775 = vst [vmem:[%s8614_s30 + $0x70] sm:$0xff] %v6751_v59 }
 0x497   : > { %6776 = vst [vmem:[%s8614_s30 + $0x78] sm:$0xff] %v6752_v20 }
 0x4a6   : > { %v6209_v38 = vpop.f32.mrb[16].mxu0 }
 0x4a7   : > { %v6211_v6 = vpop.f32.mrb[17].mxu0 }
 0x4a8   : > { %v6213_v26 = vpop.f32.mrb[18].mxu0 }
 0x4a9   : > { %v6363_v36 = vadd.f32 1e-08, %v6213_v26  ;;  %v6435_v5 = vmax.f32 %v6213_v26, 0.0  ;;  %v6215_v7 = vpop.f32.mrb[19].mxu0 }
 0x4aa   : > { %v6364_v11 = vadd.f32 1e-08, %v6215_v7  ;;  %v6436_v15 = vmax.f32 %v6215_v7, 0.0 }
 0x4ab   : > { %8116 = vrcp.f32 %v6363_v36  ;;  %v6459_v9 = vmin.f32 %v6435_v5, 1.0 }
 0x4ac   : > { %8118 = vrcp.f32 %v6364_v11  ;;  %v6460_v16 = vmin.f32 %v6436_v15, 1.0 }
 0x4ad   : > { %v6708_v35 = vrot.slane %v6459_v9, %v10281_v55 }
 0x4ae   : > { %v6907_v21 = vcombine.low %v6459_v9, %v6460_v16  ;;  %v6712_v63 = vrot.slane %v6460_v16, %v10281_v55 }
 0x4b0   : > { %v6917_v29 = vrot.slane %v6907_v21, %v10269_v49 }
 0x4b5   : > { %v8117_v19 = vpop.eup %8116 }
 0x4b6   : > { %v8119_v48 = vpop.eup %8118  ;;  %v6404_v24 = vmul.f32 108.0, %v8117_v19 }
 0x4b7   : > { %v6406_v10 = vmul.f32 108.0, %v8119_v48 }
 0x4b8   : > { %v6483_v51 = vmul.f32 %v6459_v9, %v6404_v24 }
 0x4b9   : > { %v6484_v52 = vmul.f32 %v6460_v16, %v6406_v10 }
 0x4ba   : > { %v6558_v14 = vrot.slane %v6483_v51, %v10281_v55 }
 0x4bb   : > { %v6562_v60 = vrot.slane %v6484_v52, %v10281_v55 }
 0x4bc   : > { %v6603_v18 = vmul.f32 %v6558_v14, %v6209_v38 }
 0x4bd   : > { %v6604_v42 = vmul.f32 %v6562_v60, %v6211_v6 }
 0x4be   : > { %v6633_v3 = vadd.f32 %v10702_v41, %v6603_v18 }
 0x4bf   : > { %v6634_v50 = vadd.f32 %v10702_v41, %v6604_v42 }
 0x4c0   : > { %v6753_v12 = vmul.f32 %v6708_v35, %v6633_v3 }
 0x4c1   : > { %v6754_v27 = vmul.f32 %v6712_v63, %v6634_v50 }
 0x4c2   : > { %6777 = vst [vmem:[%s8614_s30 + $0x80] sm:$0xff] %v6753_v12 }
 0x4c3   : > { %6778 = vst [vmem:[%s8614_s30 + $0x88] sm:$0xff] %v6754_v27 }
 0x4d2   : > { %v6252_v13 = vpop.f32.mrb[16].mxu1 }
 0x4d3   : > { %v6254_v30 = vpop.f32.mrb[17].mxu1 }
 0x4d4   : > { %v6256_v61 = vpop.f32.mrb[18].mxu1 }
 0x4d5   : > { %v6365_v34 = vadd.f32 1e-08, %v6256_v61  ;;  %v6437_v53 = vmax.f32 %v6256_v61, 0.0  ;;  %v6258_v23 = vpop.f32.mrb[19].mxu1 }
 0x4d6   : > { %v6366_v25 = vadd.f32 1e-08, %v6258_v23  ;;  %v6438_v46 = vmax.f32 %v6258_v23, 0.0 }
 0x4d7   : > { %8120 = vrcp.f32 %v6365_v34  ;;  %v6461_v8 = vmin.f32 %v6437_v53, 1.0 }
 0x4d8   : > { %8122 = vrcp.f32 %v6366_v25  ;;  %v6462_v45 = vmin.f32 %v6438_v46, 1.0 }
 0x4d9   : > { %v6716_v44 = vrot.slane %v6461_v8, %v10281_v55 }
 0x4da   : > { %v6908_v40 = vcombine.low %v6461_v8, %v6462_v45  ;;  %v6720_v54 = vrot.slane %v6462_v45, %v10281_v55 }
 0x4dc   : > { %v6924_v33 = vrot.slane %v6908_v40, %v10269_v49 }
 0x4de   : > { %v6939_v57 = vcombine.low %v6917_v29, %v6924_v33 }
 0x4e0   : > { %v6947_v27 = vrot.slane %v6939_v57, %v10269_v49 }
 0x4e1   : > { %v8121_v47 = vpop.eup %8120 }
 0x4e2   : > { %v8123_v28 = vpop.eup %8122  ;;  %v6408_v4 = vmul.f32 108.0, %v8121_v47 }
 0x4e3   : > { %v6410_v58 = vmul.f32 108.0, %v8123_v28 }
 0x4e4   : > { %v6485_v0 = vmul.f32 %v6461_v8, %v6408_v4 }
 0x4e5   : > { %v6486_v31 = vmul.f32 %v6462_v45, %v6410_v58 }
 0x4e6   : > { %v6566_v62 = vrot.slane %v6485_v0, %v10281_v55 }
 0x4e7   : > { %v6570_v56 = vrot.slane %v6486_v31, %v10281_v55 }
 0x4e8   : > { %v6605_v39 = vmul.f32 %v6566_v62, %v6252_v13 }
 0x4e9   : > { %v6606_v37 = vmul.f32 %v6570_v56, %v6254_v30 }
 0x4ea   : > { %v6635_v43 = vadd.f32 %v10702_v41, %v6605_v39 }
 0x4eb   : > { %v6636_v2 = vadd.f32 %v10702_v41, %v6606_v37 }
 0x4ec   : > { %v6755_v17 = vmul.f32 %v6716_v44, %v6635_v43 }
 0x4ed   : > { %v6756_v22 = vmul.f32 %v6720_v54, %v6636_v2 }
 0x4ee   : > { %6779 = vst [vmem:[%s8614_s30 + $0x90] sm:$0xff] %v6755_v17 }
 0x4ef   : > { %6780 = vst [vmem:[%s8614_s30 + $0x98] sm:$0xff] %v6756_v22 }
 0x53a   : > { %v6295_v1 = vpop.f32.mrb[20].mxu0 }
 0x53b   : > { %v10792_v32 = vpop.f32.mrb[20].mxu1  ;;  %v10794_v59 = vpop.f32.mrb[21].mxu0 }
 0x53c   : > { %v10796_v20 = vpop.f32.mrb[21].mxu1  ;;  %v6299_v38 = vpop.f32.mrb[22].mxu0 }
 0x53d   : > { %v6367_v6 = vadd.f32 1e-08, %v6299_v38  ;;  %v6439_v26 = vmax.f32 %v6299_v38, 0.0  ;;  %v6342_v36 = vpop.f32.mrb[22].mxu1  ;;  %v6301_v5 = vpop.f32.mrb[23].mxu0 }
 0x53e   : > { %v6369_v7 = vadd.f32 1e-08, %v6342_v36  ;;  %v6441_v11 = vmax.f32 %v6342_v36, 0.0  ;;  %v6368_v15 = vadd.f32 1e-08, %v6301_v5  ;;  %v6440_v9 = vmax.f32 %v6301_v5, 0.0 }
 0x53f   : > { %8124 = vrcp.f32 %v6367_v6  ;;  %v10798_v16 = vmin.f32 %v6439_v26, 1.0  ;;  %v6344_v21 = vpop.f32.mrb[23].mxu1 }
 0x540   : > { %8126 = vrcp.f32 %v6369_v7  ;;  %v10800_v19 = vmin.f32 %v6440_v9, 1.0  ;;  %v6370_v48 = vadd.f32 1e-08, %v6344_v21  ;;  %v10802_v24 = vmin.f32 %v6441_v11, 1.0 }
 0x541   : > { %8128 = vrcp.f32 %v6368_v15  ;;  %v6442_v10 = vmax.f32 %v6344_v21, 0.0 }
 0x542   : > { %v6909_v51 = vcombine.low %v10798_v16, %v10800_v19  ;;  %8130 = vrcp.f32 %v6370_v48 }
 0x543   : > { %v10807_v52 = vmin.f32 %v6442_v10, 1.0 }
 0x544   : > { %v6931_v14 = vrot.slane %v6909_v51, %v10269_v49 }
 0x545   : > { %v6910_v60 = vcombine.low %v10802_v24, %v10807_v52 }
 0x547   : > { %v6938_v18 = vrot.slane %v6910_v60, %v10269_v49 }
 0x549   : > { %v8125_v35 = vpop.eup %8124  ;;  %v6940_v42 = vcombine.low %v6931_v14, %v6938_v18 }
 0x54a   : > { %v8127_v63 = vpop.eup %8126  ;;  %v6412_v3 = vmul.f32 108.0, %v8125_v35 }
 0x54b   : > { %v8129_v50 = vpop.eup %8128  ;;  %v6416_v12 = vmul.f32 108.0, %v8127_v63  ;;  %v6954_v13 = vrot.slane %v6940_v42, %v10269_v49 }
 0x54c   : > { %v8131_v30 = vpop.eup %8130  ;;  %v6487_v61 = vmul.f32 %v10798_v16, %v6412_v3  ;;  %v6414_v34 = vmul.f32 108.0, %v8129_v50 }
 0x54d   : > { %v6489_v53 = vmul.f32 %v10802_v24, %v6416_v12  ;;  %v6418_v23 = vmul.f32 108.0, %v8131_v30  ;;  %v6955_v25 = vcombine.low %v6947_v27, %v6954_v13 }
 0x54e   : > { %v6574_v49 = vrot.slane %v6487_v61, %v10281_v55  ;;  %v6488_v46 = vmul.f32 %v10800_v19, %v6414_v34 }
 0x54f   : > { %v6582_v8 = vrot.slane %v6489_v53, %v10281_v55  ;;  %v6490_v45 = vmul.f32 %v10807_v52, %v6418_v23  ;;  %6961 = vst [vmem:[%s8616_s27 + $0x10] sm:$0xff] %v6955_v25 }
 0x550   : > { %v6607_v29 = vmul.f32 %v6574_v49, %v6295_v1  ;;  %v6578_v40 = vrot.slane %v6488_v46, %v10281_v55 }
 0x551   : > { %8220 = shalt.err (!%p8217_p1)
}
 0x552   : > { %s8221_s27 = scalar_lea.hbm %s10825_s12, 384  ;;  %s8225_s11 = scalar_lea.hbm %s10949_s4, 1536 }
 0x553   : > { %p8222_p6 = scmp.ne.s32.totalorder %s10825_s12, %s8221_s27  ;;  %p8226_p4 = scmp.lt.u32.totalorder %s10825_s12, %s10949_s4 }
 0x554   : > { %p8227_p7 = scmp.lt.u32.totalorder %s8225_s11, %s8221_s27  ;;  %p8229_p11 = scmp.lt.u32.totalorder %s8221_s27, %s10825_s12 }
 0x555   : > { %p8223_p10 = pnand %p8222_p6, %p10981_p13 }
 0x556   : > { %p8228_p9 = por %p8227_p7, %p8226_p4 }
 0x557   : > { %p8224_p3 = pneg %p8223_p10 }
 0x558   : > { %p8230_p0 = por %p8229_p11, %p8228_p9 }
 0x55a   : > { %p8231_p2 = pnand %p8230_p0, %p8224_p3 }
 0x55c   : > { %8234 = shalt.err (!%p8231_p2)
}
 0x55d   : > { %7945 = dma.vmem_to_hbm [thread:$0]  (%p10981_p13), %s10827_s8, 384, %s10825_s12, %s6968_s13   ;;  %v6609_v33 = vmul.f32 %v6582_v8, %v10792_v32  ;;  %v6586_v57 = vrot.slane %v6490_v45, %v10281_v55  ;;  %v6637_v47 = vadd.f32 %v10702_v41, %v6607_v29  ;;  %v6724_v28 = vrot.slane %v10798_v16, %v10281_v55 }
 0x55e   : > { %v6608_v4 = vmul.f32 %v6578_v40, %v10794_v59  ;;  %v6732_v0 = vrot.slane %v10802_v24, %v10281_v55  ;;  %v6728_v39 = vrot.slane %v10800_v19, %v10281_v55  ;;  %s7924_s1 = sshll.u32 %s10814_s28, 7  ;;  %s6984_s8 = sshll.u32 %s8614_s30, 4  ;;  %v6736_v54 = vrot.slane %v10807_v52, %v10281_v55  ;;  %s10882_s8 = int_to_ptr.vmem [resolvable:$true] %s6984_s8 }
 0x55f   : > { %v6639_v58 = vadd.f32 %v10702_v41, %v6609_v33  ;;  %v6610_v31 = vmul.f32 %v6586_v57, %v10796_v20  ;;  %v6757_v62 = vmul.f32 %v6724_v28, %v6637_v47  ;;  %s10982_s12 = sld [smem:[#allocation21_spill]]  ;;  %s6963_s28 = scalar_lea.sflag [#allocation5], %s8608_s15 }
 0x560   : > { %v6638_v56 = vadd.f32 %v10702_v41, %v6608_v4  ;;  %s8235_s14 = scalar_lea.vmem %s10882_s8, 3072  ;;  %s8385_s23 = smov [#allocation8]  }
 0x561   : > { %v6759_v44 = vmul.f32 %v6732_v0, %v6639_v58  ;;  %v6640_v37 = vadd.f32 %v10702_v41, %v6610_v31  ;;  %6781 = vst [vmem:[%s8614_s30 + $0xa0] sm:$0xff] %v6757_v62  ;;  %p8236_p5 = scmp.ne.s32.totalorder %s10882_s8, %s8235_s14  ;;  %s8239_s3 = sshll.u32 %s8385_s23, 4  ;;  %s8240_s3 = int_to_ptr.vmem [resolvable:$false] %s8239_s3 }
 0x562   : > { %v6758_v43 = vmul.f32 %v6728_v39, %v6638_v56  ;;  %s8241_s6 = scalar_lea.vmem %s8240_s3, 6144  ;;  %p8242_p1 = scmp.lt.s32.totalorder %s10882_s8, %s8240_s3 }
 0x563   : > { %6783 = vst [vmem:[%s8614_s30 + $0xb0] sm:$0xff] %v6759_v44  ;;  %v6760_v2 = vmul.f32 %v6736_v54, %v6640_v37  ;;  %p8237_p8 = pnand %p8236_p5, %p10981_p13  ;;  %p8243_p6 = scmp.lt.s32.totalorder %s8241_s6, %s8235_s14 }
 0x564   : > { %6782 = vst [vmem:[%s8614_s30 + $0xa8] sm:$0xff] %v6758_v43 }
 0x565   : > { %s10880_s13 = scalar_lea.hbm %s10982_s12, %s7924_s1  ;;  %6784 = vst [vmem:[%s8614_s30 + $0xb8] sm:$0xff] %v6760_v2  ;;  %p8238_p12 = pneg %p8237_p8 }
 0x566   : > { %p8244_p10 = por %p8243_p6, %p8242_p1 }
 0x568   : > { %p8245_p3 = pnand %p8244_p10, %p8238_p12 }
 0x56a   : > { %8248 = shalt.err (!%p8245_p3)
}
 0x56b   : > { %s8249_s15 = scalar_lea.hbm %s10880_s13, 3072  ;;  %s8253_s10 = scalar_lea.hbm %s10982_s12, 12288 }
 0x56c   : > { %p8250_p4 = scmp.ne.s32.totalorder %s10880_s13, %s8249_s15  ;;  %p8254_p11 = scmp.lt.u32.totalorder %s10880_s13, %s10982_s12 }
 0x56d   : > { %p8255_p0 = scmp.lt.u32.totalorder %s8253_s10, %s8249_s15  ;;  %p8257_p5 = scmp.lt.u32.totalorder %s8249_s15, %s10880_s13 }
 0x56e   : > { %p8251_p7 = pnand %p8250_p4, %p10981_p13 }
 0x56f   : > { %p8256_p2 = por %p8255_p0, %p8254_p11 }
 0x570   : > { %p8252_p9 = pneg %p8251_p7 }
 0x571   : > { %p8258_p8 = por %p8257_p5, %p8256_p2 }
 0x573   : > { %p8259_p12 = pnand %p8258_p8, %p8252_p9 }
 0x575   : > { %8262 = shalt.err (!%p8259_p12)
}
 0x576   : > { %7944 = dma.vmem_to_hbm [thread:$0]  (%p10981_p13), %s10882_s8, 3072, %s10880_s13, %s6963_s28  }
 0x577 PF: > { %s10983_s7 = sld [smem:[#allocation15_spill]]  ;;  %s10984_s26 = sld [smem:[#allocation17_spill]] }
 0x578   : > { %p7966_p1 = scmp.ge.s32.totalorder %s8365_s25, 2 }
 0x57d   : > { %s7012_s1 = sand.u32 1, %s10983_s7   ;;  %p10985_p6 = scmp.ne.s32.totalorder %s10984_s26, 0 }
 0x57e   : > { %s7013_s21 = scalar_lea.sflag [#allocation5], %s7012_s1 }
 0x57f   : > { %p7957_p10 = pnand %p7966_p1, %p10985_p6 }
 0x581   : > { %8316 = dma.done.wait (!%p7957_p10), %s7013_s21, 3072  }
 0x582   : > { %8318 = vsyncadd (!%p7957_p10), %s7013_s21, 4294964224  ;;  %s7022_s22 = scalar_lea.sflag [#allocation10], %s7012_s1 }
 0x583   : > { %8320 = dma.done.wait (!%p7957_p10), %s7022_s22, 384  }
 0x584   : > { %8322 = vsyncadd (!%p7957_p10), %s7022_s22, 4294966912  ;;  %s25_s25 = sadd.s32 1, %s8365_s25   ;;  %s10986_s21 = sld [smem:[#allocation16_spill]] }
 0x585   : > { %p22_p3 = scmp.ge.s32.totalorder %s25_s25, 6   ;;  %s10987_s23 = sld [smem:[#allocation18_spill]] }
 0x586   : > { %s10988_s5 = sld [smem:[#allocation19_spill]]  ;;  %s10989_s15 = smov %s8329_s16 }
 0x587   : > { %s10990_s16 = smov %s8333_s17  ;;  %s10991_s17 = smov %s8548_s18 }
 0x588   : > { %s10992_s18 = smov %s8341_s19  ;;  %s10993_s19 = smov %s8345_s20 }
 0x589   : > { %s10994_s20 = smov %s8543_s29  ;;  %s10995_s22 = smov %s8361_s24 }
 0x58a   :  { %24 = sbr.rel (!%p22_p3) target bundleno = 15 (0xf), region = 110 }
 0x58c   : > { %s10996_s24 = smov %s10988_s5 }
 0x591   :  { %7027 = vsyncpa [#allocation4], 1 }
 0x592   :  { %7029 = vsyncpa [#allocation4 + $0x1], 1 }
 0x593   :  { %7030 = vsyncpa [#allocation7], 1 }
 0x594   :  { %7031 = vsyncpa [#allocation5], 1 }
 0x595   :  { %7033 = vsyncpa [#allocation5 + $0x1], 1 }
 0x596   :  { %7034 = vsyncpa [#allocation10], 1 }
 0x597   :  { %7036 = vsyncpa [#allocation10 + $0x1], 1 }

</bundles_post_ra>
